<compile_context>
chip_gen: v7x
topology: tpu7x:2x2x1
jax: 0.10.0
libtpu: 0.0.40
codegen_flags: <defaults>
</compile_context>

<pallas_src>
import jax
import jax.numpy as jnp
from jax.experimental import pallas as pl
from jax.experimental.pallas import tpu as pltpu


# --------------------------- constants (DenseNet-121) -------------------------

GROWTH = 32
BLOCK_CONFIG = (6, 12, 24, 16)
NUM_INIT_FEATURES = 64
BN_SIZE = 4
NUM_CLASSES = 1000
BN_EPS = 1e-5


def _round_up(x, m):
    return (x + m - 1) // m * m


def _m_tiles(M):
    """Pad rows to a multiple of 16 (full bf16 sublane packing).  Whenever the
    padded M is >= 32, expose at least two M-tiles so both v7x TensorCores get
    work on the 'parallel' grid axis; cap the tile at 256 rows."""
    Mp = _round_up(M, 16)
    tm = max(16, min(256, Mp // 2)) if Mp >= 32 else Mp
    Mp = _round_up(Mp, tm)
    return Mp, tm


# ----------------------------- Pallas kernels ---------------------------------
# Single full-K / full-N block per grid step; grid is over M only ("parallel").
# MXU operands bf16, accumulation f32.

def _dense1x1_kernel(a_ref, bn1_ref, w_ref, bn2_ref, o_ref):
    # o = relu( (relu(a*s1 + h1) @ w) * s2 + h2 )
    # == norm1 -> relu1 -> conv1(1x1) -> norm2 -> relu2 of a DenseNet layer.
    bn1 = bn1_ref[...]                                     # (2, K) bf16
    act = jnp.maximum(a_ref[...] * bn1[0:1] + bn1[1:2], 0).astype(jnp.bfloat16)
    acc = jnp.dot(act, w_ref[...], preferred_element_type=jnp.float32)
    bn2 = bn2_ref[...]                                     # (2, N) f32
    o_ref[...] = jnp.maximum(acc * bn2[0:1] + bn2[1:2], 0.0).astype(o_ref.dtype)


def _prebn_matmul_kernel(a_ref, bn_ref, b_ref, o_ref):
    # o = relu(a*s + h) @ b        (transition: norm -> relu -> conv 1x1)
    bn = bn_ref[...]
    act = jnp.maximum(a_ref[...] * bn[0:1] + bn[1:2], 0).astype(jnp.bfloat16)
    o_ref[...] = jnp.dot(act, b_ref[...],
                         preferred_element_type=jnp.float32).astype(o_ref.dtype)


def _postbn_matmul_kernel(a_ref, b_ref, bn_ref, o_ref):
    # o = relu((a @ b) * s + h)    (stem: conv0 -> norm0 -> relu0 fused)
    acc = jnp.dot(a_ref[...], b_ref[...], preferred_element_type=jnp.float32)
    bn = bn_ref[...]
    o_ref[...] = jnp.maximum(acc * bn[0:1] + bn[1:2], 0.0).astype(o_ref.dtype)


def _matmul_kernel(a_ref, b_ref, o_ref):
    # o = a @ b                    (dense-layer 3x3 conv, BN+ReLU already applied)
    o_ref[...] = jnp.dot(a_ref[...], b_ref[...],
                         preferred_element_type=jnp.float32).astype(o_ref.dtype)


def _bias_matmul_kernel(a_ref, b_ref, bias_ref, o_ref):
    # o = a @ b + bias             (classifier)
    acc = jnp.dot(a_ref[...], b_ref[...], preferred_element_type=jnp.float32)
    o_ref[...] = (acc + bias_ref[...]).astype(o_ref.dtype)


# ---------------------------- Pallas wrappers ----------------------------------

def _call_single_block(kernel, args, arg_blocks, Mp, tm, Np, out_dtype,
                       flops, bytes_accessed):
    return pl.pallas_call(
        kernel,
        out_shape=jax.ShapeDtypeStruct((Mp, Np), out_dtype),
        grid_spec=pltpu.PrefetchScalarGridSpec(
            num_scalar_prefetch=0,
            grid=(Mp // tm,),
            in_specs=[pl.BlockSpec(shape, imap) for (shape, imap) in arg_blocks],
            out_specs=pl.BlockSpec((tm, Np), lambda i: (i, 0))),
        compiler_params=pltpu.CompilerParams(
            dimension_semantics=("parallel",)),
        cost_estimate=pl.CostEstimate(flops=flops, transcendentals=0,
                                      bytes_accessed=bytes_accessed),
    )(*args)


def _pad_a(a, Mp, Kp):
    M, K = a.shape
    if (M, K) == (Mp, Kp):
        return a
    return jnp.pad(a, ((0, Mp - M), (0, Kp - K)))


def pallas_dense1x1(a, bn1, w, bn2):
    """Dense-layer bottleneck: relu((relu(a*s1+h1) @ w)*s2 + h2).
    a:(M,K) bf16 (K == block slab width, multiple of 128), bn1:(2,K) bf16,
    w:(K,128) bf16, bn2:(2,128) f32."""
    M, K = a.shape
    Kp, Np = w.shape
    Mp, tm = _m_tiles(M)
    a = _pad_a(a, Mp, Kp)
    blocks = [((tm, Kp), lambda i: (i, 0)),
              ((2, Kp), lambda i: (0, 0)),
              ((Kp, Np), lambda i: (0, 0)),
              ((2, Np), lambda i: (0, 0))]
    byt = 2 * (Mp * Kp + Kp * Np + Mp * Np + 2 * Kp) + 4 * 2 * Np
    return _call_single_block(_dense1x1_kernel, (a, bn1, w, bn2), blocks,
                              Mp, tm, Np, jnp.bfloat16, 2 * Mp * Kp * Np, byt)


def pallas_prebn_matmul(a, bn, b):
    """relu(a*s + h) @ b (transition).  a:(M,K) bf16, bn:(2,K) bf16, b:(K,N) bf16."""
    M, K = a.shape
    Kp, Np = b.shape
    Mp, tm = _m_tiles(M)
    a = _pad_a(a, Mp, Kp)
    blocks = [((tm, Kp), lambda i: (i, 0)),
              ((2, Kp), lambda i: (0, 0)),
              ((Kp, Np), lambda i: (0, 0))]
    byt = 2 * (Mp * Kp + Kp * Np + Mp * Np + 2 * Kp)
    return _call_single_block(_prebn_matmul_kernel, (a, bn, b), blocks,
                              Mp, tm, Np, jnp.bfloat16, 2 * Mp * Kp * Np, byt)


def pallas_postbn_matmul(a, b, bn):
    """relu((a @ b)*s + h) (stem).  a:(M,K) bf16, b:(Kp,Np) bf16, bn:(2,Np) f32."""
    M, K = a.shape
    Kp, Np = b.shape
    Mp, tm = _m_tiles(M)
    a = _pad_a(a, Mp, Kp)
    blocks = [((tm, Kp), lambda i: (i, 0)),
              ((Kp, Np), lambda i: (0, 0)),
              ((2, Np), lambda i: (0, 0))]
    byt = 2 * (Mp * Kp + Kp * Np + Mp * Np) + 4 * 2 * Np
    return _call_single_block(_postbn_matmul_kernel, (a, b, bn), blocks,
                              Mp, tm, Np, jnp.bfloat16, 2 * Mp * Kp * Np, byt)


def pallas_matmul(a, b):
    """a @ b (dense-layer 3x3 conv).  a:(M,K) bf16, b:(K,Np) bf16."""
    M, K = a.shape
    Kp, Np = b.shape
    Mp, tm = _m_tiles(M)
    a = _pad_a(a, Mp, Kp)
    blocks = [((tm, Kp), lambda i: (i, 0)),
              ((Kp, Np), lambda i: (0, 0))]
    byt = 2 * (Mp * Kp + Kp * Np + Mp * Np)
    return _call_single_block(_matmul_kernel, (a, b), blocks,
                              Mp, tm, Np, jnp.bfloat16, 2 * Mp * Kp * Np, byt)


def pallas_bias_matmul(a, b, bias):
    """a @ b + bias (classifier).  a:(M,K) bf16, b:(K,Np) bf16, bias:(1,Np) f32."""
    M, K = a.shape
    Kp, Np = b.shape
    Mp, tm = _m_tiles(M)
    a = _pad_a(a, Mp, Kp)
    blocks = [((tm, Kp), lambda i: (i, 0)),
              ((Kp, Np), lambda i: (0, 0)),
              ((1, Np), lambda i: (0, 0))]
    byt = 2 * (Mp * Kp + Kp * Np) + 4 * (Mp * Np + Np)
    return _call_single_block(_bias_matmul_kernel, (a, b, bias), blocks,
                              Mp, tm, Np, jnp.float32, 2 * Mp * Kp * Np, byt)


# ------------------------ conv / pooling building blocks ----------------------

def _im2col(xp, kh, kw, stride):
    """xp is already spatially padded NHWC; returns (N,Ho,Wo,kh*kw*C)."""
    N, Hp, Wp, C = xp.shape
    Ho = (Hp - kh) // stride + 1
    Wo = (Wp - kw) // stride + 1
    cols = []
    for i in range(kh):
        for j in range(kw):
            patch = jax.lax.slice(
                xp, (0, i, j, 0),
                (N, i + (Ho - 1) * stride + 1, j + (Wo - 1) * stride + 1, C),
                (1, stride, stride, 1))
            cols.append(patch)
    return jnp.concatenate(cols, axis=-1), Ho, Wo


def maxpool_3x3_s2_p1(x):
    return jax.lax.reduce_window(
        x, jnp.asarray(-jnp.inf, x.dtype), jax.lax.max,
        window_dimensions=(1, 3, 3, 1),
        window_strides=(1, 2, 2, 1),
        padding=((0, 0), (1, 1), (1, 1), (0, 0)))


def avgpool_2x2(x):
    N, H, W, C = x.shape
    return x.reshape(N, H // 2, 2, W // 2, 2, C).mean(axis=(2, 4))


# --------------------------- parameter construction ---------------------------

def _make_bn(key, c):
    k1, k2, k3, k4 = jax.random.split(key, 4)
    gamma = jax.random.uniform(k1, (c,), jnp.float32, 0.9, 1.1)
    beta = 0.05 * jax.random.normal(k2, (c,), jnp.float32)
    mean = 0.05 * jax.random.normal(k3, (c,), jnp.float32)
    var = jax.random.uniform(k4, (c,), jnp.float32, 0.9, 1.1)
    scale = gamma / jnp.sqrt(var + BN_EPS)
    shift = beta - mean * scale
    return scale, shift


def _make_conv(key, cout, cin, kh, kw):
    fan_in = cin * kh * kw
    return jax.random.normal(key, (cout, cin, kh, kw), jnp.float32) * jnp.sqrt(2.0 / fan_in)


def _prep_stem(w, bn):
    """conv0 (7x7 s2) with norm0+relu0 folded to a per-N epilogue.  Padded
    output channels have scale=shift=0 => they come out exactly 0."""
    cout, cin, kh, kw = w.shape
    K = kh * kw * cin
    Kp, Np = _round_up(K, 128), _round_up(cout, 128)
    wm = jnp.transpose(w, (2, 3, 1, 0)).reshape(K, cout)
    wm = jnp.pad(wm, ((0, Kp - K), (0, Np - cout))).astype(jnp.bfloat16)
    scale, shift = bn
    bnp = jnp.stack([jnp.pad(scale, (0, Np - cout)),
                     jnp.pad(shift, (0, Np - cout))])           # (2, Np) f32
    return {'w': wm, 'bn': bnp}


def _prep_dense_layer(w1, bn1, w2, bn2, ch_in, c_block):
    """All weight-side prep hoisted to init.  bn1/w1 are zero-extended from the
    layer's real input width ch_in to the block's final slab width c_block, so
    the kernel can read the full (zero-initialized) slab with no slicing."""
    cmid = BN_SIZE * GROWTH
    s1, h1 = bn1
    bn1_k = jnp.stack([jnp.pad(s1, (0, c_block - ch_in)),
                       jnp.pad(h1, (0, c_block - ch_in))]).astype(jnp.bfloat16)
    w1m = jnp.transpose(w1, (2, 3, 1, 0)).reshape(ch_in, cmid)
    w1m = jnp.pad(w1m, ((0, c_block - ch_in), (0, 0))).astype(jnp.bfloat16)
    s2, h2 = bn2
    bn2_n = jnp.stack([s2, h2])                                 # (2, 128) f32
    w2m = jnp.transpose(w2, (2, 3, 1, 0)).reshape(9 * cmid, GROWTH)
    w2m = jnp.pad(w2m, ((0, 0), (0, 128 - GROWTH))).astype(jnp.bfloat16)
    return {'bn1': bn1_k, 'w1': w1m, 'bn2': bn2_n, 'w2': w2m}


def _prep_transition(w, bn):
    cout, cin, _, _ = w.shape                                   # cin, cout % 128 == 0
    s, h = bn
    return {'bn': jnp.stack([s, h]).astype(jnp.bfloat16),
            'w': jnp.transpose(w, (2, 3, 1, 0)).reshape(cin, cout).astype(jnp.bfloat16)}


def init_densenet121_params(key):
    keys = iter(jax.random.split(key, 512))
    nk = lambda: next(keys)

    p = {}
    w0 = _make_conv(nk(), NUM_INIT_FEATURES, 3, 7, 7)
    bn0 = _make_bn(nk(), NUM_INIT_FEATURES)
    p['conv0'] = _prep_stem(w0, bn0)

    ch = NUM_INIT_FEATURES
    blocks, trans = [], []
    for bi, n_layers in enumerate(BLOCK_CONFIG):
        c_block = ch + n_layers * GROWTH
        layers = []
        for _ in range(n_layers):
            bn1 = _make_bn(nk(), ch)
            w1 = _make_conv(nk(), BN_SIZE * GROWTH, ch, 1, 1)
            bn2 = _make_bn(nk(), BN_SIZE * GROWTH)
            w2 = _make_conv(nk(), GROWTH, BN_SIZE * GROWTH, 3, 3)
            layers.append(_prep_dense_layer(w1, bn1, w2, bn2, ch, c_block))
            ch += GROWTH
        blocks.append(layers)
        if bi != len(BLOCK_CONFIG) - 1:
            bnt = _make_bn(nk(), ch)
            wt = _make_conv(nk(), ch // 2, ch, 1, 1)
            trans.append(_prep_transition(wt, bnt))
            ch //= 2
    p['blocks'] = blocks
    p['trans'] = trans
    p['norm5'] = _make_bn(nk(), ch)                             # ch == 1024

    wc = 0.01 * jax.random.normal(nk(), (NUM_CLASSES, ch), jnp.float32)
    Np = _round_up(NUM_CLASSES, 128)
    p['cls_w'] = jnp.pad(wc.T, ((0, 0), (0, Np - NUM_CLASSES))).astype(jnp.bfloat16)
    p['cls_b'] = jnp.zeros((1, Np), jnp.float32)
    return p


# --------------------------------- forward ------------------------------------

def densenet121_forward(x_nchw, p):
    n = x_nchw.shape[0]
    x = jnp.transpose(x_nchw, (0, 2, 3, 1)).astype(jnp.bfloat16)   # NCHW -> NHWC

    # features.conv0 / norm0 / relu0 (one kernel) / pool0.  The padded output
    # channels 64..127 are exactly zero, so we keep the 128-wide slab as-is.
    xp = jnp.pad(x, ((0, 0), (3, 3), (3, 3), (0, 0)))
    cols, Ho, Wo = _im2col(xp, 7, 7, 2)
    M = n * Ho * Wo
    y = pallas_postbn_matmul(cols.reshape(M, -1), p['conv0']['w'], p['conv0']['bn'])
    x = y[:M].reshape(n, Ho, Wo, y.shape[1])
    x = maxpool_3x3_s2_p1(x)

    # dense blocks + transitions: each block writes into a preallocated
    # full-width channel slab (no O(L^2) concat).
    real_ch = NUM_INIT_FEATURES
    for bi, n_layers in enumerate(BLOCK_CONFIG):
        c_block = real_ch + n_layers * GROWTH
        N_, H_, W_, C_ = x.shape
        slab = x if C_ == c_block else jnp.pad(
            x, ((0, 0), (0, 0), (0, 0), (0, c_block - C_)))
        M = N_ * H_ * W_
        ch = real_ch
        for layer in p['blocks'][bi]:
            # norm1 -> relu1 -> conv1(1x1) -> norm2 -> relu2, one kernel.
            y1 = pallas_dense1x1(slab.reshape(M, c_block),
                                 layer['bn1'], layer['w1'], layer['bn2'])
            y1 = y1[:M].reshape(N_, H_, W_, BN_SIZE * GROWTH)
            # conv2 (3x3, pad=1): plain matmul on zero-padded im2col.
            y1p = jnp.pad(y1, ((0, 0), (1, 1), (1, 1), (0, 0)))
            cols, _, _ = _im2col(y1p, 3, 3, 1)
            y2 = pallas_matmul(cols.reshape(M, -1), layer['w2'])
            y2 = y2[:M, :GROWTH].reshape(N_, H_, W_, GROWTH)
            slab = jax.lax.dynamic_update_slice(slab, y2, (0, 0, 0, ch))
            ch += GROWTH
        x = slab
        real_ch = c_block
        if bi != len(BLOCK_CONFIG) - 1:
            t = pallas_prebn_matmul(x.reshape(M, c_block),
                                    p['trans'][bi]['bn'], p['trans'][bi]['w'])
            real_ch = c_block // 2
            x = t[:M].reshape(N_, H_, W_, real_ch)
            x = avgpool_2x2(x)

    # norm5 + relu + adaptive_avg_pool2d((1,1)) in plain JAX (trivial), then the
    # classifier matmul with fused bias in Pallas.
    scale5, shift5 = p['norm5']
    xf = jnp.maximum(x.astype(jnp.float32) * scale5 + shift5, 0.0)
    feat = jnp.mean(xf, axis=(1, 2)).astype(jnp.bfloat16)             # (N, 1024)
    logits = pallas_bias_matmul(feat, p['cls_w'], p['cls_b'])
    return logits[:n, :NUM_CLASSES]


# ----------------------------------- main --------------------------------------

if __name__ == "__main__":
    key = jax.random.PRNGKey(0)
    k_params, k_input = jax.random.split(key)

    params = init_densenet121_params(k_params)
    # PyTorch-style NCHW input (DenseNet needs >=32x32 spatial so the pooling
    # pipeline stays non-degenerate; batch=2, channels=3).
    x = jax.random.normal(k_input, (2, 3, 32, 32), jnp.float32)

    forward = jax.jit(densenet121_forward)
    logits = jax.block_until_ready(forward(x, params))

    assert logits.shape == (2, NUM_CLASSES)
    assert logits.dtype == jnp.float32
    print("KERNEL_OK")
</pallas_src>

<mosaic_0001>
module attributes {stable_mosaic.version = 11 : i64} {
  func.func @_postbn_matmul_kernel(%arg0: i32, %arg1: memref<256x256xbf16, #tpu.memory_space<vmem>>, %arg2: memref<256x128xbf16, #tpu.memory_space<vmem>>, %arg3: memref<2x128xf32, #tpu.memory_space<vmem>>, %arg4: memref<256x128xbf16, #tpu.memory_space<vmem>>) attributes {dimension_semantics = [#tpu.dimension_semantics<parallel>], iteration_bounds = array<i64: 2>, scalar_prefetch = 0 : i64, scratch_operands = 0 : i64, tpu.core_type = #tpu.core_type<tc>, window_params = [{transform_indices = @transform_0, window_bounds = array<i64: 256, 256>}, {pipeline_mode = #tpu.pipeline_mode<synchronous>, transform_indices = @transform_1, window_bounds = array<i64: 256, 128>}, {pipeline_mode = #tpu.pipeline_mode<synchronous>, transform_indices = @transform_2, window_bounds = array<i64: 2, 128>}, {transform_indices = @transform_3, window_bounds = array<i64: 256, 128>}]} {
    %c0 = arith.constant 0 : index
    %c0_0 = arith.constant 0 : index
    %0 = vector.load %arg1[%c0, %c0_0] : memref<256x256xbf16, #tpu.memory_space<vmem>>, vector<256x256xbf16>
    %c0_1 = arith.constant 0 : index
    %c0_2 = arith.constant 0 : index
    %1 = vector.load %arg2[%c0_1, %c0_2] : memref<256x128xbf16, #tpu.memory_space<vmem>>, vector<256x128xbf16>
    %cst = arith.constant dense<0.000000e+00> : vector<256x128xf32>
    %2 = tpu.matmul %0, %1, %cst {dimension_numbers = #tpu.dot_dimension_numbers<[1], [0], [0], [1], [0, 0, 1, 1], [], []>} : vector<256x256xbf16>, vector<256x128xbf16>, vector<256x128xf32> -> vector<256x128xf32>
    %c0_3 = arith.constant 0 : index
    %c0_4 = arith.constant 0 : index
    %3 = vector.load %arg3[%c0_3, %c0_4] : memref<2x128xf32, #tpu.memory_space<vmem>>, vector<2x128xf32>
    %4 = vector.extract_strided_slice %3 {offsets = [0, 0], sizes = [1, 128], strides = [1, 1]} : vector<2x128xf32> to vector<1x128xf32>
    %5 = vector.broadcast %4 : vector<1x128xf32> to vector<256x128xf32>
    %6 = arith.mulf %2, %5 : vector<256x128xf32>
    %7 = vector.extract_strided_slice %3 {offsets = [1, 0], sizes = [1, 128], strides = [1, 1]} : vector<2x128xf32> to vector<1x128xf32>
    %8 = vector.broadcast %7 : vector<1x128xf32> to vector<256x128xf32>
    %9 = arith.addf %6, %8 : vector<256x128xf32>
    %cst_5 = arith.constant 0.000000e+00 : f32
    %10 = vector.broadcast %cst_5 : f32 to vector<256x128xf32>
    %11 = arith.maximumf %9, %10 : vector<256x128xf32>
    %12 = arith.truncf %11 : vector<256x128xf32> to vector<256x128xbf16>
    %c0_6 = arith.constant 0 : index
    %c0_7 = arith.constant 0 : index
    %13 = vector.load %arg4[%c0_6, %c0_7] : memref<256x128xbf16, #tpu.memory_space<vmem>>, vector<256x128xbf16>
    tpu.vector_store %arg4[%c0_6, %c0_7], %12 {strides = array<i32>} : memref<256x128xbf16, #tpu.memory_space<vmem>>, vector<256x128xbf16>,
    return
  }
  func.func @transform_0(%arg0: i32) -> (i32, i32) {
    %c0_i32 = arith.constant 0 : i32
    %c0_i32_0 = arith.constant 0 : i32
    return %arg0, %c0_i32 : i32, i32
  }
  func.func @transform_1(%arg0: i32) -> (i32, i32) {
    %c0_i32 = arith.constant 0 : i32
    %c0_i32_0 = arith.constant 0 : i32
    %c0_i32_1 = arith.constant 0 : i32
    return %c0_i32, %c0_i32_0 : i32, i32
  }
  func.func @transform_2(%arg0: i32) -> (i32, i32) {
    %c0_i32 = arith.constant 0 : i32
    %c0_i32_0 = arith.constant 0 : i32
    %c0_i32_1 = arith.constant 0 : i32
    return %c0_i32, %c0_i32_0 : i32, i32
  }
  func.func @transform_3(%arg0: i32) -> (i32, i32) {
    %c0_i32 = arith.constant 0 : i32
    %c0_i32_0 = arith.constant 0 : i32
    return %arg0, %c0_i32 : i32, i32
  }
}

module attributes {stable_mosaic.version = 11 : i64} {
  func.func @_dense1x1_kernel(%arg0: i32, %arg1: memref<64x256xbf16, #tpu.memory_space<vmem>>, %arg2: memref<2x256xbf16, #tpu.memory_space<vmem>>, %arg3: memref<256x128xbf16, #tpu.memory_space<vmem>>, %arg4: memref<2x128xf32, #tpu.memory_space<vmem>>, %arg5: memref<64x128xbf16, #tpu.memory_space<vmem>>) attributes {dimension_semantics = [#tpu.dimension_semantics<parallel>], iteration_bounds = array<i64: 2>, scalar_prefetch = 0 : i64, scratch_operands = 0 : i64, tpu.core_type = #tpu.core_type<tc>, window_params = [{transform_indices = @transform_0, window_bounds = array<i64: 64, 256>}, {pipeline_mode = #tpu.pipeline_mode<synchronous>, transform_indices = @transform_1, window_bounds = array<i64: 2, 256>}, {pipeline_mode = #tpu.pipeline_mode<synchronous>, transform_indices = @transform_2, window_bounds = array<i64: 256, 128>}, {pipeline_mode = #tpu.pipeline_mode<synchronous>, transform_indices = @transform_3, window_bounds = array<i64: 2, 128>}, {transform_indices = @transform_4, window_bounds = array<i64: 64, 128>}]} {
    %c0 = arith.constant 0 : index
    %c0_0 = arith.constant 0 : index
    %0 = vector.load %arg2[%c0, %c0_0] : memref<2x256xbf16, #tpu.memory_space<vmem>>, vector<2x256xbf16>
    %c0_1 = arith.constant 0 : index
    %c0_2 = arith.constant 0 : index
    %1 = vector.load %arg1[%c0_1, %c0_2] : memref<64x256xbf16, #tpu.memory_space<vmem>>, vector<64x256xbf16>
    %2 = vector.extract_strided_slice %0 {offsets = [0, 0], sizes = [1, 256], strides = [1, 1]} : vector<2x256xbf16> to vector<1x256xbf16>
    %3 = vector.broadcast %2 : vector<1x256xbf16> to vector<64x256xbf16>
    %4 = arith.mulf %1, %3 : vector<64x256xbf16>
    %5 = vector.extract_strided_slice %0 {offsets = [1, 0], sizes = [1, 256], strides = [1, 1]} : vector<2x256xbf16> to vector<1x256xbf16>
    %6 = vector.broadcast %5 : vector<1x256xbf16> to vector<64x256xbf16>
    %7 = arith.addf %4, %6 : vector<64x256xbf16>
    %cst = arith.constant 0.000000e+00 : bf16
    %8 = vector.broadcast %cst : bf16 to vector<64x256xbf16>
    %9 = arith.maximumf %7, %8 : vector<64x256xbf16>
    %c0_3 = arith.constant 0 : index
    %c0_4 = arith.constant 0 : index
    %10 = vector.load %arg3[%c0_3, %c0_4] : memref<256x128xbf16, #tpu.memory_space<vmem>>, vector<256x128xbf16>
    %cst_5 = arith.constant dense<0.000000e+00> : vector<64x128xf32>
    %11 = tpu.matmul %9, %10, %cst_5 {dimension_numbers = #tpu.dot_dimension_numbers<[1], [0], [0], [1], [0, 0, 1, 1], [], []>} : vector<64x256xbf16>, vector<256x128xbf16>, vector<64x128xf32> -> vector<64x128xf32>
    %c0_6 = arith.constant 0 : index
    %c0_7 = arith.constant 0 : index
    %12 = vector.load %arg4[%c0_6, %c0_7] : memref<2x128xf32, #tpu.memory_space<vmem>>, vector<2x128xf32>
    %13 = vector.extract_strided_slice %12 {offsets = [0, 0], sizes = [1, 128], strides = [1, 1]} : vector<2x128xf32> to vector<1x128xf32>
    %14 = vector.broadcast %13 : vector<1x128xf32> to vector<64x128xf32>
    %15 = arith.mulf %11, %14 : vector<64x128xf32>
    %16 = vector.extract_strided_slice %12 {offsets = [1, 0], sizes = [1, 128], strides = [1, 1]} : vector<2x128xf32> to vector<1x128xf32>
    %17 = vector.broadcast %16 : vector<1x128xf32> to vector<64x128xf32>
    %18 = arith.addf %15, %17 : vector<64x128xf32>
    %cst_8 = arith.constant 0.000000e+00 : f32
    %19 = vector.broadcast %cst_8 : f32 to vector<64x128xf32>
    %20 = arith.maximumf %18, %19 : vector<64x128xf32>
    %21 = arith.truncf %20 : vector<64x128xf32> to vector<64x128xbf16>
    %c0_9 = arith.constant 0 : index
    %c0_10 = arith.constant 0 : index
    %22 = vector.load %arg5[%c0_9, %c0_10] : memref<64x128xbf16, #tpu.memory_space<vmem>>, vector<64x128xbf16>
    tpu.vector_store %arg5[%c0_9, %c0_10], %21 {strides = array<i32>} : memref<64x128xbf16, #tpu.memory_space<vmem>>, vector<64x128xbf16>,
    return
  }
  func.func @transform_0(%arg0: i32) -> (i32, i32) {
    %c0_i32 = arith.constant 0 : i32
    %c0_i32_0 = arith.constant 0 : i32
    return %arg0, %c0_i32 : i32, i32
  }
  func.func @transform_1(%arg0: i32) -> (i32, i32) {
    %c0_i32 = arith.constant 0 : i32
    %c0_i32_0 = arith.constant 0 : i32
    %c0_i32_1 = arith.constant 0 : i32
    return %c0_i32, %c0_i32_0 : i32, i32
  }
  func.func @transform_2(%arg0: i32) -> (i32, i32) {
    %c0_i32 = arith.constant 0 : i32
    %c0_i32_0 = arith.constant 0 : i32
    %c0_i32_1 = arith.constant 0 : i32
    return %c0_i32, %c0_i32_0 : i32, i32
  }
  func.func @transform_3(%arg0: i32) -> (i32, i32) {
    %c0_i32 = arith.constant 0 : i32
    %c0_i32_0 = arith.constant 0 : i32
    %c0_i32_1 = arith.constant 0 : i32
    return %c0_i32, %c0_i32_0 : i32, i32
  }
  func.func @transform_4(%arg0: i32) -> (i32, i32) {
    %c0_i32 = arith.constant 0 : i32
    %c0_i32_0 = arith.constant 0 : i32
    return %arg0, %c0_i32 : i32, i32
  }
}

module attributes {stable_mosaic.version = 11 : i64} {
  func.func @_matmul_kernel(%arg0: i32, %arg1: memref<64x1152xbf16, #tpu.memory_space<vmem>>, %arg2: memref<1152x128xbf16, #tpu.memory_space<vmem>>, %arg3: memref<64x128xbf16, #tpu.memory_space<vmem>>) attributes {dimension_semantics = [#tpu.dimension_semantics<parallel>], iteration_bounds = array<i64: 2>, scalar_prefetch = 0 : i64, scratch_operands = 0 : i64, tpu.core_type = #tpu.core_type<tc>, window_params = [{transform_indices = @transform_0, window_bounds = array<i64: 64, 1152>}, {pipeline_mode = #tpu.pipeline_mode<synchronous>, transform_indices = @transform_1, window_bounds = array<i64: 1152, 128>}, {transform_indices = @transform_2, window_bounds = array<i64: 64, 128>}]} {
    %c0 = arith.constant 0 : index
    %c0_0 = arith.constant 0 : index
    %0 = vector.load %arg1[%c0, %c0_0] : memref<64x1152xbf16, #tpu.memory_space<vmem>>, vector<64x1152xbf16>
    %c0_1 = arith.constant 0 : index
    %c0_2 = arith.constant 0 : index
    %1 = vector.load %arg2[%c0_1, %c0_2] : memref<1152x128xbf16, #tpu.memory_space<vmem>>, vector<1152x128xbf16>
    %cst = arith.constant dense<0.000000e+00> : vector<64x128xf32>
    %2 = tpu.matmul %0, %1, %cst {dimension_numbers = #tpu.dot_dimension_numbers<[1], [0], [0], [1], [0, 0, 1, 1], [], []>} : vector<64x1152xbf16>, vector<1152x128xbf16>, vector<64x128xf32> -> vector<64x128xf32>
    %3 = arith.truncf %2 : vector<64x128xf32> to vector<64x128xbf16>
    %c0_3 = arith.constant 0 : index
    %c0_4 = arith.constant 0 : index
    %4 = vector.load %arg3[%c0_3, %c0_4] : memref<64x128xbf16, #tpu.memory_space<vmem>>, vector<64x128xbf16>
    tpu.vector_store %arg3[%c0_3, %c0_4], %3 {strides = array<i32>} : memref<64x128xbf16, #tpu.memory_space<vmem>>, vector<64x128xbf16>,
    return
  }
  func.func @transform_0(%arg0: i32) -> (i32, i32) {
    %c0_i32 = arith.constant 0 : i32
    %c0_i32_0 = arith.constant 0 : i32
    return %arg0, %c0_i32 : i32, i32
  }
  func.func @transform_1(%arg0: i32) -> (i32, i32) {
    %c0_i32 = arith.constant 0 : i32
    %c0_i32_0 = arith.constant 0 : i32
    %c0_i32_1 = arith.constant 0 : i32
    return %c0_i32, %c0_i32_0 : i32, i32
  }
  func.func @transform_2(%arg0: i32) -> (i32, i32) {
    %c0_i32 = arith.constant 0 : i32
    %c0_i32_0 = arith.constant 0 : i32
    return %arg0, %c0_i32 : i32, i32
  }
}

module attributes {stable_mosaic.version = 11 : i64} {
  func.func @_prebn_matmul_kernel(%arg0: i32, %arg1: memref<64x256xbf16, #tpu.memory_space<vmem>>, %arg2: memref<2x256xbf16, #tpu.memory_space<vmem>>, %arg3: memref<256x128xbf16, #tpu.memory_space<vmem>>, %arg4: memref<64x128xbf16, #tpu.memory_space<vmem>>) attributes {dimension_semantics = [#tpu.dimension_semantics<parallel>], iteration_bounds = array<i64: 2>, scalar_prefetch = 0 : i64, scratch_operands = 0 : i64, tpu.core_type = #tpu.core_type<tc>, window_params = [{transform_indices = @transform_0, window_bounds = array<i64: 64, 256>}, {pipeline_mode = #tpu.pipeline_mode<synchronous>, transform_indices = @transform_1, window_bounds = array<i64: 2, 256>}, {pipeline_mode = #tpu.pipeline_mode<synchronous>, transform_indices = @transform_2, window_bounds = array<i64: 256, 128>}, {transform_indices = @transform_3, window_bounds = array<i64: 64, 128>}]} {
    %c0 = arith.constant 0 : index
    %c0_0 = arith.constant 0 : index
    %0 = vector.load %arg2[%c0, %c0_0] : memref<2x256xbf16, #tpu.memory_space<vmem>>, vector<2x256xbf16>
    %c0_1 = arith.constant 0 : index
    %c0_2 = arith.constant 0 : index
    %1 = vector.load %arg1[%c0_1, %c0_2] : memref<64x256xbf16, #tpu.memory_space<vmem>>, vector<64x256xbf16>
    %2 = vector.extract_strided_slice %0 {offsets = [0, 0], sizes = [1, 256], strides = [1, 1]} : vector<2x256xbf16> to vector<1x256xbf16>
    %3 = vector.broadcast %2 : vector<1x256xbf16> to vector<64x256xbf16>
    %4 = arith.mulf %1, %3 : vector<64x256xbf16>
    %5 = vector.extract_strided_slice %0 {offsets = [1, 0], sizes = [1, 256], strides = [1, 1]} : vector<2x256xbf16> to vector<1x256xbf16>
    %6 = vector.broadcast %5 : vector<1x256xbf16> to vector<64x256xbf16>
    %7 = arith.addf %4, %6 : vector<64x256xbf16>
    %cst = arith.constant 0.000000e+00 : bf16
    %8 = vector.broadcast %cst : bf16 to vector<64x256xbf16>
    %9 = arith.maximumf %7, %8 : vector<64x256xbf16>
    %c0_3 = arith.constant 0 : index
    %c0_4 = arith.constant 0 : index
    %10 = vector.load %arg3[%c0_3, %c0_4] : memref<256x128xbf16, #tpu.memory_space<vmem>>, vector<256x128xbf16>
    %cst_5 = arith.constant dense<0.000000e+00> : vector<64x128xf32>
    %11 = tpu.matmul %9, %10, %cst_5 {dimension_numbers = #tpu.dot_dimension_numbers<[1], [0], [0], [1], [0, 0, 1, 1], [], []>} : vector<64x256xbf16>, vector<256x128xbf16>, vector<64x128xf32> -> vector<64x128xf32>
    %12 = arith.truncf %11 : vector<64x128xf32> to vector<64x128xbf16>
    %c0_6 = arith.constant 0 : index
    %c0_7 = arith.constant 0 : index
    %13 = vector.load %arg4[%c0_6, %c0_7] : memref<64x128xbf16, #tpu.memory_space<vmem>>, vector<64x128xbf16>
    tpu.vector_store %arg4[%c0_6, %c0_7], %12 {strides = array<i32>} : memref<64x128xbf16, #tpu.memory_space<vmem>>, vector<64x128xbf16>,
    return
  }
  func.func @transform_0(%arg0: i32) -> (i32, i32) {
    %c0_i32 = arith.constant 0 : i32
    %c0_i32_0 = arith.constant 0 : i32
    return %arg0, %c0_i32 : i32, i32
  }
  func.func @transform_1(%arg0: i32) -> (i32, i32) {
    %c0_i32 = arith.constant 0 : i32
    %c0_i32_0 = arith.constant 0 : i32
    %c0_i32_1 = arith.constant 0 : i32
    return %c0_i32, %c0_i32_0 : i32, i32
  }
  func.func @transform_2(%arg0: i32) -> (i32, i32) {
    %c0_i32 = arith.constant 0 : i32
    %c0_i32_0 = arith.constant 0 : i32
    %c0_i32_1 = arith.constant 0 : i32
    return %c0_i32, %c0_i32_0 : i32, i32
  }
  func.func @transform_3(%arg0: i32) -> (i32, i32) {
    %c0_i32 = arith.constant 0 : i32
    %c0_i32_0 = arith.constant 0 : i32
    return %arg0, %c0_i32 : i32, i32
  }
}

module attributes {stable_mosaic.version = 11 : i64} {
  func.func @_dense1x1_kernel(%arg0: i32, %arg1: memref<16x512xbf16, #tpu.memory_space<vmem>>, %arg2: memref<2x512xbf16, #tpu.memory_space<vmem>>, %arg3: memref<512x128xbf16, #tpu.memory_space<vmem>>, %arg4: memref<2x128xf32, #tpu.memory_space<vmem>>, %arg5: memref<16x128xbf16, #tpu.memory_space<vmem>>) attributes {dimension_semantics = [#tpu.dimension_semantics<parallel>], iteration_bounds = array<i64: 2>, scalar_prefetch = 0 : i64, scratch_operands = 0 : i64, tpu.core_type = #tpu.core_type<tc>, window_params = [{transform_indices = @transform_0, window_bounds = array<i64: 16, 512>}, {pipeline_mode = #tpu.pipeline_mode<synchronous>, transform_indices = @transform_1, window_bounds = array<i64: 2, 512>}, {pipeline_mode = #tpu.pipeline_mode<synchronous>, transform_indices = @transform_2, window_bounds = array<i64: 512, 128>}, {pipeline_mode = #tpu.pipeline_mode<synchronous>, transform_indices = @transform_3, window_bounds = array<i64: 2, 128>}, {transform_indices = @transform_4, window_bounds = array<i64: 16, 128>}]} {
    %c0 = arith.constant 0 : index
    %c0_0 = arith.constant 0 : index
    %0 = vector.load %arg2[%c0, %c0_0] : memref<2x512xbf16, #tpu.memory_space<vmem>>, vector<2x512xbf16>
    %c0_1 = arith.constant 0 : index
    %c0_2 = arith.constant 0 : index
    %1 = vector.load %arg1[%c0_1, %c0_2] : memref<16x512xbf16, #tpu.memory_space<vmem>>, vector<16x512xbf16>
    %2 = vector.extract_strided_slice %0 {offsets = [0, 0], sizes = [1, 512], strides = [1, 1]} : vector<2x512xbf16> to vector<1x512xbf16>
    %3 = vector.broadcast %2 : vector<1x512xbf16> to vector<16x512xbf16>
    %4 = arith.mulf %1, %3 : vector<16x512xbf16>
    %5 = vector.extract_strided_slice %0 {offsets = [1, 0], sizes = [1, 512], strides = [1, 1]} : vector<2x512xbf16> to vector<1x512xbf16>
    %6 = vector.broadcast %5 : vector<1x512xbf16> to vector<16x512xbf16>
    %7 = arith.addf %4, %6 : vector<16x512xbf16>
    %cst = arith.constant 0.000000e+00 : bf16
    %8 = vector.broadcast %cst : bf16 to vector<16x512xbf16>
    %9 = arith.maximumf %7, %8 : vector<16x512xbf16>
    %c0_3 = arith.constant 0 : index
    %c0_4 = arith.constant 0 : index
    %10 = vector.load %arg3[%c0_3, %c0_4] : memref<512x128xbf16, #tpu.memory_space<vmem>>, vector<512x128xbf16>
    %cst_5 = arith.constant dense<0.000000e+00> : vector<16x128xf32>
    %11 = tpu.matmul %9, %10, %cst_5 {dimension_numbers = #tpu.dot_dimension_numbers<[1], [0], [0], [1], [0, 0, 1, 1], [], []>} : vector<16x512xbf16>, vector<512x128xbf16>, vector<16x128xf32> -> vector<16x128xf32>
    %c0_6 = arith.constant 0 : index
    %c0_7 = arith.constant 0 : index
    %12 = vector.load %arg4[%c0_6, %c0_7] : memref<2x128xf32, #tpu.memory_space<vmem>>, vector<2x128xf32>
    %13 = vector.extract_strided_slice %12 {offsets = [0, 0], sizes = [1, 128], strides = [1, 1]} : vector<2x128xf32> to vector<1x128xf32>
    %14 = vector.broadcast %13 : vector<1x128xf32> to vector<16x128xf32>
    %15 = arith.mulf %11, %14 : vector<16x128xf32>
    %16 = vector.extract_strided_slice %12 {offsets = [1, 0], sizes = [1, 128], strides = [1, 1]} : vector<2x128xf32> to vector<1x128xf32>
    %17 = vector.broadcast %16 : vector<1x128xf32> to vector<16x128xf32>
    %18 = arith.addf %15, %17 : vector<16x128xf32>
    %cst_8 = arith.constant 0.000000e+00 : f32
    %19 = vector.broadcast %cst_8 : f32 to vector<16x128xf32>
    %20 = arith.maximumf %18, %19 : vector<16x128xf32>
    %21 = arith.truncf %20 : vector<16x128xf32> to vector<16x128xbf16>
    %c0_9 = arith.constant 0 : index
    %c0_10 = arith.constant 0 : index
    %22 = vector.load %arg5[%c0_9, %c0_10] : memref<16x128xbf16, #tpu.memory_space<vmem>>, vector<16x128xbf16>
    tpu.vector_store %arg5[%c0_9, %c0_10], %21 {strides = array<i32>} : memref<16x128xbf16, #tpu.memory_space<vmem>>, vector<16x128xbf16>,
    return
  }
  func.func @transform_0(%arg0: i32) -> (i32, i32) {
    %c0_i32 = arith.constant 0 : i32
    %c0_i32_0 = arith.constant 0 : i32
    return %arg0, %c0_i32 : i32, i32
  }
  func.func @transform_1(%arg0: i32) -> (i32, i32) {
    %c0_i32 = arith.constant 0 : i32
    %c0_i32_0 = arith.constant 0 : i32
    %c0_i32_1 = arith.constant 0 : i32
    return %c0_i32, %c0_i32_0 : i32, i32
  }
  func.func @transform_2(%arg0: i32) -> (i32, i32) {
    %c0_i32 = arith.constant 0 : i32
    %c0_i32_0 = arith.constant 0 : i32
    %c0_i32_1 = arith.constant 0 : i32
    return %c0_i32, %c0_i32_0 : i32, i32
  }
  func.func @transform_3(%arg0: i32) -> (i32, i32) {
    %c0_i32 = arith.constant 0 : i32
    %c0_i32_0 = arith.constant 0 : i32
    %c0_i32_1 = arith.constant 0 : i32
    return %c0_i32, %c0_i32_0 : i32, i32
  }
  func.func @transform_4(%arg0: i32) -> (i32, i32) {
    %c0_i32 = arith.constant 0 : i32
    %c0_i32_0 = arith.constant 0 : i32
    return %arg0, %c0_i32 : i32, i32
  }
}

module attributes {stable_mosaic.version = 11 : i64} {
  func.func @_matmul_kernel(%arg0: i32, %arg1: memref<16x1152xbf16, #tpu.memory_space<vmem>>, %arg2: memref<1152x128xbf16, #tpu.memory_space<vmem>>, %arg3: memref<16x128xbf16, #tpu.memory_space<vmem>>) attributes {dimension_semantics = [#tpu.dimension_semantics<parallel>], iteration_bounds = array<i64: 2>, scalar_prefetch = 0 : i64, scratch_operands = 0 : i64, tpu.core_type = #tpu.core_type<tc>, window_params = [{transform_indices = @transform_0, window_bounds = array<i64: 16, 1152>}, {pipeline_mode = #tpu.pipeline_mode<synchronous>, transform_indices = @transform_1, window_bounds = array<i64: 1152, 128>}, {transform_indices = @transform_2, window_bounds = array<i64: 16, 128>}]} {
    %c0 = arith.constant 0 : index
    %c0_0 = arith.constant 0 : index
    %0 = vector.load %arg1[%c0, %c0_0] : memref<16x1152xbf16, #tpu.memory_space<vmem>>, vector<16x1152xbf16>
    %c0_1 = arith.constant 0 : index
    %c0_2 = arith.constant 0 : index
    %1 = vector.load %arg2[%c0_1, %c0_2] : memref<1152x128xbf16, #tpu.memory_space<vmem>>, vector<1152x128xbf16>
    %cst = arith.constant dense<0.000000e+00> : vector<16x128xf32>
    %2 = tpu.matmul %0, %1, %cst {dimension_numbers = #tpu.dot_dimension_numbers<[1], [0], [0], [1], [0, 0, 1, 1], [], []>} : vector<16x1152xbf16>, vector<1152x128xbf16>, vector<16x128xf32> -> vector<16x128xf32>
    %3 = arith.truncf %2 : vector<16x128xf32> to vector<16x128xbf16>
    %c0_3 = arith.constant 0 : index
    %c0_4 = arith.constant 0 : index
    %4 = vector.load %arg3[%c0_3, %c0_4] : memref<16x128xbf16, #tpu.memory_space<vmem>>, vector<16x128xbf16>
    tpu.vector_store %arg3[%c0_3, %c0_4], %3 {strides = array<i32>} : memref<16x128xbf16, #tpu.memory_space<vmem>>, vector<16x128xbf16>,
    return
  }
  func.func @transform_0(%arg0: i32) -> (i32, i32) {
    %c0_i32 = arith.constant 0 : i32
    %c0_i32_0 = arith.constant 0 : i32
    return %arg0, %c0_i32 : i32, i32
  }
  func.func @transform_1(%arg0: i32) -> (i32, i32) {
    %c0_i32 = arith.constant 0 : i32
    %c0_i32_0 = arith.constant 0 : i32
    %c0_i32_1 = arith.constant 0 : i32
    return %c0_i32, %c0_i32_0 : i32, i32
  }
  func.func @transform_2(%arg0: i32) -> (i32, i32) {
    %c0_i32 = arith.constant 0 : i32
    %c0_i32_0 = arith.constant 0 : i32
    return %arg0, %c0_i32 : i32, i32
  }
}

module attributes {stable_mosaic.version = 11 : i64} {
  func.func @_prebn_matmul_kernel(%arg0: i32, %arg1: memref<16x512xbf16, #tpu.memory_space<vmem>>, %arg2: memref<2x512xbf16, #tpu.memory_space<vmem>>, %arg3: memref<512x256xbf16, #tpu.memory_space<vmem>>, %arg4: memref<16x256xbf16, #tpu.memory_space<vmem>>) attributes {dimension_semantics = [#tpu.dimension_semantics<parallel>], iteration_bounds = array<i64: 2>, scalar_prefetch = 0 : i64, scratch_operands = 0 : i64, tpu.core_type = #tpu.core_type<tc>, window_params = [{transform_indices = @transform_0, window_bounds = array<i64: 16, 512>}, {pipeline_mode = #tpu.pipeline_mode<synchronous>, transform_indices = @transform_1, window_bounds = array<i64: 2, 512>}, {pipeline_mode = #tpu.pipeline_mode<synchronous>, transform_indices = @transform_2, window_bounds = array<i64: 512, 256>}, {transform_indices = @transform_3, window_bounds = array<i64: 16, 256>}]} {
    %c0 = arith.constant 0 : index
    %c0_0 = arith.constant 0 : index
    %0 = vector.load %arg2[%c0, %c0_0] : memref<2x512xbf16, #tpu.memory_space<vmem>>, vector<2x512xbf16>
    %c0_1 = arith.constant 0 : index
    %c0_2 = arith.constant 0 : index
    %1 = vector.load %arg1[%c0_1, %c0_2] : memref<16x512xbf16, #tpu.memory_space<vmem>>, vector<16x512xbf16>
    %2 = vector.extract_strided_slice %0 {offsets = [0, 0], sizes = [1, 512], strides = [1, 1]} : vector<2x512xbf16> to vector<1x512xbf16>
    %3 = vector.broadcast %2 : vector<1x512xbf16> to vector<16x512xbf16>
    %4 = arith.mulf %1, %3 : vector<16x512xbf16>
    %5 = vector.extract_strided_slice %0 {offsets = [1, 0], sizes = [1, 512], strides = [1, 1]} : vector<2x512xbf16> to vector<1x512xbf16>
    %6 = vector.broadcast %5 : vector<1x512xbf16> to vector<16x512xbf16>
    %7 = arith.addf %4, %6 : vector<16x512xbf16>
    %cst = arith.constant 0.000000e+00 : bf16
    %8 = vector.broadcast %cst : bf16 to vector<16x512xbf16>
    %9 = arith.maximumf %7, %8 : vector<16x512xbf16>
    %c0_3 = arith.constant 0 : index
    %c0_4 = arith.constant 0 : index
    %10 = vector.load %arg3[%c0_3, %c0_4] : memref<512x256xbf16, #tpu.memory_space<vmem>>, vector<512x256xbf16>
    %cst_5 = arith.constant dense<0.000000e+00> : vector<16x256xf32>
    %11 = tpu.matmul %9, %10, %cst_5 {dimension_numbers = #tpu.dot_dimension_numbers<[1], [0], [0], [1], [0, 0, 1, 1], [], []>} : vector<16x512xbf16>, vector<512x256xbf16>, vector<16x256xf32> -> vector<16x256xf32>
    %12 = arith.truncf %11 : vector<16x256xf32> to vector<16x256xbf16>
    %c0_6 = arith.constant 0 : index
    %c0_7 = arith.constant 0 : index
    %13 = vector.load %arg4[%c0_6, %c0_7] : memref<16x256xbf16, #tpu.memory_space<vmem>>, vector<16x256xbf16>
    tpu.vector_store %arg4[%c0_6, %c0_7], %12 {strides = array<i32>} : memref<16x256xbf16, #tpu.memory_space<vmem>>, vector<16x256xbf16>,
    return
  }
  func.func @transform_0(%arg0: i32) -> (i32, i32) {
    %c0_i32 = arith.constant 0 : i32
    %c0_i32_0 = arith.constant 0 : i32
    return %arg0, %c0_i32 : i32, i32
  }
  func.func @transform_1(%arg0: i32) -> (i32, i32) {
    %c0_i32 = arith.constant 0 : i32
    %c0_i32_0 = arith.constant 0 : i32
    %c0_i32_1 = arith.constant 0 : i32
    return %c0_i32, %c0_i32_0 : i32, i32
  }
  func.func @transform_2(%arg0: i32) -> (i32, i32) {
    %c0_i32 = arith.constant 0 : i32
    %c0_i32_0 = arith.constant 0 : i32
    %c0_i32_1 = arith.constant 0 : i32
    return %c0_i32, %c0_i32_0 : i32, i32
  }
  func.func @transform_3(%arg0: i32) -> (i32, i32) {
    %c0_i32 = arith.constant 0 : i32
    %c0_i32_0 = arith.constant 0 : i32
    return %arg0, %c0_i32 : i32, i32
  }
}

module attributes {stable_mosaic.version = 11 : i64} {
  func.func @_dense1x1_kernel(%arg0: i32, %arg1: memref<16x1024xbf16, #tpu.memory_space<vmem>>, %arg2: memref<2x1024xbf16, #tpu.memory_space<vmem>>, %arg3: memref<1024x128xbf16, #tpu.memory_space<vmem>>, %arg4: memref<2x128xf32, #tpu.memory_space<vmem>>, %arg5: memref<16x128xbf16, #tpu.memory_space<vmem>>) attributes {dimension_semantics = [#tpu.dimension_semantics<parallel>], iteration_bounds = array<i64: 1>, scalar_prefetch = 0 : i64, scratch_operands = 0 : i64, tpu.core_type = #tpu.core_type<tc>, window_params = [{transform_indices = @transform_0, window_bounds = array<i64: 16, 1024>}, {pipeline_mode = #tpu.pipeline_mode<synchronous>, transform_indices = @transform_1, window_bounds = array<i64: 2, 1024>}, {pipeline_mode = #tpu.pipeline_mode<synchronous>, transform_indices = @transform_2, window_bounds = array<i64: 1024, 128>}, {pipeline_mode = #tpu.pipeline_mode<synchronous>, transform_indices = @transform_3, window_bounds = array<i64: 2, 128>}, {transform_indices = @transform_4, window_bounds = array<i64: 16, 128>}]} {
    %c0 = arith.constant 0 : index
    %c0_0 = arith.constant 0 : index
    %0 = vector.load %arg2[%c0, %c0_0] : memref<2x1024xbf16, #tpu.memory_space<vmem>>, vector<2x1024xbf16>
    %c0_1 = arith.constant 0 : index
    %c0_2 = arith.constant 0 : index
    %1 = vector.load %arg1[%c0_1, %c0_2] : memref<16x1024xbf16, #tpu.memory_space<vmem>>, vector<16x1024xbf16>
    %2 = vector.extract_strided_slice %0 {offsets = [0, 0], sizes = [1, 1024], strides = [1, 1]} : vector<2x1024xbf16> to vector<1x1024xbf16>
    %3 = vector.broadcast %2 : vector<1x1024xbf16> to vector<16x1024xbf16>
    %4 = arith.mulf %1, %3 : vector<16x1024xbf16>
    %5 = vector.extract_strided_slice %0 {offsets = [1, 0], sizes = [1, 1024], strides = [1, 1]} : vector<2x1024xbf16> to vector<1x1024xbf16>
    %6 = vector.broadcast %5 : vector<1x1024xbf16> to vector<16x1024xbf16>
    %7 = arith.addf %4, %6 : vector<16x1024xbf16>
    %cst = arith.constant 0.000000e+00 : bf16
    %8 = vector.broadcast %cst : bf16 to vector<16x1024xbf16>
    %9 = arith.maximumf %7, %8 : vector<16x1024xbf16>
    %c0_3 = arith.constant 0 : index
    %c0_4 = arith.constant 0 : index
    %10 = vector.load %arg3[%c0_3, %c0_4] : memref<1024x128xbf16, #tpu.memory_space<vmem>>, vector<1024x128xbf16>
    %cst_5 = arith.constant dense<0.000000e+00> : vector<16x128xf32>
    %11 = tpu.matmul %9, %10, %cst_5 {dimension_numbers = #tpu.dot_dimension_numbers<[1], [0], [0], [1], [0, 0, 1, 1], [], []>} : vector<16x1024xbf16>, vector<1024x128xbf16>, vector<16x128xf32> -> vector<16x128xf32>
    %c0_6 = arith.constant 0 : index
    %c0_7 = arith.constant 0 : index
    %12 = vector.load %arg4[%c0_6, %c0_7] : memref<2x128xf32, #tpu.memory_space<vmem>>, vector<2x128xf32>
    %13 = vector.extract_strided_slice %12 {offsets = [0, 0], sizes = [1, 128], strides = [1, 1]} : vector<2x128xf32> to vector<1x128xf32>
    %14 = vector.broadcast %13 : vector<1x128xf32> to vector<16x128xf32>
    %15 = arith.mulf %11, %14 : vector<16x128xf32>
    %16 = vector.extract_strided_slice %12 {offsets = [1, 0], sizes = [1, 128], strides = [1, 1]} : vector<2x128xf32> to vector<1x128xf32>
    %17 = vector.broadcast %16 : vector<1x128xf32> to vector<16x128xf32>
    %18 = arith.addf %15, %17 : vector<16x128xf32>
    %cst_8 = arith.constant 0.000000e+00 : f32
    %19 = vector.broadcast %cst_8 : f32 to vector<16x128xf32>
    %20 = arith.maximumf %18, %19 : vector<16x128xf32>
    %21 = arith.truncf %20 : vector<16x128xf32> to vector<16x128xbf16>
    %c0_9 = arith.constant 0 : index
    %c0_10 = arith.constant 0 : index
    %22 = vector.load %arg5[%c0_9, %c0_10] : memref<16x128xbf16, #tpu.memory_space<vmem>>, vector<16x128xbf16>
    tpu.vector_store %arg5[%c0_9, %c0_10], %21 {strides = array<i32>} : memref<16x128xbf16, #tpu.memory_space<vmem>>, vector<16x128xbf16>,
    return
  }
  func.func @transform_0(%arg0: i32) -> (i32, i32) {
    %c0_i32 = arith.constant 0 : i32
    %c0_i32_0 = arith.constant 0 : i32
    return %arg0, %c0_i32 : i32, i32
  }
  func.func @transform_1(%arg0: i32) -> (i32, i32) {
    %c0_i32 = arith.constant 0 : i32
    %c0_i32_0 = arith.constant 0 : i32
    %c0_i32_1 = arith.constant 0 : i32
    return %c0_i32, %c0_i32_0 : i32, i32
  }
  func.func @transform_2(%arg0: i32) -> (i32, i32) {
    %c0_i32 = arith.constant 0 : i32
    %c0_i32_0 = arith.constant 0 : i32
    %c0_i32_1 = arith.constant 0 : i32
    return %c0_i32, %c0_i32_0 : i32, i32
  }
  func.func @transform_3(%arg0: i32) -> (i32, i32) {
    %c0_i32 = arith.constant 0 : i32
    %c0_i32_0 = arith.constant 0 : i32
    %c0_i32_1 = arith.constant 0 : i32
    return %c0_i32, %c0_i32_0 : i32, i32
  }
  func.func @transform_4(%arg0: i32) -> (i32, i32) {
    %c0_i32 = arith.constant 0 : i32
    %c0_i32_0 = arith.constant 0 : i32
    return %arg0, %c0_i32 : i32, i32
  }
}

module attributes {stable_mosaic.version = 11 : i64} {
  func.func @_matmul_kernel(%arg0: i32, %arg1: memref<16x1152xbf16, #tpu.memory_space<vmem>>, %arg2: memref<1152x128xbf16, #tpu.memory_space<vmem>>, %arg3: memref<16x128xbf16, #tpu.memory_space<vmem>>) attributes {dimension_semantics = [#tpu.dimension_semantics<parallel>], iteration_bounds = array<i64: 1>, scalar_prefetch = 0 : i64, scratch_operands = 0 : i64, tpu.core_type = #tpu.core_type<tc>, window_params = [{transform_indices = @transform_0, window_bounds = array<i64: 16, 1152>}, {pipeline_mode = #tpu.pipeline_mode<synchronous>, transform_indices = @transform_1, window_bounds = array<i64: 1152, 128>}, {transform_indices = @transform_2, window_bounds = array<i64: 16, 128>}]} {
    %c0 = arith.constant 0 : index
    %c0_0 = arith.constant 0 : index
    %0 = vector.load %arg1[%c0, %c0_0] : memref<16x1152xbf16, #tpu.memory_space<vmem>>, vector<16x1152xbf16>
    %c0_1 = arith.constant 0 : index
    %c0_2 = arith.constant 0 : index
    %1 = vector.load %arg2[%c0_1, %c0_2] : memref<1152x128xbf16, #tpu.memory_space<vmem>>, vector<1152x128xbf16>
    %cst = arith.constant dense<0.000000e+00> : vector<16x128xf32>
    %2 = tpu.matmul %0, %1, %cst {dimension_numbers = #tpu.dot_dimension_numbers<[1], [0], [0], [1], [0, 0, 1, 1], [], []>} : vector<16x1152xbf16>, vector<1152x128xbf16>, vector<16x128xf32> -> vector<16x128xf32>
    %3 = arith.truncf %2 : vector<16x128xf32> to vector<16x128xbf16>
    %c0_3 = arith.constant 0 : index
    %c0_4 = arith.constant 0 : index
    %4 = vector.load %arg3[%c0_3, %c0_4] : memref<16x128xbf16, #tpu.memory_space<vmem>>, vector<16x128xbf16>
    tpu.vector_store %arg3[%c0_3, %c0_4], %3 {strides = array<i32>} : memref<16x128xbf16, #tpu.memory_space<vmem>>, vector<16x128xbf16>,
    return
  }
  func.func @transform_0(%arg0: i32) -> (i32, i32) {
    %c0_i32 = arith.constant 0 : i32
    %c0_i32_0 = arith.constant 0 : i32
    return %arg0, %c0_i32 : i32, i32
  }
  func.func @transform_1(%arg0: i32) -> (i32, i32) {
    %c0_i32 = arith.constant 0 : i32
    %c0_i32_0 = arith.constant 0 : i32
    %c0_i32_1 = arith.constant 0 : i32
    return %c0_i32, %c0_i32_0 : i32, i32
  }
  func.func @transform_2(%arg0: i32) -> (i32, i32) {
    %c0_i32 = arith.constant 0 : i32
    %c0_i32_0 = arith.constant 0 : i32
    return %arg0, %c0_i32 : i32, i32
  }
}

module attributes {stable_mosaic.version = 11 : i64} {
  func.func @_prebn_matmul_kernel(%arg0: i32, %arg1: memref<16x1024xbf16, #tpu.memory_space<vmem>>, %arg2: memref<2x1024xbf16, #tpu.memory_space<vmem>>, %arg3: memref<1024x512xbf16, #tpu.memory_space<vmem>>, %arg4: memref<16x512xbf16, #tpu.memory_space<vmem>>) attributes {dimension_semantics = [#tpu.dimension_semantics<parallel>], iteration_bounds = array<i64: 1>, scalar_prefetch = 0 : i64, scratch_operands = 0 : i64, tpu.core_type = #tpu.core_type<tc>, window_params = [{transform_indices = @transform_0, window_bounds = array<i64: 16, 1024>}, {pipeline_mode = #tpu.pipeline_mode<synchronous>, transform_indices = @transform_1, window_bounds = array<i64: 2, 1024>}, {pipeline_mode = #tpu.pipeline_mode<synchronous>, transform_indices = @transform_2, window_bounds = array<i64: 1024, 512>}, {transform_indices = @transform_3, window_bounds = array<i64: 16, 512>}]} {
    %c0 = arith.constant 0 : index
    %c0_0 = arith.constant 0 : index
    %0 = vector.load %arg2[%c0, %c0_0] : memref<2x1024xbf16, #tpu.memory_space<vmem>>, vector<2x1024xbf16>
    %c0_1 = arith.constant 0 : index
    %c0_2 = arith.constant 0 : index
    %1 = vector.load %arg1[%c0_1, %c0_2] : memref<16x1024xbf16, #tpu.memory_space<vmem>>, vector<16x1024xbf16>
    %2 = vector.extract_strided_slice %0 {offsets = [0, 0], sizes = [1, 1024], strides = [1, 1]} : vector<2x1024xbf16> to vector<1x1024xbf16>
    %3 = vector.broadcast %2 : vector<1x1024xbf16> to vector<16x1024xbf16>
    %4 = arith.mulf %1, %3 : vector<16x1024xbf16>
    %5 = vector.extract_strided_slice %0 {offsets = [1, 0], sizes = [1, 1024], strides = [1, 1]} : vector<2x1024xbf16> to vector<1x1024xbf16>
    %6 = vector.broadcast %5 : vector<1x1024xbf16> to vector<16x1024xbf16>
    %7 = arith.addf %4, %6 : vector<16x1024xbf16>
    %cst = arith.constant 0.000000e+00 : bf16
    %8 = vector.broadcast %cst : bf16 to vector<16x1024xbf16>
    %9 = arith.maximumf %7, %8 : vector<16x1024xbf16>
    %c0_3 = arith.constant 0 : index
    %c0_4 = arith.constant 0 : index
    %10 = vector.load %arg3[%c0_3, %c0_4] : memref<1024x512xbf16, #tpu.memory_space<vmem>>, vector<1024x512xbf16>
    %cst_5 = arith.constant dense<0.000000e+00> : vector<16x512xf32>
    %11 = tpu.matmul %9, %10, %cst_5 {dimension_numbers = #tpu.dot_dimension_numbers<[1], [0], [0], [1], [0, 0, 1, 1], [], []>} : vector<16x1024xbf16>, vector<1024x512xbf16>, vector<16x512xf32> -> vector<16x512xf32>
    %12 = arith.truncf %11 : vector<16x512xf32> to vector<16x512xbf16>
    %c0_6 = arith.constant 0 : index
    %c0_7 = arith.constant 0 : index
    %13 = vector.load %arg4[%c0_6, %c0_7] : memref<16x512xbf16, #tpu.memory_space<vmem>>, vector<16x512xbf16>
    tpu.vector_store %arg4[%c0_6, %c0_7], %12 {strides = array<i32>} : memref<16x512xbf16, #tpu.memory_space<vmem>>, vector<16x512xbf16>,
    return
  }
  func.func @transform_0(%arg0: i32) -> (i32, i32) {
    %c0_i32 = arith.constant 0 : i32
    %c0_i32_0 = arith.constant 0 : i32
    return %arg0, %c0_i32 : i32, i32
  }
  func.func @transform_1(%arg0: i32) -> (i32, i32) {
    %c0_i32 = arith.constant 0 : i32
    %c0_i32_0 = arith.constant 0 : i32
    %c0_i32_1 = arith.constant 0 : i32
    return %c0_i32, %c0_i32_0 : i32, i32
  }
  func.func @transform_2(%arg0: i32) -> (i32, i32) {
    %c0_i32 = arith.constant 0 : i32
    %c0_i32_0 = arith.constant 0 : i32
    %c0_i32_1 = arith.constant 0 : i32
    return %c0_i32, %c0_i32_0 : i32, i32
  }
  func.func @transform_3(%arg0: i32) -> (i32, i32) {
    %c0_i32 = arith.constant 0 : i32
    %c0_i32_0 = arith.constant 0 : i32
    return %arg0, %c0_i32 : i32, i32
  }
}

module attributes {stable_mosaic.version = 11 : i64} {
  func.func @_bias_matmul_kernel(%arg0: i32, %arg1: memref<16x1024xbf16, #tpu.memory_space<vmem>>, %arg2: memref<1024x1024xbf16, #tpu.memory_space<vmem>>, %arg3: memref<1x1024xf32, #tpu.memory_space<vmem>>, %arg4: memref<16x1024xf32, #tpu.memory_space<vmem>>) attributes {dimension_semantics = [#tpu.dimension_semantics<parallel>], iteration_bounds = array<i64: 1>, scalar_prefetch = 0 : i64, scratch_operands = 0 : i64, tpu.core_type = #tpu.core_type<tc>, window_params = [{transform_indices = @transform_0, window_bounds = array<i64: 16, 1024>}, {pipeline_mode = #tpu.pipeline_mode<synchronous>, transform_indices = @transform_1, window_bounds = array<i64: 1024, 1024>}, {pipeline_mode = #tpu.pipeline_mode<synchronous>, transform_indices = @transform_2, window_bounds = array<i64: 1, 1024>}, {transform_indices = @transform_3, window_bounds = array<i64: 16, 1024>}]} {
    %c0 = arith.constant 0 : index
    %c0_0 = arith.constant 0 : index
    %0 = vector.load %arg1[%c0, %c0_0] : memref<16x1024xbf16, #tpu.memory_space<vmem>>, vector<16x1024xbf16>
    %c0_1 = arith.constant 0 : index
    %c0_2 = arith.constant 0 : index
    %1 = vector.load %arg2[%c0_1, %c0_2] : memref<1024x1024xbf16, #tpu.memory_space<vmem>>, vector<1024x1024xbf16>
    %cst = arith.constant dense<0.000000e+00> : vector<16x1024xf32>
    %2 = tpu.matmul %0, %1, %cst {dimension_numbers = #tpu.dot_dimension_numbers<[1], [0], [0], [1], [0, 0, 1, 1], [], []>} : vector<16x1024xbf16>, vector<1024x1024xbf16>, vector<16x1024xf32> -> vector<16x1024xf32>
    %c0_3 = arith.constant 0 : index
    %c0_4 = arith.constant 0 : index
    %3 = vector.load %arg3[%c0_3, %c0_4] : memref<1x1024xf32, #tpu.memory_space<vmem>>, vector<1x1024xf32>
    %4 = vector.broadcast %3 : vector<1x1024xf32> to vector<16x1024xf32>
    %5 = arith.addf %2, %4 : vector<16x1024xf32>
    %c0_5 = arith.constant 0 : index
    %c0_6 = arith.constant 0 : index
    %6 = vector.load %arg4[%c0_5, %c0_6] : memref<16x1024xf32, #tpu.memory_space<vmem>>, vector<16x1024xf32>
    tpu.vector_store %arg4[%c0_5, %c0_6], %5 {strides = array<i32>} : memref<16x1024xf32, #tpu.memory_space<vmem>>, vector<16x1024xf32>,
    return
  }
  func.func @transform_0(%arg0: i32) -> (i32, i32) {
    %c0_i32 = arith.constant 0 : i32
    %c0_i32_0 = arith.constant 0 : i32
    return %arg0, %c0_i32 : i32, i32
  }
  func.func @transform_1(%arg0: i32) -> (i32, i32) {
    %c0_i32 = arith.constant 0 : i32
    %c0_i32_0 = arith.constant 0 : i32
    %c0_i32_1 = arith.constant 0 : i32
    return %c0_i32, %c0_i32_0 : i32, i32
  }
  func.func @transform_2(%arg0: i32) -> (i32, i32) {
    %c0_i32 = arith.constant 0 : i32
    %c0_i32_0 = arith.constant 0 : i32
    %c0_i32_1 = arith.constant 0 : i32
    return %c0_i32, %c0_i32_0 : i32, i32
  }
  func.func @transform_3(%arg0: i32) -> (i32, i32) {
    %c0_i32 = arith.constant 0 : i32
    %c0_i32_0 = arith.constant 0 : i32
    return %arg0, %c0_i32 : i32, i32
  }
}

</mosaic_0001>

<bundles_post_ra>
// kernel: densenet121_forward.122
= control target key start
LH: loop header
LB: loop body
LE: loop exit
PB: predicated region body
PF: predicated region fallthrough
CT: control target
= control target key end

     0   :  { %s859_s15 = smov 0   ;;  %s946_s0 = inlined_call_operand.vmem [shape: bf16[128,256], index: 0, kind: input, shape index: {}]   ;;  %s947_s1 = inlined_call_operand.vmem [shape: bf16[2,256], index: 1, kind: input, shape index: {}]   ;;  %s948_s2 = inlined_call_operand.vmem [shape: bf16[256,128], index: 2, kind: input, shape index: {}]   ;;  %s949_s3 = inlined_call_operand.vmem [shape: f32[2,128], index: 3, kind: input, shape index: {}]   ;;  %s950_s4 = inlined_call_operand.vmem [shape: bf16[128,128], index: 4, kind: output, shape index: {}]  }
   0x1 LB: > { %s663_s16 = sadd.s32 4294967295, %s830_s15   ;;  %p667_p0 = scmp.ge.s32.totalorder %s830_s15, 1  ;;  %s830_s15 = sphi %s859_s15, %s14_s15  }
   0x2   : > { %p164_p1 = scmp.lt.s32.totalorder %s830_s15, 3 }
   0x4   : > { %p165_p2 = pnand %p667_p0, %p164_p1 }
   0x5   : > { %v808_v0 = vld [vmem:[%s948_s2 + $0x40] sm:$0xff] (!%p165_p2)   ;;  %v810_v2 = vld [vmem:[%s948_s2 + $0x48] sm:$0xff] (!%p165_p2)   ;;  %v812_v4 = vld [vmem:[%s948_s2 + $0x50] sm:$0xff] (!%p165_p2)   ;;  %s668_s7 = sshll.u32 (!%p165_p2), %s663_s16, 3  ;;  %v226_v9 = vlaneseq (!%p165_p2)  ;;  %v832_v13 = vmov (!%p165_p2), 1966171168  }
   0x6   : > { %168 = sbr.rel (%p165_p2) target bundleno = 273 (0x111), region = 36  ;;  %v809_v1 = vld [vmem:[%s948_s2] sm:$0xff] (!%p165_p2)   ;;  %742 = vmatprep.subr.bf16.mxu0 (!%p165_p2), %v808_v0  ;;  %782 = vmatprep.subr.bf16.mxu1 (!%p165_p2), %v808_v0  ;;  %v811_v3 = vld [vmem:[%s948_s2 + $0x8] sm:$0xff] (!%p165_p2)   ;;  %v813_v5 = vld [vmem:[%s948_s2 + $0x10] sm:$0xff] (!%p165_p2)   ;;  %p192_p3 = scmp.lt.s32.totalorder (!%p165_p2), %s668_s7, 15  ;;  %v224_v14 = vunpack.c.l.s4 (!%p165_p2), %v832_v13  ;;  %v833_v63 = vmov (!%p165_p2), 0  }
   0x7   : > { %743 = vmatpush3.bf16.msra.mxu0 (!%p165_p2), %v809_v1  ;;  %790 = vmatpush3.bf16.msra.mxu1 (!%p165_p2), %v809_v1  ;;  %v814_v6 = vld [vmem:[%s948_s2 + $0x58] sm:$0xff] (!%p165_p2)   ;;  %v816_v8 = vld [vmem:[%s948_s2 + $0x60] sm:$0xff] (!%p165_p2)   ;;  %v818_v11 = vld [vmem:[%s948_s2 + $0x68] sm:$0xff] (!%p165_p2)   ;;  %v905_v15 = vshrl.u32 (!%p165_p2), %v226_v9, 7 }
   0x8   : > { %744 = vmatprep.subr.bf16.mxu0 (!%p165_p2), %v810_v2  ;;  %783 = vmatprep.subr.bf16.mxu1 (!%p165_p2), %v810_v2  ;;  %v815_v7 = vld [vmem:[%s948_s2 + $0x18] sm:$0xff] (!%p165_p2)   ;;  %v817_v10 = vld [vmem:[%s948_s2 + $0x20] sm:$0xff] (!%p165_p2)   ;;  %v819_v16 = vld [vmem:[%s948_s2 + $0x28] sm:$0xff] (!%p165_p2)   ;;  %v225_v19 = vunpack.c.0.s8 (!%p165_p2), %v224_v14 }
   0x9   : > { %v673_v12 = vld.sshfl [vmem:[%s947_s1] sm:$0x11 pattern:$0x75316420] (!%p165_p2)  ;;  %v820_v17 = vld [vmem:[%s948_s2 + $0x70] sm:$0xff] (!%p165_p2)   ;;  %v822_v22 = vld [vmem:[%s948_s2 + $0x78] sm:$0xff] (!%p165_p2)  }
   0xa   : > { %v222_v18 = vcombine.high (!%p165_p2), %v673_v12, %v673_v12  ;;  %v228_v20 = vsub.s32 (!%p165_p2), %v225_v19, %v905_v15  ;;  %v821_v21 = vld [vmem:[%s948_s2 + $0x30] sm:$0xff] (!%p165_p2)   ;;  %v922_v25 = vsub.s32 (!%p165_p2), 0, %v905_v15  ;;  %v823_v30 = vld [vmem:[%s948_s2 + $0x38] sm:$0xff] (!%p165_p2)  }
   0xb   : > { %745 = vmatpush3.bf16.msra.mxu0 (!%p165_p2), %v811_v3  ;;  %791 = vmatpush3.bf16.msra.mxu1 (!%p165_p2), %v811_v3 }
   0xc   : > { %746 = vmatprep.subr.bf16.mxu0 (!%p165_p2), %v812_v4  ;;  %784 = vmatprep.subr.bf16.mxu1 (!%p165_p2), %v812_v4  ;;  %v229_v23 = vrot.slane (!%p165_p2), %v673_v12, %v228_v20  ;;  %v236_v24 = vrot.slane (!%p165_p2), %v222_v18, %v228_v20  ;;  %v549_v18 = vsub.s32 (!%p165_p2), 1, %v905_v15 }
   0xd   : > { %s952_s7 = smov (!%p192_p3, %s668_s7), 15 }
   0xe   : > { %s710_s21 = sshll.u32 %s952_s7, 3  ;;  %v238_v26 = vpack.i.b16 %v229_v23, %v229_v23  ;;  %v245_v27 = vpack.i.b16 %v236_v24, %v236_v24  ;;  %v265_v28 = vshrl.u32 %v229_v23, 16  ;;  %v272_v29 = vshrl.u32 %v236_v24, 16  ;;  %s672_s8 = sshll.u32 %s952_s7, 2 }
   0xf   : > { %747 = vmatpush3.bf16.msra.mxu0 %v813_v5  ;;  %792 = vmatpush3.bf16.msra.mxu1 %v813_v5  ;;  %s196_s28 = scalar_lea.vmem %s946_s0, %s710_s21  ;;  %s202_s11 = scalar_lea.vmem %s950_s4, %s672_s8 }
  0x10   : > { %748 = vmatprep.subr.bf16.mxu0 %v814_v6  ;;  %785 = vmatprep.subr.bf16.mxu1 %v814_v6  ;;  %v206_v31 = vld [vmem:[%s196_s28] sm:$0xff]  ;;  %v243_v32 = vrot.slane %v238_v26, %v922_v25  ;;  %v250_v33 = vrot.slane %v245_v27, %v922_v25  ;;  %v266_v34 = vpack.i.b16 %v265_v28, %v265_v28  ;;  %v207_v35 = vld [vmem:[%s196_s28 + $0x8] sm:$0xff]  ;;  %v208_v41 = vld [vmem:[%s196_s28 + $0x10] sm:$0xff] }
  0x11   : > { %v273_v36 = vpack.i.b16 %v272_v29, %v272_v29  ;;  %v210_v37 = vld [vmem:[%s196_s28 + $0x20] sm:$0xff]  ;;  %v211_v38 = vld [vmem:[%s196_s28 + $0x28] sm:$0xff]  ;;  %v209_v42 = vld [vmem:[%s196_s28 + $0x18] sm:$0xff] }
  0x12   : > { %v674_v39 = vcombine.low %v243_v32, %v250_v33  ;;  %v271_v40 = vrot.slane %v266_v34, %v922_v25  ;;  %v212_v43 = vld [vmem:[%s196_s28 + $0x30] sm:$0xff]  ;;  %v213_v45 = vld [vmem:[%s196_s28 + $0x38] sm:$0xff] }
  0x13   : > { %749 = vmatpush3.bf16.msra.mxu0 %v815_v7  ;;  %793 = vmatpush3.bf16.msra.mxu1 %v815_v7  ;;  %v278_v44 = vrot.slane %v273_v36, %v922_v25 }
  0x14   : > { %750 = vmatprep.subr.bf16.mxu0 %v816_v8  ;;  %786 = vmatprep.subr.bf16.mxu1 %v816_v8  ;;  %v257_v46 = vmul.bf16 %v674_v39, %v206_v31  ;;  %v258_v47 = vmul.bf16 %v674_v39, %v207_v35  ;;  %v261_v48 = vmul.bf16 %v674_v39, %v210_v37 }
  0x15   : > { %v262_v49 = vmul.bf16 %v674_v39, %v211_v38  ;;  %v675_v50 = vcombine.low %v271_v40, %v278_v44  ;;  %v259_v51 = vmul.bf16 %v674_v39, %v208_v41  ;;  %v260_v52 = vmul.bf16 %v674_v39, %v209_v42 }
  0x16   : > { %v263_v53 = vmul.bf16 %v674_v39, %v212_v43  ;;  %v264_v54 = vmul.bf16 %v674_v39, %v213_v45 }
  0x17   : > { %751 = vmatpush3.bf16.msra.mxu0 %v817_v10  ;;  %794 = vmatpush3.bf16.msra.mxu1 %v817_v10  ;;  %v285_v55 = vadd.bf16 %v675_v50, %v257_v46  ;;  %v286_v56 = vadd.bf16 %v675_v50, %v258_v47  ;;  %v289_v57 = vadd.bf16 %v675_v50, %v261_v48 }
  0x18   : > { %752 = vmatprep.subr.bf16.mxu0 %v818_v11  ;;  %787 = vmatprep.subr.bf16.mxu1 %v818_v11  ;;  %v290_v58 = vadd.bf16 %v675_v50, %v262_v49  ;;  %v287_v59 = vadd.bf16 %v675_v50, %v259_v51  ;;  %v288_v60 = vadd.bf16 %v675_v50, %v260_v52 }
  0x19   : > { %v291_v61 = vadd.bf16 %v675_v50, %v263_v53  ;;  %v292_v62 = vadd.bf16 %v675_v50, %v264_v54  ;;  %v293_v0 = vmax.bf16 %v833_v63, %v285_v55  ;;  %v294_v1 = vmax.bf16 %v833_v63, %v286_v56 }
  0x1a   : > { %v297_v2 = vmax.bf16 %v833_v63, %v289_v57  ;;  %v298_v3 = vmax.bf16 %v833_v63, %v290_v58  ;;  %v295_v4 = vmax.bf16 %v833_v63, %v287_v59  ;;  %v296_v5 = vmax.bf16 %v833_v63, %v288_v60 }
  0x1b   : > { %753 = vmatpush3.bf16.msra.mxu0 %v819_v16  ;;  %795 = vmatpush3.bf16.msra.mxu1 %v819_v16  ;;  %v299_v6 = vmax.bf16 %v833_v63, %v291_v61  ;;  %v300_v7 = vmax.bf16 %v833_v63, %v292_v62  ;;  %v677_v8 = vcombine.high %v293_v0, %v294_v1 }
  0x1c   : > { %754 = vmatprep.subr.bf16.mxu0 %v820_v17  ;;  %788 = vmatprep.subr.bf16.mxu1 %v820_v17  ;;  %v681_v9 = vcombine.high %v297_v2, %v298_v3  ;;  %v676_v10 = vcombine.low %v293_v0, %v294_v1  ;;  %v680_v11 = vcombine.low %v297_v2, %v298_v3  ;;  %v534_v17 = vld [vmem:[%s949_s3] sm:$0x3] }
  0x1d   : > { %v679_v12 = vcombine.high %v295_v4, %v296_v5  ;;  %v683_v13 = vcombine.high %v299_v6, %v300_v7  ;;  %501 = vmatprep.mubr.bf16.mxu0 %v677_v8  ;;  %v678_v14 = vcombine.low %v295_v4, %v296_v5  ;;  %v682_v16 = vcombine.low %v299_v6, %v300_v7 }
  0x1e   : > { %517 = vmatprep.mubr.bf16.mxu1 %v681_v9  ;;  %v550_v26 = vrot.slane %v534_v17, %v549_v18 }
  0x1f   : > { %755 = vmatpush3.bf16.msra.mxu0 %v821_v21  ;;  %796 = vmatpush3.bf16.msra.mxu1 %v821_v21  ;;  %v538_v21 = vrot.slane %v534_v17, %v922_v25 }
  0x20   : > { %756 = vmatprep.subr.bf16.mxu0 %v822_v22  ;;  %789 = vmatprep.subr.bf16.mxu1 %v822_v22 }
  0x23   : > { %757 = vmatpush3.bf16.msra.mxu0 %v823_v30  ;;  %797 = vmatpush3.bf16.msra.mxu1 %v823_v30 }
  0x26   : > { %502 = vmatmul.mubr.bf16.vlgmr.msra.gmra.mrb[0].mxu0 %v676_v10  ;;  %518 = vmatmul.mubr.bf16.vlgmr.msra.gmra.mrb[0].mxu1 %v680_v11 }
  0x27   : > { %509 = vmatprep.mubr.bf16.mxu0 %v679_v12  ;;  %525 = vmatprep.mubr.bf16.mxu1 %v683_v13 }
  0x2e   : > { %510 = vmatmul.mubr.bf16.gmra.mrb[4].mxu0 %v678_v14  ;;  %526 = vmatmul.mubr.bf16.gmra.mrb[4].mxu1 %v682_v16 }
  0xf9   : > { %v758_v19 = vpop.f32.mrb[0].mxu0  ;;  %v770_v20 = vpop.f32.mrb[0].mxu1 }
  0xfa   : > { %v759_v22 = vpop.f32.mrb[1].mxu0  ;;  %v771_v23 = vpop.f32.mrb[1].mxu1 }
  0xfb   : > { %v760_v24 = vadd.f32 %v759_v22, %v758_v19  ;;  %v772_v27 = vadd.f32 %v771_v23, %v770_v20  ;;  %v761_v28 = vpop.f32.mrb[2].mxu0  ;;  %v773_v29 = vpop.f32.mrb[2].mxu1 }
  0xfc   : > { %v762_v30 = vpop.f32.mrb[3].mxu0  ;;  %v774_v31 = vpop.f32.mrb[3].mxu1 }
  0xfd   : > { %v539_v32 = vmul.f32 %v760_v24, %v538_v21  ;;  %v543_v33 = vmul.f32 %v772_v27, %v538_v21  ;;  %v763_v34 = vadd.f32 %v762_v30, %v761_v28  ;;  %v775_v35 = vadd.f32 %v774_v31, %v773_v29 }
  0xff   : > { %v551_v36 = vadd.f32 %v550_v26, %v539_v32  ;;  %v555_v15 = vadd.f32 %v550_v26, %v543_v33  ;;  %v540_v37 = vmul.f32 %v763_v34, %v538_v21  ;;  %v544_v38 = vmul.f32 %v775_v35, %v538_v21 }
 0x101   : > { %v552_v25 = vadd.f32 %v550_v26, %v540_v37  ;;  %v556_v39 = vadd.f32 %v550_v26, %v544_v38  ;;  %v764_v40 = vpop.f32.mrb[4].mxu0  ;;  %v776_v41 = vpop.f32.mrb[4].mxu1  ;;  %v559_v42 = vmax.f32 %v551_v36, 0.0  ;;  %v563_v43 = vmax.f32 %v555_v15, 0.0 }
 0x102   : > { %v765_v44 = vpop.f32.mrb[5].mxu0  ;;  %v777_v45 = vpop.f32.mrb[5].mxu1 }
 0x103   : > { %v560_v46 = vmax.f32 %v552_v25, 0.0  ;;  %v564_v47 = vmax.f32 %v556_v39, 0.0  ;;  %v766_v48 = vadd.f32 %v765_v44, %v764_v40  ;;  %v778_v49 = vadd.f32 %v777_v45, %v776_v41  ;;  %v767_v50 = vpop.f32.mrb[6].mxu0  ;;  %v779_v51 = vpop.f32.mrb[6].mxu1 }
 0x104   : > { %v768_v52 = vpop.f32.mrb[7].mxu0  ;;  %v780_v53 = vpop.f32.mrb[7].mxu1 }
 0x105   : > { %v722_v54 = vpack.c.bf16 %v560_v46, %v559_v42  ;;  %v732_v55 = vpack.c.bf16 %v564_v47, %v563_v43  ;;  %v541_v56 = vmul.f32 %v766_v48, %v538_v21  ;;  %v545_v57 = vmul.f32 %v778_v49, %v538_v21 }
 0x106   : > { %v769_v58 = vadd.f32 %v768_v52, %v767_v50  ;;  %v781_v59 = vadd.f32 %v780_v53, %v779_v51 }
 0x107   : > { %723 = vst [vmem:[%s202_s11] sm:$0xff] %v722_v54   ;;  %740 = vst [vmem:[%s202_s11 + $0x10] sm:$0xff] %v732_v55   ;;  %v553_v60 = vadd.f32 %v550_v26, %v541_v56  ;;  %v557_v61 = vadd.f32 %v550_v26, %v545_v57 }
 0x108   : > { %v542_v62 = vmul.f32 %v769_v58, %v538_v21  ;;  %v546_v63 = vmul.f32 %v781_v59, %v538_v21 }
 0x109   : > { %v561_v2 = vmax.f32 %v553_v60, 0.0  ;;  %v565_v3 = vmax.f32 %v557_v61, 0.0 }
 0x10a   : > { %v554_v0 = vadd.f32 %v550_v26, %v542_v62  ;;  %v558_v1 = vadd.f32 %v550_v26, %v546_v63 }
 0x10c   : > { %v562_v4 = vmax.f32 %v554_v0, 0.0  ;;  %v566_v5 = vmax.f32 %v558_v1, 0.0 }
 0x10e   : > { %v727_v6 = vpack.c.bf16 %v562_v4, %v561_v2  ;;  %v737_v7 = vpack.c.bf16 %v566_v5, %v565_v3 }
 0x110   : > { %739 = vst [vmem:[%s202_s11 + $0x8] sm:$0xff] %v727_v6   ;;  %741 = vst [vmem:[%s202_s11 + $0x18] sm:$0xff] %v737_v7  }
 0x111 PF: > { %s14_s15 = sadd.s32 1, %s830_s15  }
 0x112   : > { %p11_p4 = scmp.ge.s32.totalorder %s14_s15, 4  }
 0x114   :  { %13 = sbr.rel (!%p11_p4) target bundleno = 1 (0x1), region = 66 }

// kernel: densenet121_forward.121
= control target key start
LH: loop header
LB: loop body
LE: loop exit
PB: predicated region body
PF: predicated region fallthrough
CT: control target
= control target key end

     0   :  { %s1428_s12 = smov 0   ;;  %s1620_s0 = inlined_call_operand.vmem [shape: bf16[512,256], index: 0, kind: input, shape index: {}]   ;;  %s1621_s1 = inlined_call_operand.vmem [shape: bf16[256,128], index: 1, kind: input, shape index: {}]   ;;  %s1622_s2 = inlined_call_operand.vmem [shape: f32[2,128], index: 2, kind: input, shape index: {}]   ;;  %s1623_s3 = inlined_call_operand.vmem [shape: bf16[512,128], index: 3, kind: output, shape index: {}]  }
   0x1 LB: > { %s980_s13 = sadd.s32 4294967295, %s1406_s12   ;;  %p984_p0 = scmp.ge.s32.totalorder %s1406_s12, 1  ;;  %s1406_s12 = sphi %s1428_s12, %s13_s12  }
   0x2   : > { %p139_p1 = scmp.lt.s32.totalorder %s1406_s12, 3 }
   0x4   : > { %p140_p2 = pnand %p984_p0, %p139_p1 }
   0x5   : > { %v1336_v0 = vld [vmem:[%s1621_s1 + $0x40] sm:$0xff] (!%p140_p2)   ;;  %s985_s16 = sshll.u32 (!%p140_p2), %s980_s13, 5  ;;  %v1338_v2 = vld [vmem:[%s1621_s1 + $0x48] sm:$0xff] (!%p140_p2)   ;;  %v1340_v4 = vld [vmem:[%s1621_s1 + $0x50] sm:$0xff] (!%p140_p2)   ;;  %v660_v48 = vlaneseq (!%p140_p2) }
   0x6   : > { %143 = sbr.rel (%p140_p2) target bundleno = 321 (0x141), region = 32  ;;  %v1337_v1 = vld [vmem:[%s1621_s1] sm:$0xff] (!%p140_p2)   ;;  %1200 = vmatprep.subr.bf16.mxu0 (!%p140_p2), %v1336_v0  ;;  %1312 = vmatprep.subr.bf16.mxu1 (!%p140_p2), %v1336_v0  ;;  %v1339_v3 = vld [vmem:[%s1621_s1 + $0x8] sm:$0xff] (!%p140_p2)   ;;  %p165_p3 = scmp.lt.s32.totalorder (!%p140_p2), %s985_s16, 63  ;;  %v1341_v5 = vld [vmem:[%s1621_s1 + $0x10] sm:$0xff] (!%p140_p2)  }
   0x7   : > { %1201 = vmatpush3.bf16.msra.mxu0 (!%p140_p2), %v1337_v1  ;;  %1320 = vmatpush3.bf16.msra.mxu1 (!%p140_p2), %v1337_v1  ;;  %v1342_v6 = vld [vmem:[%s1621_s1 + $0x58] sm:$0xff] (!%p140_p2)   ;;  %v1344_v8 = vld [vmem:[%s1621_s1 + $0x60] sm:$0xff] (!%p140_p2)   ;;  %v1346_v10 = vld [vmem:[%s1621_s1 + $0x68] sm:$0xff] (!%p140_p2)   ;;  %v661_v49 = vshrl.u32 (!%p140_p2), %v660_v48, 7 }
   0x8   : > { %1202 = vmatprep.subr.bf16.mxu0 (!%p140_p2), %v1338_v2  ;;  %1313 = vmatprep.subr.bf16.mxu1 (!%p140_p2), %v1338_v2  ;;  %v1343_v7 = vld [vmem:[%s1621_s1 + $0x18] sm:$0xff] (!%p140_p2)   ;;  %v1345_v9 = vld [vmem:[%s1621_s1 + $0x20] sm:$0xff] (!%p140_p2)   ;;  %v1347_v13 = vld [vmem:[%s1621_s1 + $0x28] sm:$0xff] (!%p140_p2)  }
   0x9   : > { %v1348_v14 = vld [vmem:[%s1621_s1 + $0x70] sm:$0xff] (!%p140_p2)   ;;  %v1350_v16 = vld [vmem:[%s1621_s1 + $0x78] sm:$0xff] (!%p140_p2)   ;;  %v662_v50 = vsub.s32 (!%p140_p2), 0, %v661_v49  ;;  %v659_v51 = vld [vmem:[%s1622_s2] sm:$0x3] (!%p140_p2)  ;;  %v698_v52 = vsub.s32 (!%p140_p2), 1, %v661_v49 }
   0xa   : > { %v1349_v15 = vld [vmem:[%s1621_s1 + $0x30] sm:$0xff] (!%p140_p2)   ;;  %v1351_v17 = vld [vmem:[%s1621_s1 + $0x38] sm:$0xff] (!%p140_p2)  }
   0xb   : > { %1203 = vmatpush3.bf16.msra.mxu0 (!%p140_p2), %v1339_v3  ;;  %1321 = vmatpush3.bf16.msra.mxu1 (!%p140_p2), %v1339_v3  ;;  %v1527_v55 = vrot.slane (!%p140_p2), %v659_v51, %v662_v50  ;;  %v1529_v59 = vrot.slane (!%p140_p2), %v659_v51, %v698_v52 }
   0xc   : > { %1204 = vmatprep.subr.bf16.mxu0 (!%p140_p2), %v1340_v4  ;;  %1314 = vmatprep.subr.bf16.mxu1 (!%p140_p2), %v1340_v4 }
   0xd   : > { %s1625_s16 = smov (!%p165_p3, %s985_s16), 63 }
   0xe   : > { %s1072_s4 = sshll.u32 %s1625_s16, 3  ;;  %s989_s28 = sshll.u32 %s1625_s16, 2 }
   0xf   : > { %1205 = vmatpush3.bf16.msra.mxu0 %v1341_v5  ;;  %1322 = vmatpush3.bf16.msra.mxu1 %v1341_v5  ;;  %s1469_s9 = scalar_lea.vmem %s1620_s0, %s1072_s4  ;;  %s1543_s16 = scalar_lea.vmem %s1623_s3, %s989_s28 }
  0x10   : > { %1206 = vmatprep.subr.bf16.mxu0 %v1342_v6  ;;  %1315 = vmatprep.subr.bf16.mxu1 %v1342_v6  ;;  %v1354_v11 = vld [vmem:[%s1469_s9 + $0x4] ss:$8 sps:$4 sm:$0xff]   ;;  %v1352_v18 = vld [vmem:[%s1469_s9] ss:$8 sps:$4 sm:$0xff]   ;;  %v1358_v20 = vld [vmem:[%s1469_s9 + $0x14] ss:$8 sps:$4 sm:$0xff]  }
  0x11   : > { %v1357_v12 = vld [vmem:[%s1469_s9 + $0x84] ss:$8 sps:$4 sm:$0xff]   ;;  %530 = vmatprep.mubr.bf16.mxu0 %v1354_v11  ;;  %v1355_v19 = vld [vmem:[%s1469_s9 + $0x80] ss:$8 sps:$4 sm:$0xff]   ;;  %v1360_v21 = vld [vmem:[%s1469_s9 + $0x94] ss:$8 sps:$4 sm:$0xff]  }
  0x12   : > { %594 = vmatprep.mubr.bf16.mxu1 %v1357_v12  ;;  %v1362_v22 = vld [vmem:[%s1469_s9 + $0x10] ss:$8 sps:$4 sm:$0xff]   ;;  %v1364_v24 = vld [vmem:[%s1469_s9 + $0x24] ss:$8 sps:$4 sm:$0xff]   ;;  %v1368_v26 = vld [vmem:[%s1469_s9 + $0x20] ss:$8 sps:$4 sm:$0xff]  }
  0x13   : > { %1207 = vmatpush3.bf16.msra.mxu0 %v1343_v7  ;;  %1323 = vmatpush3.bf16.msra.mxu1 %v1343_v7  ;;  %v1363_v23 = vld [vmem:[%s1469_s9 + $0x90] ss:$8 sps:$4 sm:$0xff]   ;;  %v1366_v25 = vld [vmem:[%s1469_s9 + $0xa4] ss:$8 sps:$4 sm:$0xff]   ;;  %v1369_v27 = vld [vmem:[%s1469_s9 + $0xa0] ss:$8 sps:$4 sm:$0xff]  }
  0x14   : > { %1208 = vmatprep.subr.bf16.mxu0 %v1344_v8  ;;  %1316 = vmatprep.subr.bf16.mxu1 %v1344_v8  ;;  %v1370_v28 = vld [vmem:[%s1469_s9 + $0x34] ss:$8 sps:$4 sm:$0xff]   ;;  %v1374_v30 = vld [vmem:[%s1469_s9 + $0x30] ss:$8 sps:$4 sm:$0xff]   ;;  %v1376_v32 = vld [vmem:[%s1469_s9 + $0x44] ss:$8 sps:$4 sm:$0xff]  }
  0x15   : > { %v1372_v29 = vld [vmem:[%s1469_s9 + $0xb4] ss:$8 sps:$4 sm:$0xff]   ;;  %v1375_v31 = vld [vmem:[%s1469_s9 + $0xb0] ss:$8 sps:$4 sm:$0xff]   ;;  %v1378_v33 = vld [vmem:[%s1469_s9 + $0xc4] ss:$8 sps:$4 sm:$0xff]  }
  0x16   : > { %v1380_v34 = vld [vmem:[%s1469_s9 + $0x40] ss:$8 sps:$4 sm:$0xff]   ;;  %v1382_v36 = vld [vmem:[%s1469_s9 + $0x54] ss:$8 sps:$4 sm:$0xff]   ;;  %v1386_v38 = vld [vmem:[%s1469_s9 + $0x50] ss:$8 sps:$4 sm:$0xff]  }
  0x17   : > { %1209 = vmatpush3.bf16.msra.mxu0 %v1345_v9  ;;  %1324 = vmatpush3.bf16.msra.mxu1 %v1345_v9  ;;  %v1381_v35 = vld [vmem:[%s1469_s9 + $0xc0] ss:$8 sps:$4 sm:$0xff]   ;;  %v1384_v37 = vld [vmem:[%s1469_s9 + $0xd4] ss:$8 sps:$4 sm:$0xff]   ;;  %v1387_v39 = vld [vmem:[%s1469_s9 + $0xd0] ss:$8 sps:$4 sm:$0xff]  }
  0x18   : > { %1210 = vmatprep.subr.bf16.mxu0 %v1346_v10  ;;  %1317 = vmatprep.subr.bf16.mxu1 %v1346_v10  ;;  %v1388_v40 = vld [vmem:[%s1469_s9 + $0x64] ss:$8 sps:$4 sm:$0xff]   ;;  %v1392_v42 = vld [vmem:[%s1469_s9 + $0x60] ss:$8 sps:$4 sm:$0xff]   ;;  %v1394_v44 = vld [vmem:[%s1469_s9 + $0x74] ss:$8 sps:$4 sm:$0xff]  }
  0x19   : > { %v1390_v41 = vld [vmem:[%s1469_s9 + $0xe4] ss:$8 sps:$4 sm:$0xff]   ;;  %v1393_v43 = vld [vmem:[%s1469_s9 + $0xe0] ss:$8 sps:$4 sm:$0xff]   ;;  %v1396_v45 = vld [vmem:[%s1469_s9 + $0xf4] ss:$8 sps:$4 sm:$0xff]  }
  0x1a   : > { %v1398_v46 = vld [vmem:[%s1469_s9 + $0x70] ss:$8 sps:$4 sm:$0xff]  }
  0x1b   : > { %1211 = vmatpush3.bf16.msra.mxu0 %v1347_v13  ;;  %1325 = vmatpush3.bf16.msra.mxu1 %v1347_v13  ;;  %v1399_v47 = vld [vmem:[%s1469_s9 + $0xf0] ss:$8 sps:$4 sm:$0xff]  }
  0x1c   : > { %1212 = vmatprep.subr.bf16.mxu0 %v1348_v14  ;;  %1318 = vmatprep.subr.bf16.mxu1 %v1348_v14 }
  0x1f   : > { %1213 = vmatpush3.bf16.msra.mxu0 %v1349_v15  ;;  %1326 = vmatpush3.bf16.msra.mxu1 %v1349_v15 }
  0x20   : > { %1214 = vmatprep.subr.bf16.mxu0 %v1350_v16  ;;  %1319 = vmatprep.subr.bf16.mxu1 %v1350_v16 }
  0x23   : > { %1215 = vmatpush3.bf16.msra.mxu0 %v1351_v17  ;;  %1327 = vmatpush3.bf16.msra.mxu1 %v1351_v17 }
  0x26   : > { %531 = vmatmul.mubr.bf16.vlgmr.msra.gmra.mrb[0].mxu0 %v1352_v18  ;;  %595 = vmatmul.mubr.bf16.vlgmr.msra.gmra.mrb[0].mxu1 %v1355_v19 }
  0x27   : > { %538 = vmatprep.mubr.bf16.mxu0 %v1358_v20  ;;  %602 = vmatprep.mubr.bf16.mxu1 %v1360_v21 }
  0x2e   : > { %539 = vmatmul.mubr.bf16.gmra.mrb[4].mxu0 %v1362_v22  ;;  %603 = vmatmul.mubr.bf16.gmra.mrb[4].mxu1 %v1363_v23 }
  0x2f   : > { %546 = vmatprep.mubr.bf16.mxu0 %v1364_v24  ;;  %610 = vmatprep.mubr.bf16.mxu1 %v1366_v25 }
  0x36   : > { %547 = vmatmul.mubr.bf16.gmra.mrb[8].mxu0 %v1368_v26  ;;  %611 = vmatmul.mubr.bf16.gmra.mrb[8].mxu1 %v1369_v27 }
  0x37   : > { %554 = vmatprep.mubr.bf16.mxu0 %v1370_v28  ;;  %618 = vmatprep.mubr.bf16.mxu1 %v1372_v29 }
  0x3e   : > { %555 = vmatmul.mubr.bf16.gmra.mrb[12].mxu0 %v1374_v30  ;;  %619 = vmatmul.mubr.bf16.gmra.mrb[12].mxu1 %v1375_v31 }
  0x3f   : > { %562 = vmatprep.mubr.bf16.mxu0 %v1376_v32  ;;  %626 = vmatprep.mubr.bf16.mxu1 %v1378_v33 }
  0x46   : > { %563 = vmatmul.mubr.bf16.gmra.mrb[16].mxu0 %v1380_v34  ;;  %627 = vmatmul.mubr.bf16.gmra.mrb[16].mxu1 %v1381_v35 }
  0x47   : > { %570 = vmatprep.mubr.bf16.mxu0 %v1382_v36  ;;  %634 = vmatprep.mubr.bf16.mxu1 %v1384_v37 }
  0x4e   : > { %571 = vmatmul.mubr.bf16.gmra.mrb[20].mxu0 %v1386_v38  ;;  %635 = vmatmul.mubr.bf16.gmra.mrb[20].mxu1 %v1387_v39 }
  0x4f   : > { %578 = vmatprep.mubr.bf16.mxu0 %v1388_v40  ;;  %642 = vmatprep.mubr.bf16.mxu1 %v1390_v41 }
  0x56   : > { %579 = vmatmul.mubr.bf16.gmra.mrb[24].mxu0 %v1392_v42  ;;  %643 = vmatmul.mubr.bf16.gmra.mrb[24].mxu1 %v1393_v43 }
  0x57   : > { %586 = vmatprep.mubr.bf16.mxu0 %v1394_v44  ;;  %650 = vmatprep.mubr.bf16.mxu1 %v1396_v45 }
  0x5e   : > { %587 = vmatmul.mubr.bf16.gmra.mrb[28].mxu0 %v1398_v46  ;;  %651 = vmatmul.mubr.bf16.gmra.mrb[28].mxu1 %v1399_v47 }
  0xf9   : > { %v1216_v53 = vpop.f32.mrb[0].mxu0  ;;  %v1264_v54 = vpop.f32.mrb[0].mxu1 }
  0xfa   : > { %v1217_v56 = vpop.f32.mrb[1].mxu0  ;;  %v1265_v57 = vpop.f32.mrb[1].mxu1 }
  0xfb   : > { %v1218_v58 = vadd.f32 %v1217_v56, %v1216_v53  ;;  %v1266_v60 = vadd.f32 %v1265_v57, %v1264_v54  ;;  %v1219_v61 = vpop.f32.mrb[2].mxu0  ;;  %v1267_v62 = vpop.f32.mrb[2].mxu1 }
  0xfc   : > { %v1220_v63 = vpop.f32.mrb[3].mxu0  ;;  %v1268_v0 = vpop.f32.mrb[3].mxu1 }
  0xfd   : > { %v664_v1 = vmul.f32 %v1218_v58, %v1527_v55  ;;  %v680_v2 = vmul.f32 %v1266_v60, %v1527_v55  ;;  %v1221_v3 = vadd.f32 %v1220_v63, %v1219_v61  ;;  %v1269_v4 = vadd.f32 %v1268_v0, %v1267_v62 }
  0xff   : > { %v700_v5 = vadd.f32 %v1529_v59, %v664_v1  ;;  %v716_v6 = vadd.f32 %v1529_v59, %v680_v2  ;;  %v665_v7 = vmul.f32 %v1221_v3, %v1527_v55  ;;  %v681_v8 = vmul.f32 %v1269_v4, %v1527_v55 }
 0x101   : > { %v701_v9 = vadd.f32 %v1529_v59, %v665_v7  ;;  %v717_v10 = vadd.f32 %v1529_v59, %v681_v8  ;;  %v1222_v11 = vpop.f32.mrb[4].mxu0  ;;  %v1270_v12 = vpop.f32.mrb[4].mxu1  ;;  %v732_v13 = vmax.f32 %v700_v5, 0.0  ;;  %v748_v14 = vmax.f32 %v716_v6, 0.0 }
 0x102   : > { %v1223_v15 = vpop.f32.mrb[5].mxu0  ;;  %v1271_v16 = vpop.f32.mrb[5].mxu1 }
 0x103   : > { %v733_v17 = vmax.f32 %v701_v9, 0.0  ;;  %v749_v18 = vmax.f32 %v717_v10, 0.0  ;;  %v1224_v19 = vadd.f32 %v1223_v15, %v1222_v11  ;;  %v1272_v20 = vadd.f32 %v1271_v16, %v1270_v12  ;;  %v1225_v21 = vpop.f32.mrb[6].mxu0  ;;  %v1273_v22 = vpop.f32.mrb[6].mxu1 }
 0x104   : > { %v1226_v23 = vpop.f32.mrb[7].mxu0  ;;  %v1274_v24 = vpop.f32.mrb[7].mxu1 }
 0x105   : > { %v1108_v25 = vpack.c.bf16 %v733_v17, %v732_v13  ;;  %v1148_v26 = vpack.c.bf16 %v749_v18, %v748_v14  ;;  %v666_v27 = vmul.f32 %v1224_v19, %v1527_v55  ;;  %v682_v28 = vmul.f32 %v1272_v20, %v1527_v55 }
 0x106   : > { %v1227_v29 = vadd.f32 %v1226_v23, %v1225_v21  ;;  %v1275_v30 = vadd.f32 %v1274_v24, %v1273_v22 }
 0x107   : > { %1109 = vst [vmem:[%s1543_s16] sm:$0xff] %v1108_v25   ;;  %1192 = vst [vmem:[%s1543_s16 + $0x40] sm:$0xff] %v1148_v26   ;;  %v702_v31 = vadd.f32 %v1529_v59, %v666_v27  ;;  %v718_v32 = vadd.f32 %v1529_v59, %v682_v28 }
 0x108   : > { %v667_v33 = vmul.f32 %v1227_v29, %v1527_v55  ;;  %v683_v34 = vmul.f32 %v1275_v30, %v1527_v55 }
 0x109   : > { %v1228_v35 = vpop.f32.mrb[8].mxu0  ;;  %v1276_v36 = vpop.f32.mrb[8].mxu1  ;;  %v734_v45 = vmax.f32 %v702_v31, 0.0  ;;  %v750_v46 = vmax.f32 %v718_v32, 0.0 }
 0x10a   : > { %v703_v37 = vadd.f32 %v1529_v59, %v667_v33  ;;  %v719_v38 = vadd.f32 %v1529_v59, %v683_v34  ;;  %v1229_v39 = vpop.f32.mrb[9].mxu0  ;;  %v1277_v40 = vpop.f32.mrb[9].mxu1 }
 0x10b   : > { %v1230_v41 = vadd.f32 %v1229_v39, %v1228_v35  ;;  %v1278_v42 = vadd.f32 %v1277_v40, %v1276_v36  ;;  %v1231_v43 = vpop.f32.mrb[10].mxu0  ;;  %v1279_v44 = vpop.f32.mrb[10].mxu1 }
 0x10c   : > { %v735_v47 = vmax.f32 %v703_v37, 0.0  ;;  %v751_v48 = vmax.f32 %v719_v38, 0.0  ;;  %v1232_v49 = vpop.f32.mrb[11].mxu0  ;;  %v1280_v50 = vpop.f32.mrb[11].mxu1 }
 0x10d   : > { %v668_v51 = vmul.f32 %v1230_v41, %v1527_v55  ;;  %v684_v52 = vmul.f32 %v1278_v42, %v1527_v55  ;;  %v1233_v53 = vadd.f32 %v1232_v49, %v1231_v43  ;;  %v1281_v54 = vadd.f32 %v1280_v50, %v1279_v44 }
 0x10e   : > { %v1113_v56 = vpack.c.bf16 %v735_v47, %v734_v45  ;;  %v1153_v57 = vpack.c.bf16 %v751_v48, %v750_v46 }
 0x10f   : > { %v704_v58 = vadd.f32 %v1529_v59, %v668_v51  ;;  %v720_v60 = vadd.f32 %v1529_v59, %v684_v52  ;;  %v669_v61 = vmul.f32 %v1233_v53, %v1527_v55  ;;  %v685_v62 = vmul.f32 %v1281_v54, %v1527_v55 }
 0x110   : > { %1185 = vst [vmem:[%s1543_s16 + $0x8] sm:$0xff] %v1113_v56   ;;  %1193 = vst [vmem:[%s1543_s16 + $0x48] sm:$0xff] %v1153_v57  }
 0x111   : > { %v705_v63 = vadd.f32 %v1529_v59, %v669_v61  ;;  %v721_v0 = vadd.f32 %v1529_v59, %v685_v62  ;;  %v1234_v1 = vpop.f32.mrb[12].mxu0  ;;  %v1282_v2 = vpop.f32.mrb[12].mxu1  ;;  %v736_v3 = vmax.f32 %v704_v58, 0.0  ;;  %v752_v4 = vmax.f32 %v720_v60, 0.0 }
 0x112   : > { %v1235_v5 = vpop.f32.mrb[13].mxu0  ;;  %v1283_v6 = vpop.f32.mrb[13].mxu1 }
 0x113   : > { %v737_v7 = vmax.f32 %v705_v63, 0.0  ;;  %v753_v8 = vmax.f32 %v721_v0, 0.0  ;;  %v1236_v9 = vadd.f32 %v1235_v5, %v1234_v1  ;;  %v1284_v10 = vadd.f32 %v1283_v6, %v1282_v2  ;;  %v1237_v11 = vpop.f32.mrb[14].mxu0  ;;  %v1285_v12 = vpop.f32.mrb[14].mxu1 }
 0x114   : > { %v1238_v13 = vpop.f32.mrb[15].mxu0  ;;  %v1286_v14 = vpop.f32.mrb[15].mxu1 }
 0x115   : > { %v1118_v15 = vpack.c.bf16 %v737_v7, %v736_v3  ;;  %v1158_v16 = vpack.c.bf16 %v753_v8, %v752_v4  ;;  %v670_v17 = vmul.f32 %v1236_v9, %v1527_v55  ;;  %v686_v18 = vmul.f32 %v1284_v10, %v1527_v55 }
 0x116   : > { %v1239_v19 = vadd.f32 %v1238_v13, %v1237_v11  ;;  %v1287_v20 = vadd.f32 %v1286_v14, %v1285_v12 }
 0x117   : > { %1186 = vst [vmem:[%s1543_s16 + $0x10] sm:$0xff] %v1118_v15   ;;  %1194 = vst [vmem:[%s1543_s16 + $0x50] sm:$0xff] %v1158_v16   ;;  %v706_v21 = vadd.f32 %v1529_v59, %v670_v17  ;;  %v722_v22 = vadd.f32 %v1529_v59, %v686_v18 }
 0x118   : > { %v671_v23 = vmul.f32 %v1239_v19, %v1527_v55  ;;  %v687_v24 = vmul.f32 %v1287_v20, %v1527_v55 }
 0x119   : > { %v1240_v25 = vpop.f32.mrb[16].mxu0  ;;  %v1288_v26 = vpop.f32.mrb[16].mxu1  ;;  %v738_v35 = vmax.f32 %v706_v21, 0.0  ;;  %v754_v36 = vmax.f32 %v722_v22, 0.0 }
 0x11a   : > { %v707_v27 = vadd.f32 %v1529_v59, %v671_v23  ;;  %v723_v28 = vadd.f32 %v1529_v59, %v687_v24  ;;  %v1241_v29 = vpop.f32.mrb[17].mxu0  ;;  %v1289_v30 = vpop.f32.mrb[17].mxu1 }
 0x11b   : > { %v1242_v31 = vadd.f32 %v1241_v29, %v1240_v25  ;;  %v1290_v32 = vadd.f32 %v1289_v30, %v1288_v26  ;;  %v1243_v33 = vpop.f32.mrb[18].mxu0  ;;  %v1291_v34 = vpop.f32.mrb[18].mxu1 }
 0x11c   : > { %v739_v37 = vmax.f32 %v707_v27, 0.0  ;;  %v755_v38 = vmax.f32 %v723_v28, 0.0  ;;  %v1244_v39 = vpop.f32.mrb[19].mxu0  ;;  %v1292_v40 = vpop.f32.mrb[19].mxu1 }
 0x11d   : > { %v672_v41 = vmul.f32 %v1242_v31, %v1527_v55  ;;  %v688_v42 = vmul.f32 %v1290_v32, %v1527_v55  ;;  %v1245_v43 = vadd.f32 %v1244_v39, %v1243_v33  ;;  %v1293_v44 = vadd.f32 %v1292_v40, %v1291_v34 }
 0x11e   : > { %v1123_v45 = vpack.c.bf16 %v739_v37, %v738_v35  ;;  %v1163_v46 = vpack.c.bf16 %v755_v38, %v754_v36 }
 0x11f   : > { %v708_v47 = vadd.f32 %v1529_v59, %v672_v41  ;;  %v724_v48 = vadd.f32 %v1529_v59, %v688_v42  ;;  %v673_v49 = vmul.f32 %v1245_v43, %v1527_v55  ;;  %v689_v50 = vmul.f32 %v1293_v44, %v1527_v55 }
 0x120   : > { %1187 = vst [vmem:[%s1543_s16 + $0x18] sm:$0xff] %v1123_v45   ;;  %1195 = vst [vmem:[%s1543_s16 + $0x58] sm:$0xff] %v1163_v46  }
 0x121   : > { %v709_v51 = vadd.f32 %v1529_v59, %v673_v49  ;;  %v725_v52 = vadd.f32 %v1529_v59, %v689_v50  ;;  %v1246_v53 = vpop.f32.mrb[20].mxu0  ;;  %v1294_v54 = vpop.f32.mrb[20].mxu1  ;;  %v740_v56 = vmax.f32 %v708_v47, 0.0  ;;  %v756_v57 = vmax.f32 %v724_v48, 0.0 }
 0x122   : > { %v1247_v58 = vpop.f32.mrb[21].mxu0  ;;  %v1295_v60 = vpop.f32.mrb[21].mxu1 }
 0x123   : > { %v741_v61 = vmax.f32 %v709_v51, 0.0  ;;  %v757_v62 = vmax.f32 %v725_v52, 0.0  ;;  %v1248_v63 = vadd.f32 %v1247_v58, %v1246_v53  ;;  %v1296_v0 = vadd.f32 %v1295_v60, %v1294_v54  ;;  %v1249_v1 = vpop.f32.mrb[22].mxu0  ;;  %v1297_v2 = vpop.f32.mrb[22].mxu1 }
 0x124   : > { %v1250_v3 = vpop.f32.mrb[23].mxu0  ;;  %v1298_v4 = vpop.f32.mrb[23].mxu1 }
 0x125   : > { %v1128_v5 = vpack.c.bf16 %v741_v61, %v740_v56  ;;  %v1168_v6 = vpack.c.bf16 %v757_v62, %v756_v57  ;;  %v674_v7 = vmul.f32 %v1248_v63, %v1527_v55  ;;  %v690_v8 = vmul.f32 %v1296_v0, %v1527_v55 }
 0x126   : > { %v1251_v9 = vadd.f32 %v1250_v3, %v1249_v1  ;;  %v1299_v10 = vadd.f32 %v1298_v4, %v1297_v2 }
 0x127   : > { %1188 = vst [vmem:[%s1543_s16 + $0x20] sm:$0xff] %v1128_v5   ;;  %1196 = vst [vmem:[%s1543_s16 + $0x60] sm:$0xff] %v1168_v6   ;;  %v710_v11 = vadd.f32 %v1529_v59, %v674_v7  ;;  %v726_v12 = vadd.f32 %v1529_v59, %v690_v8 }
 0x128   : > { %v675_v13 = vmul.f32 %v1251_v9, %v1527_v55  ;;  %v691_v14 = vmul.f32 %v1299_v10, %v1527_v55 }
 0x129   : > { %v1252_v15 = vpop.f32.mrb[24].mxu0  ;;  %v1300_v16 = vpop.f32.mrb[24].mxu1  ;;  %v742_v25 = vmax.f32 %v710_v11, 0.0  ;;  %v758_v26 = vmax.f32 %v726_v12, 0.0 }
 0x12a   : > { %v711_v17 = vadd.f32 %v1529_v59, %v675_v13  ;;  %v727_v18 = vadd.f32 %v1529_v59, %v691_v14  ;;  %v1253_v19 = vpop.f32.mrb[25].mxu0  ;;  %v1301_v20 = vpop.f32.mrb[25].mxu1 }
 0x12b   : > { %v1254_v21 = vadd.f32 %v1253_v19, %v1252_v15  ;;  %v1302_v22 = vadd.f32 %v1301_v20, %v1300_v16  ;;  %v1255_v23 = vpop.f32.mrb[26].mxu0  ;;  %v1303_v24 = vpop.f32.mrb[26].mxu1 }
 0x12c   : > { %v743_v27 = vmax.f32 %v711_v17, 0.0  ;;  %v759_v28 = vmax.f32 %v727_v18, 0.0  ;;  %v1256_v29 = vpop.f32.mrb[27].mxu0  ;;  %v1304_v30 = vpop.f32.mrb[27].mxu1 }
 0x12d   : > { %v676_v31 = vmul.f32 %v1254_v21, %v1527_v55  ;;  %v692_v32 = vmul.f32 %v1302_v22, %v1527_v55  ;;  %v1257_v33 = vadd.f32 %v1256_v29, %v1255_v23  ;;  %v1305_v34 = vadd.f32 %v1304_v30, %v1303_v24 }
 0x12e   : > { %v1133_v35 = vpack.c.bf16 %v743_v27, %v742_v25  ;;  %v1173_v36 = vpack.c.bf16 %v759_v28, %v758_v26 }
 0x12f   : > { %v712_v37 = vadd.f32 %v1529_v59, %v676_v31  ;;  %v728_v38 = vadd.f32 %v1529_v59, %v692_v32  ;;  %v677_v39 = vmul.f32 %v1257_v33, %v1527_v55  ;;  %v693_v40 = vmul.f32 %v1305_v34, %v1527_v55 }
 0x130   : > { %1189 = vst [vmem:[%s1543_s16 + $0x28] sm:$0xff] %v1133_v35   ;;  %1197 = vst [vmem:[%s1543_s16 + $0x68] sm:$0xff] %v1173_v36  }
 0x131   : > { %v713_v41 = vadd.f32 %v1529_v59, %v677_v39  ;;  %v729_v42 = vadd.f32 %v1529_v59, %v693_v40  ;;  %v1258_v43 = vpop.f32.mrb[28].mxu0  ;;  %v1306_v44 = vpop.f32.mrb[28].mxu1  ;;  %v744_v45 = vmax.f32 %v712_v37, 0.0  ;;  %v760_v46 = vmax.f32 %v728_v38, 0.0 }
 0x132   : > { %v1259_v47 = vpop.f32.mrb[29].mxu0  ;;  %v1307_v48 = vpop.f32.mrb[29].mxu1 }
 0x133   : > { %v745_v49 = vmax.f32 %v713_v41, 0.0  ;;  %v761_v50 = vmax.f32 %v729_v42, 0.0  ;;  %v1260_v51 = vadd.f32 %v1259_v47, %v1258_v43  ;;  %v1308_v52 = vadd.f32 %v1307_v48, %v1306_v44  ;;  %v1261_v53 = vpop.f32.mrb[30].mxu0  ;;  %v1309_v54 = vpop.f32.mrb[30].mxu1 }
 0x134   : > { %v1262_v56 = vpop.f32.mrb[31].mxu0  ;;  %v1310_v57 = vpop.f32.mrb[31].mxu1 }
 0x135   : > { %v1138_v58 = vpack.c.bf16 %v745_v49, %v744_v45  ;;  %v1178_v60 = vpack.c.bf16 %v761_v50, %v760_v46  ;;  %v678_v61 = vmul.f32 %v1260_v51, %v1527_v55  ;;  %v694_v62 = vmul.f32 %v1308_v52, %v1527_v55 }
 0x136   : > { %v1263_v63 = vadd.f32 %v1262_v56, %v1261_v53  ;;  %v1311_v0 = vadd.f32 %v1310_v57, %v1309_v54 }
 0x137   : > { %1190 = vst [vmem:[%s1543_s16 + $0x30] sm:$0xff] %v1138_v58   ;;  %1198 = vst [vmem:[%s1543_s16 + $0x70] sm:$0xff] %v1178_v60   ;;  %v714_v1 = vadd.f32 %v1529_v59, %v678_v61  ;;  %v730_v2 = vadd.f32 %v1529_v59, %v694_v62 }
 0x138   : > { %v679_v3 = vmul.f32 %v1263_v63, %v1527_v55  ;;  %v695_v4 = vmul.f32 %v1311_v0, %v1527_v55 }
 0x139   : > { %v746_v7 = vmax.f32 %v714_v1, 0.0  ;;  %v762_v8 = vmax.f32 %v730_v2, 0.0 }
 0x13a   : > { %v715_v5 = vadd.f32 %v1529_v59, %v679_v3  ;;  %v731_v6 = vadd.f32 %v1529_v59, %v695_v4 }
 0x13c   : > { %v747_v9 = vmax.f32 %v715_v5, 0.0  ;;  %v763_v10 = vmax.f32 %v731_v6, 0.0 }
 0x13e   : > { %v1143_v11 = vpack.c.bf16 %v747_v9, %v746_v7  ;;  %v1183_v12 = vpack.c.bf16 %v763_v10, %v762_v8 }
 0x140   : > { %1191 = vst [vmem:[%s1543_s16 + $0x38] sm:$0xff] %v1143_v11   ;;  %1199 = vst [vmem:[%s1543_s16 + $0x78] sm:$0xff] %v1183_v12  }
 0x141 PF: > { %s13_s12 = sadd.s32 1, %s1406_s12  }
 0x142   : > { %p10_p4 = scmp.ge.s32.totalorder %s13_s12, 4  }
 0x144   :  { %12 = sbr.rel (!%p10_p4) target bundleno = 1 (0x1), region = 62 }

// kernel: densenet121_forward.123
= control target key start
LH: loop header
LB: loop body
LE: loop exit
PB: predicated region body
PF: predicated region fallthrough
CT: control target
= control target key end

     0   :  { %7 = vsyncpa [#allocation3], 0  ;;  %s2390_s0 = inlined_call_operand.hbm [shape: bf16[128,1152], index: 0, kind: input, shape index: {}]   ;;  %s2391_s1 = inlined_call_operand.vmem [shape: bf16[1152,128], index: 1, kind: input, shape index: {}]   ;;  %s2392_s2 = inlined_call_operand.vmem [shape: bf16[128,128], index: 2, kind: output, shape index: {}]  }
   0x1   :  { %9 = vsyncpa [#allocation3 + $0x1], 0  ;;  %s2023_s9 = smov 0   ;;  %s2025_s10 = smov 0  }
   0x2   :  { %s2027_s11 = smov 0   ;;  %s2029_s12 = smov 0  }
   0x3 LB: > { %s1400_s13 = sadd.s32 4294967295, %s2003_s12   ;;  %s2043_s14 = sadd.s32 1, %s2003_s12   ;;  %s2003_s12 = sphi %s2029_s12, %s2399_s12   ;;  %s1999_s11 = sphi %s2027_s11, %s2398_s11   ;;  %s1995_s10 = sphi %s2025_s10, %s2397_s10   ;;  %s1991_s9 = sphi %s2023_s9, %s2396_s9  }
   0x4   : > { %s19_s15 = ssub.s32 %s2003_s12, %s2043_s14  ;;  %s22_s16 = sadd.s32 1, %s1999_s11 }
   0x5   : > { %p20_p0 = scmp.eq.s32.totalorder %s19_s15, 0  ;;  %p29_p1 = scmp.ne.s32.totalorder %s1999_s11, %s1995_s10 }
   0x6   : > { %p30_p2 = scmp.eq.s32.totalorder %s2003_s12, 0  ;;  %p35_p3 = scmp.ne.s32.totalorder %s1995_s10, %s1991_s9 }
   0x7   : > { %s2053_s17 = scalar_select %p20_p0, %s1999_s11, %s22_s16  }
   0x8   : > { %p31_p4 = por %p30_p2, %p29_p1  ;;  %p36_p5 = scmp.eq.s32.totalorder %s1400_s13, 0 }
   0x9   : > { %p1780_p6 = scmp.lt.s32.totalorder %s2003_s12, 2  ;;  %s109_s19 = sand.u32 1, %s1999_s11  }
   0xa   : > { %p2058_p7 = por %p36_p5, %p35_p3  ;;  %s1771_s20 = smul.u32 288, %s109_s19 }
   0xb   : > { %s1772_s21 = smul.u32 4608, %s2003_s12  ;;  %p2064_p8 = pnand %p1780_p6, %p31_p4 }
   0xc   : > { %s113_s26 = scalar_lea.vmem [#allocation2], %s1771_s20  ;;  %s2076_s28 = scalar_lea.sflag [#allocation3], %s109_s19 }
   0xd   : > { %s2071_s25 = scalar_lea.hbm %s2390_s0, %s1772_s21  ;;  %s121_s27 = sshll.u32 %s113_s26, 4  ;;  %s2073_s27 = int_to_ptr.vmem [resolvable:$true] %s121_s27 }
   0xe   : > { %s1939_s29 = scalar_lea.hbm %s2071_s25, 4608  ;;  %p1941_p11 = pneg %p2064_p8 }
   0xf   : > { %p1940_p10 = scmp.ne.s32.totalorder %s2071_s25, %s1939_s29  ;;  %s1944_s4 = scalar_lea.hbm %s2390_s0, 9216 }
  0x10   : > { %p1945_p0 = scmp.lt.u32.totalorder %s2071_s25, %s2390_s0  ;;  %p1946_p1 = scmp.lt.u32.totalorder %s1944_s4, %s1939_s29 }
  0x11   : > { %p1942_p12 = pnand %p1941_p11, %p1940_p10  ;;  %p1948_p3 = scmp.lt.u32.totalorder %s1939_s29, %s2071_s25 }
  0x12   : > { %p1947_p2 = por %p1946_p1, %p1945_p0 }
  0x13   : > { %p1943_p13 = pneg %p1942_p12 }
  0x14   : > { %p1949_p4 = por %p1948_p3, %p1947_p2 }
  0x16   : > { %p1950_p5 = pnand %p1949_p4, %p1943_p13 }
  0x18   : > { %1953 = shalt.err (!%p1950_p5)
}
  0x19   : > { %s1954_s7 = scalar_lea.vmem %s2073_s27, 4608  ;;  %s2005_s8 = smov [#allocation2]  }
  0x1a   : > { %p1955_p6 = scmp.ne.s32.totalorder %s2073_s27, %s1954_s7  ;;  %s1959_s9 = sshll.u32 %s2005_s8, 4  ;;  %s1960_s9 = int_to_ptr.vmem [resolvable:$false] %s1959_s9 }
  0x1b   : > { %s1961_s15 = scalar_lea.vmem %s1960_s9, 9216  ;;  %p1962_p9 = scmp.lt.s32.totalorder %s2073_s27, %s1960_s9 }
  0x1c   : > { %p1957_p10 = pnand %p1955_p6, %p1941_p11  ;;  %p1963_p0 = scmp.lt.s32.totalorder %s1961_s15, %s1954_s7 }
  0x1e   : > { %p1958_p12 = pneg %p1957_p10  ;;  %p1964_p1 = por %p1963_p0, %p1962_p9 }
  0x20   : > { %p1965_p2 = pnand %p1964_p1, %p1958_p12 }
  0x22   : > { %1968 = shalt.err (!%p1965_p2)
}
  0x23   : > { %s2006_s16 = smov 576   ;;  %s2007_s19 = smov 36  }
  0x24   : > { %1779 = dma.hbm_to_vmem [thread:$0]  (!%p2064_p8), %s2071_s25, 4608, %s2073_s27, %s2076_s28, %s2006_s16, %s2006_s16, %s2007_s19  }
  0x25   : > { %p129_p11 = scmp.lt.s32.totalorder %s2003_s12, 3  ;;  %p2395_p13 = scmp.ge.s32.totalorder %s2003_s12, 1 }
  0x27   : > { %p130_p3 = pnand %p2395_p13, %p129_p11 }
  0x28   : > { %s135_s20 = sand.u32 (!%p130_p3), 1, %s1995_s10  }
  0x29   : > { %133 = sbr.rel (%p130_p3) target bundleno = 369 (0x171), region = 28  ;;  %s136_s23 = scalar_lea.sflag (!%p130_p3), [#allocation3], %s135_s20 }
  0x2a   : > { %s1773_s21 = smul.u32 (!%p130_p3), 288, %s135_s20 }
  0x2c   : > { %s2108_s24 = scalar_lea.vmem (!%p130_p3), [#allocation2], %s1773_s21 }
  0x30   : > { %1986 = dma.done.wait (%p2058_p7), %s136_s23, 4608  }
  0x31   : > { %1988 = vsyncadd (%p2058_p7), %s136_s23, 4294962688  ;;  %v1815_v0 = vld [vmem:[%s2391_s1 + $0x40] sm:$0xff]   ;;  %v1819_v4 = vld [vmem:[%s2391_s1 + $0x48] sm:$0xff]  }
  0x32   : > { %v1816_v1 = vld [vmem:[%s2391_s1 + $0xc0] sm:$0xff]   ;;  %1559 = vmatprep.subr.bf16.mxu0 %v1815_v0  ;;  %v1820_v5 = vld [vmem:[%s2391_s1 + $0xc8] sm:$0xff]   ;;  %v1823_v8 = vld [vmem:[%s2391_s1 + $0x50] sm:$0xff]  }
  0x33   : > { %v1817_v2 = vld [vmem:[%s2391_s1] sm:$0xff]   ;;  %1599 = vmatprep.subr.bf16.mxu1 %v1816_v1  ;;  %v1821_v6 = vld [vmem:[%s2391_s1 + $0x8] sm:$0xff]   ;;  %v1824_v9 = vld [vmem:[%s2391_s1 + $0xd0] sm:$0xff]  }
  0x34   : > { %v1818_v3 = vld [vmem:[%s2391_s1 + $0x80] sm:$0xff]   ;;  %1560 = vmatpush3.bf16.msra.mxu0 %v1817_v2  ;;  %v1822_v7 = vld [vmem:[%s2391_s1 + $0x88] sm:$0xff]   ;;  %v1825_v10 = vld [vmem:[%s2391_s1 + $0x10] sm:$0xff]  }
  0x35   : > { %1600 = vmatpush3.bf16.msra.mxu1 %v1818_v3  ;;  %1561 = vmatprep.subr.bf16.mxu0 %v1819_v4  ;;  %v1826_v11 = vld [vmem:[%s2391_s1 + $0x90] sm:$0xff]   ;;  %v1827_v12 = vld [vmem:[%s2391_s1 + $0x58] sm:$0xff]   ;;  %v1831_v16 = vld [vmem:[%s2391_s1 + $0x60] sm:$0xff]  }
  0x36   : > { %1601 = vmatprep.subr.bf16.mxu1 %v1820_v5  ;;  %v1828_v13 = vld [vmem:[%s2391_s1 + $0xd8] sm:$0xff]   ;;  %v1832_v17 = vld [vmem:[%s2391_s1 + $0xe0] sm:$0xff]   ;;  %v1835_v20 = vld [vmem:[%s2391_s1 + $0x68] sm:$0xff]  }
  0x37   : > { %v1829_v14 = vld [vmem:[%s2391_s1 + $0x18] sm:$0xff]   ;;  %v1833_v18 = vld [vmem:[%s2391_s1 + $0x20] sm:$0xff]   ;;  %v1836_v21 = vld [vmem:[%s2391_s1 + $0xe8] sm:$0xff]  }
  0x38   : > { %1562 = vmatpush3.bf16.msra.mxu0 %v1821_v6  ;;  %v1830_v15 = vld [vmem:[%s2391_s1 + $0x98] sm:$0xff]   ;;  %v1834_v19 = vld [vmem:[%s2391_s1 + $0xa0] sm:$0xff]   ;;  %v1837_v22 = vld [vmem:[%s2391_s1 + $0x28] sm:$0xff]  }
  0x39   : > { %1602 = vmatpush3.bf16.msra.mxu1 %v1822_v7  ;;  %1563 = vmatprep.subr.bf16.mxu0 %v1823_v8  ;;  %v1838_v23 = vld [vmem:[%s2391_s1 + $0xa8] sm:$0xff]   ;;  %v1839_v24 = vld [vmem:[%s2391_s1 + $0x70] sm:$0xff]   ;;  %v1843_v28 = vld [vmem:[%s2391_s1 + $0x78] sm:$0xff]  }
  0x3a   : > { %1603 = vmatprep.subr.bf16.mxu1 %v1824_v9  ;;  %v1840_v25 = vld [vmem:[%s2391_s1 + $0xf0] sm:$0xff]   ;;  %v1844_v29 = vld [vmem:[%s2391_s1 + $0xf8] sm:$0xff]   ;;  %v1847_v32 = vld [vmem:[%s2108_s24] ss:$36 sps:$4 sm:$0xff]  }
  0x3b   : > { %v1841_v26 = vld [vmem:[%s2391_s1 + $0x30] sm:$0xff]   ;;  %v1845_v30 = vld [vmem:[%s2391_s1 + $0x38] sm:$0xff]   ;;  %v1849_v33 = vld [vmem:[%s2108_s24 + $0x4] ss:$36 sps:$4 sm:$0xff]  }
  0x3c   : > { %1564 = vmatpush3.bf16.msra.mxu0 %v1825_v10  ;;  %v1842_v27 = vld [vmem:[%s2391_s1 + $0xb0] sm:$0xff]   ;;  %v1846_v31 = vld [vmem:[%s2391_s1 + $0xb8] sm:$0xff]   ;;  %v1850_v34 = vld [vmem:[%s2108_s24 + $0x8] ss:$36 sps:$4 sm:$0xff]   ;;  %1000 = vmatprep.mubr.bf16.mxu0 %v1849_v33 }
  0x3d   : > { %1604 = vmatpush3.bf16.msra.mxu1 %v1826_v11  ;;  %1565 = vmatprep.subr.bf16.mxu0 %v1827_v12  ;;  %v1852_v35 = vld [vmem:[%s2108_s24 + $0xc] ss:$36 sps:$4 sm:$0xff]   ;;  %v1853_v36 = vld [vmem:[%s2391_s1 + $0x140] sm:$0xff]   ;;  %v1863_v45 = vld [vmem:[%s2108_s24 + $0x54] ss:$36 sps:$4 sm:$0xff]  }
  0x3e   : > { %1605 = vmatprep.subr.bf16.mxu1 %v1828_v13  ;;  %1065 = vmatprep.mubr.bf16.mxu1 %v1852_v35  ;;  %v1854_v37 = vld [vmem:[%s2391_s1 + $0x1c0] sm:$0xff]   ;;  %v1857_v40 = vld [vmem:[%s2391_s1 + $0x148] sm:$0xff]   ;;  %v1866_v47 = vld [vmem:[%s2108_s24 + $0x50] ss:$36 sps:$4 sm:$0xff]  }
  0x3f   : > { %v1855_v38 = vld [vmem:[%s2391_s1 + $0x100] sm:$0xff]   ;;  %v1858_v41 = vld [vmem:[%s2391_s1 + $0x1c8] sm:$0xff]   ;;  %v1867_v48 = vld [vmem:[%s2391_s1 + $0x150] sm:$0xff]  }
  0x40   : > { %1566 = vmatpush3.bf16.msra.mxu0 %v1829_v14  ;;  %v1856_v39 = vld [vmem:[%s2391_s1 + $0x180] sm:$0xff]   ;;  %v1859_v42 = vld [vmem:[%s2391_s1 + $0x108] sm:$0xff]   ;;  %v1868_v49 = vld [vmem:[%s2391_s1 + $0x1d0] sm:$0xff]  }
  0x41   : > { %1606 = vmatpush3.bf16.msra.mxu1 %v1830_v15  ;;  %1567 = vmatprep.subr.bf16.mxu0 %v1831_v16  ;;  %v1860_v43 = vld [vmem:[%s2391_s1 + $0x188] sm:$0xff]   ;;  %v1869_v50 = vld [vmem:[%s2391_s1 + $0x110] sm:$0xff]   ;;  %v1871_v52 = vld [vmem:[%s2391_s1 + $0x158] sm:$0xff]  }
  0x42   : > { %1607 = vmatprep.subr.bf16.mxu1 %v1832_v17  ;;  %v1861_v44 = vld [vmem:[%s2108_s24 + $0x4c] ss:$36 sps:$4 sm:$0xff]   ;;  %v1872_v53 = vld [vmem:[%s2391_s1 + $0x1d8] sm:$0xff]   ;;  %v1881_v60 = vld [vmem:[%s2391_s1 + $0x160] sm:$0xff]  }
  0x43   : > { %v1865_v46 = vld [vmem:[%s2108_s24 + $0x48] ss:$36 sps:$4 sm:$0xff]   ;;  %v1870_v51 = vld [vmem:[%s2391_s1 + $0x190] sm:$0xff]   ;;  %v1873_v54 = vld [vmem:[%s2391_s1 + $0x118] sm:$0xff]  }
  0x44   : > { %1568 = vmatpush3.bf16.msra.mxu0 %v1833_v18  ;;  %v1874_v55 = vld [vmem:[%s2391_s1 + $0x198] sm:$0xff]   ;;  %v1879_v58 = vld [vmem:[%s2108_s24 + $0x90] ss:$36 sps:$4 sm:$0xff]   ;;  %v1882_v61 = vld [vmem:[%s2391_s1 + $0x1e0] sm:$0xff]  }
  0x45   : > { %1608 = vmatpush3.bf16.msra.mxu1 %v1834_v19  ;;  %1569 = vmatprep.subr.bf16.mxu0 %v1835_v20  ;;  %v1875_v56 = vld [vmem:[%s2108_s24 + $0x94] ss:$36 sps:$4 sm:$0xff]   ;;  %v1877_v57 = vld [vmem:[%s2108_s24 + $0x9c] ss:$36 sps:$4 sm:$0xff]   ;;  %v1885_v0 = vld [vmem:[%s2391_s1 + $0x168] sm:$0xff]  }
  0x46   : > { %1609 = vmatprep.subr.bf16.mxu1 %v1836_v21  ;;  %v1880_v59 = vld [vmem:[%s2108_s24 + $0x98] ss:$36 sps:$4 sm:$0xff]   ;;  %v1883_v62 = vld [vmem:[%s2391_s1 + $0x120] sm:$0xff]   ;;  %v1886_v1 = vld [vmem:[%s2391_s1 + $0x1e8] sm:$0xff]  }
  0x47   : > { %v1884_v63 = vld [vmem:[%s2391_s1 + $0x1a0] sm:$0xff]   ;;  %v1887_v2 = vld [vmem:[%s2391_s1 + $0x128] sm:$0xff]   ;;  %v1893_v6 = vld [vmem:[%s2108_s24 + $0xd8] ss:$36 sps:$4 sm:$0xff]  }
  0x48   : > { %1570 = vmatpush3.bf16.msra.mxu0 %v1837_v22  ;;  %v1888_v3 = vld [vmem:[%s2391_s1 + $0x1a8] sm:$0xff]   ;;  %v1889_v4 = vld [vmem:[%s2108_s24 + $0xdc] ss:$36 sps:$4 sm:$0xff]   ;;  %v1895_v8 = vld [vmem:[%s2391_s1 + $0x170] sm:$0xff]  }
  0x49   : > { %1610 = vmatpush3.bf16.msra.mxu1 %v1838_v23  ;;  %1571 = vmatprep.subr.bf16.mxu0 %v1839_v24  ;;  %v1891_v5 = vld [vmem:[%s2108_s24 + $0xe4] ss:$36 sps:$4 sm:$0xff]   ;;  %v1896_v9 = vld [vmem:[%s2391_s1 + $0x1f0] sm:$0xff]   ;;  %v1899_v12 = vld [vmem:[%s2391_s1 + $0x178] sm:$0xff]  }
  0x4a   : > { %1611 = vmatprep.subr.bf16.mxu1 %v1840_v25  ;;  %v1894_v7 = vld [vmem:[%s2108_s24 + $0xe0] ss:$36 sps:$4 sm:$0xff]   ;;  %v1897_v10 = vld [vmem:[%s2391_s1 + $0x130] sm:$0xff]   ;;  %v1900_v13 = vld [vmem:[%s2391_s1 + $0x1f8] sm:$0xff]  }
  0x4b   : > { %v1898_v11 = vld [vmem:[%s2391_s1 + $0x1b0] sm:$0xff]   ;;  %v1901_v14 = vld [vmem:[%s2391_s1 + $0x138] sm:$0xff]   ;;  %v1909_v20 = vld [vmem:[%s2391_s1 + $0x200] sm:$0xff]  }
  0x4c   : > { %1572 = vmatpush3.bf16.msra.mxu0 %v1841_v26  ;;  %v1902_v15 = vld [vmem:[%s2391_s1 + $0x1b8] sm:$0xff]   ;;  %v1903_v16 = vld [vmem:[%s2108_s24 + $0x10] ss:$36 sps:$4 sm:$0xff]   ;;  %v1910_v21 = vld [vmem:[%s2391_s1 + $0x208] sm:$0xff]  }
  0x4d   : > { %1612 = vmatpush3.bf16.msra.mxu1 %v1842_v27  ;;  %1573 = vmatprep.subr.bf16.mxu0 %v1843_v28  ;;  %v1905_v17 = vld [vmem:[%s2108_s24 + $0x14] ss:$36 sps:$4 sm:$0xff]   ;;  %v1908_v19 = vld [vmem:[%s2108_s24 + $0x1c] ss:$36 sps:$4 sm:$0xff]   ;;  %v1913_v23 = vld [vmem:[%s2108_s24 + $0x64] ss:$36 sps:$4 sm:$0xff]  }
  0x4e   : > { %1613 = vmatprep.subr.bf16.mxu1 %v1844_v29  ;;  %v1906_v18 = vld [vmem:[%s2108_s24 + $0x18] ss:$36 sps:$4 sm:$0xff]   ;;  %v1916_v25 = vld [vmem:[%s2108_s24 + $0x60] ss:$36 sps:$4 sm:$0xff]   ;;  %v1917_v26 = vld [vmem:[%s2391_s1 + $0x210] sm:$0xff]  }
  0x4f   : > { %v1911_v22 = vld [vmem:[%s2108_s24 + $0x5c] ss:$36 sps:$4 sm:$0xff]   ;;  %v1919_v27 = vld [vmem:[%s2108_s24 + $0xa4] ss:$36 sps:$4 sm:$0xff]   ;;  %v1921_v28 = vld [vmem:[%s2108_s24 + $0xac] ss:$36 sps:$4 sm:$0xff]  }
  0x50   : > { %1574 = vmatpush3.bf16.msra.mxu0 %v1845_v30  ;;  %v1915_v24 = vld [vmem:[%s2108_s24 + $0x58] ss:$36 sps:$4 sm:$0xff]   ;;  %v1923_v30 = vld [vmem:[%s2108_s24 + $0xa0] ss:$36 sps:$4 sm:$0xff]   ;;  %v1927_v33 = vld [vmem:[%s2108_s24 + $0xec] ss:$36 sps:$4 sm:$0xff]  }
  0x51   : > { %1614 = vmatpush3.bf16.msra.mxu1 %v1846_v31  ;;  %1639 = vmatprep.subr.bf16.mxu0 %v1853_v36  ;;  %v1918_v29 = vld [vmem:[%s2391_s1 + $0x218] sm:$0xff]   ;;  %v1924_v31 = vld [vmem:[%s2108_s24 + $0xa8] ss:$36 sps:$4 sm:$0xff]  }
  0x52   : > { %1679 = vmatprep.subr.bf16.mxu1 %v1854_v37  ;;  %v1926_v35 = vld [vmem:[%s2391_s1 + $0x228] sm:$0xff]   ;;  %v1933_v37 = vld [vmem:[%s2391_s1 + $0x230] sm:$0xff]  }
  0x53   : > { %1001 = vmatmul.mubr.bf16.vlgmr.msra.gmra.mrb[0].mxu0 %v1847_v32  ;;  %v1925_v32 = vld [vmem:[%s2391_s1 + $0x220] sm:$0xff]   ;;  %v1931_v36 = vld [vmem:[%s2108_s24 + $0xe8] ss:$36 sps:$4 sm:$0xff]  }
  0x54   : > { %1066 = vmatmul.mubr.bf16.vlgmr.msra.gmra.mrb[0].mxu1 %v1850_v34  ;;  %1640 = vmatpush3.bf16.msra.mxu0 %v1855_v38  ;;  %v1929_v34 = vld [vmem:[%s2108_s24 + $0xf4] ss:$36 sps:$4 sm:$0xff]  }
  0x55   : > { %1680 = vmatpush3.bf16.msra.mxu1 %v1856_v39  ;;  %1641 = vmatprep.subr.bf16.mxu0 %v1857_v40  ;;  %v1932_v38 = vld [vmem:[%s2108_s24 + $0xf0] ss:$36 sps:$4 sm:$0xff]   ;;  %v1935_v39 = vld [vmem:[%s2108_s24 + $0x20] ss:$36 sps:$4 sm:$0xff]  }
  0x56   : > { %1681 = vmatprep.subr.bf16.mxu1 %v1858_v41  ;;  %1008 = vmatprep.mubr.bf16.mxu0 %v1861_v44  ;;  %v1936_v40 = vld [vmem:[%s2108_s24 + $0xb0] ss:$36 sps:$4 sm:$0xff]   ;;  %v1934_v41 = vld [vmem:[%s2391_s1 + $0x238] sm:$0xff]  }
  0x57   : > { %1073 = vmatprep.mubr.bf16.mxu1 %v1863_v45 }
  0x58   : > { %1642 = vmatpush3.bf16.msra.mxu0 %v1859_v42  ;;  %v1937_v42 = vld [vmem:[%s2108_s24 + $0x68] ss:$36 sps:$4 sm:$0xff]  }
  0x59   : > { %1682 = vmatpush3.bf16.msra.mxu1 %v1860_v43  ;;  %1643 = vmatprep.subr.bf16.mxu0 %v1867_v48  ;;  %v1938_v43 = vld [vmem:[%s2108_s24 + $0xf8] ss:$36 sps:$4 sm:$0xff]   ;;  %s1408_s24 = sshll.u32 %s1400_s13, 3 }
  0x5a   : > { %1683 = vmatprep.subr.bf16.mxu1 %v1868_v49  ;;  %p162_p7 = scmp.lt.s32.totalorder %s1408_s24, 15 }
  0x5b   : > { %1009 = vmatmul.mubr.bf16.gmra.mrb[4].mxu0 %v1865_v46 }
  0x5c   : > { %1074 = vmatmul.mubr.bf16.gmra.mrb[4].mxu1 %v1866_v47  ;;  %1644 = vmatpush3.bf16.msra.mxu0 %v1869_v50  ;;  %s2401_s24 = smov (!%p162_p7, %s1408_s24), 15 }
  0x5d   : > { %1684 = vmatpush3.bf16.msra.mxu1 %v1870_v51  ;;  %1645 = vmatprep.subr.bf16.mxu0 %v1871_v52  ;;  %s1409_s12 = sshll.u32 %s2401_s24, 2 }
  0x5e   : > { %1685 = vmatprep.subr.bf16.mxu1 %v1872_v53  ;;  %1016 = vmatprep.mubr.bf16.mxu0 %v1875_v56  ;;  %s165_s21 = scalar_lea.vmem %s2392_s2, %s1409_s12 }
  0x5f   : > { %1081 = vmatprep.mubr.bf16.mxu1 %v1877_v57 }
  0x60   : > { %1646 = vmatpush3.bf16.msra.mxu0 %v1873_v54 }
  0x61   : > { %1686 = vmatpush3.bf16.msra.mxu1 %v1874_v55  ;;  %1647 = vmatprep.subr.bf16.mxu0 %v1881_v60 }
  0x62   : > { %1687 = vmatprep.subr.bf16.mxu1 %v1882_v61 }
  0x63   : > { %1017 = vmatmul.mubr.bf16.gmra.mrb[8].mxu0 %v1879_v58 }
  0x64   : > { %1082 = vmatmul.mubr.bf16.gmra.mrb[8].mxu1 %v1880_v59  ;;  %1648 = vmatpush3.bf16.msra.mxu0 %v1883_v62 }
  0x65   : > { %1688 = vmatpush3.bf16.msra.mxu1 %v1884_v63  ;;  %1649 = vmatprep.subr.bf16.mxu0 %v1885_v0 }
  0x66   : > { %1689 = vmatprep.subr.bf16.mxu1 %v1886_v1  ;;  %1024 = vmatprep.mubr.bf16.mxu0 %v1889_v4 }
  0x67   : > { %1089 = vmatprep.mubr.bf16.mxu1 %v1891_v5 }
  0x68   : > { %1650 = vmatpush3.bf16.msra.mxu0 %v1887_v2 }
  0x69   : > { %1690 = vmatpush3.bf16.msra.mxu1 %v1888_v3  ;;  %1651 = vmatprep.subr.bf16.mxu0 %v1895_v8 }
  0x6a   : > { %1691 = vmatprep.subr.bf16.mxu1 %v1896_v9 }
  0x6b   : > { %1025 = vmatmul.mubr.bf16.gmra.mrb[12].mxu0 %v1893_v6 }
  0x6c   : > { %1090 = vmatmul.mubr.bf16.gmra.mrb[12].mxu1 %v1894_v7  ;;  %1652 = vmatpush3.bf16.msra.mxu0 %v1897_v10 }
  0x6d   : > { %1692 = vmatpush3.bf16.msra.mxu1 %v1898_v11  ;;  %1653 = vmatprep.subr.bf16.mxu0 %v1899_v12 }
  0x6e   : > { %1693 = vmatprep.subr.bf16.mxu1 %v1900_v13  ;;  %1130 = vmatprep.mubr.bf16.mxu0 %v1905_v17 }
  0x6f   : > { %1195 = vmatprep.mubr.bf16.mxu1 %v1908_v19 }
  0x70   : > { %1654 = vmatpush3.bf16.msra.mxu0 %v1901_v14 }
  0x71   : > { %1694 = vmatpush3.bf16.msra.mxu1 %v1902_v15  ;;  %1731 = vmatprep.subr.bf16.mxu0 %v1909_v20 }
  0x72   : > { %1755 = vmatprep.subr.bf16.mxu1 %v1909_v20 }
  0x73   : > { %1131 = vmatmul.mubr.bf16.vlgmr.msra.gmra.mrb[16].mxu0 %v1903_v16 }
  0x74   : > { %1196 = vmatmul.mubr.bf16.vlgmr.msra.gmra.mrb[16].mxu1 %v1906_v18  ;;  %1732 = vmatpush3.bf16.msra.mxu0 %v1909_v20 }
  0x75   : > { %1763 = vmatpush3.bf16.msra.mxu1 %v1909_v20  ;;  %1733 = vmatprep.subr.bf16.mxu0 %v1910_v21 }
  0x76   : > { %1756 = vmatprep.subr.bf16.mxu1 %v1910_v21  ;;  %1138 = vmatprep.mubr.bf16.mxu0 %v1911_v22 }
  0x77   : > { %1203 = vmatprep.mubr.bf16.mxu1 %v1913_v23 }
  0x78   : > { %1734 = vmatpush3.bf16.msra.mxu0 %v1910_v21 }
  0x79   : > { %1764 = vmatpush3.bf16.msra.mxu1 %v1910_v21  ;;  %1735 = vmatprep.subr.bf16.mxu0 %v1917_v26 }
  0x7a   : > { %1757 = vmatprep.subr.bf16.mxu1 %v1917_v26 }
  0x7b   : > { %1139 = vmatmul.mubr.bf16.gmra.mrb[20].mxu0 %v1915_v24 }
  0x7c   : > { %1204 = vmatmul.mubr.bf16.gmra.mrb[20].mxu1 %v1916_v25  ;;  %1146 = vmatprep.mubr.bf16.mxu0 %v1919_v27 }
  0x7d   : > { %1736 = vmatpush3.bf16.msra.mxu0 %v1917_v26  ;;  %1211 = vmatprep.mubr.bf16.mxu1 %v1921_v28 }
  0x7e   : > { %1765 = vmatpush3.bf16.msra.mxu1 %v1917_v26  ;;  %1737 = vmatprep.subr.bf16.mxu0 %v1918_v29 }
  0x7f   : > { %1758 = vmatprep.subr.bf16.mxu1 %v1918_v29 }
  0x81   : > { %1738 = vmatpush3.bf16.msra.mxu0 %v1918_v29 }
  0x82   : > { %1766 = vmatpush3.bf16.msra.mxu1 %v1918_v29  ;;  %1739 = vmatprep.subr.bf16.mxu0 %v1925_v32 }
  0x83   : > { %1147 = vmatmul.mubr.bf16.gmra.mrb[24].mxu0 %v1923_v30  ;;  %1759 = vmatprep.subr.bf16.mxu1 %v1925_v32 }
  0x84   : > { %1212 = vmatmul.mubr.bf16.gmra.mrb[24].mxu1 %v1924_v31  ;;  %1154 = vmatprep.mubr.bf16.mxu0 %v1927_v33 }
  0x85   : > { %1740 = vmatpush3.bf16.msra.mxu0 %v1925_v32  ;;  %1219 = vmatprep.mubr.bf16.mxu1 %v1929_v34 }
  0x86   : > { %1767 = vmatpush3.bf16.msra.mxu1 %v1925_v32  ;;  %1741 = vmatprep.subr.bf16.mxu0 %v1926_v35 }
  0x87   : > { %1760 = vmatprep.subr.bf16.mxu1 %v1926_v35 }
  0x89   : > { %1742 = vmatpush3.bf16.msra.mxu0 %v1926_v35 }
  0x8a   : > { %1768 = vmatpush3.bf16.msra.mxu1 %v1926_v35  ;;  %1743 = vmatprep.subr.bf16.mxu0 %v1933_v37 }
  0x8b   : > { %1155 = vmatmul.mubr.bf16.gmra.mrb[28].mxu0 %v1931_v36  ;;  %1761 = vmatprep.subr.bf16.mxu1 %v1933_v37 }
  0x8c   : > { %1220 = vmatmul.mubr.bf16.gmra.mrb[28].mxu1 %v1932_v38  ;;  %1747 = vmatprep.mubr.bf16.mxu0 %v1935_v39 }
  0x8d   : > { %1744 = vmatpush3.bf16.msra.mxu0 %v1933_v37  ;;  %1751 = vmatprep.mubr.bf16.mxu1 %v1936_v40 }
  0x8e   : > { %1769 = vmatpush3.bf16.msra.mxu1 %v1933_v37  ;;  %1745 = vmatprep.subr.bf16.mxu0 %v1934_v41 }
  0x8f   : > { %1762 = vmatprep.subr.bf16.mxu1 %v1934_v41 }
  0x91   : > { %1746 = vmatpush3.bf16.msra.mxu0 %v1934_v41 }
  0x92   : > { %1770 = vmatpush3.bf16.msra.mxu1 %v1934_v41 }
  0x94   : > { %1748 = vmatmul.mubr.bf16.vlgmr.msra.gmra.mrb[32].mxu0 %v1937_v42 }
  0x95   : > { %1752 = vmatmul.mubr.bf16.vlgmr.msra.gmra.mrb[32].mxu1 %v1938_v43 }
 0x126   : > { %v1575_v44 = vpop.f32.mrb[0].mxu0 }
 0x127   : > { %v1615_v45 = vpop.f32.mrb[0].mxu1  ;;  %v1576_v46 = vpop.f32.mrb[1].mxu0 }
 0x128   : > { %v1577_v47 = vadd.f32 %v1576_v46, %v1575_v44  ;;  %v1616_v48 = vpop.f32.mrb[1].mxu1  ;;  %v1578_v49 = vpop.f32.mrb[2].mxu0 }
 0x129   : > { %v1617_v50 = vadd.f32 %v1616_v48, %v1615_v45  ;;  %v1618_v51 = vpop.f32.mrb[2].mxu1  ;;  %v1579_v52 = vpop.f32.mrb[3].mxu0 }
 0x12a   : > { %v1580_v53 = vadd.f32 %v1579_v52, %v1578_v49  ;;  %v1619_v54 = vpop.f32.mrb[3].mxu1 }
 0x12b   : > { %v1068_v55 = vadd.f32 %v1617_v50, %v1577_v47  ;;  %v1620_v56 = vadd.f32 %v1619_v54, %v1618_v51 }
 0x12d   : > { %v1071_v57 = vadd.f32 %v1620_v56, %v1580_v53 }
 0x12e   : > { %v1581_v58 = vpop.f32.mrb[4].mxu0 }
 0x12f   : > { %v1621_v59 = vpop.f32.mrb[4].mxu1  ;;  %v1582_v60 = vpop.f32.mrb[5].mxu0 }
 0x130   : > { %v1583_v61 = vadd.f32 %v1582_v60, %v1581_v58  ;;  %v1622_v62 = vpop.f32.mrb[5].mxu1  ;;  %v1584_v63 = vpop.f32.mrb[6].mxu0 }
 0x131   : > { %v1623_v0 = vadd.f32 %v1622_v62, %v1621_v59  ;;  %v1624_v1 = vpop.f32.mrb[6].mxu1  ;;  %v1585_v2 = vpop.f32.mrb[7].mxu0 }
 0x132   : > { %v1586_v3 = vadd.f32 %v1585_v2, %v1584_v63  ;;  %v1625_v4 = vpop.f32.mrb[7].mxu1 }
 0x133   : > { %v1076_v5 = vadd.f32 %v1623_v0, %v1583_v61  ;;  %v1626_v6 = vadd.f32 %v1625_v4, %v1624_v1 }
 0x135   : > { %v1079_v7 = vadd.f32 %v1626_v6, %v1586_v3 }
 0x136   : > { %v1587_v8 = vpop.f32.mrb[8].mxu0 }
 0x137   : > { %v1627_v9 = vpop.f32.mrb[8].mxu1  ;;  %v1588_v10 = vpop.f32.mrb[9].mxu0 }
 0x138   : > { %v1589_v11 = vadd.f32 %v1588_v10, %v1587_v8  ;;  %v1628_v12 = vpop.f32.mrb[9].mxu1  ;;  %v1590_v13 = vpop.f32.mrb[10].mxu0 }
 0x139   : > { %v1629_v14 = vadd.f32 %v1628_v12, %v1627_v9  ;;  %v1630_v15 = vpop.f32.mrb[10].mxu1  ;;  %v1591_v16 = vpop.f32.mrb[11].mxu0 }
 0x13a   : > { %v1592_v17 = vadd.f32 %v1591_v16, %v1590_v13  ;;  %v1631_v18 = vpop.f32.mrb[11].mxu1 }
 0x13b   : > { %v1084_v19 = vadd.f32 %v1629_v14, %v1589_v11  ;;  %v1632_v20 = vadd.f32 %v1631_v18, %v1630_v15 }
 0x13d   : > { %v1087_v21 = vadd.f32 %v1632_v20, %v1592_v17 }
 0x13e   : > { %v1593_v22 = vpop.f32.mrb[12].mxu0 }
 0x13f   : > { %v1633_v23 = vpop.f32.mrb[12].mxu1  ;;  %v1594_v24 = vpop.f32.mrb[13].mxu0 }
 0x140   : > { %v1634_v25 = vpop.f32.mrb[13].mxu1  ;;  %v1595_v26 = vadd.f32 %v1594_v24, %v1593_v22  ;;  %v1596_v28 = vpop.f32.mrb[14].mxu0 }
 0x141   : > { %v1635_v27 = vadd.f32 %v1634_v25, %v1633_v23  ;;  %v1636_v29 = vpop.f32.mrb[14].mxu1  ;;  %v1597_v30 = vpop.f32.mrb[15].mxu0 }
 0x142   : > { %v1637_v31 = vpop.f32.mrb[15].mxu1  ;;  %v1598_v33 = vadd.f32 %v1597_v30, %v1596_v28 }
 0x143   : > { %v1092_v32 = vadd.f32 %v1635_v27, %v1595_v26  ;;  %v1638_v34 = vadd.f32 %v1637_v31, %v1636_v29 }
 0x145   : > { %v2366_v35 = vadd.f32 %v1638_v34, %v1598_v33 }
 0x146   : > { %v1655_v36 = vpop.f32.mrb[16].mxu0 }
 0x147   : > { %v1656_v37 = vpop.f32.mrb[17].mxu0  ;;  %v1695_v38 = vpop.f32.mrb[16].mxu1 }
 0x148   : > { %v1657_v39 = vadd.f32 %v1656_v37, %v1655_v36  ;;  %v1658_v40 = vpop.f32.mrb[18].mxu0  ;;  %v1696_v41 = vpop.f32.mrb[17].mxu1 }
 0x149   : > { %v1659_v42 = vpop.f32.mrb[19].mxu0  ;;  %v1697_v44 = vadd.f32 %v1696_v41, %v1695_v38  ;;  %v1698_v45 = vpop.f32.mrb[18].mxu1 }
 0x14a   : > { %v1133_v43 = vadd.f32 %v1657_v39, %v1068_v55  ;;  %v1660_v46 = vadd.f32 %v1659_v42, %v1658_v40  ;;  %v1699_v47 = vpop.f32.mrb[19].mxu1 }
 0x14b   : > { %v1700_v49 = vadd.f32 %v1699_v47, %v1698_v45 }
 0x14c   : > { %v1136_v48 = vadd.f32 %v1660_v46, %v1071_v57  ;;  %v1198_v50 = vadd.f32 %v1697_v44, %v1133_v43 }
 0x14e   : > { %v1661_v51 = vpop.f32.mrb[20].mxu0  ;;  %v2368_v52 = vadd.f32 %v1700_v49, %v1136_v48 }
 0x14f   : > { %v1662_v53 = vpop.f32.mrb[21].mxu0  ;;  %v1701_v54 = vpop.f32.mrb[20].mxu1 }
 0x150   : > { %v1663_v56 = vadd.f32 %v1662_v53, %v1661_v51  ;;  %v1664_v58 = vpop.f32.mrb[22].mxu0  ;;  %v1702_v59 = vpop.f32.mrb[21].mxu1 }
 0x151   : > { %v1665_v60 = vpop.f32.mrb[23].mxu0  ;;  %v1703_v62 = vadd.f32 %v1702_v59, %v1701_v54  ;;  %v1704_v63 = vpop.f32.mrb[22].mxu1 }
 0x152   : > { %v1141_v61 = vadd.f32 %v1663_v56, %v1076_v5  ;;  %v1666_v55 = vadd.f32 %v1665_v60, %v1664_v58  ;;  %v1705_v0 = vpop.f32.mrb[23].mxu1 }
 0x153   : > { %v1706_v2 = vadd.f32 %v1705_v0, %v1704_v63 }
 0x154   : > { %v1144_v1 = vadd.f32 %v1666_v55, %v1079_v7  ;;  %v1206_v3 = vadd.f32 %v1703_v62, %v1141_v61 }
 0x156   : > { %v1667_v57 = vpop.f32.mrb[24].mxu0  ;;  %v1209_v4 = vadd.f32 %v1706_v2, %v1144_v1 }
 0x157   : > { %v1668_v6 = vpop.f32.mrb[25].mxu0  ;;  %v1707_v8 = vpop.f32.mrb[24].mxu1 }
 0x158   : > { %v1669_v9 = vadd.f32 %v1668_v6, %v1667_v57  ;;  %v1670_v10 = vpop.f32.mrb[26].mxu0  ;;  %v1708_v11 = vpop.f32.mrb[25].mxu1 }
 0x159   : > { %v1671_v12 = vpop.f32.mrb[27].mxu0  ;;  %v1709_v14 = vadd.f32 %v1708_v11, %v1707_v8  ;;  %v1710_v15 = vpop.f32.mrb[26].mxu1 }
 0x15a   : > { %v1149_v13 = vadd.f32 %v1669_v9, %v1084_v19  ;;  %v1672_v5 = vadd.f32 %v1671_v12, %v1670_v10  ;;  %v1711_v16 = vpop.f32.mrb[27].mxu1 }
 0x15b   : > { %v1712_v18 = vadd.f32 %v1711_v16, %v1710_v15 }
 0x15c   : > { %v1152_v17 = vadd.f32 %v1672_v5, %v1087_v21  ;;  %v1214_v20 = vadd.f32 %v1709_v14, %v1149_v13 }
 0x15e   : > { %v1673_v7 = vpop.f32.mrb[28].mxu0  ;;  %v1217_v22 = vadd.f32 %v1712_v18, %v1152_v17 }
 0x15f   : > { %v1674_v23 = vpop.f32.mrb[29].mxu0  ;;  %v1713_v24 = vpop.f32.mrb[28].mxu1 }
 0x160   : > { %v1675_v25 = vadd.f32 %v1674_v23, %v1673_v7  ;;  %v1676_v26 = vpop.f32.mrb[30].mxu0  ;;  %v1714_v27 = vpop.f32.mrb[29].mxu1 }
 0x161   : > { %v1677_v28 = vpop.f32.mrb[31].mxu0  ;;  %v1715_v19 = vadd.f32 %v1714_v27, %v1713_v24  ;;  %v1716_v30 = vpop.f32.mrb[30].mxu1 }
 0x162   : > { %v1157_v29 = vadd.f32 %v1675_v25, %v1092_v32  ;;  %v1678_v31 = vadd.f32 %v1677_v28, %v1676_v26  ;;  %v1717_v33 = vpop.f32.mrb[31].mxu1 }
 0x163   : > { %v1718_v34 = vadd.f32 %v1717_v33, %v1716_v30 }
 0x164   : > { %v1160_v21 = vadd.f32 %v1678_v31, %v2366_v35  ;;  %v1222_v36 = vadd.f32 %v1715_v19, %v1157_v29 }
 0x166   : > { %v1225_v37 = vadd.f32 %v1718_v34, %v1160_v21 }
 0x167   : > { %v1749_v38 = vpop.f32.mrb[32].mxu0 }
 0x168   : > { %v1271_v39 = vadd.f32 %v1749_v38, %v1206_v3  ;;  %v1753_v40 = vpop.f32.mrb[32].mxu1  ;;  %v1262_v41 = vpop.f32.mrb[33].mxu0 }
 0x169   : > { %v1287_v42 = vadd.f32 %v1753_v40, %v1222_v36  ;;  %v1263_v43 = vadd.f32 %v1262_v41, %v1198_v50  ;;  %v1278_v44 = vpop.f32.mrb[33].mxu1  ;;  %v1750_v45 = vpop.f32.mrb[34].mxu0 }
 0x16a   : > { %v1279_v32 = vadd.f32 %v1278_v44, %v1214_v20  ;;  %v1274_v46 = vadd.f32 %v1750_v45, %v1209_v4  ;;  %v1754_v47 = vpop.f32.mrb[34].mxu1  ;;  %v1265_v48 = vpop.f32.mrb[35].mxu0 }
 0x16b   : > { %v1290_v35 = vadd.f32 %v1754_v47, %v1225_v37  ;;  %v1266_v49 = vadd.f32 %v1265_v48, %v2368_v52  ;;  %v1281_v51 = vpop.f32.mrb[35].mxu1 }
 0x16c   : > { %v1544_v53 = vpack.c.bf16 %v1274_v46, %v1271_v39  ;;  %v1282_v54 = vadd.f32 %v1281_v51, %v1217_v22 }
 0x16d   : > { %v1554_v56 = vpack.c.bf16 %v1290_v35, %v1287_v42  ;;  %v1539_v58 = vpack.c.bf16 %v1266_v49, %v1263_v43 }
 0x16e   : > { %1556 = vst [vmem:[%s165_s21 + $0x8] sm:$0xff] %v1544_v53   ;;  %v1549_v50 = vpack.c.bf16 %v1282_v54, %v1279_v32 }
 0x16f   : > { %1558 = vst [vmem:[%s165_s21 + $0x18] sm:$0xff] %v1554_v56   ;;  %1540 = vst [vmem:[%s165_s21] sm:$0xff] %v1539_v58  }
 0x170   : > { %1557 = vst [vmem:[%s165_s21 + $0x10] sm:$0xff] %v1549_v50  }
 0x171 PF: > { %p12_p8 = scmp.ge.s32.totalorder %s2043_s14, 4   ;;  %s2396_s9 = smov %s1995_s10 }
 0x172   : > { %s2397_s10 = smov %s1999_s11  ;;  %s2398_s11 = smov %s2053_s17 }
 0x173   : > { %s2399_s12 = smov %s2043_s14  ;;  %14 = sbr.rel (!%p12_p8) target bundleno = 3 (0x3), region = 68 }
 0x17a   :  { %1355 = vsyncpa [#allocation3], 1 }
 0x17b   :  { %1357 = vsyncpa [#allocation3 + $0x1], 1 }

// kernel: densenet121_forward.134
= control target key start
LH: loop header
LB: loop body
LE: loop exit
PB: predicated region body
PF: predicated region fallthrough
CT: control target
= control target key end

     0   :  { %s794_s12 = smov 0   ;;  %s866_s0 = inlined_call_operand.vmem [shape: bf16[128,256], index: 0, kind: input, shape index: {}]   ;;  %s867_s1 = inlined_call_operand.vmem [shape: bf16[2,256], index: 1, kind: input, shape index: {}]   ;;  %s868_s2 = inlined_call_operand.vmem [shape: bf16[256,128], index: 2, kind: input, shape index: {}]   ;;  %s869_s3 = inlined_call_operand.vmem [shape: bf16[128,128], index: 3, kind: output, shape index: {}]  }
   0x1 LB: > { %s603_s13 = sadd.s32 4294967295, %s770_s12   ;;  %p607_p0 = scmp.ge.s32.totalorder %s770_s12, 1  ;;  %s770_s12 = sphi %s794_s12, %s13_s12  }
   0x2   : > { %p139_p1 = scmp.lt.s32.totalorder %s770_s12, 3 }
   0x4   : > { %p140_p2 = pnand %p607_p0, %p139_p1 }
   0x5   : > { %v748_v0 = vld [vmem:[%s868_s2 + $0x40] sm:$0xff] (!%p140_p2)   ;;  %v750_v2 = vld [vmem:[%s868_s2 + $0x48] sm:$0xff] (!%p140_p2)   ;;  %v752_v4 = vld [vmem:[%s868_s2 + $0x50] sm:$0xff] (!%p140_p2)   ;;  %s608_s30 = sshll.u32 (!%p140_p2), %s603_s13, 3  ;;  %v199_v9 = vlaneseq (!%p140_p2)  ;;  %v772_v13 = vmov (!%p140_p2), 1966171168  }
   0x6   : > { %143 = sbr.rel (%p140_p2) target bundleno = 266 (0x10a), region = 32  ;;  %v749_v1 = vld [vmem:[%s868_s2] sm:$0xff] (!%p140_p2)   ;;  %682 = vmatprep.subr.bf16.mxu0 (!%p140_p2), %v748_v0  ;;  %722 = vmatprep.subr.bf16.mxu1 (!%p140_p2), %v748_v0  ;;  %v751_v3 = vld [vmem:[%s868_s2 + $0x8] sm:$0xff] (!%p140_p2)   ;;  %v753_v5 = vld [vmem:[%s868_s2 + $0x10] sm:$0xff] (!%p140_p2)   ;;  %p165_p3 = scmp.lt.s32.totalorder (!%p140_p2), %s608_s30, 15  ;;  %v197_v14 = vunpack.c.l.s4 (!%p140_p2), %v772_v13  ;;  %v773_v63 = vmov (!%p140_p2), 0  }
   0x7   : > { %683 = vmatpush3.bf16.msra.mxu0 (!%p140_p2), %v749_v1  ;;  %730 = vmatpush3.bf16.msra.mxu1 (!%p140_p2), %v749_v1  ;;  %v754_v6 = vld [vmem:[%s868_s2 + $0x58] sm:$0xff] (!%p140_p2)   ;;  %v756_v8 = vld [vmem:[%s868_s2 + $0x60] sm:$0xff] (!%p140_p2)   ;;  %v758_v11 = vld [vmem:[%s868_s2 + $0x68] sm:$0xff] (!%p140_p2)   ;;  %v200_v15 = vshrl.u32 (!%p140_p2), %v199_v9, 7 }
   0x8   : > { %684 = vmatprep.subr.bf16.mxu0 (!%p140_p2), %v750_v2  ;;  %723 = vmatprep.subr.bf16.mxu1 (!%p140_p2), %v750_v2  ;;  %v755_v7 = vld [vmem:[%s868_s2 + $0x18] sm:$0xff] (!%p140_p2)   ;;  %v757_v10 = vld [vmem:[%s868_s2 + $0x20] sm:$0xff] (!%p140_p2)   ;;  %v759_v16 = vld [vmem:[%s868_s2 + $0x28] sm:$0xff] (!%p140_p2)   ;;  %v198_v19 = vunpack.c.0.s8 (!%p140_p2), %v197_v14 }
   0x9   : > { %v613_v12 = vld.sshfl [vmem:[%s867_s1] sm:$0x11 pattern:$0x75316420] (!%p140_p2)  ;;  %v760_v17 = vld [vmem:[%s868_s2 + $0x70] sm:$0xff] (!%p140_p2)   ;;  %v762_v22 = vld [vmem:[%s868_s2 + $0x78] sm:$0xff] (!%p140_p2)  }
   0xa   : > { %v195_v18 = vcombine.high (!%p140_p2), %v613_v12, %v613_v12  ;;  %v201_v20 = vsub.s32 (!%p140_p2), %v198_v19, %v200_v15  ;;  %v761_v21 = vld [vmem:[%s868_s2 + $0x30] sm:$0xff] (!%p140_p2)   ;;  %v215_v25 = vsub.s32 (!%p140_p2), 0, %v200_v15  ;;  %v763_v30 = vld [vmem:[%s868_s2 + $0x38] sm:$0xff] (!%p140_p2)  }
   0xb   : > { %685 = vmatpush3.bf16.msra.mxu0 (!%p140_p2), %v751_v3  ;;  %731 = vmatpush3.bf16.msra.mxu1 (!%p140_p2), %v751_v3 }
   0xc   : > { %686 = vmatprep.subr.bf16.mxu0 (!%p140_p2), %v752_v4  ;;  %724 = vmatprep.subr.bf16.mxu1 (!%p140_p2), %v752_v4  ;;  %v202_v23 = vrot.slane (!%p140_p2), %v613_v12, %v201_v20  ;;  %v209_v24 = vrot.slane (!%p140_p2), %v195_v18, %v201_v20 }
   0xd   : > { %s871_s30 = smov (!%p165_p3, %s608_s30), 15 }
   0xe   : > { %s650_s17 = sshll.u32 %s871_s30, 3  ;;  %v211_v26 = vpack.i.b16 %v202_v23, %v202_v23  ;;  %v218_v27 = vpack.i.b16 %v209_v24, %v209_v24  ;;  %v238_v28 = vshrl.u32 %v202_v23, 16  ;;  %v245_v29 = vshrl.u32 %v209_v24, 16  ;;  %s612_s27 = sshll.u32 %s871_s30, 2 }
   0xf   : > { %687 = vmatpush3.bf16.msra.mxu0 %v753_v5  ;;  %732 = vmatpush3.bf16.msra.mxu1 %v753_v5  ;;  %s169_s24 = scalar_lea.vmem %s866_s0, %s650_s17  ;;  %s175_s4 = scalar_lea.vmem %s869_s3, %s612_s27 }
  0x10   : > { %688 = vmatprep.subr.bf16.mxu0 %v754_v6  ;;  %725 = vmatprep.subr.bf16.mxu1 %v754_v6  ;;  %v179_v31 = vld [vmem:[%s169_s24] sm:$0xff]  ;;  %v216_v32 = vrot.slane %v211_v26, %v215_v25  ;;  %v223_v33 = vrot.slane %v218_v27, %v215_v25  ;;  %v239_v34 = vpack.i.b16 %v238_v28, %v238_v28  ;;  %v180_v35 = vld [vmem:[%s169_s24 + $0x8] sm:$0xff]  ;;  %v181_v41 = vld [vmem:[%s169_s24 + $0x10] sm:$0xff] }
  0x11   : > { %v246_v36 = vpack.i.b16 %v245_v29, %v245_v29  ;;  %v183_v37 = vld [vmem:[%s169_s24 + $0x20] sm:$0xff]  ;;  %v184_v38 = vld [vmem:[%s169_s24 + $0x28] sm:$0xff]  ;;  %v182_v42 = vld [vmem:[%s169_s24 + $0x18] sm:$0xff] }
  0x12   : > { %v614_v39 = vcombine.low %v216_v32, %v223_v33  ;;  %v244_v40 = vrot.slane %v239_v34, %v215_v25  ;;  %v185_v43 = vld [vmem:[%s169_s24 + $0x30] sm:$0xff]  ;;  %v186_v45 = vld [vmem:[%s169_s24 + $0x38] sm:$0xff] }
  0x13   : > { %689 = vmatpush3.bf16.msra.mxu0 %v755_v7  ;;  %733 = vmatpush3.bf16.msra.mxu1 %v755_v7  ;;  %v251_v44 = vrot.slane %v246_v36, %v215_v25 }
  0x14   : > { %690 = vmatprep.subr.bf16.mxu0 %v756_v8  ;;  %726 = vmatprep.subr.bf16.mxu1 %v756_v8  ;;  %v230_v46 = vmul.bf16 %v614_v39, %v179_v31  ;;  %v231_v47 = vmul.bf16 %v614_v39, %v180_v35  ;;  %v234_v48 = vmul.bf16 %v614_v39, %v183_v37 }
  0x15   : > { %v235_v49 = vmul.bf16 %v614_v39, %v184_v38  ;;  %v615_v50 = vcombine.low %v244_v40, %v251_v44  ;;  %v232_v51 = vmul.bf16 %v614_v39, %v181_v41  ;;  %v233_v52 = vmul.bf16 %v614_v39, %v182_v42 }
  0x16   : > { %v236_v53 = vmul.bf16 %v614_v39, %v185_v43  ;;  %v237_v54 = vmul.bf16 %v614_v39, %v186_v45 }
  0x17   : > { %691 = vmatpush3.bf16.msra.mxu0 %v757_v10  ;;  %734 = vmatpush3.bf16.msra.mxu1 %v757_v10  ;;  %v258_v55 = vadd.bf16 %v615_v50, %v230_v46  ;;  %v259_v56 = vadd.bf16 %v615_v50, %v231_v47  ;;  %v262_v57 = vadd.bf16 %v615_v50, %v234_v48 }
  0x18   : > { %692 = vmatprep.subr.bf16.mxu0 %v758_v11  ;;  %727 = vmatprep.subr.bf16.mxu1 %v758_v11  ;;  %v263_v58 = vadd.bf16 %v615_v50, %v235_v49  ;;  %v260_v59 = vadd.bf16 %v615_v50, %v232_v51  ;;  %v261_v60 = vadd.bf16 %v615_v50, %v233_v52 }
  0x19   : > { %v264_v61 = vadd.bf16 %v615_v50, %v236_v53  ;;  %v265_v62 = vadd.bf16 %v615_v50, %v237_v54  ;;  %v266_v0 = vmax.bf16 %v773_v63, %v258_v55  ;;  %v267_v1 = vmax.bf16 %v773_v63, %v259_v56 }
  0x1a   : > { %v270_v2 = vmax.bf16 %v773_v63, %v262_v57  ;;  %v271_v3 = vmax.bf16 %v773_v63, %v263_v58  ;;  %v268_v4 = vmax.bf16 %v773_v63, %v260_v59  ;;  %v269_v5 = vmax.bf16 %v773_v63, %v261_v60 }
  0x1b   : > { %693 = vmatpush3.bf16.msra.mxu0 %v759_v16  ;;  %735 = vmatpush3.bf16.msra.mxu1 %v759_v16  ;;  %v272_v6 = vmax.bf16 %v773_v63, %v264_v61  ;;  %v273_v7 = vmax.bf16 %v773_v63, %v265_v62  ;;  %v617_v8 = vcombine.high %v266_v0, %v267_v1 }
  0x1c   : > { %694 = vmatprep.subr.bf16.mxu0 %v760_v17  ;;  %728 = vmatprep.subr.bf16.mxu1 %v760_v17  ;;  %v621_v9 = vcombine.high %v270_v2, %v271_v3  ;;  %v616_v10 = vcombine.low %v266_v0, %v267_v1  ;;  %v620_v11 = vcombine.low %v270_v2, %v271_v3 }
  0x1d   : > { %v619_v12 = vcombine.high %v268_v4, %v269_v5  ;;  %v623_v13 = vcombine.high %v272_v6, %v273_v7  ;;  %474 = vmatprep.mubr.bf16.mxu0 %v617_v8  ;;  %v618_v14 = vcombine.low %v268_v4, %v269_v5  ;;  %v622_v15 = vcombine.low %v272_v6, %v273_v7 }
  0x1e   : > { %490 = vmatprep.mubr.bf16.mxu1 %v621_v9 }
  0x1f   : > { %695 = vmatpush3.bf16.msra.mxu0 %v761_v21  ;;  %736 = vmatpush3.bf16.msra.mxu1 %v761_v21 }
  0x20   : > { %696 = vmatprep.subr.bf16.mxu0 %v762_v22  ;;  %729 = vmatprep.subr.bf16.mxu1 %v762_v22 }
  0x23   : > { %697 = vmatpush3.bf16.msra.mxu0 %v763_v30  ;;  %737 = vmatpush3.bf16.msra.mxu1 %v763_v30 }
  0x26   : > { %475 = vmatmul.mubr.bf16.vlgmr.msra.gmra.mrb[0].mxu0 %v616_v10  ;;  %491 = vmatmul.mubr.bf16.vlgmr.msra.gmra.mrb[0].mxu1 %v620_v11 }
  0x27   : > { %482 = vmatprep.mubr.bf16.mxu0 %v619_v12  ;;  %498 = vmatprep.mubr.bf16.mxu1 %v623_v13 }
  0x2e   : > { %483 = vmatmul.mubr.bf16.gmra.mrb[4].mxu0 %v618_v14  ;;  %499 = vmatmul.mubr.bf16.gmra.mrb[4].mxu1 %v622_v15 }
  0xf9   : > { %v698_v16 = vpop.f32.mrb[0].mxu0  ;;  %v710_v17 = vpop.f32.mrb[0].mxu1 }
  0xfa   : > { %v699_v18 = vpop.f32.mrb[1].mxu0  ;;  %v711_v19 = vpop.f32.mrb[1].mxu1 }
  0xfb   : > { %v700_v20 = vadd.f32 %v699_v18, %v698_v16  ;;  %v712_v21 = vadd.f32 %v711_v19, %v710_v17  ;;  %v701_v22 = vpop.f32.mrb[2].mxu0  ;;  %v713_v23 = vpop.f32.mrb[2].mxu1 }
  0xfc   : > { %v702_v24 = vpop.f32.mrb[3].mxu0  ;;  %v714_v25 = vpop.f32.mrb[3].mxu1 }
  0xfd   : > { %v703_v26 = vadd.f32 %v702_v24, %v701_v22  ;;  %v715_v27 = vadd.f32 %v714_v25, %v713_v23 }
  0xff   : > { %v662_v28 = vpack.c.bf16 %v703_v26, %v700_v20  ;;  %v672_v29 = vpack.c.bf16 %v715_v27, %v712_v21 }
 0x101   : > { %663 = vst [vmem:[%s175_s4] sm:$0xff] %v662_v28   ;;  %680 = vst [vmem:[%s175_s4 + $0x10] sm:$0xff] %v672_v29   ;;  %v704_v30 = vpop.f32.mrb[4].mxu0  ;;  %v716_v31 = vpop.f32.mrb[4].mxu1 }
 0x102   : > { %v705_v32 = vpop.f32.mrb[5].mxu0  ;;  %v717_v33 = vpop.f32.mrb[5].mxu1 }
 0x103   : > { %v706_v34 = vadd.f32 %v705_v32, %v704_v30  ;;  %v718_v35 = vadd.f32 %v717_v33, %v716_v31  ;;  %v707_v36 = vpop.f32.mrb[6].mxu0  ;;  %v719_v37 = vpop.f32.mrb[6].mxu1 }
 0x104   : > { %v708_v38 = vpop.f32.mrb[7].mxu0  ;;  %v720_v39 = vpop.f32.mrb[7].mxu1 }
 0x105   : > { %v709_v40 = vadd.f32 %v708_v38, %v707_v36  ;;  %v721_v41 = vadd.f32 %v720_v39, %v719_v37 }
 0x107   : > { %v667_v42 = vpack.c.bf16 %v709_v40, %v706_v34  ;;  %v677_v43 = vpack.c.bf16 %v721_v41, %v718_v35 }
 0x109   : > { %679 = vst [vmem:[%s175_s4 + $0x8] sm:$0xff] %v667_v42   ;;  %681 = vst [vmem:[%s175_s4 + $0x18] sm:$0xff] %v677_v43  }
 0x10a PF: > { %s13_s12 = sadd.s32 1, %s770_s12  }
 0x10b   : > { %p10_p4 = scmp.ge.s32.totalorder %s13_s12, 4  }
 0x10d   :  { %12 = sbr.rel (!%p10_p4) target bundleno = 1 (0x1), region = 62 }

// kernel: densenet121_forward.135
= control target key start
LH: loop header
LB: loop body
LE: loop exit
PB: predicated region body
PF: predicated region fallthrough
CT: control target
= control target key end

     0   :  { %s950_s15 = smov 0   ;;  %s1091_s0 = inlined_call_operand.vmem [shape: bf16[32,512], index: 0, kind: input, shape index: {}]   ;;  %s1092_s1 = inlined_call_operand.vmem [shape: bf16[2,512], index: 1, kind: input, shape index: {}]   ;;  %s1093_s2 = inlined_call_operand.vmem [shape: bf16[512,128], index: 2, kind: input, shape index: {}]   ;;  %s1094_s3 = inlined_call_operand.vmem [shape: f32[2,128], index: 3, kind: input, shape index: {}]   ;;  %s1095_s4 = inlined_call_operand.vmem [shape: bf16[32,128], index: 4, kind: output, shape index: {}]  }
   0x1 LB: > { %s766_s16 = sadd.s32 4294967295, %s921_s15   ;;  %p770_p0 = scmp.ge.s32.totalorder %s921_s15, 1  ;;  %s921_s15 = sphi %s950_s15, %s14_s15  }
   0x2   : > { %p164_p1 = scmp.lt.s32.totalorder %s921_s15, 3 }
   0x4   : > { %p165_p2 = pnand %p770_p0, %p164_p1 }
   0x5   : > { %v883_v0 = vld [vmem:[%s1093_s2 + $0x40] sm:$0xff] (!%p165_p2)   ;;  %v887_v4 = vld [vmem:[%s1093_s2 + $0x48] sm:$0xff] (!%p165_p2)   ;;  %v891_v8 = vld [vmem:[%s1093_s2 + $0x50] sm:$0xff] (!%p165_p2)   ;;  %s771_s27 = sshll.u32 (!%p165_p2), %s766_s16, 1  ;;  %v222_v31 = vlaneseq (!%p165_p2)  ;;  %v923_v34 = vmov (!%p165_p2), 1966171168  }
   0x6   : > { %168 = sbr.rel (%p165_p2) target bundleno = 268 (0x10c), region = 36  ;;  %v884_v1 = vld [vmem:[%s1093_s2 + $0xc0] sm:$0xff] (!%p165_p2)   ;;  %829 = vmatprep.subr.bf16.mxu0 (!%p165_p2), %v883_v0  ;;  %v888_v5 = vld [vmem:[%s1093_s2 + $0xc8] sm:$0xff] (!%p165_p2)   ;;  %v892_v9 = vld [vmem:[%s1093_s2 + $0xd0] sm:$0xff] (!%p165_p2)   ;;  %p192_p3 = scmp.lt.s32.totalorder (!%p165_p2), %s771_s27, 3  ;;  %v220_v35 = vunpack.c.l.s4 (!%p165_p2), %v923_v34 }
   0x7   : > { %v885_v2 = vld [vmem:[%s1093_s2] sm:$0xff] (!%p165_p2)   ;;  %851 = vmatprep.subr.bf16.mxu1 (!%p165_p2), %v884_v1  ;;  %v889_v6 = vld [vmem:[%s1093_s2 + $0x8] sm:$0xff] (!%p165_p2)   ;;  %v893_v10 = vld [vmem:[%s1093_s2 + $0x10] sm:$0xff] (!%p165_p2)   ;;  %v1059_v36 = vshrl.u32 (!%p165_p2), %v222_v31, 7 }
   0x8   : > { %v886_v3 = vld [vmem:[%s1093_s2 + $0x80] sm:$0xff] (!%p165_p2)   ;;  %830 = vmatpush3.bf16.msra.mxu0 (!%p165_p2), %v885_v2  ;;  %v890_v7 = vld [vmem:[%s1093_s2 + $0x88] sm:$0xff] (!%p165_p2)   ;;  %v894_v11 = vld [vmem:[%s1093_s2 + $0x90] sm:$0xff] (!%p165_p2)   ;;  %v221_v38 = vunpack.c.0.s8 (!%p165_p2), %v220_v35 }
   0x9   : > { %852 = vmatpush3.bf16.msra.mxu1 (!%p165_p2), %v886_v3  ;;  %831 = vmatprep.subr.bf16.mxu0 (!%p165_p2), %v887_v4  ;;  %v895_v12 = vld [vmem:[%s1093_s2 + $0x58] sm:$0xff] (!%p165_p2)   ;;  %v899_v16 = vld [vmem:[%s1093_s2 + $0x60] sm:$0xff] (!%p165_p2)   ;;  %v903_v20 = vld [vmem:[%s1093_s2 + $0x68] sm:$0xff] (!%p165_p2)   ;;  %v1066_v42 = vsub.s32 (!%p165_p2), 0, %v1059_v36 }
   0xa   : > { %853 = vmatprep.subr.bf16.mxu1 (!%p165_p2), %v888_v5  ;;  %v896_v13 = vld [vmem:[%s1093_s2 + $0xd8] sm:$0xff] (!%p165_p2)   ;;  %v900_v17 = vld [vmem:[%s1093_s2 + $0xe0] sm:$0xff] (!%p165_p2)   ;;  %v904_v21 = vld [vmem:[%s1093_s2 + $0xe8] sm:$0xff] (!%p165_p2)   ;;  %v224_v39 = vsub.s32 (!%p165_p2), %v221_v38, %v1059_v36 }
   0xb   : > { %v897_v14 = vld [vmem:[%s1093_s2 + $0x18] sm:$0xff] (!%p165_p2)   ;;  %v901_v18 = vld [vmem:[%s1093_s2 + $0x20] sm:$0xff] (!%p165_p2)   ;;  %v905_v22 = vld [vmem:[%s1093_s2 + $0x28] sm:$0xff] (!%p165_p2)  }
   0xc   : > { %832 = vmatpush3.bf16.msra.mxu0 (!%p165_p2), %v889_v6  ;;  %v898_v15 = vld [vmem:[%s1093_s2 + $0x98] sm:$0xff] (!%p165_p2)   ;;  %v902_v19 = vld [vmem:[%s1093_s2 + $0xa0] sm:$0xff] (!%p165_p2)   ;;  %v906_v23 = vld [vmem:[%s1093_s2 + $0xa8] sm:$0xff] (!%p165_p2)  }
   0xd   : > { %854 = vmatpush3.bf16.msra.mxu1 %v890_v7  ;;  %833 = vmatprep.subr.bf16.mxu0 %v891_v8  ;;  %v907_v24 = vld [vmem:[%s1093_s2 + $0x70] sm:$0xff]   ;;  %v911_v28 = vld [vmem:[%s1093_s2 + $0x78] sm:$0xff]   ;;  %v776_v33 = vld.sshfl [vmem:[%s1092_s1] sm:$0x33 pattern:$0x75316420] }
   0xe   : > { %855 = vmatprep.subr.bf16.mxu1 %v892_v9  ;;  %v908_v25 = vld [vmem:[%s1093_s2 + $0xf0] sm:$0xff]   ;;  %v912_v29 = vld [vmem:[%s1093_s2 + $0xf8] sm:$0xff]   ;;  %s1097_s27 = smov (!%p192_p3, %s771_s27), 3  ;;  %v218_v37 = vcombine.high %v776_v33, %v776_v33  ;;  %v225_v40 = vrot.slane %v776_v33, %v224_v39 }
   0xf   : > { %v909_v26 = vld [vmem:[%s1093_s2 + $0x30] sm:$0xff]   ;;  %v913_v30 = vld [vmem:[%s1093_s2 + $0x38] sm:$0xff]   ;;  %s821_s9 = sshll.u32 %s1097_s27, 4  ;;  %s775_s17 = sshll.u32 %s1097_s27, 2 }
  0x10   : > { %834 = vmatpush3.bf16.msra.mxu0 %v893_v10  ;;  %v910_v27 = vld [vmem:[%s1093_s2 + $0xb0] sm:$0xff]   ;;  %v914_v32 = vld [vmem:[%s1093_s2 + $0xb8] sm:$0xff]   ;;  %v232_v41 = vrot.slane %v218_v37, %v224_v39  ;;  %s196_s12 = scalar_lea.vmem %s1091_s0, %s821_s9  ;;  %v236_v43 = vpack.i.b16 %v225_v40, %v225_v40  ;;  %v279_v45 = vshrl.u32 %v225_v40, 16  ;;  %v233_v47 = vcombine.high %v225_v40, %v225_v40  ;;  %s202_s20 = scalar_lea.vmem %s1095_s4, %s775_s17 }
  0x11   : > { %856 = vmatpush3.bf16.msra.mxu1 %v894_v11  ;;  %835 = vmatprep.subr.bf16.mxu0 %v895_v12  ;;  %v206_v53 = vld [vmem:[%s196_s12] sm:$0xff]  ;;  %v208_v54 = vld [vmem:[%s196_s12 + $0x10] sm:$0xff]  ;;  %v207_v5 = vld [vmem:[%s196_s12 + $0x8] sm:$0xff] }
  0x12   : > { %857 = vmatprep.subr.bf16.mxu1 %v896_v13  ;;  %v243_v44 = vpack.i.b16 %v232_v41, %v232_v41  ;;  %v286_v46 = vshrl.u32 %v232_v41, 16  ;;  %v234_v48 = vcombine.high %v232_v41, %v232_v41  ;;  %v241_v49 = vrot.slane %v236_v43, %v1066_v42  ;;  %v209_v6 = vld [vmem:[%s196_s12 + $0x18] sm:$0xff] }
  0x13   : > { %v280_v51 = vpack.i.b16 %v279_v45, %v279_v45  ;;  %v250_v55 = vpack.i.b16 %v233_v47, %v233_v47  ;;  %v293_v57 = vshrl.u32 %v233_v47, 16 }
  0x14   : > { %836 = vmatpush3.bf16.msra.mxu0 %v897_v14  ;;  %v248_v50 = vrot.slane %v243_v44, %v1066_v42  ;;  %v287_v52 = vpack.i.b16 %v286_v46, %v286_v46  ;;  %v257_v56 = vpack.i.b16 %v234_v48, %v234_v48  ;;  %v300_v58 = vshrl.u32 %v234_v48, 16 }
  0x15   : > { %858 = vmatpush3.bf16.msra.mxu1 %v898_v15  ;;  %837 = vmatprep.subr.bf16.mxu0 %v899_v16  ;;  %v285_v60 = vrot.slane %v280_v51, %v1066_v42  ;;  %v255_v62 = vrot.slane %v250_v55, %v1066_v42  ;;  %v294_v0 = vpack.i.b16 %v293_v57, %v293_v57  ;;  %v924_v15 = vmov 0  }
  0x16   : > { %859 = vmatprep.subr.bf16.mxu1 %v900_v17  ;;  %v777_v59 = vcombine.low %v241_v49, %v248_v50  ;;  %v292_v61 = vrot.slane %v287_v52, %v1066_v42  ;;  %v262_v63 = vrot.slane %v257_v56, %v1066_v42  ;;  %v301_v1 = vpack.i.b16 %v300_v58, %v300_v58 }
  0x17   : > { %v299_v8 = vrot.slane %v294_v0, %v1066_v42 }
  0x18   : > { %838 = vmatpush3.bf16.msra.mxu0 %v901_v18  ;;  %v275_v2 = vmul.bf16 %v777_v59, %v206_v53  ;;  %v277_v3 = vmul.bf16 %v777_v59, %v208_v54  ;;  %v779_v4 = vcombine.low %v285_v60, %v292_v61  ;;  %v778_v7 = vcombine.low %v255_v62, %v262_v63 }
  0x19   : > { %860 = vmatpush3.bf16.msra.mxu1 %v902_v19  ;;  %839 = vmatprep.subr.bf16.mxu0 %v903_v20  ;;  %v306_v9 = vrot.slane %v301_v1, %v1066_v42 }
  0x1a   : > { %861 = vmatprep.subr.bf16.mxu1 %v904_v21  ;;  %v319_v10 = vadd.bf16 %v779_v4, %v275_v2  ;;  %v321_v11 = vadd.bf16 %v779_v4, %v277_v3  ;;  %v276_v12 = vmul.bf16 %v778_v7, %v207_v5  ;;  %v278_v13 = vmul.bf16 %v778_v7, %v209_v6 }
  0x1b   : > { %v780_v14 = vcombine.low %v299_v8, %v306_v9 }
  0x1c   : > { %840 = vmatpush3.bf16.msra.mxu0 %v905_v22  ;;  %v323_v16 = vmax.bf16 %v924_v15, %v319_v10  ;;  %v325_v17 = vmax.bf16 %v924_v15, %v321_v11 }
  0x1d   : > { %862 = vmatpush3.bf16.msra.mxu1 %v906_v23  ;;  %841 = vmatprep.subr.bf16.mxu0 %v907_v24  ;;  %v320_v18 = vadd.bf16 %v780_v14, %v276_v12  ;;  %v322_v19 = vadd.bf16 %v780_v14, %v278_v13 }
  0x1e   : > { %863 = vmatprep.subr.bf16.mxu1 %v908_v25  ;;  %v782_v20 = vcombine.high %v323_v16, %v325_v17  ;;  %v781_v21 = vcombine.low %v323_v16, %v325_v17 }
  0x1f   : > { %v324_v22 = vmax.bf16 %v924_v15, %v320_v18  ;;  %v326_v23 = vmax.bf16 %v924_v15, %v322_v19 }
  0x20   : > { %842 = vmatpush3.bf16.msra.mxu0 %v909_v26  ;;  %635 = vmatprep.mubr.bf16.mxu0 %v782_v20 }
  0x21   : > { %864 = vmatpush3.bf16.msra.mxu1 %v910_v27  ;;  %843 = vmatprep.subr.bf16.mxu0 %v911_v28  ;;  %v784_v24 = vcombine.high %v324_v22, %v326_v23  ;;  %v783_v25 = vcombine.low %v324_v22, %v326_v23 }
  0x22   : > { %865 = vmatprep.subr.bf16.mxu1 %v912_v29  ;;  %v685_v29 = vld [vmem:[%s1094_s3] sm:$0x3] }
  0x23   : > { %676 = vmatprep.mubr.bf16.mxu1 %v784_v24  ;;  %v689_v38 = vrot.slane %v685_v29, %v1066_v42 }
  0x24   : > { %844 = vmatpush3.bf16.msra.mxu0 %v913_v30 }
  0x25   : > { %866 = vmatpush3.bf16.msra.mxu1 %v914_v32  ;;  %v694_v32 = vsub.s32 1, %v1059_v36 }
  0x27   : > { %636 = vmatmul.mubr.bf16.vlgmr.msra.gmra.mrb[0].mxu0 %v781_v21  ;;  %v695_v43 = vrot.slane %v685_v29, %v694_v32 }
  0x28   : > { %677 = vmatmul.mubr.bf16.vlgmr.msra.gmra.mrb[0].mxu1 %v783_v25 }
  0xfa   : > { %v845_v26 = vpop.f32.mrb[0].mxu0 }
  0xfb   : > { %v846_v27 = vpop.f32.mrb[1].mxu0  ;;  %v867_v31 = vpop.f32.mrb[0].mxu1 }
  0xfc   : > { %v847_v28 = vadd.f32 %v846_v27, %v845_v26  ;;  %v848_v30 = vpop.f32.mrb[2].mxu0  ;;  %v868_v34 = vpop.f32.mrb[1].mxu1 }
  0xfd   : > { %v849_v33 = vpop.f32.mrb[3].mxu0  ;;  %v869_v37 = vadd.f32 %v868_v34, %v867_v31  ;;  %v870_v39 = vpop.f32.mrb[2].mxu1 }
  0xfe   : > { %v850_v35 = vadd.f32 %v849_v33, %v848_v30  ;;  %v871_v40 = vpop.f32.mrb[3].mxu1 }
  0xff   : > { %v679_v41 = vadd.f32 %v869_v37, %v847_v28  ;;  %v872_v44 = vadd.f32 %v871_v40, %v870_v39 }
 0x101   : > { %v690_v45 = vmul.f32 %v689_v38, %v679_v41  ;;  %v682_v46 = vadd.f32 %v872_v44, %v850_v35 }
 0x103   : > { %v696_v47 = vadd.f32 %v695_v43, %v690_v45  ;;  %v691_v48 = vmul.f32 %v689_v38, %v682_v46 }
 0x105   : > { %v697_v49 = vadd.f32 %v695_v43, %v691_v48  ;;  %v698_v50 = vmax.f32 %v696_v47, 0.0 }
 0x107   : > { %v699_v51 = vmax.f32 %v697_v49, 0.0 }
 0x109   : > { %v827_v36 = vpack.c.bf16 %v699_v51, %v698_v50 }
 0x10b   : > { %828 = vst [vmem:[%s202_s20] sm:$0xff] %v827_v36  }
 0x10c PF: > { %s14_s15 = sadd.s32 1, %s921_s15  }
 0x10d   : > { %p11_p4 = scmp.ge.s32.totalorder %s14_s15, 4  }
 0x10f   :  { %13 = sbr.rel (!%p11_p4) target bundleno = 1 (0x1), region = 66 }

// kernel: densenet121_forward.136
= control target key start
LH: loop header
LB: loop body
LE: loop exit
PB: predicated region body
PF: predicated region fallthrough
CT: control target
= control target key end

     0   :  { %7 = vsyncpa [#allocation3], 0  ;;  %s1852_s0 = inlined_call_operand.hbm [shape: bf16[32,1152], index: 0, kind: input, shape index: {}]   ;;  %s1853_s1 = inlined_call_operand.vmem [shape: bf16[1152,128], index: 1, kind: input, shape index: {}]   ;;  %s1854_s2 = inlined_call_operand.vmem [shape: bf16[32,128], index: 2, kind: output, shape index: {}]  }
   0x1   :  { %9 = vsyncpa [#allocation3 + $0x1], 0  ;;  %s1518_s9 = smov 0   ;;  %s1520_s10 = smov 0  }
   0x2   :  { %s1522_s11 = smov 0   ;;  %s1524_s12 = smov 0  }
   0x3 LB: > { %s1082_s13 = sadd.s32 4294967295, %s1496_s12   ;;  %s1538_s14 = sadd.s32 1, %s1496_s12   ;;  %s1496_s12 = sphi %s1524_s12, %s1861_s12   ;;  %s1492_s11 = sphi %s1522_s11, %s1860_s11   ;;  %s1488_s10 = sphi %s1520_s10, %s1859_s10   ;;  %s1484_s9 = sphi %s1518_s9, %s1858_s9  }
   0x4   : > { %s19_s15 = ssub.s32 %s1496_s12, %s1538_s14  ;;  %s22_s16 = sadd.s32 1, %s1492_s11 }
   0x5   : > { %p20_p0 = scmp.eq.s32.totalorder %s19_s15, 0  ;;  %p29_p1 = scmp.ne.s32.totalorder %s1492_s11, %s1488_s10 }
   0x6   : > { %p30_p2 = scmp.eq.s32.totalorder %s1496_s12, 0  ;;  %p35_p3 = scmp.ne.s32.totalorder %s1488_s10, %s1484_s9 }
   0x7   : > { %s1548_s17 = scalar_select %p20_p0, %s1492_s11, %s22_s16  }
   0x8   : > { %p31_p4 = por %p30_p2, %p29_p1  ;;  %p36_p5 = scmp.eq.s32.totalorder %s1082_s13, 0 }
   0x9   : > { %p1310_p6 = scmp.lt.s32.totalorder %s1496_s12, 2  ;;  %s109_s19 = sand.u32 1, %s1492_s11  }
   0xa   : > { %p1553_p7 = por %p36_p5, %p35_p3  ;;  %s1301_s20 = smul.u32 72, %s109_s19 }
   0xb   : > { %s1302_s21 = smul.u32 1152, %s1496_s12  ;;  %p1559_p8 = pnand %p1310_p6, %p31_p4 }
   0xc   : > { %s113_s26 = scalar_lea.vmem [#allocation2], %s1301_s20  ;;  %s1571_s28 = scalar_lea.sflag [#allocation3], %s109_s19 }
   0xd   : > { %s1566_s25 = scalar_lea.hbm %s1852_s0, %s1302_s21  ;;  %s121_s27 = sshll.u32 %s113_s26, 4  ;;  %s1568_s27 = int_to_ptr.vmem [resolvable:$true] %s121_s27 }
   0xe   : > { %s1432_s29 = scalar_lea.hbm %s1566_s25, 1152  ;;  %p1434_p11 = pneg %p1559_p8 }
   0xf   : > { %p1433_p10 = scmp.ne.s32.totalorder %s1566_s25, %s1432_s29  ;;  %s1437_s4 = scalar_lea.hbm %s1852_s0, 2304 }
  0x10   : > { %p1438_p0 = scmp.lt.u32.totalorder %s1566_s25, %s1852_s0  ;;  %p1439_p1 = scmp.lt.u32.totalorder %s1437_s4, %s1432_s29 }
  0x11   : > { %p1435_p12 = pnand %p1434_p11, %p1433_p10  ;;  %p1441_p3 = scmp.lt.u32.totalorder %s1432_s29, %s1566_s25 }
  0x12   : > { %p1440_p2 = por %p1439_p1, %p1438_p0 }
  0x13   : > { %p1436_p13 = pneg %p1435_p12 }
  0x14   : > { %p1442_p4 = por %p1441_p3, %p1440_p2 }
  0x16   : > { %p1443_p5 = pnand %p1442_p4, %p1436_p13 }
  0x18   : > { %1446 = shalt.err (!%p1443_p5)
}
  0x19   : > { %s1447_s7 = scalar_lea.vmem %s1568_s27, 1152  ;;  %s1498_s8 = smov [#allocation2]  }
  0x1a   : > { %p1448_p6 = scmp.ne.s32.totalorder %s1568_s27, %s1447_s7  ;;  %s1452_s9 = sshll.u32 %s1498_s8, 4  ;;  %s1453_s9 = int_to_ptr.vmem [resolvable:$false] %s1452_s9 }
  0x1b   : > { %s1454_s15 = scalar_lea.vmem %s1453_s9, 2304  ;;  %p1455_p9 = scmp.lt.s32.totalorder %s1568_s27, %s1453_s9 }
  0x1c   : > { %p1450_p10 = pnand %p1448_p6, %p1434_p11  ;;  %p1456_p0 = scmp.lt.s32.totalorder %s1454_s15, %s1447_s7 }
  0x1e   : > { %p1451_p12 = pneg %p1450_p10  ;;  %p1457_p1 = por %p1456_p0, %p1455_p9 }
  0x20   : > { %p1458_p2 = pnand %p1457_p1, %p1451_p12 }
  0x22   : > { %1461 = shalt.err (!%p1458_p2)
}
  0x23   : > { %s1499_s16 = smov 576   ;;  %s1500_s19 = smov 36  }
  0x24   : > { %1309 = dma.hbm_to_vmem [thread:$0]  (!%p1559_p8), %s1566_s25, 1152, %s1568_s27, %s1571_s28, %s1499_s16, %s1499_s16, %s1500_s19  }
  0x25   : > { %p129_p11 = scmp.lt.s32.totalorder %s1496_s12, 3  ;;  %p1857_p13 = scmp.ge.s32.totalorder %s1496_s12, 1 }
  0x27   : > { %p130_p3 = pnand %p1857_p13, %p129_p11 }
  0x28   : > { %s135_s20 = sand.u32 (!%p130_p3), 1, %s1488_s10  }
  0x29   : > { %133 = sbr.rel (%p130_p3) target bundleno = 366 (0x16e), region = 28  ;;  %s136_s23 = scalar_lea.sflag (!%p130_p3), [#allocation3], %s135_s20 }
  0x2a   : > { %s1303_s21 = smul.u32 (!%p130_p3), 72, %s135_s20 }
  0x2c   : > { %s1603_s24 = scalar_lea.vmem (!%p130_p3), [#allocation2], %s1303_s21 }
  0x30   : > { %1479 = dma.done.wait (%p1553_p7), %s136_s23, 1152  }
  0x31   : > { %1481 = vsyncadd (%p1553_p7), %s136_s23, 4294966144  ;;  %v1347_v0 = vld [vmem:[%s1853_s1 + $0x40] sm:$0xff]   ;;  %v1351_v4 = vld [vmem:[%s1853_s1 + $0x48] sm:$0xff]   ;;  %vm1502_vm0 = vmmov 0  }
  0x32   : > { %v1348_v1 = vld [vmem:[%s1853_s1 + $0xc0] sm:$0xff]   ;;  %1184 = vmatprep.subr.bf16.mxu0 %v1347_v0  ;;  %v1352_v5 = vld [vmem:[%s1853_s1 + $0xc8] sm:$0xff]   ;;  %v1355_v8 = vld [vmem:[%s1853_s1 + $0x50] sm:$0xff]  }
  0x33   : > { %v1349_v2 = vld [vmem:[%s1853_s1] sm:$0xff]   ;;  %1206 = vmatprep.subr.bf16.mxu1 %v1348_v1  ;;  %v1353_v6 = vld [vmem:[%s1853_s1 + $0x8] sm:$0xff]   ;;  %v1356_v9 = vld [vmem:[%s1853_s1 + $0xd0] sm:$0xff]  }
  0x34   : > { %v1350_v3 = vld [vmem:[%s1853_s1 + $0x80] sm:$0xff]   ;;  %1185 = vmatpush3.bf16.msra.mxu0 %v1349_v2  ;;  %v1354_v7 = vld [vmem:[%s1853_s1 + $0x88] sm:$0xff]   ;;  %v1357_v10 = vld [vmem:[%s1853_s1 + $0x10] sm:$0xff]  }
  0x35   : > { %1207 = vmatpush3.bf16.msra.mxu1 %v1350_v3  ;;  %1186 = vmatprep.subr.bf16.mxu0 %v1351_v4  ;;  %v1358_v11 = vld [vmem:[%s1853_s1 + $0x90] sm:$0xff]   ;;  %v1359_v12 = vld [vmem:[%s1853_s1 + $0x58] sm:$0xff]   ;;  %v1363_v16 = vld [vmem:[%s1853_s1 + $0x60] sm:$0xff]  }
  0x36   : > { %1208 = vmatprep.subr.bf16.mxu1 %v1352_v5  ;;  %v1360_v13 = vld [vmem:[%s1853_s1 + $0xd8] sm:$0xff]   ;;  %v1364_v17 = vld [vmem:[%s1853_s1 + $0xe0] sm:$0xff]   ;;  %v1367_v20 = vld [vmem:[%s1853_s1 + $0x68] sm:$0xff]  }
  0x37   : > { %v1361_v14 = vld [vmem:[%s1853_s1 + $0x18] sm:$0xff]   ;;  %v1365_v18 = vld [vmem:[%s1853_s1 + $0x20] sm:$0xff]   ;;  %v1368_v21 = vld [vmem:[%s1853_s1 + $0xe8] sm:$0xff]  }
  0x38   : > { %1187 = vmatpush3.bf16.msra.mxu0 %v1353_v6  ;;  %v1362_v15 = vld [vmem:[%s1853_s1 + $0x98] sm:$0xff]   ;;  %v1366_v19 = vld [vmem:[%s1853_s1 + $0xa0] sm:$0xff]   ;;  %v1369_v22 = vld [vmem:[%s1853_s1 + $0x28] sm:$0xff]   ;;  %v1501_v6 = vmov 0.0  }
  0x39   : > { %1209 = vmatpush3.bf16.msra.mxu1 %v1354_v7  ;;  %1188 = vmatprep.subr.bf16.mxu0 %v1355_v8  ;;  %v1370_v23 = vld [vmem:[%s1853_s1 + $0xa8] sm:$0xff]   ;;  %v1371_v24 = vld [vmem:[%s1853_s1 + $0x70] sm:$0xff]   ;;  %v1375_v28 = vld [vmem:[%s1853_s1 + $0x78] sm:$0xff]  }
  0x3a   : > { %1210 = vmatprep.subr.bf16.mxu1 %v1356_v9  ;;  %v1372_v25 = vld [vmem:[%s1853_s1 + $0xf0] sm:$0xff]   ;;  %v1376_v29 = vld [vmem:[%s1853_s1 + $0xf8] sm:$0xff]   ;;  %v1379_v32 = vld [vmem:[%s1603_s24] ss:$36 sps:$4 sm:$0xff]  }
  0x3b   : > { %v1373_v26 = vld [vmem:[%s1853_s1 + $0x30] sm:$0xff]   ;;  %v1377_v30 = vld [vmem:[%s1853_s1 + $0x38] sm:$0xff]   ;;  %v1385_v36 = vld [vmem:[%s1853_s1 + $0x140] sm:$0xff]  }
  0x3c   : > { %1189 = vmatpush3.bf16.msra.mxu0 %v1357_v10  ;;  %v1374_v27 = vld [vmem:[%s1853_s1 + $0xb0] sm:$0xff]   ;;  %v1378_v31 = vld [vmem:[%s1853_s1 + $0xb8] sm:$0xff]   ;;  %v1386_v37 = vld [vmem:[%s1853_s1 + $0x100] sm:$0xff]  }
  0x3d   : > { %1211 = vmatpush3.bf16.msra.mxu1 %v1358_v11  ;;  %1190 = vmatprep.subr.bf16.mxu0 %v1359_v12  ;;  %v1381_v33 = vld [vmem:[%s1603_s24 + $0x4] ss:$36 sps:$4 sm:$0xff]   ;;  %v1384_v35 = vld [vmem:[%s1603_s24 + $0xc] ss:$36 sps:$4 sm:$0xff]   ;;  %v1418_v4 = vld [vmem:[%s1603_s24 + $0x14] ss:$36 sps:$4 sm:$0xff]  }
  0x3e   : > { %1212 = vmatprep.subr.bf16.mxu1 %v1360_v13  ;;  %v1382_v34 = vld [vmem:[%s1603_s24 + $0x8] ss:$36 sps:$4 sm:$0xff]   ;;  %832 = vmatprep.mubr.bf16.mxu0 %v1381_v33  ;;  %v1387_v38 = vld [vmem:[%s1853_s1 + $0x1c0] sm:$0xff]   ;;  %v1397_v48 = vld [vmem:[%s1853_s1 + $0x158] sm:$0xff]  }
  0x3f   : > { %873 = vmatprep.mubr.bf16.mxu1 %v1384_v35  ;;  %v1388_v39 = vld [vmem:[%s1853_s1 + $0x180] sm:$0xff]   ;;  %v1389_v40 = vld [vmem:[%s1853_s1 + $0x148] sm:$0xff]   ;;  %v1393_v44 = vld [vmem:[%s1853_s1 + $0x150] sm:$0xff]  }
  0x40   : > { %1191 = vmatpush3.bf16.msra.mxu0 %v1361_v14  ;;  %v1390_v41 = vld [vmem:[%s1853_s1 + $0x108] sm:$0xff]   ;;  %v1394_v45 = vld [vmem:[%s1853_s1 + $0x110] sm:$0xff]   ;;  %v1398_v49 = vld [vmem:[%s1853_s1 + $0x118] sm:$0xff]  }
  0x41   : > { %1213 = vmatpush3.bf16.msra.mxu1 %v1362_v15  ;;  %1192 = vmatprep.subr.bf16.mxu0 %v1363_v16  ;;  %v1391_v42 = vld [vmem:[%s1853_s1 + $0x1c8] sm:$0xff]   ;;  %v1395_v46 = vld [vmem:[%s1853_s1 + $0x1d0] sm:$0xff]   ;;  %v1399_v50 = vld [vmem:[%s1853_s1 + $0x1d8] sm:$0xff]  }
  0x42   : > { %1214 = vmatprep.subr.bf16.mxu1 %v1364_v17  ;;  %v1392_v43 = vld [vmem:[%s1853_s1 + $0x188] sm:$0xff]   ;;  %v1396_v47 = vld [vmem:[%s1853_s1 + $0x190] sm:$0xff]   ;;  %v1400_v51 = vld [vmem:[%s1853_s1 + $0x198] sm:$0xff]  }
  0x43   : > { %v1401_v52 = vld [vmem:[%s1853_s1 + $0x160] sm:$0xff]   ;;  %v1405_v56 = vld [vmem:[%s1853_s1 + $0x168] sm:$0xff]   ;;  %v1409_v60 = vld [vmem:[%s1853_s1 + $0x170] sm:$0xff]  }
  0x44   : > { %1193 = vmatpush3.bf16.msra.mxu0 %v1365_v18  ;;  %v1402_v53 = vld [vmem:[%s1853_s1 + $0x120] sm:$0xff]   ;;  %v1406_v57 = vld [vmem:[%s1853_s1 + $0x128] sm:$0xff]   ;;  %v1410_v61 = vld [vmem:[%s1853_s1 + $0x130] sm:$0xff]  }
  0x45   : > { %1215 = vmatpush3.bf16.msra.mxu1 %v1366_v19  ;;  %1194 = vmatprep.subr.bf16.mxu0 %v1367_v20  ;;  %v1403_v54 = vld [vmem:[%s1853_s1 + $0x1e0] sm:$0xff]   ;;  %v1407_v58 = vld [vmem:[%s1853_s1 + $0x1e8] sm:$0xff]   ;;  %v1411_v62 = vld [vmem:[%s1853_s1 + $0x1f0] sm:$0xff]  }
  0x46   : > { %1216 = vmatprep.subr.bf16.mxu1 %v1368_v21  ;;  %v1404_v55 = vld [vmem:[%s1853_s1 + $0x1a0] sm:$0xff]   ;;  %v1408_v59 = vld [vmem:[%s1853_s1 + $0x1a8] sm:$0xff]   ;;  %v1412_v63 = vld [vmem:[%s1853_s1 + $0x1b0] sm:$0xff]  }
  0x47   : > { %v1413_v0 = vld [vmem:[%s1853_s1 + $0x178] sm:$0xff]   ;;  %v1423_v9 = vld [vmem:[%s1853_s1 + $0x200] sm:$0xff]   ;;  %v1424_v10 = vld [vmem:[%s1853_s1 + $0x208] sm:$0xff]  }
  0x48   : > { %1195 = vmatpush3.bf16.msra.mxu0 %v1369_v22  ;;  %v1414_v1 = vld [vmem:[%s1853_s1 + $0x138] sm:$0xff]   ;;  %v1425_v11 = vld [vmem:[%s1853_s1 + $0x210] sm:$0xff]   ;;  %v1427_v13 = vld [vmem:[%s1853_s1 + $0x220] sm:$0xff]  }
  0x49   : > { %1217 = vmatpush3.bf16.msra.mxu1 %v1370_v23  ;;  %1196 = vmatprep.subr.bf16.mxu0 %v1371_v24  ;;  %v1415_v2 = vld [vmem:[%s1853_s1 + $0x1f8] sm:$0xff]   ;;  %v1428_v14 = vld [vmem:[%s1853_s1 + $0x228] sm:$0xff]   ;;  %v1429_v15 = vld [vmem:[%s1853_s1 + $0x230] sm:$0xff]  }
  0x4a   : > { %1218 = vmatprep.subr.bf16.mxu1 %v1372_v25  ;;  %v1416_v3 = vld [vmem:[%s1603_s24 + $0x10] ss:$36 sps:$4 sm:$0xff]   ;;  %v1420_v7 = vld [vmem:[%s1603_s24 + $0x18] ss:$36 sps:$4 sm:$0xff]   ;;  %v1431_v17 = vld [vmem:[%s1603_s24 + $0x20] ss:$36 sps:$4 sm:$0xff]  }
  0x4b   : > { %v1419_v5 = vld [vmem:[%s1853_s1 + $0x1b8] sm:$0xff]  }
  0x4c   : > { %1197 = vmatpush3.bf16.msra.mxu0 %v1373_v26  ;;  %v1422_v8 = vld [vmem:[%s1603_s24 + $0x1c] ss:$36 sps:$4 sm:$0xff]   ;;  %s1090_s24 = sshll.u32 %s1082_s13, 1 }
  0x4d   : > { %1219 = vmatpush3.bf16.msra.mxu1 %v1374_v27  ;;  %1198 = vmatprep.subr.bf16.mxu0 %v1375_v28  ;;  %v1426_v12 = vld [vmem:[%s1853_s1 + $0x218] sm:$0xff]   ;;  %p162_p7 = scmp.lt.s32.totalorder %s1090_s24, 3 }
  0x4e   : > { %1220 = vmatprep.subr.bf16.mxu1 %v1376_v29  ;;  %v1430_v16 = vld [vmem:[%s1853_s1 + $0x238] sm:$0xff]  }
  0x4f   : > { %s1863_s24 = smov (!%p162_p7, %s1090_s24), 3 }
  0x50   : > { %1199 = vmatpush3.bf16.msra.mxu0 %v1377_v30  ;;  %s1091_s20 = sshll.u32 %s1863_s24, 2 }
  0x51   : > { %1221 = vmatpush3.bf16.msra.mxu1 %v1378_v31  ;;  %1228 = vmatprep.subr.bf16.mxu0 %v1385_v36  ;;  %s165_s26 = scalar_lea.vmem %s1854_s2, %s1091_s20 }
  0x52   : > { %1250 = vmatprep.subr.bf16.mxu1 %v1387_v38 }
  0x53   : > { %833 = vmatmul.mubr.bf16.vlgmr.msra.gmra.mrb[0].mxu0 %v1379_v32 }
  0x54   : > { %874 = vmatmul.mubr.bf16.vlgmr.msra.gmra.mrb[0].mxu1 %v1382_v34  ;;  %1229 = vmatpush3.bf16.msra.mxu0 %v1386_v37 }
  0x55   : > { %1251 = vmatpush3.bf16.msra.mxu1 %v1388_v39  ;;  %1230 = vmatprep.subr.bf16.mxu0 %v1389_v40 }
  0x56   : > { %1252 = vmatprep.subr.bf16.mxu1 %v1391_v42  ;;  %914 = vmatprep.mubr.bf16.mxu0 %v1418_v4 }
  0x57   : > { %955 = vmatprep.mubr.bf16.mxu1 %v1422_v8 }
  0x58   : > { %1231 = vmatpush3.bf16.msra.mxu0 %v1390_v41 }
  0x59   : > { %1253 = vmatpush3.bf16.msra.mxu1 %v1392_v43  ;;  %1232 = vmatprep.subr.bf16.mxu0 %v1393_v44 }
  0x5a   : > { %1254 = vmatprep.subr.bf16.mxu1 %v1395_v46 }
  0x5c   : > { %1233 = vmatpush3.bf16.msra.mxu0 %v1394_v45 }
  0x5d   : > { %1255 = vmatpush3.bf16.msra.mxu1 %v1396_v47  ;;  %1234 = vmatprep.subr.bf16.mxu0 %v1397_v48 }
  0x5e   : > { %1256 = vmatprep.subr.bf16.mxu1 %v1399_v50 }
  0x60   : > { %1235 = vmatpush3.bf16.msra.mxu0 %v1398_v49 }
  0x61   : > { %1257 = vmatpush3.bf16.msra.mxu1 %v1400_v51  ;;  %1236 = vmatprep.subr.bf16.mxu0 %v1401_v52 }
  0x62   : > { %1258 = vmatprep.subr.bf16.mxu1 %v1403_v54 }
  0x64   : > { %1237 = vmatpush3.bf16.msra.mxu0 %v1402_v53 }
  0x65   : > { %1259 = vmatpush3.bf16.msra.mxu1 %v1404_v55  ;;  %1238 = vmatprep.subr.bf16.mxu0 %v1405_v56 }
  0x66   : > { %1260 = vmatprep.subr.bf16.mxu1 %v1407_v58 }
  0x68   : > { %1239 = vmatpush3.bf16.msra.mxu0 %v1406_v57 }
  0x69   : > { %1261 = vmatpush3.bf16.msra.mxu1 %v1408_v59  ;;  %1240 = vmatprep.subr.bf16.mxu0 %v1409_v60 }
  0x6a   : > { %1262 = vmatprep.subr.bf16.mxu1 %v1411_v62 }
  0x6c   : > { %1241 = vmatpush3.bf16.msra.mxu0 %v1410_v61 }
  0x6d   : > { %1263 = vmatpush3.bf16.msra.mxu1 %v1412_v63  ;;  %1242 = vmatprep.subr.bf16.mxu0 %v1413_v0 }
  0x6e   : > { %1264 = vmatprep.subr.bf16.mxu1 %v1415_v2 }
  0x70   : > { %1243 = vmatpush3.bf16.msra.mxu0 %v1414_v1 }
  0x71   : > { %1281 = vmatprep.subr.bf16.mxu0 %v1501_v6  ;;  %1265 = vmatpush3.bf16.msra.mxu1 %v1419_v5 }
  0x73   : > { %915 = vmatmul.mubr.bf16.vlgmr.msra.gmra.mrb[4].mxu0 %v1416_v3 }
  0x74   : > { %1297 = vmatprep.mubr.msk.bf16.mxu0 %vm1502_vm0, %v1501_v6  ;;  %1282 = vmatpush3.bf16.msra.mxu0 %v1423_v9 }
  0x75   : > { %956 = vmatmul.mubr.bf16.vlgmr.msra.gmra.mrb[4].mxu1 %v1420_v7  ;;  %1283 = vmatprep.subr.bf16.mxu0 %v1501_v6 }
  0x78   : > { %1284 = vmatpush3.bf16.msra.mxu0 %v1424_v10 }
  0x79   : > { %1285 = vmatprep.subr.bf16.mxu0 %v1501_v6 }
  0x7c   : > { %1286 = vmatpush3.bf16.msra.mxu0 %v1425_v11 }
  0x7d   : > { %1287 = vmatprep.subr.bf16.mxu0 %v1501_v6 }
  0x80   : > { %1288 = vmatpush3.bf16.msra.mxu0 %v1426_v12 }
  0x81   : > { %1289 = vmatprep.subr.bf16.mxu0 %v1501_v6 }
  0x84   : > { %1290 = vmatpush3.bf16.msra.mxu0 %v1427_v13 }
  0x85   : > { %1291 = vmatprep.subr.bf16.mxu0 %v1501_v6 }
  0x88   : > { %1292 = vmatpush3.bf16.msra.mxu0 %v1428_v14 }
  0x89   : > { %1293 = vmatprep.subr.bf16.mxu0 %v1501_v6 }
  0x8c   : > { %1294 = vmatpush3.bf16.msra.mxu0 %v1429_v15 }
  0x8d   : > { %1295 = vmatprep.subr.bf16.mxu0 %v1501_v6 }
  0x90   : > { %1296 = vmatpush3.bf16.msra.mxu0 %v1430_v16 }
  0x93   : > { %1298 = vmatmul.mubr.bf16.vlgmr.msra.gmra.mrb[8].mxu0 %v1431_v17 }
 0x126   : > { %v1200_v18 = vpop.f32.mrb[0].mxu0 }
 0x127   : > { %v1222_v19 = vpop.f32.mrb[0].mxu1  ;;  %v1201_v20 = vpop.f32.mrb[1].mxu0 }
 0x128   : > { %v1202_v21 = vadd.f32 %v1201_v20, %v1200_v18  ;;  %v1223_v22 = vpop.f32.mrb[1].mxu1  ;;  %v1203_v23 = vpop.f32.mrb[2].mxu0 }
 0x129   : > { %v1224_v24 = vadd.f32 %v1223_v22, %v1222_v19  ;;  %v1225_v25 = vpop.f32.mrb[2].mxu1  ;;  %v1204_v26 = vpop.f32.mrb[3].mxu0 }
 0x12a   : > { %v1205_v27 = vadd.f32 %v1204_v26, %v1203_v23  ;;  %v1226_v28 = vpop.f32.mrb[3].mxu1 }
 0x12b   : > { %v876_v29 = vadd.f32 %v1224_v24, %v1202_v21  ;;  %v1227_v30 = vadd.f32 %v1226_v28, %v1225_v25 }
 0x12d   : > { %v879_v31 = vadd.f32 %v1227_v30, %v1205_v27 }
 0x146   : > { %v1244_v32 = vpop.f32.mrb[4].mxu0 }
 0x147   : > { %v1245_v33 = vpop.f32.mrb[5].mxu0 }
 0x148   : > { %v1246_v34 = vadd.f32 %v1245_v33, %v1244_v32  ;;  %v1247_v35 = vpop.f32.mrb[6].mxu0  ;;  %v1266_v36 = vpop.f32.mrb[4].mxu1 }
 0x149   : > { %v1248_v37 = vpop.f32.mrb[7].mxu0  ;;  %v1267_v40 = vpop.f32.mrb[5].mxu1 }
 0x14a   : > { %v917_v38 = vadd.f32 %v1246_v34, %v876_v29  ;;  %v1249_v39 = vadd.f32 %v1248_v37, %v1247_v35  ;;  %v1268_v41 = vadd.f32 %v1267_v40, %v1266_v36  ;;  %v1269_v42 = vpop.f32.mrb[6].mxu1 }
 0x14b   : > { %v1270_v44 = vpop.f32.mrb[7].mxu1 }
 0x14c   : > { %v920_v43 = vadd.f32 %v1249_v39, %v879_v31  ;;  %v1271_v45 = vadd.f32 %v1270_v44, %v1269_v42  ;;  %v958_v46 = vadd.f32 %v1268_v41, %v917_v38 }
 0x14e   : > { %v961_v47 = vadd.f32 %v1271_v45, %v920_v43 }
 0x166   : > { %v998_v48 = vpop.f32.mrb[8].mxu0 }
 0x167   : > { %v999_v49 = vadd.f32 %v998_v48, %v958_v46  ;;  %v1299_v50 = vpop.f32.mrb[9].mxu0 }
 0x168   : > { %v1001_v51 = vpop.f32.mrb[10].mxu0 }
 0x169   : > { %v1002_v52 = vadd.f32 %v1001_v51, %v961_v47  ;;  %v1300_v53 = vpop.f32.mrb[11].mxu0 }
 0x16b   : > { %v1182_v54 = vpack.c.bf16 %v1002_v52, %v999_v49 }
 0x16d   : > { %1183 = vst [vmem:[%s165_s26] sm:$0xff] %v1182_v54  }
 0x16e PF: > { %p12_p8 = scmp.ge.s32.totalorder %s1538_s14, 4   ;;  %s1858_s9 = smov %s1488_s10 }
 0x16f   : > { %s1859_s10 = smov %s1492_s11  ;;  %s1860_s11 = smov %s1548_s17 }
 0x170   : > { %s1861_s12 = smov %s1538_s14  ;;  %14 = sbr.rel (!%p12_p8) target bundleno = 3 (0x3), region = 68 }
 0x177   :  { %1037 = vsyncpa [#allocation3], 1 }
 0x178   :  { %1039 = vsyncpa [#allocation3 + $0x1], 1 }

// kernel: densenet121_forward.159
= control target key start
LH: loop header
LB: loop body
LE: loop exit
PB: predicated region body
PF: predicated region fallthrough
CT: control target
= control target key end

     0   :  { %s1096_s12 = smov 0   ;;  %s1330_s0 = inlined_call_operand.vmem [shape: bf16[32,512], index: 0, kind: input, shape index: {}]   ;;  %s1331_s1 = inlined_call_operand.vmem [shape: bf16[2,512], index: 1, kind: input, shape index: {}]   ;;  %s1332_s2 = inlined_call_operand.vmem [shape: bf16[512,256], index: 2, kind: input, shape index: {}]   ;;  %s1333_s3 = inlined_call_operand.vmem [shape: bf16[32,256], index: 3, kind: output, shape index: {}]  }
   0x1 LB: > { %s864_s13 = sadd.s32 4294967295, %s1072_s12   ;;  %p868_p0 = scmp.ge.s32.totalorder %s1072_s12, 1  ;;  %s1072_s12 = sphi %s1096_s12, %s13_s12  }
   0x2   : > { %p139_p1 = scmp.lt.s32.totalorder %s1072_s12, 3 }
   0x4   : > { %p140_p2 = pnand %p868_p0, %p139_p1 }
   0x5   : > { %v970_v0 = vld [vmem:[%s1332_s2 + $0x4] ss:$8 sps:$4 sm:$0xff] (!%p140_p2)   ;;  %v974_v2 = vld [vmem:[%s1332_s2] ss:$8 sps:$4 sm:$0xff] (!%p140_p2)   ;;  %v976_v4 = vld [vmem:[%s1332_s2 + $0x14] ss:$8 sps:$4 sm:$0xff] (!%p140_p2)   ;;  %v197_v39 = vlaneseq (!%p140_p2) }
   0x6   : > { %143 = sbr.rel (%p140_p2) target bundleno = 291 (0x123), region = 32  ;;  %v972_v1 = vld [vmem:[%s1332_s2 + $0x104] ss:$8 sps:$4 sm:$0xff] (!%p140_p2)   ;;  %706 = vmatprep.subr.bf16.mxu1 (!%p140_p2), %v970_v0  ;;  %v975_v3 = vld [vmem:[%s1332_s2 + $0x100] ss:$8 sps:$4 sm:$0xff] (!%p140_p2)   ;;  %s869_s15 = sshll.u32 (!%p140_p2), %s864_s13, 1 }
   0x7   : > { %749 = vmatprep.subr.bf16.mxu0 (!%p140_p2), %v972_v1  ;;  %707 = vmatpush1.bf16.msra.mxu1 (!%p140_p2), %v974_v2  ;;  %v978_v5 = vld [vmem:[%s1332_s2 + $0x114] ss:$8 sps:$4 sm:$0xff] (!%p140_p2)   ;;  %v980_v6 = vld [vmem:[%s1332_s2 + $0x10] ss:$8 sps:$4 sm:$0xff] (!%p140_p2)   ;;  %v982_v8 = vld [vmem:[%s1332_s2 + $0x24] ss:$8 sps:$4 sm:$0xff] (!%p140_p2)  }
   0x8   : > { %750 = vmatpush1.bf16.msra.mxu0 (!%p140_p2), %v975_v3  ;;  %708 = vmatprep.subr.bf16.mxu1 (!%p140_p2), %v976_v4  ;;  %v981_v7 = vld [vmem:[%s1332_s2 + $0x110] ss:$8 sps:$4 sm:$0xff] (!%p140_p2)   ;;  %v984_v9 = vld [vmem:[%s1332_s2 + $0x124] ss:$8 sps:$4 sm:$0xff] (!%p140_p2)   ;;  %v986_v10 = vld [vmem:[%s1332_s2 + $0x20] ss:$8 sps:$4 sm:$0xff] (!%p140_p2)  }
   0x9   : > { %751 = vmatprep.subr.bf16.mxu0 (!%p140_p2), %v978_v5  ;;  %v987_v11 = vld [vmem:[%s1332_s2 + $0x120] ss:$8 sps:$4 sm:$0xff] (!%p140_p2)   ;;  %v988_v12 = vld [vmem:[%s1332_s2 + $0x34] ss:$8 sps:$4 sm:$0xff] (!%p140_p2)   ;;  %v992_v14 = vld [vmem:[%s1332_s2 + $0x30] ss:$8 sps:$4 sm:$0xff] (!%p140_p2)  }
   0xa   : > { %v990_v13 = vld [vmem:[%s1332_s2 + $0x134] ss:$8 sps:$4 sm:$0xff] (!%p140_p2)   ;;  %v993_v15 = vld [vmem:[%s1332_s2 + $0x130] ss:$8 sps:$4 sm:$0xff] (!%p140_p2)   ;;  %v994_v16 = vld [vmem:[%s1332_s2 + $0x44] ss:$8 sps:$4 sm:$0xff] (!%p140_p2)  }
   0xb   : > { %709 = vmatpush1.bf16.msra.mxu1 (!%p140_p2), %v980_v6  ;;  %v996_v17 = vld [vmem:[%s1332_s2 + $0x144] ss:$8 sps:$4 sm:$0xff] (!%p140_p2)   ;;  %v998_v18 = vld [vmem:[%s1332_s2 + $0x40] ss:$8 sps:$4 sm:$0xff] (!%p140_p2)   ;;  %v1000_v20 = vld [vmem:[%s1332_s2 + $0x54] ss:$8 sps:$4 sm:$0xff] (!%p140_p2)  }
   0xc   : > { %752 = vmatpush1.bf16.msra.mxu0 (!%p140_p2), %v981_v7  ;;  %710 = vmatprep.subr.bf16.mxu1 (!%p140_p2), %v982_v8  ;;  %v999_v19 = vld [vmem:[%s1332_s2 + $0x140] ss:$8 sps:$4 sm:$0xff] (!%p140_p2)   ;;  %v1002_v21 = vld [vmem:[%s1332_s2 + $0x154] ss:$8 sps:$4 sm:$0xff] (!%p140_p2)   ;;  %v1004_v22 = vld [vmem:[%s1332_s2 + $0x50] ss:$8 sps:$4 sm:$0xff] (!%p140_p2)  }
   0xd   : > { %753 = vmatprep.subr.bf16.mxu0 %v984_v9  ;;  %v1005_v23 = vld [vmem:[%s1332_s2 + $0x150] ss:$8 sps:$4 sm:$0xff]   ;;  %v1006_v24 = vld [vmem:[%s1332_s2 + $0x64] ss:$8 sps:$4 sm:$0xff]   ;;  %v1010_v26 = vld [vmem:[%s1332_s2 + $0x60] ss:$8 sps:$4 sm:$0xff]  }
   0xe   : > { %v1008_v25 = vld [vmem:[%s1332_s2 + $0x164] ss:$8 sps:$4 sm:$0xff]   ;;  %v1011_v27 = vld [vmem:[%s1332_s2 + $0x160] ss:$8 sps:$4 sm:$0xff]   ;;  %v1012_v28 = vld [vmem:[%s1332_s2 + $0x74] ss:$8 sps:$4 sm:$0xff]  }
   0xf   : > { %711 = vmatpush1.bf16.msra.mxu1 %v986_v10  ;;  %v1014_v29 = vld [vmem:[%s1332_s2 + $0x174] ss:$8 sps:$4 sm:$0xff]   ;;  %v1016_v30 = vld [vmem:[%s1332_s2 + $0x70] ss:$8 sps:$4 sm:$0xff]   ;;  %v1018_v32 = vld [vmem:[%s1332_s2 + $0x84] ss:$8 sps:$4 sm:$0xff]  }
  0x10   : > { %754 = vmatpush1.bf16.msra.mxu0 %v987_v11  ;;  %712 = vmatprep.subr.bf16.mxu1 %v988_v12  ;;  %v1017_v31 = vld [vmem:[%s1332_s2 + $0x170] ss:$8 sps:$4 sm:$0xff]   ;;  %v1020_v33 = vld [vmem:[%s1332_s2 + $0x184] ss:$8 sps:$4 sm:$0xff]   ;;  %v1022_v34 = vld [vmem:[%s1332_s2 + $0x80] ss:$8 sps:$4 sm:$0xff]  }
  0x11   : > { %755 = vmatprep.subr.bf16.mxu0 %v990_v13  ;;  %v1023_v35 = vld [vmem:[%s1332_s2 + $0x180] ss:$8 sps:$4 sm:$0xff]   ;;  %v1024_v36 = vld [vmem:[%s1332_s2 + $0x94] ss:$8 sps:$4 sm:$0xff]   ;;  %v1074_v37 = vmov 1966171168  }
  0x12   : > { %v195_v38 = vunpack.c.l.s4 %v1074_v37  ;;  %v1026_v40 = vld [vmem:[%s1332_s2 + $0x194] ss:$8 sps:$4 sm:$0xff]   ;;  %v1028_v41 = vld [vmem:[%s1332_s2 + $0x90] ss:$8 sps:$4 sm:$0xff]   ;;  %v1030_v43 = vld [vmem:[%s1332_s2 + $0xa4] ss:$8 sps:$4 sm:$0xff]  }
  0x13   : > { %713 = vmatpush1.bf16.msra.mxu1 %v992_v14  ;;  %v1029_v42 = vld [vmem:[%s1332_s2 + $0x190] ss:$8 sps:$4 sm:$0xff]   ;;  %v198_v45 = vshrl.u32 %v197_v39, 7  ;;  %v1032_v46 = vld [vmem:[%s1332_s2 + $0x1a4] ss:$8 sps:$4 sm:$0xff]   ;;  %p166_p3 = scmp.lt.s32.totalorder %s869_s15, 3 }
  0x14   : > { %756 = vmatpush1.bf16.msra.mxu0 %v993_v15  ;;  %714 = vmatprep.subr.bf16.mxu1 %v994_v16  ;;  %v196_v44 = vunpack.c.0.s8 %v195_v38  ;;  %v1034_v47 = vld [vmem:[%s1332_s2 + $0xa0] ss:$8 sps:$4 sm:$0xff]   ;;  %v1036_v49 = vld [vmem:[%s1332_s2 + $0xb4] ss:$8 sps:$4 sm:$0xff]   ;;  %v1040_v53 = vld [vmem:[%s1332_s2 + $0xb0] ss:$8 sps:$4 sm:$0xff]  }
  0x15   : > { %757 = vmatprep.subr.bf16.mxu0 %v996_v17  ;;  %v1035_v48 = vld [vmem:[%s1332_s2 + $0x1a0] ss:$8 sps:$4 sm:$0xff]   ;;  %v1038_v51 = vld [vmem:[%s1332_s2 + $0x1b4] ss:$8 sps:$4 sm:$0xff]   ;;  %s1335_s15 = smov (!%p166_p3, %s869_s15), 3  ;;  %v1255_v57 = vsub.s32 0, %v198_v45 }
  0x16   : > { %v199_v50 = vsub.s32 %v196_v44, %v198_v45  ;;  %v875_v52 = vld.sshfl [vmem:[%s1331_s1] sm:$0x33 pattern:$0x75316420]  ;;  %v1041_v54 = vld [vmem:[%s1332_s2 + $0x1b0] ss:$8 sps:$4 sm:$0xff]  }
  0x17   : > { %715 = vmatpush1.bf16.msra.mxu1 %v998_v18  ;;  %v193_v55 = vcombine.high %v875_v52, %v875_v52  ;;  %v1042_v58 = vld [vmem:[%s1332_s2 + $0xc4] ss:$8 sps:$4 sm:$0xff]   ;;  %s952_s17 = sshll.u32 %s1335_s15, 4  ;;  %v1046_v0 = vld [vmem:[%s1332_s2 + $0xc0] ss:$8 sps:$4 sm:$0xff]   ;;  %v1075_v45 = vmov 0  }
  0x18   : > { %758 = vmatpush1.bf16.msra.mxu0 %v999_v19  ;;  %716 = vmatprep.subr.bf16.mxu1 %v1000_v20  ;;  %v200_v56 = vrot.slane %v875_v52, %v199_v50  ;;  %v1044_v59 = vld [vmem:[%s1332_s2 + $0x1c4] ss:$8 sps:$4 sm:$0xff]   ;;  %v1047_v1 = vld [vmem:[%s1332_s2 + $0x1c0] ss:$8 sps:$4 sm:$0xff]   ;;  %s1273_s23 = scalar_lea.vmem %s1330_s0, %s952_s17  ;;  %v1048_v6 = vld [vmem:[%s1332_s2 + $0xd4] ss:$8 sps:$4 sm:$0xff]  }
  0x19   : > { %759 = vmatprep.subr.bf16.mxu0 %v1002_v21  ;;  %v207_v60 = vrot.slane %v193_v55, %v199_v50  ;;  %v1050_v7 = vld [vmem:[%s1332_s2 + $0x1d4] ss:$8 sps:$4 sm:$0xff]   ;;  %v181_v14 = vld [vmem:[%s1273_s23] sm:$0xff]  ;;  %v1052_v20 = vld [vmem:[%s1332_s2 + $0xd0] ss:$8 sps:$4 sm:$0xff]  }
  0x1a   : > { %v211_v61 = vpack.i.b16 %v200_v56, %v200_v56  ;;  %v254_v62 = vshrl.u32 %v200_v56, 16  ;;  %v208_v63 = vcombine.high %v200_v56, %v200_v56  ;;  %v183_v15 = vld [vmem:[%s1273_s23 + $0x10] sm:$0xff]  ;;  %v1059_v37 = vld [vmem:[%s1332_s2 + $0x1e0] ss:$8 sps:$4 sm:$0xff]  }
  0x1b   : > { %717 = vmatpush1.bf16.msra.mxu1 %v1004_v22  ;;  %v218_v3 = vpack.i.b16 %v207_v60, %v207_v60  ;;  %v261_v5 = vshrl.u32 %v207_v60, 16  ;;  %v209_v8 = vcombine.high %v207_v60, %v207_v60  ;;  %v1053_v21 = vld [vmem:[%s1332_s2 + $0x1d0] ss:$8 sps:$4 sm:$0xff]  }
  0x1c   : > { %760 = vmatpush1.bf16.msra.mxu0 %v1005_v23  ;;  %718 = vmatprep.subr.bf16.mxu1 %v1006_v24  ;;  %v216_v2 = vrot.slane %v211_v61, %v1255_v57  ;;  %v255_v4 = vpack.i.b16 %v254_v62, %v254_v62  ;;  %v225_v9 = vpack.i.b16 %v208_v63, %v208_v63  ;;  %v268_v10 = vshrl.u32 %v208_v63, 16  ;;  %v1054_v24 = vld [vmem:[%s1332_s2 + $0xe4] ss:$8 sps:$4 sm:$0xff]   ;;  %v1064_v50 = vld [vmem:[%s1332_s2 + $0xf0] ss:$8 sps:$4 sm:$0xff]  }
  0x1d   : > { %761 = vmatprep.subr.bf16.mxu0 %v1008_v25  ;;  %v223_v11 = vrot.slane %v218_v3, %v1255_v57  ;;  %v262_v13 = vpack.i.b16 %v261_v5, %v261_v5  ;;  %v232_v17 = vpack.i.b16 %v209_v8, %v209_v8  ;;  %v275_v19 = vshrl.u32 %v209_v8, 16  ;;  %v1056_v25 = vld [vmem:[%s1332_s2 + $0x1e4] ss:$8 sps:$4 sm:$0xff]  }
  0x1e   : > { %v260_v12 = vrot.slane %v255_v4, %v1255_v57  ;;  %v230_v16 = vrot.slane %v225_v9, %v1255_v57  ;;  %v269_v18 = vpack.i.b16 %v268_v10, %v268_v10 }
  0x1f   : > { %719 = vmatpush1.bf16.msra.mxu1 %v1010_v26  ;;  %v876_v22 = vcombine.low %v216_v2, %v223_v11  ;;  %v267_v23 = vrot.slane %v262_v13, %v1255_v57  ;;  %v237_v26 = vrot.slane %v232_v17, %v1255_v57 }
  0x20   : > { %762 = vmatpush1.bf16.msra.mxu0 %v1011_v27  ;;  %720 = vmatprep.subr.bf16.mxu1 %v1012_v28  ;;  %v274_v27 = vrot.slane %v269_v18, %v1255_v57  ;;  %v276_v28 = vpack.i.b16 %v275_v19, %v275_v19 }
  0x21   : > { %763 = vmatprep.subr.bf16.mxu0 %v1014_v29  ;;  %v250_v29 = vmul.bf16 %v876_v22, %v181_v14 }
  0x23   : > { %721 = vmatpush1.bf16.msra.mxu1 %v1016_v30  ;;  %v252_v30 = vmul.bf16 %v876_v22, %v183_v15 }
  0x24   : > { %764 = vmatpush1.bf16.msra.mxu0 %v1017_v31  ;;  %722 = vmatprep.subr.bf16.mxu1 %v1018_v32  ;;  %v878_v31 = vcombine.low %v260_v12, %v267_v23  ;;  %v182_v32 = vld [vmem:[%s1273_s23 + $0x8] sm:$0xff] }
  0x25   : > { %765 = vmatprep.subr.bf16.mxu0 %v1020_v33  ;;  %v184_v33 = vld [vmem:[%s1273_s23 + $0x18] sm:$0xff]  ;;  %s953_s23 = sshll.u32 %s1335_s15, 3 }
  0x26   : > { %v294_v38 = vadd.bf16 %v878_v31, %v250_v29  ;;  %v296_v39 = vadd.bf16 %v878_v31, %v252_v30  ;;  %s177_s26 = scalar_lea.vmem %s1333_s3, %s953_s23 }
  0x27   : > { %723 = vmatpush1.bf16.msra.mxu1 %v1022_v34  ;;  %v877_v34 = vcombine.low %v230_v16, %v237_v26 }
  0x28   : > { %766 = vmatpush1.bf16.msra.mxu0 %v1023_v35  ;;  %724 = vmatprep.subr.bf16.mxu1 %v1024_v36  ;;  %v281_v35 = vrot.slane %v276_v28, %v1255_v57  ;;  %v1058_v36 = vld [vmem:[%s1332_s2 + $0xe0] ss:$8 sps:$4 sm:$0xff]  }
  0x29   : > { %767 = vmatprep.subr.bf16.mxu0 %v1026_v40  ;;  %v1060_v40 = vld [vmem:[%s1332_s2 + $0xf4] ss:$8 sps:$4 sm:$0xff]  }
  0x2a   : > { %v879_v44 = vcombine.low %v274_v27, %v281_v35 }
  0x2b   : > { %725 = vmatpush1.bf16.msra.mxu1 %v1028_v41  ;;  %v1062_v41 = vld [vmem:[%s1332_s2 + $0x1f4] ss:$8 sps:$4 sm:$0xff]  }
  0x2c   : > { %768 = vmatpush1.bf16.msra.mxu0 %v1029_v42  ;;  %726 = vmatprep.subr.bf16.mxu1 %v1030_v43  ;;  %v251_v42 = vmul.bf16 %v877_v34, %v182_v32  ;;  %v253_v43 = vmul.bf16 %v877_v34, %v184_v33 }
  0x2d   : > { %769 = vmatprep.subr.bf16.mxu0 %v1032_v46  ;;  %v298_v46 = vmax.bf16 %v1075_v45, %v294_v38 }
  0x2f   : > { %727 = vmatpush1.bf16.msra.mxu1 %v1034_v47  ;;  %v300_v47 = vmax.bf16 %v1075_v45, %v296_v39 }
  0x30   : > { %770 = vmatpush1.bf16.msra.mxu0 %v1035_v48  ;;  %728 = vmatprep.subr.bf16.mxu1 %v1036_v49  ;;  %v295_v48 = vadd.bf16 %v879_v44, %v251_v42  ;;  %v297_v49 = vadd.bf16 %v879_v44, %v253_v43 }
  0x31   : > { %771 = vmatprep.subr.bf16.mxu0 %v1038_v51  ;;  %v1065_v51 = vld [vmem:[%s1332_s2 + $0x1f0] ss:$8 sps:$4 sm:$0xff]   ;;  %v881_v52 = vcombine.high %v298_v46, %v300_v47  ;;  %v880_v56 = vcombine.low %v298_v46, %v300_v47 }
  0x33   : > { %729 = vmatpush1.bf16.msra.mxu1 %v1040_v53  ;;  %v299_v53 = vmax.bf16 %v1075_v45, %v295_v48  ;;  %738 = vmatprep.mubr.bf16.mxu1 %v881_v52 }
  0x34   : > { %772 = vmatpush1.bf16.msra.mxu0 %v1041_v54  ;;  %730 = vmatprep.subr.bf16.mxu1 %v1042_v58  ;;  %v301_v54 = vmax.bf16 %v1075_v45, %v297_v49 }
  0x35   : > { %773 = vmatprep.subr.bf16.mxu0 %v1044_v59 }
  0x36   : > { %v883_v55 = vcombine.high %v299_v53, %v301_v54  ;;  %v882_v57 = vcombine.low %v299_v53, %v301_v54 }
  0x37   : > { %731 = vmatpush1.bf16.msra.mxu1 %v1046_v0 }
  0x38   : > { %774 = vmatpush1.bf16.msra.mxu0 %v1047_v1  ;;  %732 = vmatprep.subr.bf16.mxu1 %v1048_v6 }
  0x39   : > { %775 = vmatprep.subr.bf16.mxu0 %v1050_v7  ;;  %781 = vmatprep.mubr.bf16.mxu0 %v883_v55 }
  0x3b   : > { %733 = vmatpush1.bf16.msra.mxu1 %v1052_v20 }
  0x3c   : > { %776 = vmatpush1.bf16.msra.mxu0 %v1053_v21  ;;  %734 = vmatprep.subr.bf16.mxu1 %v1054_v24 }
  0x3d   : > { %777 = vmatprep.subr.bf16.mxu0 %v1056_v25 }
  0x3f   : > { %735 = vmatpush1.bf16.msra.mxu1 %v1058_v36 }
  0x40   : > { %778 = vmatpush1.bf16.msra.mxu0 %v1059_v37  ;;  %736 = vmatprep.subr.bf16.mxu1 %v1060_v40 }
  0x41   : > { %779 = vmatprep.subr.bf16.mxu0 %v1062_v41 }
  0x43   : > { %737 = vmatpush1.bf16.msra.mxu1 %v1064_v50 }
  0x44   : > { %780 = vmatpush1.bf16.msra.mxu0 %v1065_v51 }
  0x46   : > { %739 = vmatmul.mubr.bf16.vlgmr.msra.gmra.mrb[0].mxu1 %v880_v56 }
  0x47   : > { %782 = vmatmul.mubr.bf16.vlgmr.msra.gmra.mrb[0].mxu0 %v882_v57 }
 0x119   : > { %v740_v58 = vpop.f32.mrb[0].mxu1 }
 0x11a   : > { %v783_v59 = vpop.f32.mrb[0].mxu0  ;;  %v742_v61 = vpop.f32.mrb[1].mxu1 }
 0x11b   : > { %v784_v60 = vadd.f32 %v783_v59, %v740_v58  ;;  %v785_v62 = vpop.f32.mrb[1].mxu0  ;;  %v744_v0 = vpop.f32.mrb[2].mxu1 }
 0x11c   : > { %v786_v63 = vadd.f32 %v785_v62, %v742_v61  ;;  %v787_v1 = vpop.f32.mrb[2].mxu0  ;;  %v746_v3 = vpop.f32.mrb[3].mxu1 }
 0x11d   : > { %v788_v2 = vadd.f32 %v787_v1, %v744_v0  ;;  %v789_v4 = vpop.f32.mrb[3].mxu0 }
 0x11e   : > { %v954_v5 = vpack.c.bf16 %v786_v63, %v784_v60  ;;  %v790_v6 = vadd.f32 %v789_v4, %v746_v3 }
 0x120   : > { %804 = vst [vmem:[%s177_s26] sm:$0xff] %v954_v5  ;;  %v955_v7 = vpack.c.bf16 %v790_v6, %v788_v2 }
 0x122   : > { %805 = vst [vmem:[%s177_s26 + $0x8] sm:$0xff] %v955_v7 }
 0x123 PF: > { %s13_s12 = sadd.s32 1, %s1072_s12  }
 0x124   : > { %p10_p4 = scmp.ge.s32.totalorder %s13_s12, 4  }
 0x126   :  { %12 = sbr.rel (!%p10_p4) target bundleno = 1 (0x1), region = 62 }

// kernel: densenet121_forward.160
= control target key start
LH: loop header
LB: loop body
LE: loop exit
PB: predicated region body
PF: predicated region fallthrough
CT: control target
= control target key end

     0   :  { %v1250_v22 = vmov 1966171168   ;;  %v32_v24 = vlaneseq  ;;  %s1534_s2 = inlined_call_operand.vmem [shape: bf16[1024,128], index: 2, kind: input, shape index: {}]   ;;  %s1535_s1 = inlined_call_operand.vmem [shape: bf16[2,1024], index: 1, kind: input, shape index: {}]   ;;  %s1536_s0 = inlined_call_operand.vmem [shape: bf16[16,1024], index: 0, kind: input, shape index: {}]   ;;  %s1537_s3 = inlined_call_operand.vmem [shape: f32[2,128], index: 3, kind: input, shape index: {}]   ;;  %s1538_s4 = inlined_call_operand.vmem [shape: bf16[16,128], index: 4, kind: output, shape index: {}]  }
   0x1   :  { %v1185_v0 = vld [vmem:[%s1534_s2 + $0x40] sm:$0xff]   ;;  %v1189_v4 = vld [vmem:[%s1534_s2 + $0x48] sm:$0xff]   ;;  %v1193_v8 = vld [vmem:[%s1534_s2 + $0x50] sm:$0xff]   ;;  %v30_v23 = vunpack.c.l.s4 %v1250_v22 }
   0x2   :  { %v1186_v1 = vld [vmem:[%s1534_s2 + $0xc0] sm:$0xff]   ;;  %1095 = vmatprep.subr.bf16.mxu0 %v1185_v0  ;;  %v1190_v5 = vld [vmem:[%s1534_s2 + $0xc8] sm:$0xff]   ;;  %v1194_v9 = vld [vmem:[%s1534_s2 + $0xd0] sm:$0xff]   ;;  %v1355_v30 = vshrl.u32 %v32_v24, 7 }
   0x3   :  { %v1187_v2 = vld [vmem:[%s1534_s2] sm:$0xff]   ;;  %1117 = vmatprep.subr.bf16.mxu1 %v1186_v1  ;;  %v1191_v6 = vld [vmem:[%s1534_s2 + $0x8] sm:$0xff]   ;;  %v1195_v10 = vld [vmem:[%s1534_s2 + $0x10] sm:$0xff]   ;;  %v31_v29 = vunpack.c.0.s8 %v30_v23  ;;  %v1251_v23 = vmov 0  }
   0x4   :  { %v1188_v3 = vld [vmem:[%s1534_s2 + $0x80] sm:$0xff]   ;;  %1096 = vmatpush3.bf16.msra.mxu0 %v1187_v2  ;;  %v1192_v7 = vld [vmem:[%s1534_s2 + $0x88] sm:$0xff]   ;;  %v1196_v11 = vld [vmem:[%s1534_s2 + $0x90] sm:$0xff]   ;;  %v1383_v44 = vsub.s32 0, %v1355_v30 }
   0x5   :  { %1118 = vmatpush3.bf16.msra.mxu1 %v1188_v3  ;;  %1097 = vmatprep.subr.bf16.mxu0 %v1189_v4  ;;  %v1197_v12 = vld [vmem:[%s1534_s2 + $0x58] sm:$0xff]   ;;  %v1201_v16 = vld [vmem:[%s1534_s2 + $0x60] sm:$0xff]   ;;  %v1205_v20 = vld [vmem:[%s1534_s2 + $0x68] sm:$0xff]   ;;  %v34_v35 = vsub.s32 %v31_v29, %v1355_v30 }
   0x6   :  { %1119 = vmatprep.subr.bf16.mxu1 %v1190_v5  ;;  %v1198_v13 = vld [vmem:[%s1534_s2 + $0xd8] sm:$0xff]   ;;  %v1202_v17 = vld [vmem:[%s1534_s2 + $0xe0] sm:$0xff]   ;;  %v1206_v21 = vld [vmem:[%s1534_s2 + $0xe8] sm:$0xff]  }
   0x7   :  { %v1199_v14 = vld [vmem:[%s1534_s2 + $0x18] sm:$0xff]   ;;  %v1203_v18 = vld [vmem:[%s1534_s2 + $0x20] sm:$0xff]   ;;  %v1207_v25 = vld [vmem:[%s1534_s2 + $0x28] sm:$0xff]  }
   0x8   :  { %1098 = vmatpush3.bf16.msra.mxu0 %v1191_v6  ;;  %v1200_v15 = vld [vmem:[%s1534_s2 + $0x98] sm:$0xff]   ;;  %v1204_v19 = vld [vmem:[%s1534_s2 + $0xa0] sm:$0xff]   ;;  %v1208_v26 = vld [vmem:[%s1534_s2 + $0xa8] sm:$0xff]  }
   0x9   :  { %1120 = vmatpush3.bf16.msra.mxu1 %v1192_v7  ;;  %1099 = vmatprep.subr.bf16.mxu0 %v1193_v8  ;;  %v1209_v27 = vld [vmem:[%s1534_s2 + $0x70] sm:$0xff]   ;;  %v1213_v33 = vld [vmem:[%s1534_s2 + $0x78] sm:$0xff]   ;;  %v18_v38 = vld [vmem:[%s1535_s1] sm:$0xff] }
   0xa   :  { %1121 = vmatprep.subr.bf16.mxu1 %v1194_v9  ;;  %v1210_v28 = vld [vmem:[%s1534_s2 + $0xf0] sm:$0xff]   ;;  %v1214_v34 = vld [vmem:[%s1534_s2 + $0xf8] sm:$0xff]   ;;  %v28_v39 = vcombine.high %v18_v38, %v18_v38  ;;  %v35_v40 = vrot.slane %v18_v38, %v34_v35  ;;  %v1218_v41 = vld [vmem:[%s1534_s2 + $0x140] sm:$0xff]  }
   0xb   :  { %v1211_v31 = vld [vmem:[%s1534_s2 + $0x30] sm:$0xff]   ;;  %v1215_v36 = vld [vmem:[%s1534_s2 + $0x38] sm:$0xff]   ;;  %v1219_v45 = vld [vmem:[%s1534_s2 + $0x1c0] sm:$0xff]  }
   0xc   :  { %1100 = vmatpush3.bf16.msra.mxu0 %v1195_v10  ;;  %v1212_v32 = vld [vmem:[%s1534_s2 + $0xb0] sm:$0xff]   ;;  %v1216_v37 = vld [vmem:[%s1534_s2 + $0xb8] sm:$0xff]   ;;  %v43_v42 = vcombine.high %v35_v40, %v35_v40  ;;  %v51_v43 = vrot.slane %v35_v40, %v34_v35  ;;  %v42_v46 = vrot.slane %v28_v39, %v34_v35  ;;  %v19_v58 = vld [vmem:[%s1536_s0] sm:$0xff] }
   0xd   :  { %1122 = vmatpush3.bf16.msra.mxu1 %v1196_v11  ;;  %1101 = vmatprep.subr.bf16.mxu0 %v1197_v12  ;;  %v23_v63 = vld [vmem:[%s1536_s0 + $0x20] sm:$0xff]  ;;  %v20_v6 = vld [vmem:[%s1536_s0 + $0x8] sm:$0xff] }
   0xe   :  { %1123 = vmatprep.subr.bf16.mxu1 %v1198_v13  ;;  %v65_v47 = vrot.slane %v43_v42, %v34_v35  ;;  %v78_v48 = vpack.i.b16 %v51_v43, %v51_v43  ;;  %v165_v49 = vshrl.u32 %v51_v43, 16  ;;  %v73_v50 = vcombine.high %v51_v43, %v51_v43 }
   0xf   :  { %v44_v62 = vcombine.high %v42_v46, %v42_v46  ;;  %v58_v10 = vrot.slane %v42_v46, %v34_v35 }
  0x10   :  { %1102 = vmatpush3.bf16.msra.mxu0 %v1199_v14  ;;  %v83_v51 = vrot.slane %v78_v48, %v1383_v44  ;;  %v85_v52 = vpack.i.b16 %v65_v47, %v65_v47  ;;  %v166_v53 = vpack.i.b16 %v165_v49, %v165_v49  ;;  %v172_v54 = vshrl.u32 %v65_v47, 16  ;;  %v24_v14 = vld [vmem:[%s1536_s0 + $0x28] sm:$0xff] }
  0x11   :  { %1124 = vmatpush3.bf16.msra.mxu1 %v1200_v15  ;;  %1103 = vmatprep.subr.bf16.mxu0 %v1201_v16  ;;  %v75_v55 = vcombine.high %v65_v47, %v65_v47  ;;  %v92_v56 = vpack.i.b16 %v73_v50, %v73_v50  ;;  %v179_v57 = vshrl.u32 %v73_v50, 16  ;;  %v72_v15 = vrot.slane %v44_v62, %v34_v35  ;;  %v1224_v48 = vld [vmem:[%s1534_s2 + $0x108] sm:$0xff]  }
  0x12   :  { %1125 = vmatprep.subr.bf16.mxu1 %v1202_v17  ;;  %v90_v59 = vrot.slane %v85_v52, %v1383_v44  ;;  %v171_v60 = vrot.slane %v166_v53, %v1383_v44  ;;  %v173_v61 = vpack.i.b16 %v172_v54, %v172_v54  ;;  %v193_v38 = vshrl.u32 %v58_v10, 16  ;;  %v1225_v54 = vld [vmem:[%s1534_s2 + $0x188] sm:$0xff]  }
  0x13   :  { %v97_v0 = vrot.slane %v92_v56, %v1383_v44  ;;  %v99_v1 = vpack.i.b16 %v75_v55, %v75_v55  ;;  %v180_v2 = vpack.i.b16 %v179_v57, %v179_v57  ;;  %v186_v3 = vshrl.u32 %v75_v55, 16  ;;  %v1227_v57 = vld [vmem:[%s1534_s2 + $0x1d0] sm:$0xff]  }
  0x14   :  { %1104 = vmatpush3.bf16.msra.mxu0 %v1203_v18  ;;  %v1006_v4 = vcombine.low %v83_v51, %v90_v59  ;;  %v178_v5 = vrot.slane %v173_v61, %v1383_v44  ;;  %v200_v39 = vshrl.u32 %v72_v15, 16  ;;  %v106_v46 = vpack.i.b16 %v58_v10, %v58_v10  ;;  %v1226_v51 = vld [vmem:[%s1534_s2 + $0x150] sm:$0xff]  }
  0x15   :  { %1126 = vmatpush3.bf16.msra.mxu1 %v1204_v19  ;;  %1105 = vmatprep.subr.bf16.mxu0 %v1205_v20  ;;  %v104_v7 = vrot.slane %v99_v1, %v1383_v44  ;;  %v185_v8 = vrot.slane %v180_v2, %v1383_v44  ;;  %v187_v9 = vpack.i.b16 %v186_v3, %v186_v3  ;;  %v1229_v2 = vld [vmem:[%s1534_s2 + $0x190] sm:$0xff]  }
  0x16   :  { %1127 = vmatprep.subr.bf16.mxu1 %v1206_v21  ;;  %v157_v11 = vmul.bf16 %v1006_v4, %v19_v58  ;;  %v161_v12 = vmul.bf16 %v1006_v4, %v23_v63  ;;  %v1010_v13 = vcombine.low %v171_v60, %v178_v5  ;;  %v113_v47 = vpack.i.b16 %v72_v15, %v72_v15  ;;  %v1228_v60 = vld [vmem:[%s1534_s2 + $0x110] sm:$0xff]   ;;  %v1230_v63 = vld [vmem:[%s1534_s2 + $0x158] sm:$0xff]  }
  0x17   :  { %v1007_v16 = vcombine.low %v97_v0, %v104_v7  ;;  %v192_v17 = vrot.slane %v187_v9, %v1383_v44  ;;  %v194_v52 = vpack.i.b16 %v193_v38, %v193_v38  ;;  %v201_v53 = vpack.i.b16 %v200_v39, %v200_v39  ;;  %v1231_v5 = vld [vmem:[%s1534_s2 + $0x1d8] sm:$0xff]   ;;  %v1234_v9 = vld [vmem:[%s1534_s2 + $0x160] sm:$0xff]  }
  0x18   :  { %1106 = vmatpush3.bf16.msra.mxu0 %v1207_v25  ;;  %v245_v18 = vadd.bf16 %v1010_v13, %v157_v11  ;;  %v249_v19 = vadd.bf16 %v1010_v13, %v161_v12  ;;  %v111_v58 = vrot.slane %v106_v46, %v1383_v44  ;;  %v118_v59 = vrot.slane %v113_v47, %v1383_v44  ;;  %v1232_v7 = vld [vmem:[%s1534_s2 + $0x118] sm:$0xff]   ;;  %v21_v12 = vld [vmem:[%s1536_s0 + $0x10] sm:$0xff] }
  0x19   :  { %1128 = vmatpush3.bf16.msra.mxu1 %v1208_v26  ;;  %1107 = vmatprep.subr.bf16.mxu0 %v1209_v27  ;;  %v158_v20 = vmul.bf16 %v1007_v16, %v20_v6  ;;  %v162_v21 = vmul.bf16 %v1007_v16, %v24_v14  ;;  %v1011_v22 = vcombine.low %v185_v8, %v192_v17  ;;  %v1233_v11 = vld [vmem:[%s1534_s2 + $0x198] sm:$0xff]   ;;  %v25_v14 = vld [vmem:[%s1536_s0 + $0x30] sm:$0xff] }
  0x1a   :  { %1129 = vmatprep.subr.bf16.mxu1 %v1210_v28  ;;  %v253_v24 = vmax.bf16 %v1251_v23, %v245_v18  ;;  %v257_v25 = vmax.bf16 %v1251_v23, %v249_v19  ;;  %v74_v26 = vcombine.high %v58_v10, %v58_v10  ;;  %v76_v27 = vcombine.high %v72_v15, %v72_v15  ;;  %v22_v16 = vld [vmem:[%s1536_s0 + $0x18] sm:$0xff]  ;;  %v1235_v18 = vld [vmem:[%s1534_s2 + $0x1e0] sm:$0xff]  }
  0x1b   :  { %v246_v28 = vadd.bf16 %v1011_v22, %v158_v20  ;;  %v250_v29 = vadd.bf16 %v1011_v22, %v162_v21  ;;  %v199_v0 = vrot.slane %v194_v52, %v1383_v44  ;;  %v206_v1 = vrot.slane %v201_v53, %v1383_v44  ;;  %v26_v17 = vld [vmem:[%s1536_s0 + $0x38] sm:$0xff]  ;;  %v1236_v19 = vld [vmem:[%s1534_s2 + $0x120] sm:$0xff]  }
  0x1c   :  { %1108 = vmatpush3.bf16.msra.mxu0 %v1211_v31  ;;  %v1220_v31 = vld [vmem:[%s1534_s2 + $0x100] sm:$0xff]   ;;  %v207_v40 = vshrl.u32 %v74_v26, 16  ;;  %v120_v49 = vpack.i.b16 %v74_v26, %v74_v26  ;;  %v127_v50 = vpack.i.b16 %v76_v27, %v76_v27  ;;  %v1008_v6 = vcombine.low %v111_v58, %v118_v59  ;;  %v1248_v46 = vld [vmem:[%s1534_s2 + $0x138] sm:$0xff]  }
  0x1d   :  { %1130 = vmatpush3.bf16.msra.mxu1 %v1212_v32  ;;  %1109 = vmatprep.subr.bf16.mxu0 %v1213_v33  ;;  %v1015_v32 = vcombine.high %v253_v24, %v257_v25  ;;  %v1014_v33 = vcombine.low %v253_v24, %v257_v25  ;;  %v254_v35 = vmax.bf16 %v1251_v23, %v246_v28  ;;  %v1238_v24 = vld [vmem:[%s1534_s2 + $0x168] sm:$0xff]   ;;  %v1249_v47 = vld [vmem:[%s1534_s2 + $0x1b8] sm:$0xff]  }
  0x1e   :  { %1131 = vmatprep.subr.bf16.mxu1 %v1214_v34  ;;  %v1222_v34 = vld [vmem:[%s1534_s2 + $0x148] sm:$0xff]   ;;  %v208_v55 = vpack.i.b16 %v207_v40, %v207_v40  ;;  %v125_v61 = vrot.slane %v120_v49, %v1383_v44  ;;  %v132_v62 = vrot.slane %v127_v50, %v1383_v44  ;;  %v1012_v10 = vcombine.low %v199_v0, %v206_v1 }
  0x1f   :  { %845 = vmatprep.mubr.bf16.mxu0 %v1015_v32  ;;  %v159_v15 = vmul.bf16 %v1008_v6, %v21_v12  ;;  %v163_v20 = vmul.bf16 %v1008_v6, %v25_v14  ;;  %v1239_v32 = vld [vmem:[%s1534_s2 + $0x1e8] sm:$0xff]   ;;  %v986_v6 = vsub.s32 1, %v1355_v30 }
  0x20   :  { %1110 = vmatpush3.bf16.msra.mxu0 %v1215_v36  ;;  %v258_v36 = vmax.bf16 %v1251_v23, %v250_v29  ;;  %v213_v3 = vrot.slane %v208_v55, %v1383_v44  ;;  %v1009_v8 = vcombine.low %v125_v61, %v132_v62  ;;  %v1237_v29 = vld [vmem:[%s1534_s2 + $0x1a0] sm:$0xff]   ;;  %v1241_v40 = vld [vmem:[%s1534_s2 + $0x1a8] sm:$0xff]  }
  0x21   :  { %1132 = vmatpush3.bf16.msra.mxu1 %v1216_v37  ;;  %1139 = vmatprep.subr.bf16.mxu0 %v1218_v41  ;;  %v1221_v37 = vld [vmem:[%s1534_s2 + $0x180] sm:$0xff]   ;;  %v214_v41 = vshrl.u32 %v76_v27, 16  ;;  %v247_v25 = vadd.bf16 %v1012_v10, %v159_v15  ;;  %v251_v26 = vadd.bf16 %v1012_v10, %v163_v20 }
  0x22   :  { %1161 = vmatprep.subr.bf16.mxu1 %v1219_v45  ;;  %v1017_v42 = vcombine.high %v254_v35, %v258_v36  ;;  %v1016_v43 = vcombine.low %v254_v35, %v258_v36  ;;  %v1223_v45 = vld [vmem:[%s1534_s2 + $0x1c8] sm:$0xff]   ;;  %v160_v21 = vmul.bf16 %v1009_v8, %v22_v16  ;;  %v164_v22 = vmul.bf16 %v1009_v8, %v26_v17 }
  0x23   :  { %846 = vmatmul.mubr.bf16.vlgmr.msra.gmra.mrb[0].mxu0 %v1014_v33  ;;  %v215_v56 = vpack.i.b16 %v214_v41, %v214_v41  ;;  %v1240_v33 = vld [vmem:[%s1534_s2 + $0x128] sm:$0xff]   ;;  %v1243_v41 = vld [vmem:[%s1534_s2 + $0x1f0] sm:$0xff]  }
  0x24   :  { %1140 = vmatpush3.bf16.msra.mxu0 %v1220_v31  ;;  %886 = vmatprep.mubr.bf16.mxu1 %v1017_v42  ;;  %v255_v31 = vmax.bf16 %v1251_v23, %v247_v25  ;;  %v1246_v42 = vld [vmem:[%s1534_s2 + $0x178] sm:$0xff]  }
  0x25   :  { %1141 = vmatprep.subr.bf16.mxu0 %v1222_v34  ;;  %887 = vmatmul.mubr.bf16.vlgmr.msra.gmra.mrb[0].mxu1 %v1016_v43  ;;  %v220_v4 = vrot.slane %v215_v56, %v1383_v44  ;;  %v259_v34 = vmax.bf16 %v1251_v23, %v251_v26  ;;  %v1245_v43 = vld [vmem:[%s1534_s2 + $0x1b0] sm:$0xff]  }
  0x26   :  { %1162 = vmatpush3.bf16.msra.mxu1 %v1221_v37  ;;  %v1242_v37 = vld [vmem:[%s1534_s2 + $0x170] sm:$0xff]  }
  0x27   :  { %1163 = vmatprep.subr.bf16.mxu1 %v1223_v45  ;;  %v1013_v13 = vcombine.low %v213_v3, %v220_v4  ;;  %v1019_v38 = vcombine.high %v255_v31, %v259_v34  ;;  %v1247_v45 = vld [vmem:[%s1534_s2 + $0x1f8] sm:$0xff]   ;;  %v977_v3 = vld [vmem:[%s1537_s3] sm:$0x3] }
  0x28   :  { %1142 = vmatpush3.bf16.msra.mxu0 %v1224_v48  ;;  %v1018_v48 = vcombine.low %v255_v31, %v259_v34  ;;  %v981_v12 = vrot.slane %v977_v3, %v1383_v44  ;;  %v987_v17 = vrot.slane %v977_v3, %v986_v6 }
  0x29   :  { %1143 = vmatprep.subr.bf16.mxu0 %v1226_v51  ;;  %v248_v27 = vadd.bf16 %v1013_v13, %v160_v21  ;;  %v252_v28 = vadd.bf16 %v1013_v13, %v164_v22  ;;  %927 = vmatprep.mubr.bf16.mxu0 %v1019_v38 }
  0x2a   :  { %1164 = vmatpush3.bf16.msra.mxu1 %v1225_v54 }
  0x2b   :  { %1165 = vmatprep.subr.bf16.mxu1 %v1227_v57  ;;  %v256_v35 = vmax.bf16 %v1251_v23, %v248_v27  ;;  %v260_v36 = vmax.bf16 %v1251_v23, %v252_v28  ;;  %v1244_v23 = vld [vmem:[%s1534_s2 + $0x130] sm:$0xff]  }
  0x2c   :  { %1144 = vmatpush3.bf16.msra.mxu0 %v1228_v60 }
  0x2d   :  { %1145 = vmatprep.subr.bf16.mxu0 %v1230_v63  ;;  %v1021_v39 = vcombine.high %v256_v35, %v260_v36  ;;  %v1020_v49 = vcombine.low %v256_v35, %v260_v36 }
  0x2e   :  { %1166 = vmatpush3.bf16.msra.mxu1 %v1229_v2 }
  0x2f   :  { %1167 = vmatprep.subr.bf16.mxu1 %v1231_v5  ;;  %968 = vmatprep.mubr.bf16.mxu1 %v1021_v39 }
  0x30   :  { %1146 = vmatpush3.bf16.msra.mxu0 %v1232_v7 }
  0x31   :  { %1147 = vmatprep.subr.bf16.mxu0 %v1234_v9 }
  0x32   :  { %1168 = vmatpush3.bf16.msra.mxu1 %v1233_v11 }
  0x33   :  { %1169 = vmatprep.subr.bf16.mxu1 %v1235_v18 }
  0x34   :  { %1148 = vmatpush3.bf16.msra.mxu0 %v1236_v19 }
  0x35   :  { %1149 = vmatprep.subr.bf16.mxu0 %v1238_v24 }
  0x36   :  { %1170 = vmatpush3.bf16.msra.mxu1 %v1237_v29 }
  0x37   :  { %1171 = vmatprep.subr.bf16.mxu1 %v1239_v32 }
  0x38   :  { %1150 = vmatpush3.bf16.msra.mxu0 %v1240_v33 }
  0x39   :  { %1151 = vmatprep.subr.bf16.mxu0 %v1242_v37 }
  0x3a   :  { %1172 = vmatpush3.bf16.msra.mxu1 %v1241_v40 }
  0x3b   :  { %1173 = vmatprep.subr.bf16.mxu1 %v1243_v41 }
  0x3c   :  { %1152 = vmatpush3.bf16.msra.mxu0 %v1244_v23 }
  0x3d   :  { %1153 = vmatprep.subr.bf16.mxu0 %v1246_v42 }
  0x3e   :  { %1174 = vmatpush3.bf16.msra.mxu1 %v1245_v43 }
  0x3f   :  { %1175 = vmatprep.subr.bf16.mxu1 %v1247_v45 }
  0x40   :  { %1154 = vmatpush3.bf16.msra.mxu0 %v1248_v46 }
  0x42   :  { %1176 = vmatpush3.bf16.msra.mxu1 %v1249_v47 }
  0x43   :  { %928 = vmatmul.mubr.bf16.vlgmr.msra.gmra.mrb[4].mxu0 %v1018_v48 }
  0x45   :  { %969 = vmatmul.mubr.bf16.vlgmr.msra.gmra.mrb[4].mxu1 %v1020_v49 }
  0xf6   :  { %v1111_v50 = vpop.f32.mrb[0].mxu0 }
  0xf7   :  { %v1112_v51 = vpop.f32.mrb[1].mxu0 }
  0xf8   :  { %v1113_v52 = vadd.f32 %v1112_v51, %v1111_v50  ;;  %v1114_v53 = vpop.f32.mrb[2].mxu0  ;;  %v1133_v54 = vpop.f32.mrb[0].mxu1 }
  0xf9   :  { %v1115_v55 = vpop.f32.mrb[3].mxu0  ;;  %v1134_v56 = vpop.f32.mrb[1].mxu1 }
  0xfa   :  { %v1116_v57 = vadd.f32 %v1115_v55, %v1114_v53  ;;  %v1135_v58 = vadd.f32 %v1134_v56, %v1133_v54  ;;  %v1136_v59 = vpop.f32.mrb[2].mxu1 }
  0xfb   :  { %v1137_v60 = vpop.f32.mrb[3].mxu1 }
  0xfc   :  { %v889_v61 = vadd.f32 %v1135_v58, %v1113_v52  ;;  %v1138_v62 = vadd.f32 %v1137_v60, %v1136_v59 }
  0xfe   :  { %v892_v63 = vadd.f32 %v1138_v62, %v1116_v57 }
 0x116   :  { %v1155_v0 = vpop.f32.mrb[4].mxu0 }
 0x117   :  { %v1156_v1 = vpop.f32.mrb[5].mxu0 }
 0x118   :  { %v1157_v2 = vadd.f32 %v1156_v1, %v1155_v0  ;;  %v1158_v4 = vpop.f32.mrb[6].mxu0  ;;  %v1177_v5 = vpop.f32.mrb[4].mxu1 }
 0x119   :  { %v1159_v7 = vpop.f32.mrb[7].mxu0  ;;  %v1178_v9 = vpop.f32.mrb[5].mxu1 }
 0x11a   :  { %v930_v8 = vadd.f32 %v1157_v2, %v889_v61  ;;  %v1160_v10 = vadd.f32 %v1159_v7, %v1158_v4  ;;  %v1179_v11 = vadd.f32 %v1178_v9, %v1177_v5  ;;  %v1180_v13 = vpop.f32.mrb[6].mxu1 }
 0x11b   :  { %v1181_v15 = vpop.f32.mrb[7].mxu1 }
 0x11c   :  { %v933_v14 = vadd.f32 %v1160_v10, %v892_v63  ;;  %v971_v16 = vadd.f32 %v1179_v11, %v930_v8  ;;  %v1182_v18 = vadd.f32 %v1181_v15, %v1180_v13 }
 0x11e   :  { %v982_v19 = vmul.f32 %v981_v12, %v971_v16  ;;  %v974_v20 = vadd.f32 %v1182_v18, %v933_v14 }
 0x120   :  { %v988_v21 = vadd.f32 %v987_v17, %v982_v19  ;;  %v983_v22 = vmul.f32 %v981_v12, %v974_v20 }
 0x122   :  { %v989_v24 = vadd.f32 %v987_v17, %v983_v22  ;;  %v990_v25 = vmax.f32 %v988_v21, 0.0 }
 0x124   :  { %v991_v30 = vmax.f32 %v989_v24, 0.0 }
 0x126   :  { %v1093_v26 = vpack.c.bf16 %v991_v30, %v990_v25 }
 0x128   :  { %1094 = vst [vmem:[%s1538_s4] sm:$0xff] %v1093_v26  }

// kernel: densenet121_forward.161
= control target key start
LH: loop header
LB: loop body
LE: loop exit
PB: predicated region body
PF: predicated region fallthrough
CT: control target
= control target key end

     0   :  { %vm1158_vm0 = vmmov 0   ;;  %s1420_s1 = inlined_call_operand.vmem [shape: bf16[1152,128], index: 1, kind: input, shape index: {}]   ;;  %s1421_s0 = inlined_call_operand.vmem [shape: bf16[16,1152], index: 0, kind: input, shape index: {}]   ;;  %s1422_s2 = inlined_call_operand.vmem [shape: bf16[16,128], index: 2, kind: output, shape index: {}]  }
   0x1   :  { %v1072_v0 = vld [vmem:[%s1420_s1 + $0x40] sm:$0xff]   ;;  %v1076_v4 = vld [vmem:[%s1420_s1 + $0x48] sm:$0xff]   ;;  %v1080_v8 = vld [vmem:[%s1420_s1 + $0x50] sm:$0xff]  }
   0x2   :  { %v1073_v1 = vld [vmem:[%s1420_s1 + $0xc0] sm:$0xff]   ;;  %953 = vmatprep.subr.bf16.mxu0 %v1072_v0  ;;  %v1077_v5 = vld [vmem:[%s1420_s1 + $0xc8] sm:$0xff]   ;;  %v1081_v9 = vld [vmem:[%s1420_s1 + $0xd0] sm:$0xff]  }
   0x3   :  { %v1074_v2 = vld [vmem:[%s1420_s1] sm:$0xff]   ;;  %975 = vmatprep.subr.bf16.mxu1 %v1073_v1  ;;  %v1078_v6 = vld [vmem:[%s1420_s1 + $0x8] sm:$0xff]   ;;  %v1082_v10 = vld [vmem:[%s1420_s1 + $0x10] sm:$0xff]  }
   0x4   :  { %v1075_v3 = vld [vmem:[%s1420_s1 + $0x80] sm:$0xff]   ;;  %954 = vmatpush3.bf16.msra.mxu0 %v1074_v2  ;;  %v1079_v7 = vld [vmem:[%s1420_s1 + $0x88] sm:$0xff]   ;;  %v1083_v11 = vld [vmem:[%s1420_s1 + $0x90] sm:$0xff]  }
   0x5   :  { %976 = vmatpush3.bf16.msra.mxu1 %v1075_v3  ;;  %955 = vmatprep.subr.bf16.mxu0 %v1076_v4  ;;  %v1084_v12 = vld [vmem:[%s1420_s1 + $0x58] sm:$0xff]   ;;  %v1088_v16 = vld [vmem:[%s1420_s1 + $0x60] sm:$0xff]   ;;  %v1092_v20 = vld [vmem:[%s1420_s1 + $0x68] sm:$0xff]  }
   0x6   :  { %977 = vmatprep.subr.bf16.mxu1 %v1077_v5  ;;  %v1085_v13 = vld [vmem:[%s1420_s1 + $0xd8] sm:$0xff]   ;;  %v1089_v17 = vld [vmem:[%s1420_s1 + $0xe0] sm:$0xff]   ;;  %v1093_v21 = vld [vmem:[%s1420_s1 + $0xe8] sm:$0xff]  }
   0x7   :  { %v1086_v14 = vld [vmem:[%s1420_s1 + $0x18] sm:$0xff]   ;;  %v1090_v18 = vld [vmem:[%s1420_s1 + $0x20] sm:$0xff]   ;;  %v1094_v22 = vld [vmem:[%s1420_s1 + $0x28] sm:$0xff]  }
   0x8   :  { %956 = vmatpush3.bf16.msra.mxu0 %v1078_v6  ;;  %v1087_v15 = vld [vmem:[%s1420_s1 + $0x98] sm:$0xff]   ;;  %v1091_v19 = vld [vmem:[%s1420_s1 + $0xa0] sm:$0xff]   ;;  %v1095_v23 = vld [vmem:[%s1420_s1 + $0xa8] sm:$0xff]   ;;  %v1157_v6 = vmov 0.0  }
   0x9   :  { %978 = vmatpush3.bf16.msra.mxu1 %v1079_v7  ;;  %957 = vmatprep.subr.bf16.mxu0 %v1080_v8  ;;  %v1096_v24 = vld [vmem:[%s1420_s1 + $0x70] sm:$0xff]   ;;  %v1100_v28 = vld [vmem:[%s1420_s1 + $0x78] sm:$0xff]   ;;  %v1104_v32 = vld [vmem:[%s1421_s0] ss:$36 sps:$4 sm:$0xff]  }
   0xa   :  { %979 = vmatprep.subr.bf16.mxu1 %v1081_v9  ;;  %v1097_v25 = vld [vmem:[%s1420_s1 + $0xf0] sm:$0xff]   ;;  %v1101_v29 = vld [vmem:[%s1420_s1 + $0xf8] sm:$0xff]   ;;  %v1106_v33 = vld [vmem:[%s1421_s0 + $0x4] ss:$36 sps:$4 sm:$0xff]  }
   0xb   :  { %v1098_v26 = vld [vmem:[%s1420_s1 + $0x30] sm:$0xff]   ;;  %v1102_v30 = vld [vmem:[%s1420_s1 + $0x38] sm:$0xff]   ;;  %v1107_v34 = vld [vmem:[%s1421_s0 + $0x8] ss:$36 sps:$4 sm:$0xff]   ;;  %676 = vmatprep.mubr.bf16.mxu0 %v1106_v33 }
   0xc   :  { %958 = vmatpush3.bf16.msra.mxu0 %v1082_v10  ;;  %v1099_v27 = vld [vmem:[%s1420_s1 + $0xb0] sm:$0xff]   ;;  %v1103_v31 = vld [vmem:[%s1420_s1 + $0xb8] sm:$0xff]   ;;  %v1110_v36 = vld [vmem:[%s1420_s1 + $0x140] sm:$0xff]  }
   0xd   :  { %980 = vmatpush3.bf16.msra.mxu1 %v1083_v11  ;;  %959 = vmatprep.subr.bf16.mxu0 %v1084_v12  ;;  %v1109_v35 = vld [vmem:[%s1421_s0 + $0xc] ss:$36 sps:$4 sm:$0xff]   ;;  %v1111_v37 = vld [vmem:[%s1420_s1 + $0x100] sm:$0xff]   ;;  %v1122_v48 = vld [vmem:[%s1420_s1 + $0x158] sm:$0xff]  }
   0xe   :  { %981 = vmatprep.subr.bf16.mxu1 %v1085_v13  ;;  %717 = vmatprep.mubr.bf16.mxu1 %v1109_v35  ;;  %v1112_v38 = vld [vmem:[%s1420_s1 + $0x1c0] sm:$0xff]   ;;  %v1114_v40 = vld [vmem:[%s1420_s1 + $0x148] sm:$0xff]   ;;  %v1118_v44 = vld [vmem:[%s1420_s1 + $0x150] sm:$0xff]  }
   0xf   :  { %v1113_v39 = vld [vmem:[%s1420_s1 + $0x180] sm:$0xff]   ;;  %v1115_v41 = vld [vmem:[%s1420_s1 + $0x108] sm:$0xff]   ;;  %v1119_v45 = vld [vmem:[%s1420_s1 + $0x110] sm:$0xff]  }
  0x10   :  { %960 = vmatpush3.bf16.msra.mxu0 %v1086_v14  ;;  %v1116_v42 = vld [vmem:[%s1420_s1 + $0x1c8] sm:$0xff]   ;;  %v1120_v46 = vld [vmem:[%s1420_s1 + $0x1d0] sm:$0xff]   ;;  %v1123_v49 = vld [vmem:[%s1420_s1 + $0x118] sm:$0xff]  }
  0x11   :  { %982 = vmatpush3.bf16.msra.mxu1 %v1087_v15  ;;  %961 = vmatprep.subr.bf16.mxu0 %v1088_v16  ;;  %v1117_v43 = vld [vmem:[%s1420_s1 + $0x188] sm:$0xff]   ;;  %v1121_v47 = vld [vmem:[%s1420_s1 + $0x190] sm:$0xff]   ;;  %v1124_v50 = vld [vmem:[%s1420_s1 + $0x1d8] sm:$0xff]  }
  0x12   :  { %983 = vmatprep.subr.bf16.mxu1 %v1089_v17  ;;  %v1125_v51 = vld [vmem:[%s1420_s1 + $0x198] sm:$0xff]   ;;  %v1126_v52 = vld [vmem:[%s1420_s1 + $0x160] sm:$0xff]   ;;  %v1130_v56 = vld [vmem:[%s1420_s1 + $0x168] sm:$0xff]  }
  0x13   :  { %v1127_v53 = vld [vmem:[%s1420_s1 + $0x120] sm:$0xff]   ;;  %v1131_v57 = vld [vmem:[%s1420_s1 + $0x128] sm:$0xff]   ;;  %v1134_v60 = vld [vmem:[%s1420_s1 + $0x170] sm:$0xff]  }
  0x14   :  { %962 = vmatpush3.bf16.msra.mxu0 %v1090_v18  ;;  %v1128_v54 = vld [vmem:[%s1420_s1 + $0x1e0] sm:$0xff]   ;;  %v1132_v58 = vld [vmem:[%s1420_s1 + $0x1e8] sm:$0xff]   ;;  %v1135_v61 = vld [vmem:[%s1420_s1 + $0x130] sm:$0xff]  }
  0x15   :  { %984 = vmatpush3.bf16.msra.mxu1 %v1091_v19  ;;  %963 = vmatprep.subr.bf16.mxu0 %v1092_v20  ;;  %v1129_v55 = vld [vmem:[%s1420_s1 + $0x1a0] sm:$0xff]   ;;  %v1133_v59 = vld [vmem:[%s1420_s1 + $0x1a8] sm:$0xff]   ;;  %v1136_v62 = vld [vmem:[%s1420_s1 + $0x1f0] sm:$0xff]  }
  0x16   :  { %985 = vmatprep.subr.bf16.mxu1 %v1093_v21  ;;  %v1137_v63 = vld [vmem:[%s1420_s1 + $0x1b0] sm:$0xff]   ;;  %v1138_v0 = vld [vmem:[%s1420_s1 + $0x178] sm:$0xff]   ;;  %v1148_v9 = vld [vmem:[%s1420_s1 + $0x200] sm:$0xff]  }
  0x17   :  { %v1139_v1 = vld [vmem:[%s1420_s1 + $0x138] sm:$0xff]   ;;  %v1141_v3 = vld [vmem:[%s1421_s0 + $0x10] ss:$36 sps:$4 sm:$0xff]   ;;  %v1149_v10 = vld [vmem:[%s1420_s1 + $0x208] sm:$0xff]  }
  0x18   :  { %964 = vmatpush3.bf16.msra.mxu0 %v1094_v22  ;;  %v1140_v2 = vld [vmem:[%s1420_s1 + $0x1f8] sm:$0xff]   ;;  %v1150_v11 = vld [vmem:[%s1420_s1 + $0x210] sm:$0xff]   ;;  %v1152_v13 = vld [vmem:[%s1420_s1 + $0x220] sm:$0xff]  }
  0x19   :  { %986 = vmatpush3.bf16.msra.mxu1 %v1095_v23  ;;  %965 = vmatprep.subr.bf16.mxu0 %v1096_v24  ;;  %v1143_v4 = vld [vmem:[%s1421_s0 + $0x14] ss:$36 sps:$4 sm:$0xff]   ;;  %v1147_v8 = vld [vmem:[%s1421_s0 + $0x1c] ss:$36 sps:$4 sm:$0xff]   ;;  %v1153_v14 = vld [vmem:[%s1420_s1 + $0x228] sm:$0xff]  }
  0x1a   :  { %987 = vmatprep.subr.bf16.mxu1 %v1097_v25  ;;  %v1144_v5 = vld [vmem:[%s1420_s1 + $0x1b8] sm:$0xff]   ;;  %v1154_v15 = vld [vmem:[%s1420_s1 + $0x230] sm:$0xff]   ;;  %v1156_v17 = vld [vmem:[%s1421_s0 + $0x20] ss:$36 sps:$4 sm:$0xff]  }
  0x1b   :  { %v1145_v7 = vld [vmem:[%s1421_s0 + $0x18] ss:$36 sps:$4 sm:$0xff]  }
  0x1c   :  { %966 = vmatpush3.bf16.msra.mxu0 %v1098_v26  ;;  %v1151_v12 = vld [vmem:[%s1420_s1 + $0x218] sm:$0xff]  }
  0x1d   :  { %988 = vmatpush3.bf16.msra.mxu1 %v1099_v27  ;;  %967 = vmatprep.subr.bf16.mxu0 %v1100_v28  ;;  %v1155_v16 = vld [vmem:[%s1420_s1 + $0x238] sm:$0xff]  }
  0x1e   :  { %989 = vmatprep.subr.bf16.mxu1 %v1101_v29 }
  0x20   :  { %968 = vmatpush3.bf16.msra.mxu0 %v1102_v30 }
  0x21   :  { %990 = vmatpush3.bf16.msra.mxu1 %v1103_v31  ;;  %997 = vmatprep.subr.bf16.mxu0 %v1110_v36 }
  0x22   :  { %1019 = vmatprep.subr.bf16.mxu1 %v1112_v38 }
  0x23   :  { %677 = vmatmul.mubr.bf16.vlgmr.msra.gmra.mrb[0].mxu0 %v1104_v32 }
  0x24   :  { %718 = vmatmul.mubr.bf16.vlgmr.msra.gmra.mrb[0].mxu1 %v1107_v34  ;;  %998 = vmatpush3.bf16.msra.mxu0 %v1111_v37 }
  0x25   :  { %1020 = vmatpush3.bf16.msra.mxu1 %v1113_v39  ;;  %999 = vmatprep.subr.bf16.mxu0 %v1114_v40 }
  0x26   :  { %1021 = vmatprep.subr.bf16.mxu1 %v1116_v42  ;;  %758 = vmatprep.mubr.bf16.mxu0 %v1143_v4 }
  0x27   :  { %799 = vmatprep.mubr.bf16.mxu1 %v1147_v8 }
  0x28   :  { %1000 = vmatpush3.bf16.msra.mxu0 %v1115_v41 }
  0x29   :  { %1022 = vmatpush3.bf16.msra.mxu1 %v1117_v43  ;;  %1001 = vmatprep.subr.bf16.mxu0 %v1118_v44 }
  0x2a   :  { %1023 = vmatprep.subr.bf16.mxu1 %v1120_v46 }
  0x2c   :  { %1002 = vmatpush3.bf16.msra.mxu0 %v1119_v45 }
  0x2d   :  { %1024 = vmatpush3.bf16.msra.mxu1 %v1121_v47  ;;  %1003 = vmatprep.subr.bf16.mxu0 %v1122_v48 }
  0x2e   :  { %1025 = vmatprep.subr.bf16.mxu1 %v1124_v50 }
  0x30   :  { %1004 = vmatpush3.bf16.msra.mxu0 %v1123_v49 }
  0x31   :  { %1026 = vmatpush3.bf16.msra.mxu1 %v1125_v51  ;;  %1005 = vmatprep.subr.bf16.mxu0 %v1126_v52 }
  0x32   :  { %1027 = vmatprep.subr.bf16.mxu1 %v1128_v54 }
  0x34   :  { %1006 = vmatpush3.bf16.msra.mxu0 %v1127_v53 }
  0x35   :  { %1028 = vmatpush3.bf16.msra.mxu1 %v1129_v55  ;;  %1007 = vmatprep.subr.bf16.mxu0 %v1130_v56 }
  0x36   :  { %1029 = vmatprep.subr.bf16.mxu1 %v1132_v58 }
  0x38   :  { %1008 = vmatpush3.bf16.msra.mxu0 %v1131_v57 }
  0x39   :  { %1030 = vmatpush3.bf16.msra.mxu1 %v1133_v59  ;;  %1009 = vmatprep.subr.bf16.mxu0 %v1134_v60 }
  0x3a   :  { %1031 = vmatprep.subr.bf16.mxu1 %v1136_v62 }
  0x3c   :  { %1010 = vmatpush3.bf16.msra.mxu0 %v1135_v61 }
  0x3d   :  { %1032 = vmatpush3.bf16.msra.mxu1 %v1137_v63  ;;  %1011 = vmatprep.subr.bf16.mxu0 %v1138_v0 }
  0x3e   :  { %1033 = vmatprep.subr.bf16.mxu1 %v1140_v2 }
  0x40   :  { %1012 = vmatpush3.bf16.msra.mxu0 %v1139_v1 }
  0x41   :  { %1050 = vmatprep.subr.bf16.mxu0 %v1157_v6  ;;  %1034 = vmatpush3.bf16.msra.mxu1 %v1144_v5 }
  0x43   :  { %759 = vmatmul.mubr.bf16.vlgmr.msra.gmra.mrb[4].mxu0 %v1141_v3 }
  0x44   :  { %1066 = vmatprep.mubr.msk.bf16.mxu0 %vm1158_vm0, %v1157_v6  ;;  %1051 = vmatpush3.bf16.msra.mxu0 %v1148_v9 }
  0x45   :  { %800 = vmatmul.mubr.bf16.vlgmr.msra.gmra.mrb[4].mxu1 %v1145_v7  ;;  %1052 = vmatprep.subr.bf16.mxu0 %v1157_v6 }
  0x48   :  { %1053 = vmatpush3.bf16.msra.mxu0 %v1149_v10 }
  0x49   :  { %1054 = vmatprep.subr.bf16.mxu0 %v1157_v6 }
  0x4c   :  { %1055 = vmatpush3.bf16.msra.mxu0 %v1150_v11 }
  0x4d   :  { %1056 = vmatprep.subr.bf16.mxu0 %v1157_v6 }
  0x50   :  { %1057 = vmatpush3.bf16.msra.mxu0 %v1151_v12 }
  0x51   :  { %1058 = vmatprep.subr.bf16.mxu0 %v1157_v6 }
  0x54   :  { %1059 = vmatpush3.bf16.msra.mxu0 %v1152_v13 }
  0x55   :  { %1060 = vmatprep.subr.bf16.mxu0 %v1157_v6 }
  0x58   :  { %1061 = vmatpush3.bf16.msra.mxu0 %v1153_v14 }
  0x59   :  { %1062 = vmatprep.subr.bf16.mxu0 %v1157_v6 }
  0x5c   :  { %1063 = vmatpush3.bf16.msra.mxu0 %v1154_v15 }
  0x5d   :  { %1064 = vmatprep.subr.bf16.mxu0 %v1157_v6 }
  0x60   :  { %1065 = vmatpush3.bf16.msra.mxu0 %v1155_v16 }
  0x63   :  { %1067 = vmatmul.mubr.bf16.vlgmr.msra.gmra.mrb[8].mxu0 %v1156_v17 }
  0xf6   :  { %v969_v18 = vpop.f32.mrb[0].mxu0 }
  0xf7   :  { %v991_v19 = vpop.f32.mrb[0].mxu1  ;;  %v970_v20 = vpop.f32.mrb[1].mxu0 }
  0xf8   :  { %v971_v21 = vadd.f32 %v970_v20, %v969_v18  ;;  %v992_v22 = vpop.f32.mrb[1].mxu1  ;;  %v972_v23 = vpop.f32.mrb[2].mxu0 }
  0xf9   :  { %v993_v24 = vadd.f32 %v992_v22, %v991_v19  ;;  %v994_v25 = vpop.f32.mrb[2].mxu1  ;;  %v973_v26 = vpop.f32.mrb[3].mxu0 }
  0xfa   :  { %v974_v27 = vadd.f32 %v973_v26, %v972_v23  ;;  %v995_v28 = vpop.f32.mrb[3].mxu1 }
  0xfb   :  { %v720_v29 = vadd.f32 %v993_v24, %v971_v21  ;;  %v996_v30 = vadd.f32 %v995_v28, %v994_v25 }
  0xfd   :  { %v723_v31 = vadd.f32 %v996_v30, %v974_v27 }
 0x116   :  { %v1013_v32 = vpop.f32.mrb[4].mxu0 }
 0x117   :  { %v1014_v33 = vpop.f32.mrb[5].mxu0 }
 0x118   :  { %v1015_v34 = vadd.f32 %v1014_v33, %v1013_v32  ;;  %v1016_v35 = vpop.f32.mrb[6].mxu0  ;;  %v1035_v36 = vpop.f32.mrb[4].mxu1 }
 0x119   :  { %v1017_v37 = vpop.f32.mrb[7].mxu0  ;;  %v1036_v40 = vpop.f32.mrb[5].mxu1 }
 0x11a   :  { %v761_v38 = vadd.f32 %v1015_v34, %v720_v29  ;;  %v1018_v39 = vadd.f32 %v1017_v37, %v1016_v35  ;;  %v1037_v41 = vadd.f32 %v1036_v40, %v1035_v36  ;;  %v1038_v42 = vpop.f32.mrb[6].mxu1 }
 0x11b   :  { %v1039_v44 = vpop.f32.mrb[7].mxu1 }
 0x11c   :  { %v764_v43 = vadd.f32 %v1018_v39, %v723_v31  ;;  %v1040_v45 = vadd.f32 %v1039_v44, %v1038_v42  ;;  %v802_v46 = vadd.f32 %v1037_v41, %v761_v38 }
 0x11e   :  { %v805_v47 = vadd.f32 %v1040_v45, %v764_v43 }
 0x136   :  { %v842_v48 = vpop.f32.mrb[8].mxu0 }
 0x137   :  { %v843_v49 = vadd.f32 %v842_v48, %v802_v46  ;;  %v1068_v50 = vpop.f32.mrb[9].mxu0 }
 0x138   :  { %v845_v51 = vpop.f32.mrb[10].mxu0 }
 0x139   :  { %v846_v52 = vadd.f32 %v845_v51, %v805_v47  ;;  %v1069_v53 = vpop.f32.mrb[11].mxu0 }
 0x13b   :  { %v951_v54 = vpack.c.bf16 %v846_v52, %v843_v49 }
 0x13d   :  { %952 = vst [vmem:[%s1422_s2] sm:$0xff] %v951_v54  }

// kernel: densenet121_forward.208
= control target key start
LH: loop header
LB: loop body
LE: loop exit
PB: predicated region body
PF: predicated region fallthrough
CT: control target
= control target key end

     0   :  { %v2901_v36 = vmov 1966171168   ;;  %v29_v38 = vlaneseq  ;;  %s3816_s2 = inlined_call_operand.vmem [shape: bf16[1024,512], index: 2, kind: input, shape index: {}]   ;;  %s3817_s1 = inlined_call_operand.vmem [shape: bf16[2,1024], index: 1, kind: input, shape index: {}]   ;;  %s3818_s0 = inlined_call_operand.vmem [shape: bf16[16,1024], index: 0, kind: input, shape index: {}]   ;;  %s3819_s3 = inlined_call_operand.vmem [shape: bf16[16,512], index: 3, kind: output, shape index: {}]  }
   0x1   :  { %v2516_v0 = vld [vmem:[%s3816_s2 + $0x4] ss:$16 sps:$4 sm:$0xff]   ;;  %v2518_v1 = vld [vmem:[%s3816_s2 + $0xc] ss:$16 sps:$4 sm:$0xff]   ;;  %v2520_v2 = vld [vmem:[%s3816_s2] ss:$16 sps:$4 sm:$0xff]   ;;  %v27_v37 = vunpack.c.l.s4 %v2901_v36 }
   0x2   :  { %1834 = vmatprep.subr.bf16.mxu0 %v2516_v0  ;;  %v2521_v3 = vld [vmem:[%s3816_s2 + $0x8] ss:$16 sps:$4 sm:$0xff]   ;;  %2006 = vmatprep.subr.bf16.mxu1 %v2518_v1  ;;  %v2522_v4 = vld [vmem:[%s3816_s2 + $0x24] ss:$16 sps:$4 sm:$0xff]   ;;  %v2524_v5 = vld [vmem:[%s3816_s2 + $0x2c] ss:$16 sps:$4 sm:$0xff]  }
   0x3   :  { %1835 = vmatpush1.bf16.msra.mxu0 %v2520_v2  ;;  %2007 = vmatpush1.bf16.msra.mxu1 %v2521_v3  ;;  %v2526_v6 = vld [vmem:[%s3816_s2 + $0x20] ss:$16 sps:$4 sm:$0xff]   ;;  %v2527_v7 = vld [vmem:[%s3816_s2 + $0x28] ss:$16 sps:$4 sm:$0xff]   ;;  %v2528_v8 = vld [vmem:[%s3816_s2 + $0x44] ss:$16 sps:$4 sm:$0xff]   ;;  %v28_v42 = vunpack.c.0.s8 %v27_v37 }
   0x4   :  { %1836 = vmatprep.subr.bf16.mxu0 %v2522_v4  ;;  %2008 = vmatprep.subr.bf16.mxu1 %v2524_v5  ;;  %v2530_v9 = vld [vmem:[%s3816_s2 + $0x4c] ss:$16 sps:$4 sm:$0xff]   ;;  %v2532_v10 = vld [vmem:[%s3816_s2 + $0x40] ss:$16 sps:$4 sm:$0xff]   ;;  %v2533_v11 = vld [vmem:[%s3816_s2 + $0x48] ss:$16 sps:$4 sm:$0xff]  }
   0x5   :  { %v2534_v12 = vld [vmem:[%s3816_s2 + $0x64] ss:$16 sps:$4 sm:$0xff]   ;;  %v2536_v13 = vld [vmem:[%s3816_s2 + $0x6c] ss:$16 sps:$4 sm:$0xff]   ;;  %v2538_v14 = vld [vmem:[%s3816_s2 + $0x60] ss:$16 sps:$4 sm:$0xff]  }
   0x6   :  { %v2539_v15 = vld [vmem:[%s3816_s2 + $0x68] ss:$16 sps:$4 sm:$0xff]   ;;  %v2540_v16 = vld [vmem:[%s3816_s2 + $0x84] ss:$16 sps:$4 sm:$0xff]   ;;  %v2542_v17 = vld [vmem:[%s3816_s2 + $0x8c] ss:$16 sps:$4 sm:$0xff]  }
   0x7   :  { %1837 = vmatpush1.bf16.msra.mxu0 %v2526_v6  ;;  %2009 = vmatpush1.bf16.msra.mxu1 %v2527_v7  ;;  %v2544_v18 = vld [vmem:[%s3816_s2 + $0x80] ss:$16 sps:$4 sm:$0xff]   ;;  %v2545_v19 = vld [vmem:[%s3816_s2 + $0x88] ss:$16 sps:$4 sm:$0xff]   ;;  %v2546_v20 = vld [vmem:[%s3816_s2 + $0xa4] ss:$16 sps:$4 sm:$0xff]  }
   0x8   :  { %1838 = vmatprep.subr.bf16.mxu0 %v2528_v8  ;;  %2010 = vmatprep.subr.bf16.mxu1 %v2530_v9  ;;  %v2548_v21 = vld [vmem:[%s3816_s2 + $0xac] ss:$16 sps:$4 sm:$0xff]   ;;  %v2550_v22 = vld [vmem:[%s3816_s2 + $0xa0] ss:$16 sps:$4 sm:$0xff]   ;;  %v2551_v23 = vld [vmem:[%s3816_s2 + $0xa8] ss:$16 sps:$4 sm:$0xff]  }
   0x9   :  { %v2552_v24 = vld [vmem:[%s3816_s2 + $0xc4] ss:$16 sps:$4 sm:$0xff]   ;;  %v2554_v25 = vld [vmem:[%s3816_s2 + $0xcc] ss:$16 sps:$4 sm:$0xff]   ;;  %v2556_v26 = vld [vmem:[%s3816_s2 + $0xc0] ss:$16 sps:$4 sm:$0xff]  }
   0xa   :  { %v2557_v27 = vld [vmem:[%s3816_s2 + $0xc8] ss:$16 sps:$4 sm:$0xff]   ;;  %v2558_v28 = vld [vmem:[%s3816_s2 + $0xe4] ss:$16 sps:$4 sm:$0xff]   ;;  %v2560_v29 = vld [vmem:[%s3816_s2 + $0xec] ss:$16 sps:$4 sm:$0xff]  }
   0xb   :  { %1839 = vmatpush1.bf16.msra.mxu0 %v2532_v10  ;;  %2011 = vmatpush1.bf16.msra.mxu1 %v2533_v11  ;;  %v2562_v30 = vld [vmem:[%s3816_s2 + $0xe0] ss:$16 sps:$4 sm:$0xff]   ;;  %v2563_v31 = vld [vmem:[%s3816_s2 + $0xe8] ss:$16 sps:$4 sm:$0xff]   ;;  %v2564_v32 = vld [vmem:[%s3816_s2 + $0x104] ss:$16 sps:$4 sm:$0xff]  }
   0xc   :  { %1840 = vmatprep.subr.bf16.mxu0 %v2534_v12  ;;  %2012 = vmatprep.subr.bf16.mxu1 %v2536_v13  ;;  %v2566_v33 = vld [vmem:[%s3816_s2 + $0x10c] ss:$16 sps:$4 sm:$0xff]   ;;  %v2568_v34 = vld [vmem:[%s3816_s2 + $0x100] ss:$16 sps:$4 sm:$0xff]   ;;  %v2569_v35 = vld [vmem:[%s3816_s2 + $0x108] ss:$16 sps:$4 sm:$0xff]  }
   0xd   :  { %v2570_v39 = vld [vmem:[%s3816_s2 + $0x124] ss:$16 sps:$4 sm:$0xff]   ;;  %v2572_v40 = vld [vmem:[%s3816_s2 + $0x12c] ss:$16 sps:$4 sm:$0xff]   ;;  %v2574_v41 = vld [vmem:[%s3816_s2 + $0x120] ss:$16 sps:$4 sm:$0xff]  }
   0xe   :  { %v30_v43 = vshrl.u32 %v29_v38, 7  ;;  %v2575_v44 = vld [vmem:[%s3816_s2 + $0x128] ss:$16 sps:$4 sm:$0xff]   ;;  %v2576_v45 = vld [vmem:[%s3816_s2 + $0x144] ss:$16 sps:$4 sm:$0xff]  }
   0xf   :  { %1841 = vmatpush1.bf16.msra.mxu0 %v2538_v14  ;;  %2013 = vmatpush1.bf16.msra.mxu1 %v2539_v15  ;;  %v2578_v46 = vld [vmem:[%s3816_s2 + $0x14c] ss:$16 sps:$4 sm:$0xff]   ;;  %v2580_v47 = vld [vmem:[%s3816_s2 + $0x140] ss:$16 sps:$4 sm:$0xff]   ;;  %v2581_v48 = vld [vmem:[%s3816_s2 + $0x148] ss:$16 sps:$4 sm:$0xff]  }
  0x10   :  { %1842 = vmatprep.subr.bf16.mxu0 %v2540_v16  ;;  %2014 = vmatprep.subr.bf16.mxu1 %v2542_v17  ;;  %v31_v49 = vsub.s32 %v28_v42, %v30_v43  ;;  %v2582_v50 = vld [vmem:[%s3816_s2 + $0x164] ss:$16 sps:$4 sm:$0xff]   ;;  %v2584_v51 = vld [vmem:[%s3816_s2 + $0x16c] ss:$16 sps:$4 sm:$0xff]   ;;  %v2586_v53 = vld [vmem:[%s3816_s2 + $0x160] ss:$16 sps:$4 sm:$0xff]  }
  0x11   :  { %v15_v52 = vld [vmem:[%s3817_s1] sm:$0xff]  ;;  %v2587_v55 = vld [vmem:[%s3816_s2 + $0x168] ss:$16 sps:$4 sm:$0xff]   ;;  %v2590_v58 = vld [vmem:[%s3816_s2 + $0x18c] ss:$16 sps:$4 sm:$0xff]   ;;  %v3078_v61 = vsub.s32 0, %v30_v43 }
  0x12   :  { %v32_v54 = vrot.slane %v15_v52, %v31_v49  ;;  %v2588_v56 = vld [vmem:[%s3816_s2 + $0x184] ss:$16 sps:$4 sm:$0xff]   ;;  %v25_v57 = vcombine.high %v15_v52, %v15_v52  ;;  %v2592_v62 = vld [vmem:[%s3816_s2 + $0x180] ss:$16 sps:$4 sm:$0xff]   ;;  %v2593_v2 = vld [vmem:[%s3816_s2 + $0x188] ss:$16 sps:$4 sm:$0xff]  }
  0x13   :  { %1843 = vmatpush1.bf16.msra.mxu0 %v2544_v18  ;;  %2015 = vmatpush1.bf16.msra.mxu1 %v2545_v19  ;;  %v2594_v3 = vld [vmem:[%s3816_s2 + $0x1a4] ss:$16 sps:$4 sm:$0xff]   ;;  %v2596_v5 = vld [vmem:[%s3816_s2 + $0x1ac] ss:$16 sps:$4 sm:$0xff]   ;;  %v2598_v10 = vld [vmem:[%s3816_s2 + $0x1a0] ss:$16 sps:$4 sm:$0xff]  }
  0x14   :  { %1844 = vmatprep.subr.bf16.mxu0 %v2546_v20  ;;  %2016 = vmatprep.subr.bf16.mxu1 %v2548_v21  ;;  %v40_v59 = vcombine.high %v32_v54, %v32_v54  ;;  %v3076_v60 = vrot.slane %v32_v54, %v31_v49  ;;  %v39_v4 = vrot.slane %v25_v57, %v31_v49  ;;  %v2599_v12 = vld [vmem:[%s3816_s2 + $0x1a8] ss:$16 sps:$4 sm:$0xff]   ;;  %v2600_v13 = vld [vmem:[%s3816_s2 + $0x1c4] ss:$16 sps:$4 sm:$0xff]   ;;  %v2602_v20 = vld [vmem:[%s3816_s2 + $0x1cc] ss:$16 sps:$4 sm:$0xff]  }
  0x15   :  { %v16_v18 = vld [vmem:[%s3818_s0] sm:$0xff]  ;;  %v2902_v42 = vmov 0   ;;  %v2624_v57 = vld [vmem:[%s3816_s2 + $0x22c] ss:$16 sps:$4 sm:$0xff]  }
  0x16   :  { %v3083_v63 = vrot.slane %v40_v59, %v31_v49  ;;  %v75_v0 = vpack.i.b16 %v3076_v60, %v3076_v60  ;;  %v162_v1 = vshrl.u32 %v3076_v60, 16  ;;  %v41_v11 = vcombine.high %v39_v4, %v39_v4  ;;  %v20_v19 = vld [vmem:[%s3818_s0 + $0x20] sm:$0xff]  ;;  %v2622_v59 = vld [vmem:[%s3816_s2 + $0x228] ss:$16 sps:$4 sm:$0xff]  }
  0x17   :  { %1845 = vmatpush1.bf16.msra.mxu0 %v2550_v22  ;;  %2017 = vmatpush1.bf16.msra.mxu1 %v2551_v23  ;;  %v3112_v17 = vrot.slane %v39_v4, %v31_v49  ;;  %v2628_v4 = vld [vmem:[%s3816_s2 + $0x248] ss:$16 sps:$4 sm:$0xff]  }
  0x18   :  { %1846 = vmatprep.subr.bf16.mxu0 %v2552_v24  ;;  %2018 = vmatprep.subr.bf16.mxu1 %v2554_v25  ;;  %v80_v6 = vrot.slane %v75_v0, %v3078_v61  ;;  %v82_v7 = vpack.i.b16 %v3083_v63, %v3083_v63  ;;  %v163_v8 = vpack.i.b16 %v162_v1, %v162_v1  ;;  %v169_v9 = vshrl.u32 %v3083_v63, 16  ;;  %v2630_v0 = vld [vmem:[%s3816_s2 + $0x24c] ss:$16 sps:$4 sm:$0xff]  }
  0x19   :  { %v3124_v23 = vrot.slane %v41_v11, %v31_v49  ;;  %v103_v24 = vpack.i.b16 %v3112_v17, %v3112_v17  ;;  %v190_v25 = vshrl.u32 %v3112_v17, 16  ;;  %v70_v1 = vcombine.high %v3076_v60, %v3076_v60  ;;  %v2636_v60 = vld [vmem:[%s3816_s2 + $0x26c] ss:$16 sps:$4 sm:$0xff]   ;;  %v2639_v11 = vld [vmem:[%s3816_s2 + $0x284] ss:$16 sps:$4 sm:$0xff]  }
  0x1a   :  { %v87_v14 = vrot.slane %v82_v7, %v3078_v61  ;;  %v168_v15 = vrot.slane %v163_v8, %v3078_v61  ;;  %v170_v16 = vpack.i.b16 %v169_v9, %v169_v9  ;;  %v2631_v7 = vld [vmem:[%s3816_s2 + $0x260] ss:$16 sps:$4 sm:$0xff]  }
  0x1b   :  { %1847 = vmatpush1.bf16.msra.mxu0 %v2556_v26  ;;  %2019 = vmatpush1.bf16.msra.mxu1 %v2557_v27  ;;  %v2604_v26 = vld [vmem:[%s3816_s2 + $0x1c0] ss:$16 sps:$4 sm:$0xff]   ;;  %v89_v8 = vpack.i.b16 %v70_v1, %v70_v1 }
  0x1c   :  { %1848 = vmatprep.subr.bf16.mxu0 %v2558_v28  ;;  %2020 = vmatprep.subr.bf16.mxu1 %v2560_v29  ;;  %v2210_v21 = vcombine.low %v80_v6, %v87_v14  ;;  %v175_v22 = vrot.slane %v170_v16, %v3078_v61 }
  0x1d   :  { %v94_v16 = vrot.slane %v89_v8, %v3078_v61  ;;  %v71_v8 = vcombine.high %v3112_v17, %v3112_v17  ;;  %v2699_v17 = vld [vmem:[%s3816_s2 + $0x3c4] ss:$16 sps:$4 sm:$0xff]  }
  0x1e   :  { %v154_v27 = vmul.bf16 %v2210_v21, %v16_v18  ;;  %v158_v28 = vmul.bf16 %v2210_v21, %v20_v19  ;;  %v2214_v29 = vcombine.low %v168_v15, %v175_v22  ;;  %v2637_v15 = vld [vmem:[%s3816_s2 + $0x280] ss:$16 sps:$4 sm:$0xff]   ;;  %v2640_v19 = vld [vmem:[%s3816_s2 + $0x288] ss:$16 sps:$4 sm:$0xff]   ;;  %v2648_v21 = vld [vmem:[%s3816_s2 + $0x2ac] ss:$16 sps:$4 sm:$0xff]  }
  0x1f   :  { %1849 = vmatpush1.bf16.msra.mxu0 %v2562_v30  ;;  %2021 = vmatpush1.bf16.msra.mxu1 %v2563_v31  ;;  %v110_v30 = vpack.i.b16 %v3124_v23, %v3124_v23  ;;  %v2605_v31 = vld [vmem:[%s3816_s2 + $0x1c8] ss:$16 sps:$4 sm:$0xff]  }
  0x20   :  { %1850 = vmatprep.subr.bf16.mxu0 %v2564_v32  ;;  %2022 = vmatprep.subr.bf16.mxu1 %v2566_v33  ;;  %v2606_v32 = vld [vmem:[%s3816_s2 + $0x1e4] ss:$16 sps:$4 sm:$0xff]   ;;  %v108_v33 = vrot.slane %v103_v24, %v3078_v61  ;;  %v242_v36 = vadd.bf16 %v2214_v29, %v154_v27  ;;  %v246_v37 = vadd.bf16 %v2214_v29, %v158_v28  ;;  %v2646_v27 = vld [vmem:[%s3816_s2 + $0x2a8] ss:$16 sps:$4 sm:$0xff]   ;;  %v2654_v29 = vld [vmem:[%s3816_s2 + $0x2cc] ss:$16 sps:$4 sm:$0xff]  }
  0x21   :  { %v115_v38 = vrot.slane %v110_v30, %v3078_v61  ;;  %v2651_v28 = vld [vmem:[%s3816_s2 + $0x2c4] ss:$16 sps:$4 sm:$0xff]  }
  0x22   :  { %v250_v43 = vmax.bf16 %v2902_v42, %v242_v36  ;;  %v2652_v36 = vld [vmem:[%s3816_s2 + $0x2c8] ss:$16 sps:$4 sm:$0xff]  }
  0x23   :  { %1851 = vmatpush1.bf16.msra.mxu0 %v2568_v34  ;;  %2023 = vmatpush1.bf16.msra.mxu1 %v2569_v35  ;;  %v197_v34 = vshrl.u32 %v3124_v23, 16  ;;  %v2608_v35 = vld [vmem:[%s3816_s2 + $0x1ec] ss:$16 sps:$4 sm:$0xff]  }
  0x24   :  { %1852 = vmatprep.subr.bf16.mxu0 %v2570_v39  ;;  %2024 = vmatprep.subr.bf16.mxu1 %v2572_v40  ;;  %v191_v39 = vpack.i.b16 %v190_v25, %v190_v25  ;;  %v2643_v25 = vld [vmem:[%s3816_s2 + $0x2a0] ss:$16 sps:$4 sm:$0xff]  }
  0x25   :  { %v198_v40 = vpack.i.b16 %v197_v34, %v197_v34 }
  0x27   :  { %1853 = vmatpush1.bf16.msra.mxu0 %v2574_v41  ;;  %2025 = vmatpush1.bf16.msra.mxu1 %v2575_v44  ;;  %v2610_v41 = vld [vmem:[%s3816_s2 + $0x1e0] ss:$16 sps:$4 sm:$0xff]   ;;  %v254_v44 = vmax.bf16 %v2902_v42, %v246_v37  ;;  %v203_v49 = vrot.slane %v198_v40, %v3078_v61  ;;  %v2657_v37 = vld [vmem:[%s3816_s2 + $0x2e4] ss:$16 sps:$4 sm:$0xff]  }
  0x28   :  { %1854 = vmatprep.subr.bf16.mxu0 %v2576_v45  ;;  %2026 = vmatprep.subr.bf16.mxu1 %v2578_v46  ;;  %v3151_v45 = vcombine.low %v108_v33, %v115_v38  ;;  %v2611_v46 = vld [vmem:[%s3816_s2 + $0x1e8] ss:$16 sps:$4 sm:$0xff]   ;;  %v2649_v33 = vld [vmem:[%s3816_s2 + $0x2c0] ss:$16 sps:$4 sm:$0xff]   ;;  %v2660_v38 = vld [vmem:[%s3816_s2 + $0x2ec] ss:$16 sps:$4 sm:$0xff]  }
  0x29   :  { %v2218_v54 = vcombine.low %v250_v43, %v254_v44 }
  0x2b   :  { %1855 = vmatpush1.bf16.msra.mxu0 %v2580_v47  ;;  %2027 = vmatpush1.bf16.msra.mxu1 %v2581_v48  ;;  %v2615_v47 = vld [vmem:[%s3816_s2 + $0x204] ss:$16 sps:$4 sm:$0xff]   ;;  %v196_v48 = vrot.slane %v191_v39, %v3078_v61 }
  0x2c   :  { %1856 = vmatprep.subr.bf16.mxu0 %v2582_v50  ;;  %2028 = vmatprep.subr.bf16.mxu1 %v2584_v51  ;;  %v2219_v50 = vcombine.high %v250_v43, %v254_v44  ;;  %v2618_v51 = vld [vmem:[%s3816_s2 + $0x20c] ss:$16 sps:$4 sm:$0xff]  }
  0x2d   :  { %v3164_v52 = vcombine.low %v196_v48, %v203_v49  ;;  %v2666_v48 = vld [vmem:[%s3816_s2 + $0x30c] ss:$16 sps:$4 sm:$0xff]  }
  0x2e   :  { %1866 = vmatprep.mubr.bf16.mxu0 %v2219_v50  ;;  %2038 = vmatprep.mubr.bf16.mxu1 %v2219_v50  ;;  %v2661_v50 = vld [vmem:[%s3816_s2 + $0x300] ss:$16 sps:$4 sm:$0xff]  }
  0x2f   :  { %1857 = vmatpush1.bf16.msra.mxu0 %v2586_v53  ;;  %2029 = vmatpush1.bf16.msra.mxu1 %v2587_v55  ;;  %v2613_v53 = vld [vmem:[%s3816_s2 + $0x200] ss:$16 sps:$4 sm:$0xff]   ;;  %v2616_v55 = vld [vmem:[%s3816_s2 + $0x208] ss:$16 sps:$4 sm:$0xff]  }
  0x30   :  { %1858 = vmatprep.subr.bf16.mxu0 %v2588_v56  ;;  %2030 = vmatprep.subr.bf16.mxu1 %v2590_v58  ;;  %v2621_v56 = vld [vmem:[%s3816_s2 + $0x224] ss:$16 sps:$4 sm:$0xff]   ;;  %v2619_v58 = vld [vmem:[%s3816_s2 + $0x220] ss:$16 sps:$4 sm:$0xff]  }
  0x33   :  { %1859 = vmatpush1.bf16.msra.mxu0 %v2592_v62  ;;  %2031 = vmatpush1.bf16.msra.mxu1 %v2593_v2  ;;  %v2627_v62 = vld [vmem:[%s3816_s2 + $0x244] ss:$16 sps:$4 sm:$0xff]   ;;  %v72_v2 = vcombine.high %v3083_v63, %v3083_v63  ;;  %v176_v63 = vshrl.u32 %v70_v1, 16  ;;  %v2684_v1 = vld [vmem:[%s3816_s2 + $0x36c] ss:$16 sps:$4 sm:$0xff]  }
  0x34   :  { %1860 = vmatprep.subr.bf16.mxu0 %v2594_v3  ;;  %2032 = vmatprep.subr.bf16.mxu1 %v2596_v5  ;;  %v2625_v3 = vld [vmem:[%s3816_s2 + $0x240] ss:$16 sps:$4 sm:$0xff]   ;;  %v2633_v5 = vld [vmem:[%s3816_s2 + $0x264] ss:$16 sps:$4 sm:$0xff]  }
  0x35   :  { %v183_v6 = vshrl.u32 %v72_v2, 16  ;;  %v96_v9 = vpack.i.b16 %v72_v2, %v72_v2  ;;  %v2679_v2 = vld [vmem:[%s3816_s2 + $0x360] ss:$16 sps:$4 sm:$0xff]  }
  0x37   :  { %1861 = vmatpush1.bf16.msra.mxu0 %v2598_v10  ;;  %2033 = vmatpush1.bf16.msra.mxu1 %v2599_v12  ;;  %v2634_v10 = vld [vmem:[%s3816_s2 + $0x268] ss:$16 sps:$4 sm:$0xff]   ;;  %v2642_v12 = vld [vmem:[%s3816_s2 + $0x28c] ss:$16 sps:$4 sm:$0xff]   ;;  %v184_v14 = vpack.i.b16 %v183_v6, %v183_v6  ;;  %v101_v18 = vrot.slane %v96_v9, %v3078_v61  ;;  %v2693_v6 = vld [vmem:[%s3816_s2 + $0x3a4] ss:$16 sps:$4 sm:$0xff]   ;;  %v73_v9 = vcombine.high %v3124_v23, %v3124_v23 }
  0x38   :  { %1862 = vmatprep.subr.bf16.mxu0 %v2600_v13  ;;  %2034 = vmatprep.subr.bf16.mxu1 %v2602_v20  ;;  %v177_v13 = vpack.i.b16 %v176_v63, %v176_v63  ;;  %v2645_v20 = vld [vmem:[%s3816_s2 + $0x2a4] ss:$16 sps:$4 sm:$0xff]   ;;  %v2688_v63 = vld [vmem:[%s3816_s2 + $0x388] ss:$16 sps:$4 sm:$0xff]   ;;  %v2702_v23 = vld [vmem:[%s3816_s2 + $0x3cc] ss:$16 sps:$4 sm:$0xff]  }
  0x39   :  { %v189_v24 = vrot.slane %v184_v14, %v3078_v61  ;;  %v204_v14 = vshrl.u32 %v71_v8, 16 }
  0x3a   :  { %v182_v22 = vrot.slane %v177_v13, %v3078_v61  ;;  %v124_v13 = vpack.i.b16 %v73_v9, %v73_v9 }
  0x3b   :  { %1863 = vmatpush1.bf16.msra.mxu0 %v2604_v26  ;;  %2035 = vmatpush1.bf16.msra.mxu1 %v2605_v31  ;;  %v2211_v26 = vcombine.low %v94_v16, %v101_v18  ;;  %v17_v31 = vld [vmem:[%s3818_s0 + $0x8] sm:$0xff] }
  0x3c   :  { %1864 = vmatprep.subr.bf16.mxu0 %v2606_v32  ;;  %2036 = vmatprep.subr.bf16.mxu1 %v2608_v35  ;;  %v2215_v30 = vcombine.low %v182_v22, %v189_v24  ;;  %v21_v32 = vld [vmem:[%s3818_s0 + $0x28] sm:$0xff]  ;;  %v129_v18 = vrot.slane %v124_v13, %v3078_v61 }
  0x3d   :  { %v155_v34 = vmul.bf16 %v2211_v26, %v17_v31  ;;  %v159_v35 = vmul.bf16 %v2211_v26, %v21_v32  ;;  %v2700_v22 = vld [vmem:[%s3816_s2 + $0x3c8] ss:$16 sps:$4 sm:$0xff]   ;;  %v2711_v31 = vld [vmem:[%s3816_s2 + $0x404] ss:$16 sps:$4 sm:$0xff]   ;;  %v2714_v32 = vld [vmem:[%s3816_s2 + $0x40c] ss:$16 sps:$4 sm:$0xff]  }
  0x3e   :  { %v2762_v13 = vld [vmem:[%s3816_s2 + $0x50c] ss:$16 sps:$4 sm:$0xff]  }
  0x3f   :  { %1865 = vmatpush1.bf16.msra.mxu0 %v2610_v41  ;;  %2037 = vmatpush1.bf16.msra.mxu1 %v2611_v46  ;;  %v243_v39 = vadd.bf16 %v2215_v30, %v155_v34  ;;  %v247_v40 = vadd.bf16 %v2215_v30, %v159_v35  ;;  %v2655_v41 = vld [vmem:[%s3816_s2 + $0x2e0] ss:$16 sps:$4 sm:$0xff]   ;;  %v2658_v46 = vld [vmem:[%s3816_s2 + $0x2e8] ss:$16 sps:$4 sm:$0xff]  }
  0x40   :  { %1877 = vmatprep.subr.bf16.mxu0 %v2615_v47  ;;  %2049 = vmatprep.subr.bf16.mxu1 %v2618_v51  ;;  %v2663_v47 = vld [vmem:[%s3816_s2 + $0x304] ss:$16 sps:$4 sm:$0xff]   ;;  %v2664_v51 = vld [vmem:[%s3816_s2 + $0x308] ss:$16 sps:$4 sm:$0xff]   ;;  %v2703_v30 = vld [vmem:[%s3816_s2 + $0x3e0] ss:$16 sps:$4 sm:$0xff]  }
  0x41   :  { %v3268_v43 = vmax.bf16 %v2902_v42, %v243_v39  ;;  %v3271_v44 = vmax.bf16 %v2902_v42, %v247_v40  ;;  %v2712_v35 = vld [vmem:[%s3816_s2 + $0x408] ss:$16 sps:$4 sm:$0xff]   ;;  %v22_v39 = vld [vmem:[%s3818_s0 + $0x30] sm:$0xff] }
  0x42   :  { %1867 = vmatmul.mubr.bf16.vlgmr.msra.gmra.mrb[0].mxu0 %v2218_v54  ;;  %2039 = vmatmul.mubr.bf16.vlgmr.msra.gmra.mrb[0].mxu1 %v2218_v54  ;;  %v2672_v54 = vld [vmem:[%s3816_s2 + $0x32c] ss:$16 sps:$4 sm:$0xff]  }
  0x43   :  { %1878 = vmatpush1.bf16.msra.mxu0 %v2613_v53  ;;  %2050 = vmatpush1.bf16.msra.mxu1 %v2616_v55  ;;  %v2221_v49 = vcombine.high %v3268_v43, %v3271_v44  ;;  %v2669_v53 = vld [vmem:[%s3816_s2 + $0x324] ss:$16 sps:$4 sm:$0xff]   ;;  %v2667_v55 = vld [vmem:[%s3816_s2 + $0x320] ss:$16 sps:$4 sm:$0xff]   ;;  %v2220_v34 = vcombine.low %v3268_v43, %v3271_v44  ;;  %v160_v43 = vmul.bf16 %v3151_v45, %v22_v39  ;;  %v2718_v44 = vld [vmem:[%s3816_s2 + $0x428] ss:$16 sps:$4 sm:$0xff]  }
  0x44   :  { %1879 = vmatprep.subr.bf16.mxu0 %v2621_v56  ;;  %2051 = vmatprep.subr.bf16.mxu1 %v2624_v57  ;;  %v2670_v56 = vld [vmem:[%s3816_s2 + $0x328] ss:$16 sps:$4 sm:$0xff]   ;;  %v2675_v57 = vld [vmem:[%s3816_s2 + $0x344] ss:$16 sps:$4 sm:$0xff]   ;;  %v2792_v39 = vld [vmem:[%s3816_s2 + $0x5ac] ss:$16 sps:$4 sm:$0xff]  }
  0x45   :  { %1909 = vmatprep.mubr.bf16.mxu0 %v2221_v49  ;;  %2081 = vmatprep.mubr.bf16.mxu1 %v2221_v49 }
  0x47   :  { %1880 = vmatpush1.bf16.msra.mxu0 %v2619_v58  ;;  %2052 = vmatpush1.bf16.msra.mxu1 %v2622_v59  ;;  %v2678_v58 = vld [vmem:[%s3816_s2 + $0x34c] ss:$16 sps:$4 sm:$0xff]   ;;  %v2673_v59 = vld [vmem:[%s3816_s2 + $0x340] ss:$16 sps:$4 sm:$0xff]  }
  0x48   :  { %1881 = vmatprep.subr.bf16.mxu0 %v2627_v62  ;;  %2053 = vmatprep.subr.bf16.mxu1 %v2630_v0  ;;  %v2676_v62 = vld [vmem:[%s3816_s2 + $0x348] ss:$16 sps:$4 sm:$0xff]   ;;  %v2681_v0 = vld [vmem:[%s3816_s2 + $0x364] ss:$16 sps:$4 sm:$0xff]  }
  0x4b   :  { %1882 = vmatpush1.bf16.msra.mxu0 %v2625_v3  ;;  %2054 = vmatpush1.bf16.msra.mxu1 %v2628_v4  ;;  %v2682_v3 = vld [vmem:[%s3816_s2 + $0x368] ss:$16 sps:$4 sm:$0xff]   ;;  %v2687_v4 = vld [vmem:[%s3816_s2 + $0x384] ss:$16 sps:$4 sm:$0xff]  }
  0x4c   :  { %1883 = vmatprep.subr.bf16.mxu0 %v2633_v5  ;;  %2055 = vmatprep.subr.bf16.mxu1 %v2636_v60  ;;  %v2690_v5 = vld [vmem:[%s3816_s2 + $0x38c] ss:$16 sps:$4 sm:$0xff]   ;;  %v2685_v60 = vld [vmem:[%s3816_s2 + $0x380] ss:$16 sps:$4 sm:$0xff]  }
  0x4f   :  { %1884 = vmatpush1.bf16.msra.mxu0 %v2631_v7  ;;  %2056 = vmatpush1.bf16.msra.mxu1 %v2634_v10  ;;  %v2696_v7 = vld [vmem:[%s3816_s2 + $0x3ac] ss:$16 sps:$4 sm:$0xff]   ;;  %v2691_v10 = vld [vmem:[%s3816_s2 + $0x3a0] ss:$16 sps:$4 sm:$0xff]  }
  0x50   :  { %1885 = vmatprep.subr.bf16.mxu0 %v2639_v11  ;;  %2057 = vmatprep.subr.bf16.mxu1 %v2642_v12  ;;  %v2694_v11 = vld [vmem:[%s3816_s2 + $0x3a8] ss:$16 sps:$4 sm:$0xff]   ;;  %v117_v12 = vpack.i.b16 %v71_v8, %v71_v8  ;;  %v2753_v8 = vld [vmem:[%s3816_s2 + $0x4e4] ss:$16 sps:$4 sm:$0xff]  }
  0x52   :  { %v122_v16 = vrot.slane %v117_v12, %v3078_v61  ;;  %v2759_v12 = vld [vmem:[%s3816_s2 + $0x504] ss:$16 sps:$4 sm:$0xff]  }
  0x53   :  { %1886 = vmatpush1.bf16.msra.mxu0 %v2637_v15  ;;  %2058 = vmatpush1.bf16.msra.mxu1 %v2640_v19  ;;  %v211_v15 = vshrl.u32 %v73_v9, 16  ;;  %v205_v19 = vpack.i.b16 %v204_v14, %v204_v14  ;;  %v2756_v9 = vld [vmem:[%s3816_s2 + $0x4ec] ss:$16 sps:$4 sm:$0xff]   ;;  %v2757_v14 = vld [vmem:[%s3816_s2 + $0x500] ss:$16 sps:$4 sm:$0xff]  }
  0x54   :  { %1887 = vmatprep.subr.bf16.mxu0 %v2645_v20  ;;  %2059 = vmatprep.subr.bf16.mxu1 %v2648_v21  ;;  %v2697_v21 = vld [vmem:[%s3816_s2 + $0x3c0] ss:$16 sps:$4 sm:$0xff]   ;;  %v3368_v24 = vcombine.low %v122_v16, %v129_v18  ;;  %v2766_v18 = vld [vmem:[%s3816_s2 + $0x528] ss:$16 sps:$4 sm:$0xff]  }
  0x55   :  { %v212_v20 = vpack.i.b16 %v211_v15, %v211_v15  ;;  %v2760_v15 = vld [vmem:[%s3816_s2 + $0x508] ss:$16 sps:$4 sm:$0xff]   ;;  %v2763_v16 = vld [vmem:[%s3816_s2 + $0x520] ss:$16 sps:$4 sm:$0xff]  }
  0x57   :  { %1888 = vmatpush1.bf16.msra.mxu0 %v2643_v25  ;;  %2060 = vmatpush1.bf16.msra.mxu1 %v2646_v27  ;;  %v210_v25 = vrot.slane %v205_v19, %v3078_v61  ;;  %v217_v26 = vrot.slane %v212_v20, %v3078_v61  ;;  %v2705_v27 = vld [vmem:[%s3816_s2 + $0x3e4] ss:$16 sps:$4 sm:$0xff]   ;;  %v2706_v61 = vld [vmem:[%s3816_s2 + $0x3e8] ss:$16 sps:$4 sm:$0xff]   ;;  %v2774_v20 = vld [vmem:[%s3816_s2 + $0x54c] ss:$16 sps:$4 sm:$0xff]  }
  0x58   :  { %1889 = vmatprep.subr.bf16.mxu0 %v2651_v28  ;;  %2061 = vmatprep.subr.bf16.mxu1 %v2654_v29  ;;  %v2708_v28 = vld [vmem:[%s3816_s2 + $0x3ec] ss:$16 sps:$4 sm:$0xff]   ;;  %v2771_v19 = vld [vmem:[%s3816_s2 + $0x544] ss:$16 sps:$4 sm:$0xff]  }
  0x59   :  { %v3378_v29 = vcombine.low %v210_v25, %v217_v26  ;;  %v2777_v25 = vld [vmem:[%s3816_s2 + $0x564] ss:$16 sps:$4 sm:$0xff]   ;;  %v2780_v26 = vld [vmem:[%s3816_s2 + $0x56c] ss:$16 sps:$4 sm:$0xff]  }
  0x5b   :  { %1890 = vmatpush1.bf16.msra.mxu0 %v2649_v33  ;;  %2062 = vmatpush1.bf16.msra.mxu1 %v2652_v36  ;;  %v2709_v33 = vld [vmem:[%s3816_s2 + $0x400] ss:$16 sps:$4 sm:$0xff]   ;;  %v2717_v36 = vld [vmem:[%s3816_s2 + $0x424] ss:$16 sps:$4 sm:$0xff]  }
  0x5c   :  { %1891 = vmatprep.subr.bf16.mxu0 %v2657_v37  ;;  %2063 = vmatprep.subr.bf16.mxu1 %v2660_v38  ;;  %v2720_v37 = vld [vmem:[%s3816_s2 + $0x42c] ss:$16 sps:$4 sm:$0xff]   ;;  %v18_v38 = vld [vmem:[%s3818_s0 + $0x10] sm:$0xff] }
  0x5d   :  { %v156_v40 = vmul.bf16 %v3151_v45, %v18_v38  ;;  %v248_v45 = vadd.bf16 %v3164_v52, %v160_v43  ;;  %v2790_v43 = vld [vmem:[%s3816_s2 + $0x5a8] ss:$16 sps:$4 sm:$0xff]  }
  0x5f   :  { %1892 = vmatpush1.bf16.msra.mxu0 %v2655_v41  ;;  %2064 = vmatpush1.bf16.msra.mxu1 %v2658_v46  ;;  %v2715_v41 = vld [vmem:[%s3816_s2 + $0x420] ss:$16 sps:$4 sm:$0xff]   ;;  %v2723_v46 = vld [vmem:[%s3816_s2 + $0x444] ss:$16 sps:$4 sm:$0xff]  }
  0x60   :  { %1893 = vmatprep.subr.bf16.mxu0 %v2663_v47  ;;  %2065 = vmatprep.subr.bf16.mxu1 %v2666_v48  ;;  %v244_v47 = vadd.bf16 %v3164_v52, %v156_v40  ;;  %v2726_v48 = vld [vmem:[%s3816_s2 + $0x44c] ss:$16 sps:$4 sm:$0xff]  }
  0x61   :  { %v2732_v52 = vld [vmem:[%s3816_s2 + $0x46c] ss:$16 sps:$4 sm:$0xff]  }
  0x62   :  { %v252_v49 = vmax.bf16 %v2902_v42, %v244_v47  ;;  %v2795_v47 = vld [vmem:[%s3816_s2 + $0x5c4] ss:$16 sps:$4 sm:$0xff]  }
  0x63   :  { %1894 = vmatpush1.bf16.msra.mxu0 %v2661_v50  ;;  %2066 = vmatpush1.bf16.msra.mxu1 %v2664_v51  ;;  %v2721_v50 = vld [vmem:[%s3816_s2 + $0x440] ss:$16 sps:$4 sm:$0xff]   ;;  %v256_v51 = vmax.bf16 %v2902_v42, %v248_v45  ;;  %v2796_v45 = vld [vmem:[%s3816_s2 + $0x5c8] ss:$16 sps:$4 sm:$0xff]  }
  0x64   :  { %1895 = vmatprep.subr.bf16.mxu0 %v2669_v53  ;;  %2067 = vmatprep.subr.bf16.mxu1 %v2672_v54  ;;  %v2724_v53 = vld [vmem:[%s3816_s2 + $0x448] ss:$16 sps:$4 sm:$0xff]   ;;  %v2729_v54 = vld [vmem:[%s3816_s2 + $0x464] ss:$16 sps:$4 sm:$0xff]  }
  0x67   :  { %1896 = vmatpush1.bf16.msra.mxu0 %v2667_v55  ;;  %2068 = vmatpush1.bf16.msra.mxu1 %v2670_v56  ;;  %v2223_v55 = vcombine.high %v252_v49, %v256_v51  ;;  %v3442_v56 = vcombine.low %v252_v49, %v256_v51  ;;  %v2801_v49 = vld [vmem:[%s3816_s2 + $0x5e4] ss:$16 sps:$4 sm:$0xff]   ;;  %v2799_v51 = vld [vmem:[%s3816_s2 + $0x5e0] ss:$16 sps:$4 sm:$0xff]  }
  0x68   :  { %1897 = vmatprep.subr.bf16.mxu0 %v2675_v57  ;;  %2069 = vmatprep.subr.bf16.mxu1 %v2678_v58  ;;  %v2727_v57 = vld [vmem:[%s3816_s2 + $0x460] ss:$16 sps:$4 sm:$0xff]   ;;  %v2730_v58 = vld [vmem:[%s3816_s2 + $0x468] ss:$16 sps:$4 sm:$0xff]  }
  0x6b   :  { %1898 = vmatpush1.bf16.msra.mxu0 %v2673_v59  ;;  %2070 = vmatpush1.bf16.msra.mxu1 %v2676_v62  ;;  %v2735_v59 = vld [vmem:[%s3816_s2 + $0x484] ss:$16 sps:$4 sm:$0xff]   ;;  %v2738_v62 = vld [vmem:[%s3816_s2 + $0x48c] ss:$16 sps:$4 sm:$0xff]  }
  0x6c   :  { %1899 = vmatprep.subr.bf16.mxu0 %v2681_v0  ;;  %2071 = vmatprep.subr.bf16.mxu1 %v2684_v1  ;;  %v2733_v0 = vld [vmem:[%s3816_s2 + $0x480] ss:$16 sps:$4 sm:$0xff]   ;;  %v2736_v1 = vld [vmem:[%s3816_s2 + $0x488] ss:$16 sps:$4 sm:$0xff]  }
  0x6f   :  { %1900 = vmatpush1.bf16.msra.mxu0 %v2679_v2  ;;  %2072 = vmatpush1.bf16.msra.mxu1 %v2682_v3  ;;  %v2741_v2 = vld [vmem:[%s3816_s2 + $0x4a4] ss:$16 sps:$4 sm:$0xff]   ;;  %v2744_v3 = vld [vmem:[%s3816_s2 + $0x4ac] ss:$16 sps:$4 sm:$0xff]  }
  0x70   :  { %1901 = vmatprep.subr.bf16.mxu0 %v2687_v4  ;;  %2073 = vmatprep.subr.bf16.mxu1 %v2690_v5  ;;  %v2739_v4 = vld [vmem:[%s3816_s2 + $0x4a0] ss:$16 sps:$4 sm:$0xff]   ;;  %v2742_v5 = vld [vmem:[%s3816_s2 + $0x4a8] ss:$16 sps:$4 sm:$0xff]  }
  0x73   :  { %1902 = vmatpush1.bf16.msra.mxu0 %v2685_v60  ;;  %2074 = vmatpush1.bf16.msra.mxu1 %v2688_v63  ;;  %v2747_v60 = vld [vmem:[%s3816_s2 + $0x4c4] ss:$16 sps:$4 sm:$0xff]   ;;  %v2750_v63 = vld [vmem:[%s3816_s2 + $0x4cc] ss:$16 sps:$4 sm:$0xff]  }
  0x74   :  { %1903 = vmatprep.subr.bf16.mxu0 %v2693_v6  ;;  %2075 = vmatprep.subr.bf16.mxu1 %v2696_v7  ;;  %v2745_v6 = vld [vmem:[%s3816_s2 + $0x4c0] ss:$16 sps:$4 sm:$0xff]   ;;  %v2748_v7 = vld [vmem:[%s3816_s2 + $0x4c8] ss:$16 sps:$4 sm:$0xff]  }
  0x77   :  { %1904 = vmatpush1.bf16.msra.mxu0 %v2691_v10  ;;  %2076 = vmatpush1.bf16.msra.mxu1 %v2694_v11  ;;  %v2751_v10 = vld [vmem:[%s3816_s2 + $0x4e0] ss:$16 sps:$4 sm:$0xff]   ;;  %v2754_v11 = vld [vmem:[%s3816_s2 + $0x4e8] ss:$16 sps:$4 sm:$0xff]  }
  0x78   :  { %1905 = vmatprep.subr.bf16.mxu0 %v2699_v17  ;;  %2077 = vmatprep.subr.bf16.mxu1 %v2702_v23  ;;  %v2765_v17 = vld [vmem:[%s3816_s2 + $0x524] ss:$16 sps:$4 sm:$0xff]   ;;  %v2768_v23 = vld [vmem:[%s3816_s2 + $0x52c] ss:$16 sps:$4 sm:$0xff]  }
  0x7b   :  { %1906 = vmatpush1.bf16.msra.mxu0 %v2697_v21  ;;  %2078 = vmatpush1.bf16.msra.mxu1 %v2700_v22  ;;  %v2769_v21 = vld [vmem:[%s3816_s2 + $0x540] ss:$16 sps:$4 sm:$0xff]   ;;  %v2772_v22 = vld [vmem:[%s3816_s2 + $0x548] ss:$16 sps:$4 sm:$0xff]  }
  0x7c   :  { %1907 = vmatprep.subr.bf16.mxu0 %v2705_v27  ;;  %2079 = vmatprep.subr.bf16.mxu1 %v2708_v28  ;;  %v2775_v27 = vld [vmem:[%s3816_s2 + $0x560] ss:$16 sps:$4 sm:$0xff]   ;;  %v2778_v28 = vld [vmem:[%s3816_s2 + $0x568] ss:$16 sps:$4 sm:$0xff]  }
  0x7f   :  { %1908 = vmatpush1.bf16.msra.mxu0 %v2703_v30  ;;  %2080 = vmatpush1.bf16.msra.mxu1 %v2706_v61  ;;  %v2783_v30 = vld [vmem:[%s3816_s2 + $0x584] ss:$16 sps:$4 sm:$0xff]   ;;  %v2786_v61 = vld [vmem:[%s3816_s2 + $0x58c] ss:$16 sps:$4 sm:$0xff]  }
  0x80   :  { %1920 = vmatprep.subr.bf16.mxu0 %v2711_v31  ;;  %2092 = vmatprep.subr.bf16.mxu1 %v2714_v32  ;;  %v19_v31 = vld [vmem:[%s3818_s0 + $0x18] sm:$0xff] }
  0x81   :  { %v23_v32 = vld [vmem:[%s3818_s0 + $0x38] sm:$0xff] }
  0x82   :  { %1910 = vmatmul.mubr.bf16.vlgmr.msra.gmra.mrb[0].mxu0 %v2220_v34  ;;  %2082 = vmatmul.mubr.bf16.vlgmr.msra.gmra.mrb[0].mxu1 %v2220_v34  ;;  %v161_v34 = vmul.bf16 %v3368_v24, %v23_v32  ;;  %v2870_v32 = vld [vmem:[%s3816_s2 + $0x74c] ss:$16 sps:$4 sm:$0xff]  }
  0x83   :  { %1921 = vmatpush1.bf16.msra.mxu0 %v2709_v33  ;;  %2093 = vmatpush1.bf16.msra.mxu1 %v2712_v35  ;;  %v157_v33 = vmul.bf16 %v3368_v24, %v19_v31  ;;  %v2781_v35 = vld [vmem:[%s3816_s2 + $0x580] ss:$16 sps:$4 sm:$0xff]   ;;  %v2789_v24 = vld [vmem:[%s3816_s2 + $0x5a4] ss:$16 sps:$4 sm:$0xff]  }
  0x84   :  { %1922 = vmatprep.subr.bf16.mxu0 %v2717_v36  ;;  %2094 = vmatprep.subr.bf16.mxu1 %v2720_v37  ;;  %v2784_v36 = vld [vmem:[%s3816_s2 + $0x588] ss:$16 sps:$4 sm:$0xff]   ;;  %v249_v38 = vadd.bf16 %v3378_v29, %v161_v34  ;;  %v2867_v31 = vld [vmem:[%s3816_s2 + $0x744] ss:$16 sps:$4 sm:$0xff]  }
  0x85   :  { %1952 = vmatprep.mubr.bf16.mxu0 %v2223_v55  ;;  %2124 = vmatprep.mubr.bf16.mxu1 %v2223_v55  ;;  %v245_v37 = vadd.bf16 %v3378_v29, %v157_v33  ;;  %v2787_v29 = vld [vmem:[%s3816_s2 + $0x5a0] ss:$16 sps:$4 sm:$0xff]   ;;  %v2868_v34 = vld [vmem:[%s3816_s2 + $0x748] ss:$16 sps:$4 sm:$0xff]  }
  0x86   :  { %v2805_v55 = vld [vmem:[%s3816_s2 + $0x600] ss:$16 sps:$4 sm:$0xff]  }
  0x87   :  { %1923 = vmatpush1.bf16.msra.mxu0 %v2715_v41  ;;  %2095 = vmatpush1.bf16.msra.mxu1 %v2718_v44  ;;  %v253_v40 = vmax.bf16 %v2902_v42, %v245_v37  ;;  %v257_v41 = vmax.bf16 %v2902_v42, %v249_v38  ;;  %v2798_v42 = vld [vmem:[%s3816_s2 + $0x5cc] ss:$16 sps:$4 sm:$0xff]   ;;  %v2865_v33 = vld [vmem:[%s3816_s2 + $0x740] ss:$16 sps:$4 sm:$0xff]   ;;  %v2874_v38 = vld [vmem:[%s3816_s2 + $0x768] ss:$16 sps:$4 sm:$0xff]  }
  0x88   :  { %1924 = vmatprep.subr.bf16.mxu0 %v2723_v46  ;;  %2096 = vmatprep.subr.bf16.mxu1 %v2726_v48  ;;  %v2793_v48 = vld [vmem:[%s3816_s2 + $0x5c0] ss:$16 sps:$4 sm:$0xff]  }
  0x89   :  { %v2225_v44 = vcombine.high %v253_v40, %v257_v41  ;;  %v3582_v46 = vcombine.low %v253_v40, %v257_v41  ;;  %v2871_v37 = vld [vmem:[%s3816_s2 + $0x760] ss:$16 sps:$4 sm:$0xff]   ;;  %v2880_v41 = vld [vmem:[%s3816_s2 + $0x788] ss:$16 sps:$4 sm:$0xff]  }
  0x8a   :  { %v2877_v40 = vld [vmem:[%s3816_s2 + $0x780] ss:$16 sps:$4 sm:$0xff]  }
  0x8b   :  { %1925 = vmatpush1.bf16.msra.mxu0 %v2721_v50  ;;  %2097 = vmatpush1.bf16.msra.mxu1 %v2724_v53  ;;  %v2804_v50 = vld [vmem:[%s3816_s2 + $0x5ec] ss:$16 sps:$4 sm:$0xff]   ;;  %v2802_v53 = vld [vmem:[%s3816_s2 + $0x5e8] ss:$16 sps:$4 sm:$0xff]  }
  0x8c   :  { %1926 = vmatprep.subr.bf16.mxu0 %v2729_v54  ;;  %2098 = vmatprep.subr.bf16.mxu1 %v2732_v52  ;;  %v2807_v54 = vld [vmem:[%s3816_s2 + $0x604] ss:$16 sps:$4 sm:$0xff]   ;;  %v2810_v52 = vld [vmem:[%s3816_s2 + $0x60c] ss:$16 sps:$4 sm:$0xff]  }
  0x8f   :  { %1927 = vmatpush1.bf16.msra.mxu0 %v2727_v57  ;;  %2099 = vmatpush1.bf16.msra.mxu1 %v2730_v58  ;;  %v2808_v57 = vld [vmem:[%s3816_s2 + $0x608] ss:$16 sps:$4 sm:$0xff]   ;;  %v2813_v58 = vld [vmem:[%s3816_s2 + $0x624] ss:$16 sps:$4 sm:$0xff]  }
  0x90   :  { %1928 = vmatprep.subr.bf16.mxu0 %v2735_v59  ;;  %2100 = vmatprep.subr.bf16.mxu1 %v2738_v62  ;;  %v2816_v59 = vld [vmem:[%s3816_s2 + $0x62c] ss:$16 sps:$4 sm:$0xff]   ;;  %v2811_v62 = vld [vmem:[%s3816_s2 + $0x620] ss:$16 sps:$4 sm:$0xff]  }
  0x93   :  { %1929 = vmatpush1.bf16.msra.mxu0 %v2733_v0  ;;  %2101 = vmatpush1.bf16.msra.mxu1 %v2736_v1  ;;  %v2814_v0 = vld [vmem:[%s3816_s2 + $0x628] ss:$16 sps:$4 sm:$0xff]   ;;  %v2819_v1 = vld [vmem:[%s3816_s2 + $0x644] ss:$16 sps:$4 sm:$0xff]  }
  0x94   :  { %1930 = vmatprep.subr.bf16.mxu0 %v2741_v2  ;;  %2102 = vmatprep.subr.bf16.mxu1 %v2744_v3  ;;  %v2817_v2 = vld [vmem:[%s3816_s2 + $0x640] ss:$16 sps:$4 sm:$0xff]   ;;  %v2820_v3 = vld [vmem:[%s3816_s2 + $0x648] ss:$16 sps:$4 sm:$0xff]  }
  0x97   :  { %1931 = vmatpush1.bf16.msra.mxu0 %v2739_v4  ;;  %2103 = vmatpush1.bf16.msra.mxu1 %v2742_v5  ;;  %v2825_v4 = vld [vmem:[%s3816_s2 + $0x664] ss:$16 sps:$4 sm:$0xff]   ;;  %v2828_v5 = vld [vmem:[%s3816_s2 + $0x66c] ss:$16 sps:$4 sm:$0xff]  }
  0x98   :  { %1932 = vmatprep.subr.bf16.mxu0 %v2747_v60  ;;  %2104 = vmatprep.subr.bf16.mxu1 %v2750_v63  ;;  %v2823_v60 = vld [vmem:[%s3816_s2 + $0x660] ss:$16 sps:$4 sm:$0xff]   ;;  %v2826_v63 = vld [vmem:[%s3816_s2 + $0x668] ss:$16 sps:$4 sm:$0xff]  }
  0x9b   :  { %1933 = vmatpush1.bf16.msra.mxu0 %v2745_v6  ;;  %2105 = vmatpush1.bf16.msra.mxu1 %v2748_v7  ;;  %v2831_v6 = vld [vmem:[%s3816_s2 + $0x684] ss:$16 sps:$4 sm:$0xff]   ;;  %v2834_v7 = vld [vmem:[%s3816_s2 + $0x68c] ss:$16 sps:$4 sm:$0xff]  }
  0x9c   :  { %1934 = vmatprep.subr.bf16.mxu0 %v2753_v8  ;;  %2106 = vmatprep.subr.bf16.mxu1 %v2756_v9  ;;  %v2829_v8 = vld [vmem:[%s3816_s2 + $0x680] ss:$16 sps:$4 sm:$0xff]   ;;  %v2832_v9 = vld [vmem:[%s3816_s2 + $0x688] ss:$16 sps:$4 sm:$0xff]  }
  0x9f   :  { %1935 = vmatpush1.bf16.msra.mxu0 %v2751_v10  ;;  %2107 = vmatpush1.bf16.msra.mxu1 %v2754_v11  ;;  %v2837_v10 = vld [vmem:[%s3816_s2 + $0x6a4] ss:$16 sps:$4 sm:$0xff]   ;;  %v2840_v11 = vld [vmem:[%s3816_s2 + $0x6ac] ss:$16 sps:$4 sm:$0xff]  }
  0xa0   :  { %1936 = vmatprep.subr.bf16.mxu0 %v2759_v12  ;;  %2108 = vmatprep.subr.bf16.mxu1 %v2762_v13  ;;  %v2835_v12 = vld [vmem:[%s3816_s2 + $0x6a0] ss:$16 sps:$4 sm:$0xff]   ;;  %v2838_v13 = vld [vmem:[%s3816_s2 + $0x6a8] ss:$16 sps:$4 sm:$0xff]  }
  0xa3   :  { %1937 = vmatpush1.bf16.msra.mxu0 %v2757_v14  ;;  %2109 = vmatpush1.bf16.msra.mxu1 %v2760_v15  ;;  %v2843_v14 = vld [vmem:[%s3816_s2 + $0x6c4] ss:$16 sps:$4 sm:$0xff]   ;;  %v2846_v15 = vld [vmem:[%s3816_s2 + $0x6cc] ss:$16 sps:$4 sm:$0xff]  }
  0xa4   :  { %1938 = vmatprep.subr.bf16.mxu0 %v2765_v17  ;;  %2110 = vmatprep.subr.bf16.mxu1 %v2768_v23  ;;  %v2841_v17 = vld [vmem:[%s3816_s2 + $0x6c0] ss:$16 sps:$4 sm:$0xff]   ;;  %v2844_v23 = vld [vmem:[%s3816_s2 + $0x6c8] ss:$16 sps:$4 sm:$0xff]  }
  0xa7   :  { %1939 = vmatpush1.bf16.msra.mxu0 %v2763_v16  ;;  %2111 = vmatpush1.bf16.msra.mxu1 %v2766_v18  ;;  %v2849_v16 = vld [vmem:[%s3816_s2 + $0x6e4] ss:$16 sps:$4 sm:$0xff]   ;;  %v2852_v18 = vld [vmem:[%s3816_s2 + $0x6ec] ss:$16 sps:$4 sm:$0xff]  }
  0xa8   :  { %1940 = vmatprep.subr.bf16.mxu0 %v2771_v19  ;;  %2112 = vmatprep.subr.bf16.mxu1 %v2774_v20  ;;  %v2847_v19 = vld [vmem:[%s3816_s2 + $0x6e0] ss:$16 sps:$4 sm:$0xff]   ;;  %v2850_v20 = vld [vmem:[%s3816_s2 + $0x6e8] ss:$16 sps:$4 sm:$0xff]  }
  0xab   :  { %1941 = vmatpush1.bf16.msra.mxu0 %v2769_v21  ;;  %2113 = vmatpush1.bf16.msra.mxu1 %v2772_v22  ;;  %v2855_v21 = vld [vmem:[%s3816_s2 + $0x704] ss:$16 sps:$4 sm:$0xff]   ;;  %v2858_v22 = vld [vmem:[%s3816_s2 + $0x70c] ss:$16 sps:$4 sm:$0xff]  }
  0xac   :  { %1942 = vmatprep.subr.bf16.mxu0 %v2777_v25  ;;  %2114 = vmatprep.subr.bf16.mxu1 %v2780_v26  ;;  %v2853_v25 = vld [vmem:[%s3816_s2 + $0x700] ss:$16 sps:$4 sm:$0xff]   ;;  %v2856_v26 = vld [vmem:[%s3816_s2 + $0x708] ss:$16 sps:$4 sm:$0xff]  }
  0xaf   :  { %1943 = vmatpush1.bf16.msra.mxu0 %v2775_v27  ;;  %2115 = vmatpush1.bf16.msra.mxu1 %v2778_v28  ;;  %v2861_v27 = vld [vmem:[%s3816_s2 + $0x724] ss:$16 sps:$4 sm:$0xff]   ;;  %v2864_v28 = vld [vmem:[%s3816_s2 + $0x72c] ss:$16 sps:$4 sm:$0xff]  }
  0xb0   :  { %1944 = vmatprep.subr.bf16.mxu0 %v2783_v30  ;;  %2116 = vmatprep.subr.bf16.mxu1 %v2786_v61  ;;  %v2859_v30 = vld [vmem:[%s3816_s2 + $0x720] ss:$16 sps:$4 sm:$0xff]   ;;  %v2862_v61 = vld [vmem:[%s3816_s2 + $0x728] ss:$16 sps:$4 sm:$0xff]  }
  0xb3   :  { %1945 = vmatpush1.bf16.msra.mxu0 %v2781_v35  ;;  %2117 = vmatpush1.bf16.msra.mxu1 %v2784_v36  ;;  %v2873_v35 = vld [vmem:[%s3816_s2 + $0x764] ss:$16 sps:$4 sm:$0xff]   ;;  %v2876_v36 = vld [vmem:[%s3816_s2 + $0x76c] ss:$16 sps:$4 sm:$0xff]  }
  0xb4   :  { %1946 = vmatprep.subr.bf16.mxu0 %v2789_v24  ;;  %2118 = vmatprep.subr.bf16.mxu1 %v2792_v39  ;;  %v2879_v24 = vld [vmem:[%s3816_s2 + $0x784] ss:$16 sps:$4 sm:$0xff]   ;;  %v2882_v39 = vld [vmem:[%s3816_s2 + $0x78c] ss:$16 sps:$4 sm:$0xff]  }
  0xb7   :  { %1947 = vmatpush1.bf16.msra.mxu0 %v2787_v29  ;;  %2119 = vmatpush1.bf16.msra.mxu1 %v2790_v43  ;;  %v2885_v29 = vld [vmem:[%s3816_s2 + $0x7a4] ss:$16 sps:$4 sm:$0xff]   ;;  %v2888_v43 = vld [vmem:[%s3816_s2 + $0x7ac] ss:$16 sps:$4 sm:$0xff]  }
  0xb8   :  { %1948 = vmatprep.subr.bf16.mxu0 %v2795_v47  ;;  %2120 = vmatprep.subr.bf16.mxu1 %v2798_v42  ;;  %v2886_v47 = vld [vmem:[%s3816_s2 + $0x7a8] ss:$16 sps:$4 sm:$0xff]   ;;  %v2891_v42 = vld [vmem:[%s3816_s2 + $0x7c4] ss:$16 sps:$4 sm:$0xff]  }
  0xbb   :  { %1949 = vmatpush1.bf16.msra.mxu0 %v2793_v48  ;;  %2121 = vmatpush1.bf16.msra.mxu1 %v2796_v45  ;;  %v2894_v48 = vld [vmem:[%s3816_s2 + $0x7cc] ss:$16 sps:$4 sm:$0xff]   ;;  %v2889_v45 = vld [vmem:[%s3816_s2 + $0x7c0] ss:$16 sps:$4 sm:$0xff]  }
  0xbc   :  { %1950 = vmatprep.subr.bf16.mxu0 %v2801_v49  ;;  %2122 = vmatprep.subr.bf16.mxu1 %v2804_v50  ;;  %v2892_v49 = vld [vmem:[%s3816_s2 + $0x7c8] ss:$16 sps:$4 sm:$0xff]   ;;  %v2897_v50 = vld [vmem:[%s3816_s2 + $0x7e4] ss:$16 sps:$4 sm:$0xff]  }
  0xbf   :  { %1951 = vmatpush1.bf16.msra.mxu0 %v2799_v51  ;;  %2123 = vmatpush1.bf16.msra.mxu1 %v2802_v53  ;;  %v2900_v51 = vld [vmem:[%s3816_s2 + $0x7ec] ss:$16 sps:$4 sm:$0xff]   ;;  %v2895_v53 = vld [vmem:[%s3816_s2 + $0x7e0] ss:$16 sps:$4 sm:$0xff]  }
  0xc0   :  { %1963 = vmatprep.subr.bf16.mxu0 %v2807_v54  ;;  %2135 = vmatprep.subr.bf16.mxu1 %v2810_v52  ;;  %v2898_v54 = vld [vmem:[%s3816_s2 + $0x7e8] ss:$16 sps:$4 sm:$0xff]  }
  0xc2   :  { %1953 = vmatmul.mubr.bf16.vlgmr.msra.gmra.mrb[0].mxu0 %v3442_v56  ;;  %2125 = vmatmul.mubr.bf16.vlgmr.msra.gmra.mrb[0].mxu1 %v3442_v56  ;;  %v2822_v56 = vld [vmem:[%s3816_s2 + $0x64c] ss:$16 sps:$4 sm:$0xff]  }
  0xc3   :  { %1964 = vmatpush1.bf16.msra.mxu0 %v2805_v55  ;;  %2136 = vmatpush1.bf16.msra.mxu1 %v2808_v57 }
  0xc4   :  { %1965 = vmatprep.subr.bf16.mxu0 %v2813_v58  ;;  %2137 = vmatprep.subr.bf16.mxu1 %v2816_v59 }
  0xc5   :  { %1995 = vmatprep.mubr.bf16.mxu0 %v2225_v44  ;;  %2167 = vmatprep.mubr.bf16.mxu1 %v2225_v44  ;;  %v2883_v44 = vld [vmem:[%s3816_s2 + $0x7a0] ss:$16 sps:$4 sm:$0xff]  }
  0xc7   :  { %1966 = vmatpush1.bf16.msra.mxu0 %v2811_v62  ;;  %2138 = vmatpush1.bf16.msra.mxu1 %v2814_v0 }
  0xc8   :  { %1967 = vmatprep.subr.bf16.mxu0 %v2819_v1  ;;  %2139 = vmatprep.subr.bf16.mxu1 %v2822_v56 }
  0xcb   :  { %1968 = vmatpush1.bf16.msra.mxu0 %v2817_v2  ;;  %2140 = vmatpush1.bf16.msra.mxu1 %v2820_v3 }
  0xcc   :  { %1969 = vmatprep.subr.bf16.mxu0 %v2825_v4  ;;  %2141 = vmatprep.subr.bf16.mxu1 %v2828_v5 }
  0xcf   :  { %1970 = vmatpush1.bf16.msra.mxu0 %v2823_v60  ;;  %2142 = vmatpush1.bf16.msra.mxu1 %v2826_v63 }
  0xd0   :  { %1971 = vmatprep.subr.bf16.mxu0 %v2831_v6  ;;  %2143 = vmatprep.subr.bf16.mxu1 %v2834_v7 }
  0xd3   :  { %1972 = vmatpush1.bf16.msra.mxu0 %v2829_v8  ;;  %2144 = vmatpush1.bf16.msra.mxu1 %v2832_v9 }
  0xd4   :  { %1973 = vmatprep.subr.bf16.mxu0 %v2837_v10  ;;  %2145 = vmatprep.subr.bf16.mxu1 %v2840_v11 }
  0xd7   :  { %1974 = vmatpush1.bf16.msra.mxu0 %v2835_v12  ;;  %2146 = vmatpush1.bf16.msra.mxu1 %v2838_v13 }
  0xd8   :  { %1975 = vmatprep.subr.bf16.mxu0 %v2843_v14  ;;  %2147 = vmatprep.subr.bf16.mxu1 %v2846_v15 }
  0xdb   :  { %1976 = vmatpush1.bf16.msra.mxu0 %v2841_v17  ;;  %2148 = vmatpush1.bf16.msra.mxu1 %v2844_v23 }
  0xdc   :  { %1977 = vmatprep.subr.bf16.mxu0 %v2849_v16  ;;  %2149 = vmatprep.subr.bf16.mxu1 %v2852_v18 }
  0xdf   :  { %1978 = vmatpush1.bf16.msra.mxu0 %v2847_v19  ;;  %2150 = vmatpush1.bf16.msra.mxu1 %v2850_v20 }
  0xe0   :  { %1979 = vmatprep.subr.bf16.mxu0 %v2855_v21  ;;  %2151 = vmatprep.subr.bf16.mxu1 %v2858_v22 }
  0xe3   :  { %1980 = vmatpush1.bf16.msra.mxu0 %v2853_v25  ;;  %2152 = vmatpush1.bf16.msra.mxu1 %v2856_v26 }
  0xe4   :  { %1981 = vmatprep.subr.bf16.mxu0 %v2861_v27  ;;  %2153 = vmatprep.subr.bf16.mxu1 %v2864_v28 }
  0xe7   :  { %1982 = vmatpush1.bf16.msra.mxu0 %v2859_v30  ;;  %2154 = vmatpush1.bf16.msra.mxu1 %v2862_v61 }
  0xe8   :  { %1983 = vmatprep.subr.bf16.mxu0 %v2867_v31  ;;  %2155 = vmatprep.subr.bf16.mxu1 %v2870_v32 }
  0xeb   :  { %1984 = vmatpush1.bf16.msra.mxu0 %v2865_v33  ;;  %2156 = vmatpush1.bf16.msra.mxu1 %v2868_v34 }
  0xec   :  { %1985 = vmatprep.subr.bf16.mxu0 %v2873_v35  ;;  %2157 = vmatprep.subr.bf16.mxu1 %v2876_v36 }
  0xef   :  { %1986 = vmatpush1.bf16.msra.mxu0 %v2871_v37  ;;  %2158 = vmatpush1.bf16.msra.mxu1 %v2874_v38 }
  0xf0   :  { %1987 = vmatprep.subr.bf16.mxu0 %v2879_v24  ;;  %2159 = vmatprep.subr.bf16.mxu1 %v2882_v39 }
  0xf3   :  { %1988 = vmatpush1.bf16.msra.mxu0 %v2877_v40  ;;  %2160 = vmatpush1.bf16.msra.mxu1 %v2880_v41 }
  0xf4   :  { %1989 = vmatprep.subr.bf16.mxu0 %v2885_v29  ;;  %2161 = vmatprep.subr.bf16.mxu1 %v2888_v43 }
  0xf7   :  { %1990 = vmatpush1.bf16.msra.mxu0 %v2883_v44  ;;  %2162 = vmatpush1.bf16.msra.mxu1 %v2886_v47 }
  0xf8   :  { %1991 = vmatprep.subr.bf16.mxu0 %v2891_v42  ;;  %2163 = vmatprep.subr.bf16.mxu1 %v2894_v48 }
  0xfb   :  { %1992 = vmatpush1.bf16.msra.mxu0 %v2889_v45  ;;  %2164 = vmatpush1.bf16.msra.mxu1 %v2892_v49 }
  0xfc   :  { %1993 = vmatprep.subr.bf16.mxu0 %v2897_v50  ;;  %2165 = vmatprep.subr.bf16.mxu1 %v2900_v51 }
  0xff   :  { %1994 = vmatpush1.bf16.msra.mxu0 %v2895_v53  ;;  %2166 = vmatpush1.bf16.msra.mxu1 %v2898_v54 }
 0x102   :  { %1996 = vmatmul.mubr.bf16.vlgmr.msra.gmra.mrb[0].mxu0 %v3582_v46  ;;  %2168 = vmatmul.mubr.bf16.vlgmr.msra.gmra.mrb[0].mxu1 %v3582_v46 }
 0x1d5   :  { %v1997_v52 = vpop.f32.mrb[0].mxu0  ;;  %v2169_v55 = vpop.f32.mrb[0].mxu1 }
 0x1d6   :  { %v1999_v57 = vpop.f32.mrb[1].mxu0  ;;  %v2171_v58 = vpop.f32.mrb[1].mxu1 }
 0x1d7   :  { %v2486_v59 = vpack.c.bf16 %v1999_v57, %v1997_v52  ;;  %v2487_v62 = vpack.c.bf16 %v2171_v58, %v2169_v55  ;;  %v2001_v0 = vpop.f32.mrb[2].mxu0  ;;  %v2173_v1 = vpop.f32.mrb[2].mxu1 }
 0x1d8   :  { %v2003_v56 = vpop.f32.mrb[3].mxu0  ;;  %v2175_v2 = vpop.f32.mrb[3].mxu1 }
 0x1d9   :  { %2202 = vst [vmem:[%s3819_s3] sm:$0xff] %v2486_v59  ;;  %2203 = vst [vmem:[%s3819_s3 + $0x8] sm:$0xff] %v2487_v62  ;;  %v2488_v3 = vpack.c.bf16 %v2003_v56, %v2001_v0  ;;  %v2489_v46 = vpack.c.bf16 %v2175_v2, %v2173_v1 }
 0x1db   :  { %2204 = vst [vmem:[%s3819_s3 + $0x10] sm:$0xff] %v2488_v3  ;;  %2205 = vst [vmem:[%s3819_s3 + $0x18] sm:$0xff] %v2489_v46 }

// kernel: densenet121_forward.241
= control target key start
LH: loop header
LB: loop body
LE: loop exit
PB: predicated region body
PF: predicated region fallthrough
CT: control target
= control target key end

     0   :  { %s6199_s1 = inlined_call_operand.vmem [shape: bf16[1024,1024], index: 1, kind: input, shape index: {}]   ;;  %s6200_s0 = inlined_call_operand.vmem [shape: bf16[16,1024], index: 0, kind: input, shape index: {}]   ;;  %s6201_s2 = inlined_call_operand.vmem [shape: f32[1,1024], index: 2, kind: input, shape index: {}]   ;;  %s6202_s3 = inlined_call_operand.vmem [shape: f32[16,1024], index: 3, kind: output, shape index: {}]  }
   0x1   :  { %v22_v0 = vld [vmem:[%s6199_s1] sm:$0xff]  ;;  %v23_v2 = vld [vmem:[%s6199_s1 + $0x8] sm:$0xff] }
   0x2   :  { %v26_v1 = vld [vmem:[%s6199_s1 + $0x20] sm:$0xff]  ;;  %v27_v4 = vld [vmem:[%s6199_s1 + $0x28] sm:$0xff] }
   0x3   :  { %v3893_v3 = vcombine.high %v22_v0, %v26_v1  ;;  %v3892_v5 = vcombine.low %v22_v0, %v26_v1  ;;  %v30_v6 = vld [vmem:[%s6199_s1 + $0x40] sm:$0xff]  ;;  %v3895_v8 = vcombine.high %v23_v2, %v27_v4  ;;  %v3894_v9 = vcombine.low %v23_v2, %v27_v4  ;;  %v31_v11 = vld [vmem:[%s6199_s1 + $0x48] sm:$0xff] }
   0x4   :  { %v34_v7 = vld [vmem:[%s6199_s1 + $0x60] sm:$0xff]  ;;  %v35_v12 = vld [vmem:[%s6199_s1 + $0x68] sm:$0xff] }
   0x5   :  { %v3901_v10 = vcombine.high %v30_v6, %v34_v7  ;;  %v38_v13 = vld [vmem:[%s6199_s1 + $0x80] sm:$0xff]  ;;  %3176 = vmatprep.subr.bf16.mxu0 %v3893_v3  ;;  %v3903_v14 = vcombine.high %v31_v11, %v35_v12  ;;  %v39_v16 = vld [vmem:[%s6199_s1 + $0x88] sm:$0xff]  ;;  %3348 = vmatprep.subr.bf16.mxu1 %v3895_v8  ;;  %v3900_v18 = vcombine.low %v30_v6, %v34_v7 }
   0x6   :  { %v42_v15 = vld [vmem:[%s6199_s1 + $0xa0] sm:$0xff]  ;;  %v43_v17 = vld [vmem:[%s6199_s1 + $0xa8] sm:$0xff]  ;;  %3177 = vmatpush1.bf16.msra.mxu0 %v3892_v5  ;;  %3349 = vmatpush1.bf16.msra.mxu1 %v3894_v9  ;;  %v3902_v19 = vcombine.low %v31_v11, %v35_v12 }
   0x7   :  { %3178 = vmatprep.subr.bf16.mxu0 %v3901_v10  ;;  %v3909_v20 = vcombine.high %v38_v13, %v42_v15  ;;  %3350 = vmatprep.subr.bf16.mxu1 %v3903_v14  ;;  %v3911_v21 = vcombine.high %v39_v16, %v43_v17  ;;  %v46_v22 = vld [vmem:[%s6199_s1 + $0xc0] sm:$0xff]  ;;  %v47_v24 = vld [vmem:[%s6199_s1 + $0xc8] sm:$0xff]  ;;  %v3908_v26 = vcombine.low %v38_v13, %v42_v15 }
   0x8   :  { %v50_v23 = vld [vmem:[%s6199_s1 + $0xe0] sm:$0xff]  ;;  %v51_v25 = vld [vmem:[%s6199_s1 + $0xe8] sm:$0xff]  ;;  %v3910_v27 = vcombine.low %v39_v16, %v43_v17 }
   0x9   :  { %v3917_v28 = vcombine.high %v46_v22, %v50_v23  ;;  %v3919_v29 = vcombine.high %v47_v24, %v51_v25  ;;  %v54_v30 = vld [vmem:[%s6199_s1 + $0x100] sm:$0xff]  ;;  %v55_v32 = vld [vmem:[%s6199_s1 + $0x108] sm:$0xff]  ;;  %v3916_v34 = vcombine.low %v46_v22, %v50_v23  ;;  %v3918_v35 = vcombine.low %v47_v24, %v51_v25 }
   0xa   :  { %3179 = vmatpush1.bf16.msra.mxu0 %v3900_v18  ;;  %3351 = vmatpush1.bf16.msra.mxu1 %v3902_v19  ;;  %v58_v31 = vld [vmem:[%s6199_s1 + $0x120] sm:$0xff]  ;;  %v59_v33 = vld [vmem:[%s6199_s1 + $0x128] sm:$0xff] }
   0xb   :  { %3180 = vmatprep.subr.bf16.mxu0 %v3909_v20  ;;  %3352 = vmatprep.subr.bf16.mxu1 %v3911_v21  ;;  %v3925_v36 = vcombine.high %v54_v30, %v58_v31  ;;  %v3927_v37 = vcombine.high %v55_v32, %v59_v33  ;;  %v62_v38 = vld [vmem:[%s6199_s1 + $0x140] sm:$0xff]  ;;  %v63_v40 = vld [vmem:[%s6199_s1 + $0x148] sm:$0xff]  ;;  %v3924_v42 = vcombine.low %v54_v30, %v58_v31 }
   0xc   :  { %v66_v39 = vld [vmem:[%s6199_s1 + $0x160] sm:$0xff]  ;;  %v67_v41 = vld [vmem:[%s6199_s1 + $0x168] sm:$0xff]  ;;  %v3926_v43 = vcombine.low %v55_v32, %v59_v33 }
   0xd   :  { %v3933_v44 = vcombine.high %v62_v38, %v66_v39  ;;  %v3935_v45 = vcombine.high %v63_v40, %v67_v41  ;;  %v70_v46 = vld [vmem:[%s6199_s1 + $0x180] sm:$0xff]  ;;  %v71_v48 = vld [vmem:[%s6199_s1 + $0x188] sm:$0xff]  ;;  %v3932_v50 = vcombine.low %v62_v38, %v66_v39  ;;  %v3934_v51 = vcombine.low %v63_v40, %v67_v41 }
   0xe   :  { %3181 = vmatpush1.bf16.msra.mxu0 %v3908_v26  ;;  %3353 = vmatpush1.bf16.msra.mxu1 %v3910_v27  ;;  %v74_v47 = vld [vmem:[%s6199_s1 + $0x1a0] sm:$0xff]  ;;  %v75_v49 = vld [vmem:[%s6199_s1 + $0x1a8] sm:$0xff] }
   0xf   :  { %3182 = vmatprep.subr.bf16.mxu0 %v3917_v28  ;;  %3354 = vmatprep.subr.bf16.mxu1 %v3919_v29  ;;  %v3941_v52 = vcombine.high %v70_v46, %v74_v47  ;;  %v4575_v53 = vld [vmem:[%s6200_s0] sm:$0xff]  ;;  %v3943_v55 = vcombine.high %v71_v48, %v75_v49  ;;  %v79_v59 = vld [vmem:[%s6199_s1 + $0x1c8] sm:$0xff]  ;;  %v3940_v61 = vcombine.low %v70_v46, %v74_v47 }
  0x10   :  { %v4580_v54 = vld [vmem:[%s6200_s0 + $0x20] sm:$0xff]  ;;  %v83_v60 = vld [vmem:[%s6199_s1 + $0x1e8] sm:$0xff]  ;;  %v3942_v62 = vcombine.low %v71_v48, %v75_v49 }
  0x11   :  { %v78_v56 = vld [vmem:[%s6199_s1 + $0x1c0] sm:$0xff]  ;;  %v4590_v58 = vcombine.high %v4575_v53, %v4580_v54  ;;  %v3951_v0 = vcombine.high %v79_v59, %v83_v60  ;;  %v87_v3 = vld [vmem:[%s6199_s1 + $0x208] sm:$0xff]  ;;  %v3950_v6 = vcombine.low %v79_v59, %v83_v60 }
  0x12   :  { %3183 = vmatpush1.bf16.msra.mxu0 %v3916_v34  ;;  %3355 = vmatpush1.bf16.msra.mxu1 %v3918_v35  ;;  %v82_v57 = vld [vmem:[%s6199_s1 + $0x1e0] sm:$0xff]  ;;  %v91_v4 = vld [vmem:[%s6199_s1 + $0x228] sm:$0xff] }
  0x13   :  { %3184 = vmatprep.subr.bf16.mxu0 %v3925_v36  ;;  %3356 = vmatprep.subr.bf16.mxu1 %v3927_v37  ;;  %v3949_v63 = vcombine.high %v78_v56, %v82_v57  ;;  %v86_v1 = vld [vmem:[%s6199_s1 + $0x200] sm:$0xff]  ;;  %v3948_v5 = vcombine.low %v78_v56, %v82_v57  ;;  %v3959_v8 = vcombine.high %v87_v3, %v91_v4  ;;  %v95_v11 = vld [vmem:[%s6199_s1 + $0x248] sm:$0xff] }
  0x14   :  { %3208 = vmatprep.mubr.bf16.mxu0 %v4590_v58  ;;  %v90_v2 = vld [vmem:[%s6199_s1 + $0x220] sm:$0xff]  ;;  %3380 = vmatprep.mubr.bf16.mxu1 %v4590_v58  ;;  %v99_v12 = vld [vmem:[%s6199_s1 + $0x268] sm:$0xff]  ;;  %v3958_v14 = vcombine.low %v87_v3, %v91_v4 }
  0x15   :  { %v3957_v7 = vcombine.high %v86_v1, %v90_v2  ;;  %v94_v9 = vld [vmem:[%s6199_s1 + $0x240] sm:$0xff]  ;;  %v3956_v13 = vcombine.low %v86_v1, %v90_v2  ;;  %v3967_v16 = vcombine.high %v95_v11, %v99_v12  ;;  %v103_v19 = vld [vmem:[%s6199_s1 + $0x288] sm:$0xff]  ;;  %v3966_v22 = vcombine.low %v95_v11, %v99_v12 }
  0x16   :  { %3185 = vmatpush1.bf16.msra.mxu0 %v3924_v42  ;;  %3357 = vmatpush1.bf16.msra.mxu1 %v3926_v43  ;;  %v98_v10 = vld [vmem:[%s6199_s1 + $0x260] sm:$0xff]  ;;  %v107_v20 = vld [vmem:[%s6199_s1 + $0x2a8] sm:$0xff] }
  0x17   :  { %3186 = vmatprep.subr.bf16.mxu0 %v3933_v44  ;;  %3358 = vmatprep.subr.bf16.mxu1 %v3935_v45  ;;  %v3965_v15 = vcombine.high %v94_v9, %v98_v10  ;;  %v102_v17 = vld [vmem:[%s6199_s1 + $0x280] sm:$0xff]  ;;  %v3964_v21 = vcombine.low %v94_v9, %v98_v10  ;;  %v3975_v24 = vcombine.high %v103_v19, %v107_v20  ;;  %v111_v27 = vld [vmem:[%s6199_s1 + $0x2c8] sm:$0xff] }
  0x18   :  { %v106_v18 = vld [vmem:[%s6199_s1 + $0x2a0] sm:$0xff]  ;;  %v115_v28 = vld [vmem:[%s6199_s1 + $0x2e8] sm:$0xff]  ;;  %v3974_v30 = vcombine.low %v103_v19, %v107_v20 }
  0x19   :  { %v3973_v23 = vcombine.high %v102_v17, %v106_v18  ;;  %v110_v25 = vld [vmem:[%s6199_s1 + $0x2c0] sm:$0xff]  ;;  %v3972_v29 = vcombine.low %v102_v17, %v106_v18  ;;  %v3983_v32 = vcombine.high %v111_v27, %v115_v28  ;;  %v119_v35 = vld [vmem:[%s6199_s1 + $0x308] sm:$0xff]  ;;  %v3982_v38 = vcombine.low %v111_v27, %v115_v28 }
  0x1a   :  { %3187 = vmatpush1.bf16.msra.mxu0 %v3932_v50  ;;  %3359 = vmatpush1.bf16.msra.mxu1 %v3934_v51  ;;  %v114_v26 = vld [vmem:[%s6199_s1 + $0x2e0] sm:$0xff]  ;;  %v123_v36 = vld [vmem:[%s6199_s1 + $0x328] sm:$0xff] }
  0x1b   :  { %3188 = vmatprep.subr.bf16.mxu0 %v3941_v52  ;;  %3360 = vmatprep.subr.bf16.mxu1 %v3943_v55  ;;  %v3981_v31 = vcombine.high %v110_v25, %v114_v26  ;;  %v118_v33 = vld [vmem:[%s6199_s1 + $0x300] sm:$0xff]  ;;  %v3980_v37 = vcombine.low %v110_v25, %v114_v26  ;;  %v3991_v40 = vcombine.high %v119_v35, %v123_v36  ;;  %v127_v43 = vld [vmem:[%s6199_s1 + $0x348] sm:$0xff] }
  0x1c   :  { %v122_v34 = vld [vmem:[%s6199_s1 + $0x320] sm:$0xff]  ;;  %v131_v44 = vld [vmem:[%s6199_s1 + $0x368] sm:$0xff]  ;;  %v3990_v46 = vcombine.low %v119_v35, %v123_v36 }
  0x1d   :  { %v3989_v39 = vcombine.high %v118_v33, %v122_v34  ;;  %v126_v41 = vld [vmem:[%s6199_s1 + $0x340] sm:$0xff]  ;;  %v3988_v45 = vcombine.low %v118_v33, %v122_v34  ;;  %v3999_v48 = vcombine.high %v127_v43, %v131_v44  ;;  %v135_v51 = vld [vmem:[%s6199_s1 + $0x388] sm:$0xff]  ;;  %v3998_v56 = vcombine.low %v127_v43, %v131_v44 }
  0x1e   :  { %3189 = vmatpush1.bf16.msra.mxu0 %v3940_v61  ;;  %3361 = vmatpush1.bf16.msra.mxu1 %v3942_v62  ;;  %v130_v42 = vld [vmem:[%s6199_s1 + $0x360] sm:$0xff]  ;;  %v139_v52 = vld [vmem:[%s6199_s1 + $0x3a8] sm:$0xff] }
  0x1f   :  { %3190 = vmatprep.subr.bf16.mxu0 %v3949_v63  ;;  %3362 = vmatprep.subr.bf16.mxu1 %v3951_v0  ;;  %v3997_v47 = vcombine.high %v126_v41, %v130_v42  ;;  %v134_v49 = vld [vmem:[%s6199_s1 + $0x380] sm:$0xff]  ;;  %v3996_v55 = vcombine.low %v126_v41, %v130_v42  ;;  %v4007_v59 = vcombine.high %v135_v51, %v139_v52  ;;  %v143_v62 = vld [vmem:[%s6199_s1 + $0x3c8] sm:$0xff] }
  0x20   :  { %v138_v50 = vld [vmem:[%s6199_s1 + $0x3a0] sm:$0xff]  ;;  %v147_v63 = vld [vmem:[%s6199_s1 + $0x3e8] sm:$0xff]  ;;  %v4006_v1 = vcombine.low %v135_v51, %v139_v52 }
  0x21   :  { %v4005_v57 = vcombine.high %v134_v49, %v138_v50  ;;  %v142_v60 = vld [vmem:[%s6199_s1 + $0x3c0] sm:$0xff]  ;;  %v4004_v0 = vcombine.low %v134_v49, %v138_v50  ;;  %v4015_v3 = vcombine.high %v143_v62, %v147_v63  ;;  %v4014_v9 = vcombine.low %v143_v62, %v147_v63  ;;  %v4727_v17 = vld [vmem:[%s6200_s0 + $0x8] sm:$0xff] }
  0x22   :  { %3191 = vmatpush1.bf16.msra.mxu0 %v3948_v5  ;;  %3363 = vmatpush1.bf16.msra.mxu1 %v3950_v6  ;;  %v146_v61 = vld [vmem:[%s6199_s1 + $0x3e0] sm:$0xff]  ;;  %v151_v6 = vld [vmem:[%s6199_s1 + $0x408] sm:$0xff] }
  0x23   :  { %3192 = vmatprep.subr.bf16.mxu0 %v3957_v7  ;;  %3364 = vmatprep.subr.bf16.mxu1 %v3959_v8  ;;  %v4013_v2 = vcombine.high %v142_v60, %v146_v61  ;;  %v150_v4 = vld [vmem:[%s6199_s1 + $0x400] sm:$0xff]  ;;  %v155_v7 = vld [vmem:[%s6199_s1 + $0x428] sm:$0xff]  ;;  %v4012_v8 = vcombine.low %v142_v60, %v146_v61 }
  0x24   :  { %v154_v5 = vld [vmem:[%s6199_s1 + $0x420] sm:$0xff]  ;;  %v4023_v11 = vcombine.high %v151_v6, %v155_v7  ;;  %v4732_v18 = vld [vmem:[%s6200_s0 + $0x28] sm:$0xff] }
  0x25   :  { %v4021_v10 = vcombine.high %v150_v4, %v154_v5  ;;  %v158_v12 = vld [vmem:[%s6199_s1 + $0x440] sm:$0xff]  ;;  %v4020_v19 = vcombine.low %v150_v4, %v154_v5  ;;  %v171_v25 = vld [vmem:[%s6199_s1 + $0x4a8] sm:$0xff] }
  0x26   :  { %3193 = vmatpush1.bf16.msra.mxu0 %v3956_v13  ;;  %3365 = vmatpush1.bf16.msra.mxu1 %v3958_v14  ;;  %v162_v13 = vld [vmem:[%s6199_s1 + $0x460] sm:$0xff]  ;;  %v159_v14 = vld [vmem:[%s6199_s1 + $0x448] sm:$0xff] }
  0x27   :  { %3194 = vmatprep.subr.bf16.mxu0 %v3965_v15  ;;  %3366 = vmatprep.subr.bf16.mxu1 %v3967_v16  ;;  %v4719_v15 = vcombine.low %v4575_v53, %v4580_v54  ;;  %v163_v16 = vld [vmem:[%s6199_s1 + $0x468] sm:$0xff]  ;;  %v4022_v53 = vcombine.low %v151_v6, %v155_v7  ;;  %v4029_v54 = vcombine.high %v158_v12, %v162_v13 }
  0x28   :  { %v4031_v20 = vcombine.high %v159_v14, %v163_v16  ;;  %v4028_v26 = vcombine.low %v158_v12, %v162_v13  ;;  %v4030_v27 = vcombine.low %v159_v14, %v163_v16  ;;  %v179_v33 = vld [vmem:[%s6199_s1 + $0x4e8] sm:$0xff] }
  0x29   :  { %v187_v41 = vld [vmem:[%s6199_s1 + $0x528] sm:$0xff] }
  0x2a   :  { %3195 = vmatpush1.bf16.msra.mxu0 %v3964_v21  ;;  %3367 = vmatpush1.bf16.msra.mxu1 %v3966_v22  ;;  %v166_v21 = vld [vmem:[%s6199_s1 + $0x480] sm:$0xff]  ;;  %v195_v49 = vld [vmem:[%s6199_s1 + $0x568] sm:$0xff] }
  0x2b   :  { %3196 = vmatprep.subr.bf16.mxu0 %v3973_v23  ;;  %3368 = vmatprep.subr.bf16.mxu1 %v3975_v24  ;;  %v170_v22 = vld [vmem:[%s6199_s1 + $0x4a0] sm:$0xff]  ;;  %v4742_v23 = vcombine.high %v4727_v17, %v4732_v18  ;;  %v167_v24 = vld [vmem:[%s6199_s1 + $0x488] sm:$0xff] }
  0x2c   :  { %v4037_v28 = vcombine.high %v166_v21, %v170_v22  ;;  %v4036_v34 = vcombine.low %v166_v21, %v170_v22  ;;  %v4038_v35 = vcombine.low %v167_v24, %v171_v25  ;;  %v203_v60 = vld [vmem:[%s6199_s1 + $0x5a8] sm:$0xff] }
  0x2d   :  { %v211_v4 = vld [vmem:[%s6199_s1 + $0x5e8] sm:$0xff] }
  0x2e   :  { %3197 = vmatpush1.bf16.msra.mxu0 %v3972_v29  ;;  %3369 = vmatpush1.bf16.msra.mxu1 %v3974_v30  ;;  %v4039_v29 = vcombine.high %v167_v24, %v171_v25  ;;  %v174_v30 = vld [vmem:[%s6199_s1 + $0x4c0] sm:$0xff]  ;;  %v219_v12 = vld [vmem:[%s6199_s1 + $0x628] sm:$0xff] }
  0x2f   :  { %3198 = vmatprep.subr.bf16.mxu0 %v3981_v31  ;;  %3370 = vmatprep.subr.bf16.mxu1 %v3983_v32  ;;  %v178_v31 = vld [vmem:[%s6199_s1 + $0x4e0] sm:$0xff]  ;;  %v175_v32 = vld [vmem:[%s6199_s1 + $0x4c8] sm:$0xff] }
  0x30   :  { %v4045_v36 = vcombine.high %v174_v30, %v178_v31  ;;  %v4044_v42 = vcombine.low %v174_v30, %v178_v31  ;;  %v4046_v43 = vcombine.low %v175_v32, %v179_v33  ;;  %v227_v21 = vld [vmem:[%s6199_s1 + $0x668] sm:$0xff] }
  0x31   :  { %v235_v30 = vld [vmem:[%s6199_s1 + $0x6a8] sm:$0xff] }
  0x32   :  { %3199 = vmatpush1.bf16.msra.mxu0 %v3980_v37  ;;  %3371 = vmatpush1.bf16.msra.mxu1 %v3982_v38  ;;  %v4047_v37 = vcombine.high %v175_v32, %v179_v33  ;;  %v182_v38 = vld [vmem:[%s6199_s1 + $0x500] sm:$0xff] }
  0x33   :  { %3200 = vmatprep.subr.bf16.mxu0 %v3989_v39  ;;  %3372 = vmatprep.subr.bf16.mxu1 %v3991_v40  ;;  %v186_v39 = vld [vmem:[%s6199_s1 + $0x520] sm:$0xff]  ;;  %v183_v40 = vld [vmem:[%s6199_s1 + $0x508] sm:$0xff] }
  0x34   :  { %v4053_v44 = vcombine.high %v182_v38, %v186_v39  ;;  %v4052_v50 = vcombine.low %v182_v38, %v186_v39  ;;  %v4054_v51 = vcombine.low %v183_v40, %v187_v41  ;;  %v243_v38 = vld [vmem:[%s6199_s1 + $0x6e8] sm:$0xff] }
  0x36   :  { %3201 = vmatpush1.bf16.msra.mxu0 %v3988_v45  ;;  %3373 = vmatpush1.bf16.msra.mxu1 %v3990_v46  ;;  %v4055_v45 = vcombine.high %v183_v40, %v187_v41  ;;  %v190_v46 = vld [vmem:[%s6199_s1 + $0x540] sm:$0xff] }
  0x37   :  { %3202 = vmatprep.subr.bf16.mxu0 %v3997_v47  ;;  %3374 = vmatprep.subr.bf16.mxu1 %v3999_v48  ;;  %v194_v47 = vld [vmem:[%s6199_s1 + $0x560] sm:$0xff]  ;;  %v191_v48 = vld [vmem:[%s6199_s1 + $0x548] sm:$0xff] }
  0x38   :  { %v4061_v52 = vcombine.high %v190_v46, %v194_v47  ;;  %v4060_v61 = vcombine.low %v190_v46, %v194_v47  ;;  %v4062_v62 = vcombine.low %v191_v48, %v195_v49  ;;  %v251_v46 = vld [vmem:[%s6199_s1 + $0x728] sm:$0xff] }
  0x3a   :  { %3203 = vmatpush1.bf16.msra.mxu0 %v3996_v55  ;;  %3375 = vmatpush1.bf16.msra.mxu1 %v3998_v56  ;;  %v4063_v55 = vcombine.high %v191_v48, %v195_v49  ;;  %v198_v56 = vld [vmem:[%s6199_s1 + $0x580] sm:$0xff] }
  0x3b   :  { %3204 = vmatprep.subr.bf16.mxu0 %v4005_v57  ;;  %3376 = vmatprep.subr.bf16.mxu1 %v4007_v59  ;;  %v202_v57 = vld [vmem:[%s6199_s1 + $0x5a0] sm:$0xff]  ;;  %v199_v59 = vld [vmem:[%s6199_s1 + $0x588] sm:$0xff] }
  0x3c   :  { %v4069_v63 = vcombine.high %v198_v56, %v202_v57  ;;  %v4068_v5 = vcombine.low %v198_v56, %v202_v57  ;;  %v4070_v6 = vcombine.low %v199_v59, %v203_v60  ;;  %v259_v56 = vld [vmem:[%s6199_s1 + $0x768] sm:$0xff] }
  0x3e   :  { %3205 = vmatpush1.bf16.msra.mxu0 %v4004_v0  ;;  %3377 = vmatpush1.bf16.msra.mxu1 %v4006_v1  ;;  %v4071_v0 = vcombine.high %v199_v59, %v203_v60  ;;  %v206_v1 = vld [vmem:[%s6199_s1 + $0x5c0] sm:$0xff] }
  0x3f   :  { %3206 = vmatprep.subr.bf16.mxu0 %v4013_v2  ;;  %3378 = vmatprep.subr.bf16.mxu1 %v4015_v3  ;;  %v210_v2 = vld [vmem:[%s6199_s1 + $0x5e0] sm:$0xff]  ;;  %v207_v3 = vld [vmem:[%s6199_s1 + $0x5c8] sm:$0xff] }
  0x40   :  { %v4077_v7 = vcombine.high %v206_v1, %v210_v2  ;;  %v4076_v13 = vcombine.low %v206_v1, %v210_v2  ;;  %v4078_v14 = vcombine.low %v207_v3, %v211_v4  ;;  %v267_v1 = vld [vmem:[%s6199_s1 + $0x7a8] sm:$0xff] }
  0x42   :  { %3207 = vmatpush1.bf16.msra.mxu0 %v4012_v8  ;;  %3379 = vmatpush1.bf16.msra.mxu1 %v4014_v9  ;;  %v4079_v8 = vcombine.high %v207_v3, %v211_v4  ;;  %v214_v9 = vld [vmem:[%s6199_s1 + $0x600] sm:$0xff] }
  0x43   :  { %3219 = vmatprep.subr.bf16.mxu0 %v4021_v10  ;;  %3391 = vmatprep.subr.bf16.mxu1 %v4023_v11  ;;  %v218_v10 = vld [vmem:[%s6199_s1 + $0x620] sm:$0xff]  ;;  %v215_v11 = vld [vmem:[%s6199_s1 + $0x608] sm:$0xff] }
  0x44   :  { %v4085_v16 = vcombine.high %v214_v9, %v218_v10  ;;  %v4084_v22 = vcombine.low %v214_v9, %v218_v10  ;;  %v4086_v24 = vcombine.low %v215_v11, %v219_v12  ;;  %v275_v9 = vld [vmem:[%s6199_s1 + $0x7e8] sm:$0xff] }
  0x45   :  { %3209 = vmatmul.mubr.bf16.vlgmr.msra.gmra.mrb[0].mxu0 %v4719_v15  ;;  %3381 = vmatmul.mubr.bf16.vlgmr.msra.gmra.mrb[0].mxu1 %v4719_v15 }
  0x46   :  { %3220 = vmatpush1.bf16.msra.mxu0 %v4020_v19  ;;  %3392 = vmatpush1.bf16.msra.mxu1 %v4022_v53  ;;  %v4087_v19 = vcombine.high %v215_v11, %v219_v12  ;;  %v222_v53 = vld [vmem:[%s6199_s1 + $0x640] sm:$0xff] }
  0x47   :  { %3221 = vmatprep.subr.bf16.mxu0 %v4029_v54  ;;  %3393 = vmatprep.subr.bf16.mxu1 %v4031_v20  ;;  %v226_v54 = vld [vmem:[%s6199_s1 + $0x660] sm:$0xff]  ;;  %v223_v20 = vld [vmem:[%s6199_s1 + $0x648] sm:$0xff] }
  0x48   :  { %3251 = vmatprep.mubr.bf16.mxu0 %v4742_v23  ;;  %3423 = vmatprep.mubr.bf16.mxu1 %v4742_v23  ;;  %v4093_v25 = vcombine.high %v222_v53, %v226_v54  ;;  %v4092_v31 = vcombine.low %v222_v53, %v226_v54  ;;  %v4094_v32 = vcombine.low %v223_v20, %v227_v21  ;;  %v283_v53 = vld [vmem:[%s6199_s1 + $0x828] sm:$0xff] }
  0x4a   :  { %3222 = vmatpush1.bf16.msra.mxu0 %v4028_v26  ;;  %3394 = vmatpush1.bf16.msra.mxu1 %v4030_v27  ;;  %v4095_v26 = vcombine.high %v223_v20, %v227_v21  ;;  %v230_v27 = vld [vmem:[%s6199_s1 + $0x680] sm:$0xff] }
  0x4b   :  { %3223 = vmatprep.subr.bf16.mxu0 %v4037_v28  ;;  %3395 = vmatprep.subr.bf16.mxu1 %v4039_v29  ;;  %v234_v28 = vld [vmem:[%s6199_s1 + $0x6a0] sm:$0xff]  ;;  %v231_v29 = vld [vmem:[%s6199_s1 + $0x688] sm:$0xff] }
  0x4c   :  { %v4101_v33 = vcombine.high %v230_v27, %v234_v28  ;;  %v4100_v39 = vcombine.low %v230_v27, %v234_v28  ;;  %v4102_v40 = vcombine.low %v231_v29, %v235_v30  ;;  %v4933_v27 = vcombine.low %v4727_v17, %v4732_v18  ;;  %v291_v28 = vld [vmem:[%s6199_s1 + $0x868] sm:$0xff] }
  0x4e   :  { %3224 = vmatpush1.bf16.msra.mxu0 %v4036_v34  ;;  %3396 = vmatpush1.bf16.msra.mxu1 %v4038_v35  ;;  %v4103_v34 = vcombine.high %v231_v29, %v235_v30  ;;  %v238_v35 = vld [vmem:[%s6199_s1 + $0x6c0] sm:$0xff]  ;;  %v4941_v29 = vld [vmem:[%s6200_s0 + $0x10] sm:$0xff] }
  0x4f   :  { %3225 = vmatprep.subr.bf16.mxu0 %v4045_v36  ;;  %3397 = vmatprep.subr.bf16.mxu1 %v4047_v37  ;;  %v242_v36 = vld [vmem:[%s6199_s1 + $0x6e0] sm:$0xff]  ;;  %v239_v37 = vld [vmem:[%s6199_s1 + $0x6c8] sm:$0xff]  ;;  %v4946_v30 = vld [vmem:[%s6200_s0 + $0x30] sm:$0xff] }
  0x50   :  { %v4109_v41 = vcombine.high %v238_v35, %v242_v36  ;;  %v4108_v47 = vcombine.low %v238_v35, %v242_v36  ;;  %v4110_v48 = vcombine.low %v239_v37, %v243_v38  ;;  %v4956_v35 = vcombine.high %v4941_v29, %v4946_v30  ;;  %v295_v36 = vld [vmem:[%s6199_s1 + $0x888] sm:$0xff] }
  0x52   :  { %3226 = vmatpush1.bf16.msra.mxu0 %v4044_v42  ;;  %3398 = vmatpush1.bf16.msra.mxu1 %v4046_v43  ;;  %v4111_v42 = vcombine.high %v239_v37, %v243_v38  ;;  %v246_v43 = vld [vmem:[%s6199_s1 + $0x700] sm:$0xff]  ;;  %v299_v37 = vld [vmem:[%s6199_s1 + $0x8a8] sm:$0xff] }
  0x53   :  { %3227 = vmatprep.subr.bf16.mxu0 %v4053_v44  ;;  %3399 = vmatprep.subr.bf16.mxu1 %v4055_v45  ;;  %v250_v44 = vld [vmem:[%s6199_s1 + $0x720] sm:$0xff]  ;;  %v247_v45 = vld [vmem:[%s6199_s1 + $0x708] sm:$0xff] }
  0x54   :  { %v4117_v49 = vcombine.high %v246_v43, %v250_v44  ;;  %v4116_v57 = vcombine.low %v246_v43, %v250_v44  ;;  %v4118_v59 = vcombine.low %v247_v45, %v251_v46  ;;  %v306_v43 = vld [vmem:[%s6199_s1 + $0x8e0] sm:$0xff]  ;;  %v303_v44 = vld [vmem:[%s6199_s1 + $0x8c8] sm:$0xff] }
  0x56   :  { %3228 = vmatpush1.bf16.msra.mxu0 %v4052_v50  ;;  %3400 = vmatpush1.bf16.msra.mxu1 %v4054_v51  ;;  %v4119_v50 = vcombine.high %v247_v45, %v251_v46  ;;  %v254_v51 = vld [vmem:[%s6199_s1 + $0x740] sm:$0xff]  ;;  %v307_v45 = vld [vmem:[%s6199_s1 + $0x8e8] sm:$0xff] }
  0x57   :  { %3229 = vmatprep.subr.bf16.mxu0 %v4061_v52  ;;  %3401 = vmatprep.subr.bf16.mxu1 %v4063_v55  ;;  %v258_v52 = vld [vmem:[%s6199_s1 + $0x760] sm:$0xff]  ;;  %v255_v55 = vld [vmem:[%s6199_s1 + $0x748] sm:$0xff] }
  0x58   :  { %v4125_v60 = vcombine.high %v254_v51, %v258_v52  ;;  %v4124_v2 = vcombine.low %v254_v51, %v258_v52  ;;  %v4126_v3 = vcombine.low %v255_v55, %v259_v56  ;;  %v314_v51 = vld [vmem:[%s6199_s1 + $0x920] sm:$0xff]  ;;  %v311_v52 = vld [vmem:[%s6199_s1 + $0x908] sm:$0xff] }
  0x5a   :  { %3230 = vmatpush1.bf16.msra.mxu0 %v4060_v61  ;;  %3402 = vmatpush1.bf16.msra.mxu1 %v4062_v62  ;;  %v4127_v61 = vcombine.high %v255_v55, %v259_v56  ;;  %v262_v62 = vld [vmem:[%s6199_s1 + $0x780] sm:$0xff]  ;;  %v315_v55 = vld [vmem:[%s6199_s1 + $0x928] sm:$0xff] }
  0x5b   :  { %3231 = vmatprep.subr.bf16.mxu0 %v4069_v63  ;;  %3403 = vmatprep.subr.bf16.mxu1 %v4071_v0  ;;  %v266_v63 = vld [vmem:[%s6199_s1 + $0x7a0] sm:$0xff]  ;;  %v263_v0 = vld [vmem:[%s6199_s1 + $0x788] sm:$0xff] }
  0x5c   :  { %v4133_v4 = vcombine.high %v262_v62, %v266_v63  ;;  %v4132_v10 = vcombine.low %v262_v62, %v266_v63  ;;  %v4134_v11 = vcombine.low %v263_v0, %v267_v1  ;;  %v322_v62 = vld [vmem:[%s6199_s1 + $0x960] sm:$0xff]  ;;  %v319_v63 = vld [vmem:[%s6199_s1 + $0x948] sm:$0xff] }
  0x5e   :  { %3232 = vmatpush1.bf16.msra.mxu0 %v4068_v5  ;;  %3404 = vmatpush1.bf16.msra.mxu1 %v4070_v6  ;;  %v4135_v5 = vcombine.high %v263_v0, %v267_v1  ;;  %v270_v6 = vld [vmem:[%s6199_s1 + $0x7c0] sm:$0xff]  ;;  %v323_v0 = vld [vmem:[%s6199_s1 + $0x968] sm:$0xff] }
  0x5f   :  { %3233 = vmatprep.subr.bf16.mxu0 %v4077_v7  ;;  %3405 = vmatprep.subr.bf16.mxu1 %v4079_v8  ;;  %v274_v7 = vld [vmem:[%s6199_s1 + $0x7e0] sm:$0xff]  ;;  %v271_v8 = vld [vmem:[%s6199_s1 + $0x7c8] sm:$0xff] }
  0x60   :  { %v4141_v12 = vcombine.high %v270_v6, %v274_v7  ;;  %v4140_v54 = vcombine.low %v270_v6, %v274_v7  ;;  %v4142_v20 = vcombine.low %v271_v8, %v275_v9  ;;  %v330_v6 = vld [vmem:[%s6199_s1 + $0x9a0] sm:$0xff]  ;;  %v327_v7 = vld [vmem:[%s6199_s1 + $0x988] sm:$0xff] }
  0x62   :  { %3234 = vmatpush1.bf16.msra.mxu0 %v4076_v13  ;;  %3406 = vmatpush1.bf16.msra.mxu1 %v4078_v14  ;;  %v4143_v13 = vcombine.high %v271_v8, %v275_v9  ;;  %v278_v14 = vld [vmem:[%s6199_s1 + $0x800] sm:$0xff]  ;;  %v331_v8 = vld [vmem:[%s6199_s1 + $0x9a8] sm:$0xff] }
  0x63   :  { %3235 = vmatprep.subr.bf16.mxu0 %v4085_v16  ;;  %3407 = vmatprep.subr.bf16.mxu1 %v4087_v19  ;;  %v282_v16 = vld [vmem:[%s6199_s1 + $0x820] sm:$0xff]  ;;  %v279_v19 = vld [vmem:[%s6199_s1 + $0x808] sm:$0xff] }
  0x64   :  { %v4149_v21 = vcombine.high %v278_v14, %v282_v16  ;;  %v4150_v17 = vcombine.low %v279_v19, %v283_v53 }
  0x66   :  { %3236 = vmatpush1.bf16.msra.mxu0 %v4084_v22  ;;  %3408 = vmatpush1.bf16.msra.mxu1 %v4086_v24  ;;  %v4151_v22 = vcombine.high %v279_v19, %v283_v53  ;;  %v286_v24 = vld [vmem:[%s6199_s1 + $0x840] sm:$0xff]  ;;  %v339_v19 = vld [vmem:[%s6199_s1 + $0x9e8] sm:$0xff] }
  0x67   :  { %3237 = vmatprep.subr.bf16.mxu0 %v4093_v25  ;;  %3409 = vmatprep.subr.bf16.mxu1 %v4095_v26  ;;  %v290_v25 = vld [vmem:[%s6199_s1 + $0x860] sm:$0xff]  ;;  %v287_v26 = vld [vmem:[%s6199_s1 + $0x848] sm:$0xff] }
  0x68   :  { %v4157_v18 = vcombine.high %v286_v24, %v290_v25  ;;  %v4156_v38 = vcombine.low %v286_v24, %v290_v25  ;;  %v346_v24 = vld [vmem:[%s6199_s1 + $0xa20] sm:$0xff]  ;;  %v343_v25 = vld [vmem:[%s6199_s1 + $0xa08] sm:$0xff] }
  0x6a   :  { %3238 = vmatpush1.bf16.msra.mxu0 %v4092_v31  ;;  %3410 = vmatpush1.bf16.msra.mxu1 %v4094_v32  ;;  %v4148_v31 = vcombine.low %v278_v14, %v282_v16  ;;  %v4159_v32 = vcombine.high %v287_v26, %v291_v28  ;;  %v338_v14 = vld [vmem:[%s6199_s1 + $0x9e0] sm:$0xff]  ;;  %v335_v16 = vld [vmem:[%s6199_s1 + $0x9c8] sm:$0xff] }
  0x6b   :  { %3239 = vmatprep.subr.bf16.mxu0 %v4101_v33  ;;  %3411 = vmatprep.subr.bf16.mxu1 %v4103_v34  ;;  %v294_v33 = vld [vmem:[%s6199_s1 + $0x880] sm:$0xff] }
  0x6c   :  { %v298_v34 = vld [vmem:[%s6199_s1 + $0x8a0] sm:$0xff] }
  0x6d   :  { %v4164_v46 = vcombine.low %v294_v33, %v298_v34 }
  0x6e   :  { %3240 = vmatpush1.bf16.msra.mxu0 %v4100_v39  ;;  %3412 = vmatpush1.bf16.msra.mxu1 %v4102_v40  ;;  %v4158_v39 = vcombine.low %v287_v26, %v291_v28  ;;  %v4165_v40 = vcombine.high %v294_v33, %v298_v34  ;;  %v347_v26 = vld [vmem:[%s6199_s1 + $0xa28] sm:$0xff]  ;;  %v354_v33 = vld [vmem:[%s6199_s1 + $0xa60] sm:$0xff] }
  0x6f   :  { %3241 = vmatprep.subr.bf16.mxu0 %v4109_v41  ;;  %3413 = vmatprep.subr.bf16.mxu1 %v4111_v42  ;;  %v4167_v41 = vcombine.high %v295_v36, %v299_v37  ;;  %v302_v42 = vld [vmem:[%s6199_s1 + $0x8c0] sm:$0xff]  ;;  %v351_v34 = vld [vmem:[%s6199_s1 + $0xa48] sm:$0xff] }
  0x70   :  { %v4172_v56 = vcombine.low %v302_v42, %v306_v43 }
  0x72   :  { %3242 = vmatpush1.bf16.msra.mxu0 %v4108_v47  ;;  %3414 = vmatpush1.bf16.msra.mxu1 %v4110_v48  ;;  %v4166_v47 = vcombine.low %v295_v36, %v299_v37  ;;  %v4173_v48 = vcombine.high %v302_v42, %v306_v43  ;;  %v355_v36 = vld [vmem:[%s6199_s1 + $0xa68] sm:$0xff]  ;;  %v362_v42 = vld [vmem:[%s6199_s1 + $0xaa0] sm:$0xff] }
  0x73   :  { %3243 = vmatprep.subr.bf16.mxu0 %v4117_v49  ;;  %3415 = vmatprep.subr.bf16.mxu1 %v4119_v50  ;;  %v4175_v49 = vcombine.high %v303_v44, %v307_v45  ;;  %v310_v50 = vld [vmem:[%s6199_s1 + $0x900] sm:$0xff]  ;;  %v359_v43 = vld [vmem:[%s6199_s1 + $0xa88] sm:$0xff] }
  0x74   :  { %v4180_v1 = vcombine.low %v310_v50, %v314_v51 }
  0x76   :  { %3244 = vmatpush1.bf16.msra.mxu0 %v4116_v57  ;;  %3416 = vmatpush1.bf16.msra.mxu1 %v4118_v59  ;;  %v4174_v57 = vcombine.low %v303_v44, %v307_v45  ;;  %v4181_v59 = vcombine.high %v310_v50, %v314_v51  ;;  %v363_v44 = vld [vmem:[%s6199_s1 + $0xaa8] sm:$0xff]  ;;  %v370_v50 = vld [vmem:[%s6199_s1 + $0xae0] sm:$0xff] }
  0x77   :  { %3245 = vmatprep.subr.bf16.mxu0 %v4125_v60  ;;  %3417 = vmatprep.subr.bf16.mxu1 %v4127_v61  ;;  %v4183_v60 = vcombine.high %v311_v52, %v315_v55  ;;  %v318_v61 = vld [vmem:[%s6199_s1 + $0x940] sm:$0xff]  ;;  %v367_v51 = vld [vmem:[%s6199_s1 + $0xac8] sm:$0xff] }
  0x78   :  { %v4188_v9 = vcombine.low %v318_v61, %v322_v62 }
  0x7a   :  { %3246 = vmatpush1.bf16.msra.mxu0 %v4124_v2  ;;  %3418 = vmatpush1.bf16.msra.mxu1 %v4126_v3  ;;  %v4182_v2 = vcombine.low %v311_v52, %v315_v55  ;;  %v4189_v3 = vcombine.high %v318_v61, %v322_v62  ;;  %v371_v52 = vld [vmem:[%s6199_s1 + $0xae8] sm:$0xff]  ;;  %v378_v61 = vld [vmem:[%s6199_s1 + $0xb20] sm:$0xff] }
  0x7b   :  { %3247 = vmatprep.subr.bf16.mxu0 %v4133_v4  ;;  %3419 = vmatprep.subr.bf16.mxu1 %v4135_v5  ;;  %v4191_v4 = vcombine.high %v319_v63, %v323_v0  ;;  %v326_v5 = vld [vmem:[%s6199_s1 + $0x980] sm:$0xff]  ;;  %v375_v62 = vld [vmem:[%s6199_s1 + $0xb08] sm:$0xff] }
  0x7c   :  { %v4196_v53 = vcombine.low %v326_v5, %v330_v6 }
  0x7e   :  { %3248 = vmatpush1.bf16.msra.mxu0 %v4132_v10  ;;  %3420 = vmatpush1.bf16.msra.mxu1 %v4134_v11  ;;  %v4190_v10 = vcombine.low %v319_v63, %v323_v0  ;;  %v4197_v11 = vcombine.high %v326_v5, %v330_v6  ;;  %v379_v63 = vld [vmem:[%s6199_s1 + $0xb28] sm:$0xff]  ;;  %v386_v5 = vld [vmem:[%s6199_s1 + $0xb60] sm:$0xff] }
  0x7f   :  { %3249 = vmatprep.subr.bf16.mxu0 %v4141_v12  ;;  %3421 = vmatprep.subr.bf16.mxu1 %v4143_v13  ;;  %v4199_v12 = vcombine.high %v327_v7, %v331_v8  ;;  %v334_v13 = vld [vmem:[%s6199_s1 + $0x9c0] sm:$0xff]  ;;  %v383_v6 = vld [vmem:[%s6199_s1 + $0xb48] sm:$0xff] }
  0x80   :  { %v4204_v28 = vcombine.low %v334_v13, %v338_v14 }
  0x82   :  { %3250 = vmatpush1.bf16.msra.mxu0 %v4140_v54  ;;  %3422 = vmatpush1.bf16.msra.mxu1 %v4142_v20  ;;  %v4198_v54 = vcombine.low %v327_v7, %v331_v8  ;;  %v4205_v20 = vcombine.high %v334_v13, %v338_v14  ;;  %v387_v7 = vld [vmem:[%s6199_s1 + $0xb68] sm:$0xff]  ;;  %v394_v13 = vld [vmem:[%s6199_s1 + $0xba0] sm:$0xff] }
  0x83   :  { %3262 = vmatprep.subr.bf16.mxu0 %v4149_v21  ;;  %3434 = vmatprep.subr.bf16.mxu1 %v4151_v22  ;;  %v4207_v21 = vcombine.high %v335_v16, %v339_v19  ;;  %v342_v22 = vld [vmem:[%s6199_s1 + $0xa00] sm:$0xff]  ;;  %v391_v14 = vld [vmem:[%s6199_s1 + $0xb88] sm:$0xff] }
  0x84   :  { %v4212_v37 = vcombine.low %v342_v22, %v346_v24 }
  0x85   :  { %3252 = vmatmul.mubr.bf16.vlgmr.msra.gmra.mrb[0].mxu0 %v4933_v27  ;;  %3424 = vmatmul.mubr.bf16.vlgmr.msra.gmra.mrb[0].mxu1 %v4933_v27 }
  0x86   :  { %3263 = vmatpush1.bf16.msra.mxu0 %v4148_v31  ;;  %3435 = vmatpush1.bf16.msra.mxu1 %v4150_v17  ;;  %v4206_v31 = vcombine.low %v335_v16, %v339_v19  ;;  %v4213_v17 = vcombine.high %v342_v22, %v346_v24  ;;  %v395_v16 = vld [vmem:[%s6199_s1 + $0xba8] sm:$0xff]  ;;  %v402_v22 = vld [vmem:[%s6199_s1 + $0xbe0] sm:$0xff] }
  0x87   :  { %3264 = vmatprep.subr.bf16.mxu0 %v4157_v18  ;;  %3436 = vmatprep.subr.bf16.mxu1 %v4159_v32  ;;  %v4215_v18 = vcombine.high %v343_v25, %v347_v26  ;;  %v350_v32 = vld [vmem:[%s6199_s1 + $0xa40] sm:$0xff]  ;;  %v399_v24 = vld [vmem:[%s6199_s1 + $0xbc8] sm:$0xff] }
  0x88   :  { %3294 = vmatprep.mubr.bf16.mxu0 %v4956_v35  ;;  %3466 = vmatprep.mubr.bf16.mxu1 %v4956_v35  ;;  %v4220_v45 = vcombine.low %v350_v32, %v354_v33 }
  0x8a   :  { %3265 = vmatpush1.bf16.msra.mxu0 %v4156_v38  ;;  %3437 = vmatpush1.bf16.msra.mxu1 %v4158_v39  ;;  %v4214_v38 = vcombine.low %v343_v25, %v347_v26  ;;  %v4221_v39 = vcombine.high %v350_v32, %v354_v33  ;;  %v403_v25 = vld [vmem:[%s6199_s1 + $0xbe8] sm:$0xff]  ;;  %v410_v32 = vld [vmem:[%s6199_s1 + $0xc20] sm:$0xff] }
  0x8b   :  { %3266 = vmatprep.subr.bf16.mxu0 %v4165_v40  ;;  %3438 = vmatprep.subr.bf16.mxu1 %v4167_v41  ;;  %v4223_v40 = vcombine.high %v351_v34, %v355_v36  ;;  %v358_v41 = vld [vmem:[%s6199_s1 + $0xa80] sm:$0xff]  ;;  %v407_v33 = vld [vmem:[%s6199_s1 + $0xc08] sm:$0xff] }
  0x8c   :  { %v4228_v55 = vcombine.low %v358_v41, %v362_v42 }
  0x8e   :  { %3267 = vmatpush1.bf16.msra.mxu0 %v4164_v46  ;;  %3439 = vmatpush1.bf16.msra.mxu1 %v4166_v47  ;;  %v4222_v46 = vcombine.low %v351_v34, %v355_v36  ;;  %v4229_v47 = vcombine.high %v358_v41, %v362_v42  ;;  %v411_v34 = vld [vmem:[%s6199_s1 + $0xc28] sm:$0xff]  ;;  %v418_v41 = vld [vmem:[%s6199_s1 + $0xc60] sm:$0xff] }
  0x8f   :  { %3268 = vmatprep.subr.bf16.mxu0 %v4173_v48  ;;  %3440 = vmatprep.subr.bf16.mxu1 %v4175_v49  ;;  %v4231_v48 = vcombine.high %v359_v43, %v363_v44  ;;  %v366_v49 = vld [vmem:[%s6199_s1 + $0xac0] sm:$0xff]  ;;  %v415_v42 = vld [vmem:[%s6199_s1 + $0xc48] sm:$0xff] }
  0x90   :  { %v4236_v0 = vcombine.low %v366_v49, %v370_v50 }
  0x92   :  { %3269 = vmatpush1.bf16.msra.mxu0 %v4172_v56  ;;  %3441 = vmatpush1.bf16.msra.mxu1 %v4174_v57  ;;  %v4230_v56 = vcombine.low %v359_v43, %v363_v44  ;;  %v4237_v57 = vcombine.high %v366_v49, %v370_v50  ;;  %v5147_v43 = vcombine.low %v4941_v29, %v4946_v30  ;;  %v419_v44 = vld [vmem:[%s6199_s1 + $0xc68] sm:$0xff]  ;;  %v422_v49 = vld [vmem:[%s6199_s1 + $0xc80] sm:$0xff] }
  0x93   :  { %3270 = vmatprep.subr.bf16.mxu0 %v4181_v59  ;;  %3442 = vmatprep.subr.bf16.mxu1 %v4183_v60  ;;  %v4239_v59 = vcombine.high %v367_v51, %v371_v52  ;;  %v374_v60 = vld [vmem:[%s6199_s1 + $0xb00] sm:$0xff]  ;;  %v4278_v29 = vcombine.low %v407_v33, %v411_v34 }
  0x94   :  { %v4244_v8 = vcombine.low %v374_v60, %v378_v61  ;;  %v426_v50 = vld [vmem:[%s6199_s1 + $0xca0] sm:$0xff] }
  0x96   :  { %3271 = vmatpush1.bf16.msra.mxu0 %v4180_v1  ;;  %3443 = vmatpush1.bf16.msra.mxu1 %v4182_v2  ;;  %v4238_v1 = vcombine.low %v367_v51, %v371_v52  ;;  %v4245_v2 = vcombine.high %v374_v60, %v378_v61  ;;  %v423_v52 = vld [vmem:[%s6199_s1 + $0xc88] sm:$0xff]  ;;  %v430_v61 = vld [vmem:[%s6199_s1 + $0xcc0] sm:$0xff] }
  0x97   :  { %3272 = vmatprep.subr.bf16.mxu0 %v4189_v3  ;;  %3444 = vmatprep.subr.bf16.mxu1 %v4191_v4  ;;  %v4247_v3 = vcombine.high %v375_v62, %v379_v63  ;;  %v382_v4 = vld [vmem:[%s6199_s1 + $0xb40] sm:$0xff] }
  0x98   :  { %v4252_v19 = vcombine.low %v382_v4, %v386_v5 }
  0x9a   :  { %3273 = vmatpush1.bf16.msra.mxu0 %v4188_v9  ;;  %3445 = vmatpush1.bf16.msra.mxu1 %v4190_v10  ;;  %v4246_v9 = vcombine.low %v375_v62, %v379_v63  ;;  %v4253_v10 = vcombine.high %v382_v4, %v386_v5  ;;  %v434_v62 = vld [vmem:[%s6199_s1 + $0xce0] sm:$0xff]  ;;  %v431_v63 = vld [vmem:[%s6199_s1 + $0xcc8] sm:$0xff] }
  0x9b   :  { %3274 = vmatprep.subr.bf16.mxu0 %v4197_v11  ;;  %3446 = vmatprep.subr.bf16.mxu1 %v4199_v12  ;;  %v4255_v11 = vcombine.high %v383_v6, %v387_v7  ;;  %v390_v12 = vld [vmem:[%s6199_s1 + $0xb80] sm:$0xff] }
  0x9c   :  { %v4260_v26 = vcombine.low %v390_v12, %v394_v13  ;;  %v438_v5 = vld [vmem:[%s6199_s1 + $0xd00] sm:$0xff] }
  0x9e   :  { %3275 = vmatpush1.bf16.msra.mxu0 %v4196_v53  ;;  %3447 = vmatpush1.bf16.msra.mxu1 %v4198_v54  ;;  %v4254_v53 = vcombine.low %v383_v6, %v387_v7  ;;  %v4261_v54 = vcombine.high %v390_v12, %v394_v13  ;;  %v442_v6 = vld [vmem:[%s6199_s1 + $0xd20] sm:$0xff]  ;;  %v439_v7 = vld [vmem:[%s6199_s1 + $0xd08] sm:$0xff] }
  0x9f   :  { %3276 = vmatprep.subr.bf16.mxu0 %v4205_v20  ;;  %3448 = vmatprep.subr.bf16.mxu1 %v4207_v21  ;;  %v4263_v20 = vcombine.high %v391_v14, %v395_v16  ;;  %v398_v21 = vld [vmem:[%s6199_s1 + $0xbc0] sm:$0xff] }
  0xa0   :  { %v4268_v36 = vcombine.low %v398_v21, %v402_v22  ;;  %v446_v13 = vld [vmem:[%s6199_s1 + $0xd40] sm:$0xff] }
  0xa2   :  { %3277 = vmatpush1.bf16.msra.mxu0 %v4204_v28  ;;  %3449 = vmatpush1.bf16.msra.mxu1 %v4206_v31  ;;  %v4262_v28 = vcombine.low %v391_v14, %v395_v16  ;;  %v4269_v31 = vcombine.high %v398_v21, %v402_v22  ;;  %v450_v14 = vld [vmem:[%s6199_s1 + $0xd60] sm:$0xff]  ;;  %v447_v16 = vld [vmem:[%s6199_s1 + $0xd48] sm:$0xff] }
  0xa3   :  { %3278 = vmatprep.subr.bf16.mxu0 %v4213_v17  ;;  %3450 = vmatprep.subr.bf16.mxu1 %v4215_v18  ;;  %v4271_v17 = vcombine.high %v399_v24, %v403_v25  ;;  %v406_v18 = vld [vmem:[%s6199_s1 + $0xc00] sm:$0xff] }
  0xa4   :  { %v454_v22 = vld [vmem:[%s6199_s1 + $0xd80] sm:$0xff] }
  0xa6   :  { %3279 = vmatpush1.bf16.msra.mxu0 %v4212_v37  ;;  %3451 = vmatpush1.bf16.msra.mxu1 %v4214_v38  ;;  %v4270_v37 = vcombine.low %v399_v24, %v403_v25  ;;  %v4277_v38 = vcombine.high %v406_v18, %v410_v32  ;;  %v458_v24 = vld [vmem:[%s6199_s1 + $0xda0] sm:$0xff]  ;;  %v455_v25 = vld [vmem:[%s6199_s1 + $0xd88] sm:$0xff] }
  0xa7   :  { %3280 = vmatprep.subr.bf16.mxu0 %v4221_v39  ;;  %3452 = vmatprep.subr.bf16.mxu1 %v4223_v40  ;;  %v4279_v39 = vcombine.high %v407_v33, %v411_v34  ;;  %v414_v40 = vld [vmem:[%s6199_s1 + $0xc40] sm:$0xff]  ;;  %v463_v34 = vld [vmem:[%s6199_s1 + $0xdc8] sm:$0xff] }
  0xa8   :  { %v4285_v30 = vcombine.high %v414_v40, %v418_v41  ;;  %v466_v33 = vld [vmem:[%s6199_s1 + $0xde0] sm:$0xff] }
  0xaa   :  { %3281 = vmatpush1.bf16.msra.mxu0 %v4220_v45  ;;  %3453 = vmatpush1.bf16.msra.mxu1 %v4222_v46  ;;  %v5155_v45 = vld [vmem:[%s6200_s0 + $0x18] sm:$0xff] }
  0xab   :  { %3282 = vmatprep.subr.bf16.mxu0 %v4229_v47  ;;  %3454 = vmatprep.subr.bf16.mxu1 %v4231_v48  ;;  %v5160_v46 = vld [vmem:[%s6200_s0 + $0x38] sm:$0xff]  ;;  %v4276_v47 = vcombine.low %v406_v18, %v410_v32  ;;  %v4287_v48 = vcombine.high %v415_v42, %v419_v44  ;;  %v462_v32 = vld [vmem:[%s6199_s1 + $0xdc0] sm:$0xff] }
  0xac   :  { %v5170_v51 = vcombine.high %v5155_v45, %v5160_v46 }
  0xae   :  { %3283 = vmatpush1.bf16.msra.mxu0 %v4228_v55  ;;  %3455 = vmatpush1.bf16.msra.mxu1 %v4230_v56  ;;  %v427_v55 = vld [vmem:[%s6199_s1 + $0xca8] sm:$0xff]  ;;  %v4284_v56 = vcombine.low %v414_v40, %v418_v41  ;;  %v470_v41 = vld [vmem:[%s6199_s1 + $0xe00] sm:$0xff] }
  0xaf   :  { %3284 = vmatprep.subr.bf16.mxu0 %v4237_v57  ;;  %3456 = vmatprep.subr.bf16.mxu1 %v4239_v59  ;;  %v4286_v57 = vcombine.low %v415_v42, %v419_v44  ;;  %v4293_v59 = vcombine.high %v422_v49, %v426_v50  ;;  %v4295_v60 = vcombine.high %v423_v52, %v427_v55  ;;  %v474_v42 = vld [vmem:[%s6199_s1 + $0xe20] sm:$0xff]  ;;  %v471_v44 = vld [vmem:[%s6199_s1 + $0xe08] sm:$0xff] }
  0xb2   :  { %3285 = vmatpush1.bf16.msra.mxu0 %v4236_v0  ;;  %3457 = vmatpush1.bf16.msra.mxu1 %v4238_v1  ;;  %v435_v0 = vld [vmem:[%s6199_s1 + $0xce8] sm:$0xff]  ;;  %v4292_v1 = vcombine.low %v422_v49, %v426_v50  ;;  %v478_v50 = vld [vmem:[%s6199_s1 + $0xe40] sm:$0xff] }
  0xb3   :  { %3286 = vmatprep.subr.bf16.mxu0 %v4245_v2  ;;  %3458 = vmatprep.subr.bf16.mxu1 %v4247_v3  ;;  %v4294_v2 = vcombine.low %v423_v52, %v427_v55  ;;  %v4301_v3 = vcombine.high %v430_v61, %v434_v62  ;;  %v4303_v4 = vcombine.high %v431_v63, %v435_v0  ;;  %v482_v52 = vld [vmem:[%s6199_s1 + $0xe60] sm:$0xff]  ;;  %v479_v55 = vld [vmem:[%s6199_s1 + $0xe48] sm:$0xff] }
  0xb6   :  { %3287 = vmatpush1.bf16.msra.mxu0 %v4244_v8  ;;  %3459 = vmatpush1.bf16.msra.mxu1 %v4246_v9  ;;  %v443_v8 = vld [vmem:[%s6199_s1 + $0xd28] sm:$0xff]  ;;  %v4300_v9 = vcombine.low %v430_v61, %v434_v62  ;;  %v486_v62 = vld [vmem:[%s6199_s1 + $0xe80] sm:$0xff] }
  0xb7   :  { %3288 = vmatprep.subr.bf16.mxu0 %v4253_v10  ;;  %3460 = vmatprep.subr.bf16.mxu1 %v4255_v11  ;;  %v4302_v10 = vcombine.low %v431_v63, %v435_v0  ;;  %v4309_v11 = vcombine.high %v438_v5, %v442_v6  ;;  %v4311_v12 = vcombine.high %v439_v7, %v443_v8  ;;  %v490_v63 = vld [vmem:[%s6199_s1 + $0xea0] sm:$0xff]  ;;  %v487_v0 = vld [vmem:[%s6199_s1 + $0xe88] sm:$0xff] }
  0xba   :  { %3289 = vmatpush1.bf16.msra.mxu0 %v4252_v19  ;;  %3461 = vmatpush1.bf16.msra.mxu1 %v4254_v53  ;;  %v451_v19 = vld [vmem:[%s6199_s1 + $0xd68] sm:$0xff]  ;;  %v4308_v53 = vcombine.low %v438_v5, %v442_v6  ;;  %v494_v6 = vld [vmem:[%s6199_s1 + $0xec0] sm:$0xff] }
  0xbb   :  { %3290 = vmatprep.subr.bf16.mxu0 %v4261_v54  ;;  %3462 = vmatprep.subr.bf16.mxu1 %v4263_v20  ;;  %v4310_v54 = vcombine.low %v439_v7, %v443_v8  ;;  %v4317_v20 = vcombine.high %v446_v13, %v450_v14  ;;  %v4319_v21 = vcombine.high %v447_v16, %v451_v19  ;;  %v498_v7 = vld [vmem:[%s6199_s1 + $0xee0] sm:$0xff]  ;;  %v495_v8 = vld [vmem:[%s6199_s1 + $0xec8] sm:$0xff] }
  0xbe   :  { %3291 = vmatpush1.bf16.msra.mxu0 %v4260_v26  ;;  %3463 = vmatpush1.bf16.msra.mxu1 %v4262_v28  ;;  %v459_v26 = vld [vmem:[%s6199_s1 + $0xda8] sm:$0xff]  ;;  %v4316_v28 = vcombine.low %v446_v13, %v450_v14  ;;  %v502_v14 = vld [vmem:[%s6199_s1 + $0xf00] sm:$0xff] }
  0xbf   :  { %3292 = vmatprep.subr.bf16.mxu0 %v4269_v31  ;;  %3464 = vmatprep.subr.bf16.mxu1 %v4271_v17  ;;  %v4318_v31 = vcombine.low %v447_v16, %v451_v19  ;;  %v4325_v17 = vcombine.high %v454_v22, %v458_v24  ;;  %v4327_v18 = vcombine.high %v455_v25, %v459_v26  ;;  %v506_v16 = vld [vmem:[%s6199_s1 + $0xf20] sm:$0xff]  ;;  %v503_v19 = vld [vmem:[%s6199_s1 + $0xf08] sm:$0xff] }
  0xc2   :  { %3293 = vmatpush1.bf16.msra.mxu0 %v4268_v36  ;;  %3465 = vmatpush1.bf16.msra.mxu1 %v4270_v37  ;;  %v467_v36 = vld [vmem:[%s6199_s1 + $0xde8] sm:$0xff]  ;;  %v4324_v37 = vcombine.low %v454_v22, %v458_v24  ;;  %v510_v24 = vld [vmem:[%s6199_s1 + $0xf40] sm:$0xff] }
  0xc3   :  { %3305 = vmatprep.subr.bf16.mxu0 %v4277_v38  ;;  %3477 = vmatprep.subr.bf16.mxu1 %v4279_v39  ;;  %v4326_v38 = vcombine.low %v455_v25, %v459_v26  ;;  %v4333_v39 = vcombine.high %v462_v32, %v466_v33  ;;  %v4335_v40 = vcombine.high %v463_v34, %v467_v36  ;;  %v514_v25 = vld [vmem:[%s6199_s1 + $0xf60] sm:$0xff]  ;;  %v511_v26 = vld [vmem:[%s6199_s1 + $0xf48] sm:$0xff] }
  0xc5   :  { %3295 = vmatmul.mubr.bf16.vlgmr.msra.gmra.mrb[0].mxu0 %v5147_v43  ;;  %3467 = vmatmul.mubr.bf16.vlgmr.msra.gmra.mrb[0].mxu1 %v5147_v43 }
  0xc6   :  { %3306 = vmatpush1.bf16.msra.mxu0 %v4276_v47  ;;  %3478 = vmatpush1.bf16.msra.mxu1 %v4278_v29  ;;  %v475_v47 = vld [vmem:[%s6199_s1 + $0xe28] sm:$0xff]  ;;  %v4332_v29 = vcombine.low %v462_v32, %v466_v33  ;;  %v518_v33 = vld [vmem:[%s6199_s1 + $0xf80] sm:$0xff] }
  0xc7   :  { %3307 = vmatprep.subr.bf16.mxu0 %v4285_v30  ;;  %3479 = vmatprep.subr.bf16.mxu1 %v4287_v48  ;;  %v4334_v30 = vcombine.low %v463_v34, %v467_v36  ;;  %v4341_v48 = vcombine.high %v470_v41, %v474_v42  ;;  %v4343_v49 = vcombine.high %v471_v44, %v475_v47  ;;  %v522_v34 = vld [vmem:[%s6199_s1 + $0xfa0] sm:$0xff]  ;;  %v519_v36 = vld [vmem:[%s6199_s1 + $0xf88] sm:$0xff] }
  0xc8   :  { %3337 = vmatprep.mubr.bf16.mxu0 %v5170_v51  ;;  %3509 = vmatprep.mubr.bf16.mxu1 %v5170_v51 }
  0xca   :  { %3308 = vmatpush1.bf16.msra.mxu0 %v4284_v56  ;;  %3480 = vmatpush1.bf16.msra.mxu1 %v4286_v57  ;;  %v483_v56 = vld [vmem:[%s6199_s1 + $0xe68] sm:$0xff]  ;;  %v4340_v57 = vcombine.low %v470_v41, %v474_v42  ;;  %v526_v42 = vld [vmem:[%s6199_s1 + $0xfc0] sm:$0xff] }
  0xcb   :  { %3309 = vmatprep.subr.bf16.mxu0 %v4293_v59  ;;  %3481 = vmatprep.subr.bf16.mxu1 %v4295_v60  ;;  %v4342_v59 = vcombine.low %v471_v44, %v475_v47  ;;  %v4349_v60 = vcombine.high %v478_v50, %v482_v52  ;;  %v4351_v61 = vcombine.high %v479_v55, %v483_v56  ;;  %v530_v44 = vld [vmem:[%s6199_s1 + $0xfe0] sm:$0xff]  ;;  %v527_v47 = vld [vmem:[%s6199_s1 + $0xfc8] sm:$0xff] }
  0xce   :  { %3310 = vmatpush1.bf16.msra.mxu0 %v4292_v1  ;;  %3482 = vmatpush1.bf16.msra.mxu1 %v4294_v2  ;;  %v491_v1 = vld [vmem:[%s6199_s1 + $0xea8] sm:$0xff]  ;;  %v4348_v2 = vcombine.low %v478_v50, %v482_v52  ;;  %v24_v52 = vld [vmem:[%s6199_s1 + $0x10] sm:$0xff] }
  0xcf   :  { %3311 = vmatprep.subr.bf16.mxu0 %v4301_v3  ;;  %3483 = vmatprep.subr.bf16.mxu1 %v4303_v4  ;;  %v4350_v3 = vcombine.low %v479_v55, %v483_v56  ;;  %v4357_v4 = vcombine.high %v486_v62, %v490_v63  ;;  %v4359_v5 = vcombine.high %v487_v0, %v491_v1  ;;  %v28_v55 = vld [vmem:[%s6199_s1 + $0x30] sm:$0xff]  ;;  %v25_v56 = vld [vmem:[%s6199_s1 + $0x18] sm:$0xff] }
  0xd2   :  { %3312 = vmatpush1.bf16.msra.mxu0 %v4300_v9  ;;  %3484 = vmatpush1.bf16.msra.mxu1 %v4302_v10  ;;  %v499_v9 = vld [vmem:[%s6199_s1 + $0xee8] sm:$0xff]  ;;  %v4356_v10 = vcombine.low %v486_v62, %v490_v63  ;;  %v32_v63 = vld [vmem:[%s6199_s1 + $0x50] sm:$0xff] }
  0xd3   :  { %3313 = vmatprep.subr.bf16.mxu0 %v4309_v11  ;;  %3485 = vmatprep.subr.bf16.mxu1 %v4311_v12  ;;  %v4358_v11 = vcombine.low %v487_v0, %v491_v1  ;;  %v4365_v12 = vcombine.high %v494_v6, %v498_v7  ;;  %v4367_v13 = vcombine.high %v495_v8, %v499_v9  ;;  %v36_v0 = vld [vmem:[%s6199_s1 + $0x70] sm:$0xff] }
  0xd4   :  { %v5358_v1 = vcombine.low %v5155_v45, %v5160_v46  ;;  %v40_v45 = vld [vmem:[%s6199_s1 + $0x90] sm:$0xff] }
  0xd5   :  { %v44_v46 = vld [vmem:[%s6199_s1 + $0xb0] sm:$0xff] }
  0xd6   :  { %3314 = vmatpush1.bf16.msra.mxu0 %v4308_v53  ;;  %3486 = vmatpush1.bf16.msra.mxu1 %v4310_v54  ;;  %v507_v53 = vld [vmem:[%s6199_s1 + $0xf28] sm:$0xff]  ;;  %v4364_v54 = vcombine.low %v494_v6, %v498_v7  ;;  %v3905_v6 = vcombine.high %v32_v63, %v36_v0 }
  0xd7   :  { %3315 = vmatprep.subr.bf16.mxu0 %v4317_v20  ;;  %3487 = vmatprep.subr.bf16.mxu1 %v4319_v21  ;;  %v4366_v20 = vcombine.low %v495_v8, %v499_v9  ;;  %v4373_v21 = vcombine.high %v502_v14, %v506_v16  ;;  %v4375_v22 = vcombine.high %v503_v19, %v507_v53  ;;  %v41_v8 = vld [vmem:[%s6199_s1 + $0x98] sm:$0xff] }
  0xd8   :  { %v45_v9 = vld [vmem:[%s6199_s1 + $0xb8] sm:$0xff] }
  0xda   :  { %3316 = vmatpush1.bf16.msra.mxu0 %v4316_v28  ;;  %3488 = vmatpush1.bf16.msra.mxu1 %v4318_v31  ;;  %v515_v28 = vld [vmem:[%s6199_s1 + $0xf68] sm:$0xff]  ;;  %v4372_v31 = vcombine.low %v502_v14, %v506_v16  ;;  %v48_v14 = vld [vmem:[%s6199_s1 + $0xd0] sm:$0xff] }
  0xdb   :  { %3317 = vmatprep.subr.bf16.mxu0 %v4325_v17  ;;  %3489 = vmatprep.subr.bf16.mxu1 %v4327_v18  ;;  %v4374_v17 = vcombine.low %v503_v19, %v507_v53  ;;  %v4381_v18 = vcombine.high %v510_v24, %v514_v25  ;;  %v4383_v32 = vcombine.high %v511_v26, %v515_v28  ;;  %v52_v16 = vld [vmem:[%s6199_s1 + $0xf0] sm:$0xff]  ;;  %v49_v19 = vld [vmem:[%s6199_s1 + $0xd8] sm:$0xff] }
  0xdc   :  { %v53_v53 = vld [vmem:[%s6199_s1 + $0xf8] sm:$0xff] }
  0xde   :  { %3318 = vmatpush1.bf16.msra.mxu0 %v4324_v37  ;;  %3490 = vmatpush1.bf16.msra.mxu1 %v4326_v38  ;;  %v523_v37 = vld [vmem:[%s6199_s1 + $0xfa8] sm:$0xff]  ;;  %v4380_v38 = vcombine.low %v510_v24, %v514_v25  ;;  %v56_v24 = vld [vmem:[%s6199_s1 + $0x110] sm:$0xff] }
  0xdf   :  { %3319 = vmatprep.subr.bf16.mxu0 %v4333_v39  ;;  %3491 = vmatprep.subr.bf16.mxu1 %v4335_v40  ;;  %v4382_v39 = vcombine.low %v511_v26, %v515_v28  ;;  %v4389_v40 = vcombine.high %v518_v33, %v522_v34  ;;  %v4391_v41 = vcombine.high %v519_v36, %v523_v37  ;;  %v60_v25 = vld [vmem:[%s6199_s1 + $0x130] sm:$0xff]  ;;  %v61_v26 = vld [vmem:[%s6199_s1 + $0x138] sm:$0xff] }
  0xe0   :  { %v3920_v28 = vcombine.low %v48_v14, %v52_v16 }
  0xe2   :  { %3320 = vmatpush1.bf16.msra.mxu0 %v4332_v29  ;;  %3492 = vmatpush1.bf16.msra.mxu1 %v4334_v30  ;;  %v531_v29 = vld [vmem:[%s6199_s1 + $0xfe8] sm:$0xff]  ;;  %v4388_v30 = vcombine.low %v518_v33, %v522_v34  ;;  %v68_v33 = vld [vmem:[%s6199_s1 + $0x170] sm:$0xff]  ;;  %v65_v34 = vld [vmem:[%s6199_s1 + $0x158] sm:$0xff] }
  0xe3   :  { %3321 = vmatprep.subr.bf16.mxu0 %v4341_v48  ;;  %3493 = vmatprep.subr.bf16.mxu1 %v4343_v49  ;;  %v4390_v48 = vcombine.low %v519_v36, %v523_v37  ;;  %v4397_v49 = vcombine.high %v526_v42, %v530_v44  ;;  %v4399_v50 = vcombine.high %v527_v47, %v531_v29  ;;  %v69_v36 = vld [vmem:[%s6199_s1 + $0x178] sm:$0xff] }
  0xe4   :  { %v3928_v37 = vcombine.low %v56_v24, %v60_v25 }
  0xe6   :  { %3322 = vmatpush1.bf16.msra.mxu0 %v4340_v57  ;;  %3494 = vmatpush1.bf16.msra.mxu1 %v4342_v59  ;;  %v29_v57 = vld [vmem:[%s6199_s1 + $0x38] sm:$0xff]  ;;  %v4396_v59 = vcombine.low %v526_v42, %v530_v44  ;;  %v76_v42 = vld [vmem:[%s6199_s1 + $0x1b0] sm:$0xff] }
  0xe7   :  { %3323 = vmatprep.subr.bf16.mxu0 %v4349_v60  ;;  %3495 = vmatprep.subr.bf16.mxu1 %v4351_v61  ;;  %v4398_v60 = vcombine.low %v527_v47, %v531_v29  ;;  %v3897_v61 = vcombine.high %v24_v52, %v28_v55  ;;  %v3899_v62 = vcombine.high %v25_v56, %v29_v57  ;;  %v73_v44 = vld [vmem:[%s6199_s1 + $0x198] sm:$0xff] }
  0xe8   :  { %v77_v47 = vld [vmem:[%s6199_s1 + $0x1b8] sm:$0xff] }
  0xea   :  { %3324 = vmatpush1.bf16.msra.mxu0 %v4348_v2  ;;  %3496 = vmatpush1.bf16.msra.mxu1 %v4350_v3  ;;  %v33_v2 = vld [vmem:[%s6199_s1 + $0x58] sm:$0xff] }
  0xeb   :  { %3325 = vmatprep.subr.bf16.mxu0 %v4357_v4  ;;  %3497 = vmatprep.subr.bf16.mxu1 %v4359_v5  ;;  %v37_v3 = vld [vmem:[%s6199_s1 + $0x78] sm:$0xff]  ;;  %v3896_v4 = vcombine.low %v24_v52, %v28_v55  ;;  %v3898_v5 = vcombine.low %v25_v56, %v29_v57  ;;  %v84_v52 = vld [vmem:[%s6199_s1 + $0x1f0] sm:$0xff] }
  0xec   :  { %v3907_v7 = vcombine.high %v33_v2, %v37_v3  ;;  %v81_v55 = vld [vmem:[%s6199_s1 + $0x1d8] sm:$0xff] }
  0xed   :  { %v85_v56 = vld [vmem:[%s6199_s1 + $0x1f8] sm:$0xff] }
  0xee   :  { %3326 = vmatpush1.bf16.msra.mxu0 %v4356_v10  ;;  %3498 = vmatpush1.bf16.msra.mxu1 %v4358_v11  ;;  %v3904_v10 = vcombine.low %v32_v63, %v36_v0  ;;  %v3906_v11 = vcombine.low %v33_v2, %v37_v3  ;;  %v92_v63 = vld [vmem:[%s6199_s1 + $0x230] sm:$0xff]  ;;  %v89_v0 = vld [vmem:[%s6199_s1 + $0x218] sm:$0xff] }
  0xef   :  { %3327 = vmatprep.subr.bf16.mxu0 %v4365_v12  ;;  %3499 = vmatprep.subr.bf16.mxu1 %v4367_v13  ;;  %v3913_v12 = vcombine.high %v40_v45, %v44_v46  ;;  %v3915_v13 = vcombine.high %v41_v8, %v45_v9  ;;  %v93_v2 = vld [vmem:[%s6199_s1 + $0x238] sm:$0xff] }
  0xf2   :  { %3328 = vmatpush1.bf16.msra.mxu0 %v4364_v54  ;;  %3500 = vmatpush1.bf16.msra.mxu1 %v4366_v20  ;;  %v3912_v54 = vcombine.low %v40_v45, %v44_v46  ;;  %v3914_v20 = vcombine.low %v41_v8, %v45_v9  ;;  %v100_v45 = vld [vmem:[%s6199_s1 + $0x270] sm:$0xff]  ;;  %v97_v46 = vld [vmem:[%s6199_s1 + $0x258] sm:$0xff] }
  0xf3   :  { %3329 = vmatprep.subr.bf16.mxu0 %v4373_v21  ;;  %3501 = vmatprep.subr.bf16.mxu1 %v4375_v22  ;;  %v3921_v21 = vcombine.high %v48_v14, %v52_v16  ;;  %v3923_v22 = vcombine.high %v49_v19, %v53_v53  ;;  %v101_v8 = vld [vmem:[%s6199_s1 + $0x278] sm:$0xff]  ;;  %v108_v14 = vld [vmem:[%s6199_s1 + $0x2b0] sm:$0xff] }
  0xf4   :  { %v105_v16 = vld [vmem:[%s6199_s1 + $0x298] sm:$0xff] }
  0xf6   :  { %3330 = vmatpush1.bf16.msra.mxu0 %v4372_v31  ;;  %3502 = vmatpush1.bf16.msra.mxu1 %v4374_v17  ;;  %v3922_v31 = vcombine.low %v49_v19, %v53_v53  ;;  %v3929_v17 = vcombine.high %v56_v24, %v60_v25  ;;  %v109_v19 = vld [vmem:[%s6199_s1 + $0x2b8] sm:$0xff]  ;;  %v116_v24 = vld [vmem:[%s6199_s1 + $0x2f0] sm:$0xff] }
  0xf7   :  { %3331 = vmatprep.subr.bf16.mxu0 %v4381_v18  ;;  %3503 = vmatprep.subr.bf16.mxu1 %v4383_v32  ;;  %v64_v32 = vld [vmem:[%s6199_s1 + $0x150] sm:$0xff]  ;;  %v113_v25 = vld [vmem:[%s6199_s1 + $0x2d8] sm:$0xff] }
  0xf8   :  { %v3936_v29 = vcombine.low %v64_v32, %v68_v33 }
  0xfa   :  { %3332 = vmatpush1.bf16.msra.mxu0 %v4380_v38  ;;  %3504 = vmatpush1.bf16.msra.mxu1 %v4382_v39  ;;  %v3937_v39 = vcombine.high %v64_v32, %v68_v33  ;;  %v124_v32 = vld [vmem:[%s6199_s1 + $0x330] sm:$0xff]  ;;  %v121_v33 = vld [vmem:[%s6199_s1 + $0x318] sm:$0xff] }
  0xfb   :  { %3333 = vmatprep.subr.bf16.mxu0 %v4389_v40  ;;  %3505 = vmatprep.subr.bf16.mxu1 %v4391_v41  ;;  %v3939_v40 = vcombine.high %v65_v34, %v69_v36  ;;  %v72_v41 = vld [vmem:[%s6199_s1 + $0x190] sm:$0xff] }
  0xfc   :  { %v3944_v57 = vcombine.low %v72_v41, %v76_v42 }
  0xfe   :  { %3334 = vmatpush1.bf16.msra.mxu0 %v4388_v30  ;;  %3506 = vmatpush1.bf16.msra.mxu1 %v4390_v48  ;;  %v3938_v30 = vcombine.low %v65_v34, %v69_v36  ;;  %v3945_v48 = vcombine.high %v72_v41, %v76_v42  ;;  %v125_v34 = vld [vmem:[%s6199_s1 + $0x338] sm:$0xff]  ;;  %v132_v41 = vld [vmem:[%s6199_s1 + $0x370] sm:$0xff] }
  0xff   :  { %3335 = vmatprep.subr.bf16.mxu0 %v4397_v49  ;;  %3507 = vmatprep.subr.bf16.mxu1 %v4399_v50  ;;  %v3947_v49 = vcombine.high %v73_v44, %v77_v47  ;;  %v80_v50 = vld [vmem:[%s6199_s1 + $0x1d0] sm:$0xff]  ;;  %v129_v42 = vld [vmem:[%s6199_s1 + $0x358] sm:$0xff] }
 0x100   :  { %v3952_v3 = vcombine.low %v80_v50, %v84_v52 }
 0x102   :  { %3336 = vmatpush1.bf16.msra.mxu0 %v4396_v59  ;;  %3508 = vmatpush1.bf16.msra.mxu1 %v4398_v60  ;;  %v3946_v59 = vcombine.low %v73_v44, %v77_v47  ;;  %v3953_v60 = vcombine.high %v80_v50, %v84_v52  ;;  %v133_v44 = vld [vmem:[%s6199_s1 + $0x378] sm:$0xff]  ;;  %v140_v50 = vld [vmem:[%s6199_s1 + $0x3b0] sm:$0xff] }
 0x103   :  { %3520 = vmatprep.subr.bf16.mxu0 %v3897_v61  ;;  %3692 = vmatprep.subr.bf16.mxu1 %v3899_v62  ;;  %v3955_v61 = vcombine.high %v81_v55, %v85_v56  ;;  %v88_v62 = vld [vmem:[%s6199_s1 + $0x210] sm:$0xff]  ;;  %v137_v52 = vld [vmem:[%s6199_s1 + $0x398] sm:$0xff] }
 0x104   :  { %v3960_v9 = vcombine.low %v88_v62, %v92_v63 }
 0x105   :  { %3338 = vmatmul.mubr.bf16.vlgmr.msra.gmra.mrb[0].mxu0 %v5358_v1  ;;  %3510 = vmatmul.mubr.bf16.vlgmr.msra.gmra.mrb[0].mxu1 %v5358_v1 }
 0x106   :  { %3521 = vmatpush1.bf16.msra.mxu0 %v3896_v4  ;;  %3693 = vmatpush1.bf16.msra.mxu1 %v3898_v5  ;;  %v3954_v4 = vcombine.low %v81_v55, %v85_v56  ;;  %v3961_v5 = vcombine.high %v88_v62, %v92_v63  ;;  %v141_v55 = vld [vmem:[%s6199_s1 + $0x3b8] sm:$0xff]  ;;  %v148_v62 = vld [vmem:[%s6199_s1 + $0x3f0] sm:$0xff] }
 0x107   :  { %3522 = vmatprep.subr.bf16.mxu0 %v3905_v6  ;;  %3694 = vmatprep.subr.bf16.mxu1 %v3907_v7  ;;  %v3963_v6 = vcombine.high %v89_v0, %v93_v2  ;;  %v96_v7 = vld [vmem:[%s6199_s1 + $0x250] sm:$0xff]  ;;  %v145_v63 = vld [vmem:[%s6199_s1 + $0x3d8] sm:$0xff] }
 0x108   :  { %3552 = vmatprep.mubr.bf16.mxu0 %v4590_v58  ;;  %3724 = vmatprep.mubr.bf16.mxu1 %v4590_v58  ;;  %v57_v58 = vld [vmem:[%s6199_s1 + $0x118] sm:$0xff]  ;;  %v3968_v53 = vcombine.low %v96_v7, %v100_v45 }
 0x109   :  { %v3931_v18 = vcombine.high %v57_v58, %v61_v26  ;;  %v3930_v38 = vcombine.low %v57_v58, %v61_v26  ;;  %v117_v58 = vld [vmem:[%s6199_s1 + $0x2f8] sm:$0xff] }
 0x10a   :  { %3523 = vmatpush1.bf16.msra.mxu0 %v3904_v10  ;;  %3695 = vmatpush1.bf16.msra.mxu1 %v3906_v11  ;;  %v3962_v10 = vcombine.low %v89_v0, %v93_v2  ;;  %v3969_v11 = vcombine.high %v96_v7, %v100_v45  ;;  %v149_v0 = vld [vmem:[%s6199_s1 + $0x3f8] sm:$0xff]  ;;  %v156_v7 = vld [vmem:[%s6199_s1 + $0x430] sm:$0xff] }
 0x10b   :  { %3524 = vmatprep.subr.bf16.mxu0 %v3913_v12  ;;  %3696 = vmatprep.subr.bf16.mxu1 %v3915_v13  ;;  %v3971_v12 = vcombine.high %v97_v46, %v101_v8  ;;  %v104_v13 = vld [vmem:[%s6199_s1 + $0x290] sm:$0xff]  ;;  %v153_v45 = vld [vmem:[%s6199_s1 + $0x418] sm:$0xff] }
 0x10c   :  { %v3976_v26 = vcombine.low %v104_v13, %v108_v14 }
 0x10e   :  { %3525 = vmatpush1.bf16.msra.mxu0 %v3912_v54  ;;  %3697 = vmatpush1.bf16.msra.mxu1 %v3914_v20  ;;  %v3970_v54 = vcombine.low %v97_v46, %v101_v8  ;;  %v3977_v20 = vcombine.high %v104_v13, %v108_v14  ;;  %v157_v46 = vld [vmem:[%s6199_s1 + $0x438] sm:$0xff]  ;;  %v164_v13 = vld [vmem:[%s6199_s1 + $0x470] sm:$0xff] }
 0x10f   :  { %3526 = vmatprep.subr.bf16.mxu0 %v3921_v21  ;;  %3698 = vmatprep.subr.bf16.mxu1 %v3923_v22  ;;  %v3979_v21 = vcombine.high %v105_v16, %v109_v19  ;;  %v112_v22 = vld [vmem:[%s6199_s1 + $0x2d0] sm:$0xff]  ;;  %v161_v14 = vld [vmem:[%s6199_s1 + $0x458] sm:$0xff] }
 0x110   :  { %v3984_v36 = vcombine.low %v112_v22, %v116_v24 }
 0x112   :  { %3527 = vmatpush1.bf16.msra.mxu0 %v3920_v28  ;;  %3699 = vmatpush1.bf16.msra.mxu1 %v3922_v31  ;;  %v3978_v28 = vcombine.low %v105_v16, %v109_v19  ;;  %v3985_v31 = vcombine.high %v112_v22, %v116_v24  ;;  %v165_v16 = vld [vmem:[%s6199_s1 + $0x478] sm:$0xff]  ;;  %v172_v22 = vld [vmem:[%s6199_s1 + $0x4b0] sm:$0xff] }
 0x113   :  { %3528 = vmatprep.subr.bf16.mxu0 %v3929_v17  ;;  %3700 = vmatprep.subr.bf16.mxu1 %v3931_v18  ;;  %v3987_v17 = vcombine.high %v113_v25, %v117_v58  ;;  %v120_v18 = vld [vmem:[%s6199_s1 + $0x310] sm:$0xff]  ;;  %v169_v24 = vld [vmem:[%s6199_s1 + $0x498] sm:$0xff] }
 0x114   :  { %v3992_v47 = vcombine.low %v120_v18, %v124_v32 }
 0x116   :  { %3529 = vmatpush1.bf16.msra.mxu0 %v3928_v37  ;;  %3701 = vmatpush1.bf16.msra.mxu1 %v3930_v38  ;;  %v3986_v37 = vcombine.low %v113_v25, %v117_v58  ;;  %v3993_v38 = vcombine.high %v120_v18, %v124_v32  ;;  %v173_v25 = vld [vmem:[%s6199_s1 + $0x4b8] sm:$0xff]  ;;  %v180_v18 = vld [vmem:[%s6199_s1 + $0x4f0] sm:$0xff] }
 0x117   :  { %3530 = vmatprep.subr.bf16.mxu0 %v3937_v39  ;;  %3702 = vmatprep.subr.bf16.mxu1 %v3939_v40  ;;  %v3995_v39 = vcombine.high %v121_v33, %v125_v34  ;;  %v128_v40 = vld [vmem:[%s6199_s1 + $0x350] sm:$0xff]  ;;  %v181_v32 = vld [vmem:[%s6199_s1 + $0x4f8] sm:$0xff] }
 0x118   :  { %v4000_v56 = vcombine.low %v128_v40, %v132_v41 }
 0x11a   :  { %3531 = vmatpush1.bf16.msra.mxu0 %v3936_v29  ;;  %3703 = vmatpush1.bf16.msra.mxu1 %v3938_v30  ;;  %v3994_v29 = vcombine.low %v121_v33, %v125_v34  ;;  %v4001_v30 = vcombine.high %v128_v40, %v132_v41  ;;  %v4042_v34 = vcombine.low %v169_v24, %v173_v25  ;;  %v189_v40 = vld [vmem:[%s6199_s1 + $0x538] sm:$0xff] }
 0x11b   :  { %3532 = vmatprep.subr.bf16.mxu0 %v3945_v48  ;;  %3704 = vmatprep.subr.bf16.mxu1 %v3947_v49  ;;  %v4003_v48 = vcombine.high %v129_v42, %v133_v44  ;;  %v136_v49 = vld [vmem:[%s6199_s1 + $0x390] sm:$0xff] }
 0x11c   :  { %v4008_v2 = vcombine.low %v136_v49, %v140_v50 }
 0x11e   :  { %3533 = vmatpush1.bf16.msra.mxu0 %v3944_v57  ;;  %3705 = vmatpush1.bf16.msra.mxu1 %v3946_v59  ;;  %v4002_v57 = vcombine.low %v129_v42, %v133_v44  ;;  %v4009_v59 = vcombine.high %v136_v49, %v140_v50  ;;  %v197_v49 = vld [vmem:[%s6199_s1 + $0x578] sm:$0xff] }
 0x11f   :  { %3534 = vmatprep.subr.bf16.mxu0 %v3953_v60  ;;  %3706 = vmatprep.subr.bf16.mxu1 %v3955_v61  ;;  %v4011_v60 = vcombine.high %v137_v52, %v141_v55  ;;  %v144_v61 = vld [vmem:[%s6199_s1 + $0x3d0] sm:$0xff] }
 0x120   :  { %v4016_v8 = vcombine.low %v144_v61, %v148_v62 }
 0x122   :  { %3535 = vmatpush1.bf16.msra.mxu0 %v3952_v3  ;;  %3707 = vmatpush1.bf16.msra.mxu1 %v3954_v4  ;;  %v4010_v3 = vcombine.low %v137_v52, %v141_v55  ;;  %v4017_v4 = vcombine.high %v144_v61, %v148_v62  ;;  %v205_v61 = vld [vmem:[%s6199_s1 + $0x5b8] sm:$0xff] }
 0x123   :  { %3536 = vmatprep.subr.bf16.mxu0 %v3961_v5  ;;  %3708 = vmatprep.subr.bf16.mxu1 %v3963_v6  ;;  %v4019_v5 = vcombine.high %v145_v63, %v149_v0  ;;  %v152_v6 = vld [vmem:[%s6199_s1 + $0x410] sm:$0xff] }
 0x124   :  { %v4024_v19 = vcombine.low %v152_v6, %v156_v7 }
 0x126   :  { %3537 = vmatpush1.bf16.msra.mxu0 %v3960_v9  ;;  %3709 = vmatpush1.bf16.msra.mxu1 %v3962_v10  ;;  %v4018_v9 = vcombine.low %v145_v63, %v149_v0  ;;  %v4025_v10 = vcombine.high %v152_v6, %v156_v7  ;;  %v213_v6 = vld [vmem:[%s6199_s1 + $0x5f8] sm:$0xff] }
 0x127   :  { %3538 = vmatprep.subr.bf16.mxu0 %v3969_v11  ;;  %3710 = vmatprep.subr.bf16.mxu1 %v3971_v12  ;;  %v4027_v11 = vcombine.high %v153_v45, %v157_v46  ;;  %v160_v12 = vld [vmem:[%s6199_s1 + $0x450] sm:$0xff] }
 0x128   :  { %v4032_v58 = vcombine.low %v160_v12, %v164_v13 }
 0x12a   :  { %3539 = vmatpush1.bf16.msra.mxu0 %v3968_v53  ;;  %3711 = vmatpush1.bf16.msra.mxu1 %v3970_v54  ;;  %v4026_v53 = vcombine.low %v153_v45, %v157_v46  ;;  %v4033_v54 = vcombine.high %v160_v12, %v164_v13  ;;  %v221_v12 = vld [vmem:[%s6199_s1 + $0x638] sm:$0xff] }
 0x12b   :  { %3540 = vmatprep.subr.bf16.mxu0 %v3977_v20  ;;  %3712 = vmatprep.subr.bf16.mxu1 %v3979_v21  ;;  %v4035_v20 = vcombine.high %v161_v14, %v165_v16  ;;  %v168_v21 = vld [vmem:[%s6199_s1 + $0x490] sm:$0xff] }
 0x12c   :  { %v4040_v33 = vcombine.low %v168_v21, %v172_v22 }
 0x12e   :  { %3541 = vmatpush1.bf16.msra.mxu0 %v3976_v26  ;;  %3713 = vmatpush1.bf16.msra.mxu1 %v3978_v28  ;;  %v4034_v26 = vcombine.low %v161_v14, %v165_v16  ;;  %v4041_v28 = vcombine.high %v168_v21, %v172_v22  ;;  %v229_v21 = vld [vmem:[%s6199_s1 + $0x678] sm:$0xff] }
 0x12f   :  { %3542 = vmatprep.subr.bf16.mxu0 %v3985_v31  ;;  %3714 = vmatprep.subr.bf16.mxu1 %v3987_v17  ;;  %v4043_v31 = vcombine.high %v169_v24, %v173_v25  ;;  %v176_v17 = vld [vmem:[%s6199_s1 + $0x4d0] sm:$0xff] }
 0x130   :  { %v4048_v41 = vcombine.low %v176_v17, %v180_v18 }
 0x132   :  { %3543 = vmatpush1.bf16.msra.mxu0 %v3984_v36  ;;  %3715 = vmatpush1.bf16.msra.mxu1 %v3986_v37  ;;  %v4049_v36 = vcombine.high %v176_v17, %v180_v18  ;;  %v237_v17 = vld [vmem:[%s6199_s1 + $0x6b8] sm:$0xff] }
 0x133   :  { %3544 = vmatprep.subr.bf16.mxu0 %v3993_v38  ;;  %3716 = vmatprep.subr.bf16.mxu1 %v3995_v39  ;;  %v184_v38 = vld [vmem:[%s6199_s1 + $0x510] sm:$0xff] }
 0x134   :  { %v188_v39 = vld [vmem:[%s6199_s1 + $0x530] sm:$0xff] }
 0x135   :  { %v4057_v44 = vcombine.high %v184_v38, %v188_v39  ;;  %v4056_v50 = vcombine.low %v184_v38, %v188_v39  ;;  %v245_v38 = vld [vmem:[%s6199_s1 + $0x6f8] sm:$0xff] }
 0x136   :  { %3545 = vmatpush1.bf16.msra.mxu0 %v3992_v47  ;;  %3717 = vmatpush1.bf16.msra.mxu1 %v3994_v29  ;;  %v192_v29 = vld [vmem:[%s6199_s1 + $0x550] sm:$0xff] }
 0x137   :  { %3546 = vmatprep.subr.bf16.mxu0 %v4001_v30  ;;  %3718 = vmatprep.subr.bf16.mxu1 %v4003_v48  ;;  %v196_v30 = vld [vmem:[%s6199_s1 + $0x570] sm:$0xff]  ;;  %v193_v48 = vld [vmem:[%s6199_s1 + $0x558] sm:$0xff] }
 0x138   :  { %v4065_v55 = vcombine.high %v192_v29, %v196_v30  ;;  %v4064_v62 = vcombine.low %v192_v29, %v196_v30  ;;  %v4066_v63 = vcombine.low %v193_v48, %v197_v49  ;;  %v253_v29 = vld [vmem:[%s6199_s1 + $0x738] sm:$0xff] }
 0x13a   :  { %3547 = vmatpush1.bf16.msra.mxu0 %v4000_v56  ;;  %3719 = vmatpush1.bf16.msra.mxu1 %v4002_v57  ;;  %v4067_v56 = vcombine.high %v193_v48, %v197_v49  ;;  %v200_v57 = vld [vmem:[%s6199_s1 + $0x590] sm:$0xff] }
 0x13b   :  { %3548 = vmatprep.subr.bf16.mxu0 %v4009_v59  ;;  %3720 = vmatprep.subr.bf16.mxu1 %v4011_v60  ;;  %v204_v59 = vld [vmem:[%s6199_s1 + $0x5b0] sm:$0xff]  ;;  %v201_v60 = vld [vmem:[%s6199_s1 + $0x598] sm:$0xff] }
 0x13c   :  { %v4073_v0 = vcombine.high %v200_v57, %v204_v59  ;;  %v4072_v7 = vcombine.low %v200_v57, %v204_v59  ;;  %v4074_v45 = vcombine.low %v201_v60, %v205_v61  ;;  %v261_v57 = vld [vmem:[%s6199_s1 + $0x778] sm:$0xff] }
 0x13e   :  { %3549 = vmatpush1.bf16.msra.mxu0 %v4008_v2  ;;  %3721 = vmatpush1.bf16.msra.mxu1 %v4010_v3  ;;  %v4075_v2 = vcombine.high %v201_v60, %v205_v61  ;;  %v208_v3 = vld [vmem:[%s6199_s1 + $0x5d0] sm:$0xff] }
 0x13f   :  { %3550 = vmatprep.subr.bf16.mxu0 %v4017_v4  ;;  %3722 = vmatprep.subr.bf16.mxu1 %v4019_v5  ;;  %v212_v4 = vld [vmem:[%s6199_s1 + $0x5f0] sm:$0xff]  ;;  %v209_v5 = vld [vmem:[%s6199_s1 + $0x5d8] sm:$0xff] }
 0x140   :  { %v4081_v46 = vcombine.high %v208_v3, %v212_v4  ;;  %v4080_v13 = vcombine.low %v208_v3, %v212_v4  ;;  %v4082_v14 = vcombine.low %v209_v5, %v213_v6  ;;  %v269_v3 = vld [vmem:[%s6199_s1 + $0x7b8] sm:$0xff] }
 0x142   :  { %3551 = vmatpush1.bf16.msra.mxu0 %v4016_v8  ;;  %3723 = vmatpush1.bf16.msra.mxu1 %v4018_v9  ;;  %v4083_v8 = vcombine.high %v209_v5, %v213_v6  ;;  %v216_v9 = vld [vmem:[%s6199_s1 + $0x610] sm:$0xff] }
 0x143   :  { %3563 = vmatprep.subr.bf16.mxu0 %v4025_v10  ;;  %3735 = vmatprep.subr.bf16.mxu1 %v4027_v11  ;;  %v220_v10 = vld [vmem:[%s6199_s1 + $0x630] sm:$0xff]  ;;  %v217_v11 = vld [vmem:[%s6199_s1 + $0x618] sm:$0xff] }
 0x144   :  { %v4089_v16 = vcombine.high %v216_v9, %v220_v10  ;;  %v4088_v22 = vcombine.low %v216_v9, %v220_v10  ;;  %v4090_v24 = vcombine.low %v217_v11, %v221_v12  ;;  %v277_v9 = vld [vmem:[%s6199_s1 + $0x7f8] sm:$0xff] }
 0x145   :  { %3553 = vmatmul.mubr.bf16.vlgmr.msra.gmra.mrb[4].mxu0 %v4719_v15  ;;  %3725 = vmatmul.mubr.bf16.vlgmr.msra.gmra.mrb[4].mxu1 %v4719_v15  ;;  %v177_v15 = vld [vmem:[%s6199_s1 + $0x4d8] sm:$0xff] }
 0x146   :  { %3564 = vmatpush1.bf16.msra.mxu0 %v4024_v19  ;;  %3736 = vmatpush1.bf16.msra.mxu1 %v4026_v53  ;;  %v4051_v37 = vcombine.high %v177_v15, %v181_v32  ;;  %v4050_v42 = vcombine.low %v177_v15, %v181_v32  ;;  %v4091_v19 = vcombine.high %v217_v11, %v221_v12  ;;  %v224_v53 = vld [vmem:[%s6199_s1 + $0x650] sm:$0xff] }
 0x147   :  { %3565 = vmatprep.subr.bf16.mxu0 %v4033_v54  ;;  %3737 = vmatprep.subr.bf16.mxu1 %v4035_v20  ;;  %v228_v54 = vld [vmem:[%s6199_s1 + $0x670] sm:$0xff]  ;;  %v225_v20 = vld [vmem:[%s6199_s1 + $0x658] sm:$0xff] }
 0x148   :  { %3595 = vmatprep.mubr.bf16.mxu0 %v4742_v23  ;;  %3767 = vmatprep.mubr.bf16.mxu1 %v4742_v23  ;;  %v185_v23 = vld [vmem:[%s6199_s1 + $0x518] sm:$0xff]  ;;  %v4097_v25 = vcombine.high %v224_v53, %v228_v54  ;;  %v4096_v18 = vcombine.low %v224_v53, %v228_v54  ;;  %v4098_v15 = vcombine.low %v225_v20, %v229_v21 }
 0x149   :  { %v4059_v47 = vcombine.high %v185_v23, %v189_v40  ;;  %v4058_v52 = vcombine.low %v185_v23, %v189_v40  ;;  %v285_v53 = vld [vmem:[%s6199_s1 + $0x838] sm:$0xff] }
 0x14a   :  { %3566 = vmatpush1.bf16.msra.mxu0 %v4032_v58  ;;  %3738 = vmatpush1.bf16.msra.mxu1 %v4034_v26  ;;  %v4099_v58 = vcombine.high %v225_v20, %v229_v21  ;;  %v232_v26 = vld [vmem:[%s6199_s1 + $0x690] sm:$0xff] }
 0x14b   :  { %3567 = vmatprep.subr.bf16.mxu0 %v4041_v28  ;;  %3739 = vmatprep.subr.bf16.mxu1 %v4043_v31  ;;  %v236_v28 = vld [vmem:[%s6199_s1 + $0x6b0] sm:$0xff]  ;;  %v233_v31 = vld [vmem:[%s6199_s1 + $0x698] sm:$0xff] }
 0x14c   :  { %v4105_v32 = vcombine.high %v232_v26, %v236_v28  ;;  %v4104_v39 = vcombine.low %v232_v26, %v236_v28  ;;  %v4106_v23 = vcombine.low %v233_v31, %v237_v17  ;;  %v293_v26 = vld [vmem:[%s6199_s1 + $0x878] sm:$0xff] }
 0x14e   :  { %3568 = vmatpush1.bf16.msra.mxu0 %v4040_v33  ;;  %3740 = vmatpush1.bf16.msra.mxu1 %v4042_v34  ;;  %v4107_v33 = vcombine.high %v233_v31, %v237_v17  ;;  %v240_v34 = vld [vmem:[%s6199_s1 + $0x6d0] sm:$0xff] }
 0x14f   :  { %3569 = vmatprep.subr.bf16.mxu0 %v4049_v36  ;;  %3741 = vmatprep.subr.bf16.mxu1 %v4051_v37  ;;  %v244_v36 = vld [vmem:[%s6199_s1 + $0x6f0] sm:$0xff]  ;;  %v241_v37 = vld [vmem:[%s6199_s1 + $0x6d8] sm:$0xff] }
 0x150   :  { %v4113_v40 = vcombine.high %v240_v34, %v244_v36  ;;  %v4112_v30 = vcombine.low %v240_v34, %v244_v36  ;;  %v4114_v48 = vcombine.low %v241_v37, %v245_v38  ;;  %v301_v34 = vld [vmem:[%s6199_s1 + $0x8b8] sm:$0xff] }
 0x152   :  { %3570 = vmatpush1.bf16.msra.mxu0 %v4048_v41  ;;  %3742 = vmatpush1.bf16.msra.mxu1 %v4050_v42  ;;  %v4115_v41 = vcombine.high %v241_v37, %v245_v38  ;;  %v248_v42 = vld [vmem:[%s6199_s1 + $0x710] sm:$0xff] }
 0x153   :  { %3571 = vmatprep.subr.bf16.mxu0 %v4057_v44  ;;  %3743 = vmatprep.subr.bf16.mxu1 %v4059_v47  ;;  %v252_v44 = vld [vmem:[%s6199_s1 + $0x730] sm:$0xff]  ;;  %v249_v47 = vld [vmem:[%s6199_s1 + $0x718] sm:$0xff] }
 0x154   :  { %v4121_v49 = vcombine.high %v248_v42, %v252_v44  ;;  %v4120_v59 = vcombine.low %v248_v42, %v252_v44  ;;  %v4122_v60 = vcombine.low %v249_v47, %v253_v29 }
 0x156   :  { %3572 = vmatpush1.bf16.msra.mxu0 %v4056_v50  ;;  %3744 = vmatpush1.bf16.msra.mxu1 %v4058_v52  ;;  %v4123_v50 = vcombine.high %v249_v47, %v253_v29  ;;  %v256_v52 = vld [vmem:[%s6199_s1 + $0x750] sm:$0xff] }
 0x157   :  { %3573 = vmatprep.subr.bf16.mxu0 %v4065_v55  ;;  %3745 = vmatprep.subr.bf16.mxu1 %v4067_v56  ;;  %v260_v55 = vld [vmem:[%s6199_s1 + $0x770] sm:$0xff]  ;;  %v257_v56 = vld [vmem:[%s6199_s1 + $0x758] sm:$0xff] }
 0x158   :  { %v4129_v61 = vcombine.high %v256_v52, %v260_v55  ;;  %v4128_v4 = vcombine.low %v256_v52, %v260_v55  ;;  %v4130_v5 = vcombine.low %v257_v56, %v261_v57 }
 0x15a   :  { %3574 = vmatpush1.bf16.msra.mxu0 %v4064_v62  ;;  %3746 = vmatpush1.bf16.msra.mxu1 %v4066_v63  ;;  %v4131_v62 = vcombine.high %v257_v56, %v261_v57  ;;  %v264_v63 = vld [vmem:[%s6199_s1 + $0x790] sm:$0xff] }
 0x15b   :  { %3575 = vmatprep.subr.bf16.mxu0 %v4073_v0  ;;  %3747 = vmatprep.subr.bf16.mxu1 %v4075_v2  ;;  %v268_v0 = vld [vmem:[%s6199_s1 + $0x7b0] sm:$0xff]  ;;  %v265_v2 = vld [vmem:[%s6199_s1 + $0x798] sm:$0xff] }
 0x15c   :  { %v4137_v6 = vcombine.high %v264_v63, %v268_v0  ;;  %v4136_v10 = vcombine.low %v264_v63, %v268_v0  ;;  %v4138_v11 = vcombine.low %v265_v2, %v269_v3  ;;  %v320_v57 = vld [vmem:[%s6199_s1 + $0x950] sm:$0xff] }
 0x15e   :  { %3576 = vmatpush1.bf16.msra.mxu0 %v4072_v7  ;;  %3748 = vmatpush1.bf16.msra.mxu1 %v4074_v45  ;;  %v4139_v7 = vcombine.high %v265_v2, %v269_v3  ;;  %v272_v45 = vld [vmem:[%s6199_s1 + $0x7d0] sm:$0xff] }
 0x15f   :  { %3577 = vmatprep.subr.bf16.mxu0 %v4081_v46  ;;  %3749 = vmatprep.subr.bf16.mxu1 %v4083_v8  ;;  %v276_v46 = vld [vmem:[%s6199_s1 + $0x7f0] sm:$0xff]  ;;  %v273_v8 = vld [vmem:[%s6199_s1 + $0x7d8] sm:$0xff] }
 0x160   :  { %v4145_v12 = vcombine.high %v272_v45, %v276_v46  ;;  %v4144_v54 = vcombine.low %v272_v45, %v276_v46  ;;  %v4146_v20 = vcombine.low %v273_v8, %v277_v9  ;;  %v328_v3 = vld [vmem:[%s6199_s1 + $0x990] sm:$0xff] }
 0x162   :  { %3578 = vmatpush1.bf16.msra.mxu0 %v4080_v13  ;;  %3750 = vmatpush1.bf16.msra.mxu1 %v4082_v14  ;;  %v4147_v13 = vcombine.high %v273_v8, %v277_v9  ;;  %v280_v14 = vld [vmem:[%s6199_s1 + $0x810] sm:$0xff] }
 0x163   :  { %3579 = vmatprep.subr.bf16.mxu0 %v4089_v16  ;;  %3751 = vmatprep.subr.bf16.mxu1 %v4091_v19  ;;  %v284_v16 = vld [vmem:[%s6199_s1 + $0x830] sm:$0xff]  ;;  %v281_v19 = vld [vmem:[%s6199_s1 + $0x818] sm:$0xff] }
 0x164   :  { %v4153_v21 = vcombine.high %v280_v14, %v284_v16  ;;  %v4152_v28 = vcombine.low %v280_v14, %v284_v16  ;;  %v4154_v31 = vcombine.low %v281_v19, %v285_v53  ;;  %v336_v9 = vld [vmem:[%s6199_s1 + $0x9d0] sm:$0xff] }
 0x166   :  { %3580 = vmatpush1.bf16.msra.mxu0 %v4088_v22  ;;  %3752 = vmatpush1.bf16.msra.mxu1 %v4090_v24  ;;  %v4155_v22 = vcombine.high %v281_v19, %v285_v53  ;;  %v288_v24 = vld [vmem:[%s6199_s1 + $0x850] sm:$0xff] }
 0x167   :  { %3581 = vmatprep.subr.bf16.mxu0 %v4097_v25  ;;  %3753 = vmatprep.subr.bf16.mxu1 %v4099_v58  ;;  %v292_v25 = vld [vmem:[%s6199_s1 + $0x870] sm:$0xff]  ;;  %v289_v58 = vld [vmem:[%s6199_s1 + $0x858] sm:$0xff] }
 0x168   :  { %v4161_v17 = vcombine.high %v288_v24, %v292_v25  ;;  %v4160_v36 = vcombine.low %v288_v24, %v292_v25  ;;  %v4162_v37 = vcombine.low %v289_v58, %v293_v26  ;;  %v344_v53 = vld [vmem:[%s6199_s1 + $0xa10] sm:$0xff] }
 0x16a   :  { %3582 = vmatpush1.bf16.msra.mxu0 %v4096_v18  ;;  %3754 = vmatpush1.bf16.msra.mxu1 %v4098_v15  ;;  %v4163_v18 = vcombine.high %v289_v58, %v293_v26  ;;  %v296_v15 = vld [vmem:[%s6199_s1 + $0x890] sm:$0xff] }
 0x16b   :  { %3583 = vmatprep.subr.bf16.mxu0 %v4105_v32  ;;  %3755 = vmatprep.subr.bf16.mxu1 %v4107_v33  ;;  %v300_v32 = vld [vmem:[%s6199_s1 + $0x8b0] sm:$0xff]  ;;  %v297_v33 = vld [vmem:[%s6199_s1 + $0x898] sm:$0xff] }
 0x16c   :  { %v4169_v38 = vcombine.high %v296_v15, %v300_v32  ;;  %v4168_v42 = vcombine.low %v296_v15, %v300_v32  ;;  %v4170_v44 = vcombine.low %v297_v33, %v301_v34  ;;  %v352_v26 = vld [vmem:[%s6199_s1 + $0xa50] sm:$0xff] }
 0x16e   :  { %3584 = vmatpush1.bf16.msra.mxu0 %v4104_v39  ;;  %3756 = vmatpush1.bf16.msra.mxu1 %v4106_v23  ;;  %v4171_v39 = vcombine.high %v297_v33, %v301_v34  ;;  %v304_v23 = vld [vmem:[%s6199_s1 + $0x8d0] sm:$0xff] }
 0x16f   :  { %3585 = vmatprep.subr.bf16.mxu0 %v4113_v40  ;;  %3757 = vmatprep.subr.bf16.mxu1 %v4115_v41  ;;  %v308_v40 = vld [vmem:[%s6199_s1 + $0x8f0] sm:$0xff]  ;;  %v309_v41 = vld [vmem:[%s6199_s1 + $0x8f8] sm:$0xff] }
 0x170   :  { %v4177_v47 = vcombine.high %v304_v23, %v308_v40  ;;  %v360_v34 = vld [vmem:[%s6199_s1 + $0xa90] sm:$0xff] }
 0x172   :  { %3586 = vmatpush1.bf16.msra.mxu0 %v4112_v30  ;;  %3758 = vmatpush1.bf16.msra.mxu1 %v4114_v48  ;;  %v312_v30 = vld [vmem:[%s6199_s1 + $0x910] sm:$0xff] }
 0x173   :  { %3587 = vmatprep.subr.bf16.mxu0 %v4121_v49  ;;  %3759 = vmatprep.subr.bf16.mxu1 %v4123_v50  ;;  %v316_v48 = vld [vmem:[%s6199_s1 + $0x930] sm:$0xff]  ;;  %v317_v49 = vld [vmem:[%s6199_s1 + $0x938] sm:$0xff]  ;;  %v4176_v50 = vcombine.low %v304_v23, %v308_v40 }
 0x174   :  { %v4185_v55 = vcombine.high %v312_v30, %v316_v48 }
 0x176   :  { %3588 = vmatpush1.bf16.msra.mxu0 %v4120_v59  ;;  %3760 = vmatpush1.bf16.msra.mxu1 %v4122_v60  ;;  %v324_v59 = vld [vmem:[%s6199_s1 + $0x970] sm:$0xff]  ;;  %v321_v60 = vld [vmem:[%s6199_s1 + $0x958] sm:$0xff] }
 0x177   :  { %3589 = vmatprep.subr.bf16.mxu0 %v4129_v61  ;;  %3761 = vmatprep.subr.bf16.mxu1 %v4131_v62  ;;  %v325_v61 = vld [vmem:[%s6199_s1 + $0x978] sm:$0xff]  ;;  %v4184_v62 = vcombine.low %v312_v30, %v316_v48  ;;  %v4193_v0 = vcombine.high %v320_v57, %v324_v59 }
 0x178   :  { %v4195_v2 = vcombine.high %v321_v60, %v325_v61  ;;  %v4194_v45 = vcombine.low %v321_v60, %v325_v61  ;;  %v384_v61 = vld [vmem:[%s6199_s1 + $0xb50] sm:$0xff] }
 0x17a   :  { %3590 = vmatpush1.bf16.msra.mxu0 %v4128_v4  ;;  %3762 = vmatpush1.bf16.msra.mxu1 %v4130_v5  ;;  %v332_v4 = vld [vmem:[%s6199_s1 + $0x9b0] sm:$0xff]  ;;  %v329_v5 = vld [vmem:[%s6199_s1 + $0x998] sm:$0xff] }
 0x17b   :  { %3591 = vmatprep.subr.bf16.mxu0 %v4137_v6  ;;  %3763 = vmatprep.subr.bf16.mxu1 %v4139_v7  ;;  %v333_v6 = vld [vmem:[%s6199_s1 + $0x9b8] sm:$0xff]  ;;  %v4192_v7 = vcombine.low %v320_v57, %v324_v59  ;;  %v4201_v46 = vcombine.high %v328_v3, %v332_v4 }
 0x17c   :  { %v4203_v8 = vcombine.high %v329_v5, %v333_v6  ;;  %v4202_v14 = vcombine.low %v329_v5, %v333_v6  ;;  %v392_v6 = vld [vmem:[%s6199_s1 + $0xb90] sm:$0xff] }
 0x17e   :  { %3592 = vmatpush1.bf16.msra.mxu0 %v4136_v10  ;;  %3764 = vmatpush1.bf16.msra.mxu1 %v4138_v11  ;;  %v340_v10 = vld [vmem:[%s6199_s1 + $0x9f0] sm:$0xff]  ;;  %v337_v11 = vld [vmem:[%s6199_s1 + $0x9d8] sm:$0xff] }
 0x17f   :  { %3593 = vmatprep.subr.bf16.mxu0 %v4145_v12  ;;  %3765 = vmatprep.subr.bf16.mxu1 %v4147_v13  ;;  %v341_v12 = vld [vmem:[%s6199_s1 + $0x9f8] sm:$0xff]  ;;  %v4200_v13 = vcombine.low %v328_v3, %v332_v4  ;;  %v4209_v16 = vcombine.high %v336_v9, %v340_v10 }
 0x180   :  { %v4211_v19 = vcombine.high %v337_v11, %v341_v12  ;;  %v4210_v24 = vcombine.low %v337_v11, %v341_v12  ;;  %v400_v12 = vld [vmem:[%s6199_s1 + $0xbd0] sm:$0xff] }
 0x182   :  { %3594 = vmatpush1.bf16.msra.mxu0 %v4144_v54  ;;  %3766 = vmatpush1.bf16.msra.mxu1 %v4146_v20  ;;  %v348_v54 = vld [vmem:[%s6199_s1 + $0xa30] sm:$0xff]  ;;  %v345_v20 = vld [vmem:[%s6199_s1 + $0xa18] sm:$0xff] }
 0x183   :  { %3606 = vmatprep.subr.bf16.mxu0 %v4153_v21  ;;  %3778 = vmatprep.subr.bf16.mxu1 %v4155_v22  ;;  %v349_v21 = vld [vmem:[%s6199_s1 + $0xa38] sm:$0xff]  ;;  %v4208_v22 = vcombine.low %v336_v9, %v340_v10  ;;  %v4217_v25 = vcombine.high %v344_v53, %v348_v54 }
 0x184   :  { %v4219_v58 = vcombine.high %v345_v20, %v349_v21  ;;  %v4218_v15 = vcombine.low %v345_v20, %v349_v21  ;;  %v408_v21 = vld [vmem:[%s6199_s1 + $0xc10] sm:$0xff] }
 0x185   :  { %3596 = vmatmul.mubr.bf16.vlgmr.msra.gmra.mrb[4].mxu0 %v4933_v27  ;;  %3768 = vmatmul.mubr.bf16.vlgmr.msra.gmra.mrb[4].mxu1 %v4933_v27  ;;  %v305_v27 = vld [vmem:[%s6199_s1 + $0x8d8] sm:$0xff] }
 0x186   :  { %3607 = vmatpush1.bf16.msra.mxu0 %v4152_v28  ;;  %3779 = vmatpush1.bf16.msra.mxu1 %v4154_v31  ;;  %v4179_v29 = vcombine.high %v305_v27, %v309_v41  ;;  %v4178_v52 = vcombine.low %v305_v27, %v309_v41  ;;  %v356_v28 = vld [vmem:[%s6199_s1 + $0xa70] sm:$0xff]  ;;  %v353_v31 = vld [vmem:[%s6199_s1 + $0xa58] sm:$0xff] }
 0x187   :  { %3608 = vmatprep.subr.bf16.mxu0 %v4161_v17  ;;  %3780 = vmatprep.subr.bf16.mxu1 %v4163_v18  ;;  %v357_v17 = vld [vmem:[%s6199_s1 + $0xa78] sm:$0xff]  ;;  %v4216_v18 = vcombine.low %v344_v53, %v348_v54  ;;  %v4225_v32 = vcombine.high %v352_v26, %v356_v28  ;;  %v368_v41 = vld [vmem:[%s6199_s1 + $0xad0] sm:$0xff] }
 0x188   :  { %3638 = vmatprep.mubr.bf16.mxu0 %v4956_v35  ;;  %3810 = vmatprep.mubr.bf16.mxu1 %v4956_v35  ;;  %v313_v35 = vld [vmem:[%s6199_s1 + $0x918] sm:$0xff]  ;;  %v4227_v33 = vcombine.high %v353_v31, %v357_v17  ;;  %v4226_v23 = vcombine.low %v353_v31, %v357_v17  ;;  %v416_v17 = vld [vmem:[%s6199_s1 + $0xc50] sm:$0xff] }
 0x189   :  { %v4187_v56 = vcombine.high %v313_v35, %v317_v49  ;;  %v4186_v63 = vcombine.low %v313_v35, %v317_v49  ;;  %v376_v49 = vld [vmem:[%s6199_s1 + $0xb10] sm:$0xff] }
 0x18a   :  { %3609 = vmatpush1.bf16.msra.mxu0 %v4160_v36  ;;  %3781 = vmatpush1.bf16.msra.mxu1 %v4162_v37  ;;  %v364_v36 = vld [vmem:[%s6199_s1 + $0xab0] sm:$0xff]  ;;  %v361_v37 = vld [vmem:[%s6199_s1 + $0xa98] sm:$0xff] }
 0x18b   :  { %3610 = vmatprep.subr.bf16.mxu0 %v4169_v38  ;;  %3782 = vmatprep.subr.bf16.mxu1 %v4171_v39  ;;  %v365_v38 = vld [vmem:[%s6199_s1 + $0xab8] sm:$0xff]  ;;  %v4224_v39 = vcombine.low %v352_v26, %v356_v28  ;;  %v4233_v40 = vcombine.high %v360_v34, %v364_v36 }
 0x18c   :  { %v4235_v27 = vcombine.high %v361_v37, %v365_v38  ;;  %v4234_v30 = vcombine.low %v361_v37, %v365_v38  ;;  %v424_v38 = vld [vmem:[%s6199_s1 + $0xc90] sm:$0xff] }
 0x18e   :  { %3611 = vmatpush1.bf16.msra.mxu0 %v4168_v42  ;;  %3783 = vmatpush1.bf16.msra.mxu1 %v4170_v44  ;;  %v372_v42 = vld [vmem:[%s6199_s1 + $0xaf0] sm:$0xff]  ;;  %v369_v44 = vld [vmem:[%s6199_s1 + $0xad8] sm:$0xff] }
 0x18f   :  { %3612 = vmatprep.subr.bf16.mxu0 %v4177_v47  ;;  %3784 = vmatprep.subr.bf16.mxu1 %v4179_v29  ;;  %v373_v47 = vld [vmem:[%s6199_s1 + $0xaf8] sm:$0xff]  ;;  %v4232_v29 = vcombine.low %v360_v34, %v364_v36  ;;  %v4241_v48 = vcombine.high %v368_v41, %v372_v42 }
 0x190   :  { %v4243_v35 = vcombine.high %v369_v44, %v373_v47  ;;  %v4242_v57 = vcombine.low %v369_v44, %v373_v47  ;;  %v432_v47 = vld [vmem:[%s6199_s1 + $0xcd0] sm:$0xff] }
 0x192   :  { %3613 = vmatpush1.bf16.msra.mxu0 %v4176_v50  ;;  %3785 = vmatpush1.bf16.msra.mxu1 %v4178_v52  ;;  %v380_v50 = vld [vmem:[%s6199_s1 + $0xb30] sm:$0xff]  ;;  %v377_v52 = vld [vmem:[%s6199_s1 + $0xb18] sm:$0xff] }
 0x193   :  { %3614 = vmatprep.subr.bf16.mxu0 %v4185_v55  ;;  %3786 = vmatprep.subr.bf16.mxu1 %v4187_v56  ;;  %v381_v55 = vld [vmem:[%s6199_s1 + $0xb38] sm:$0xff]  ;;  %v4240_v56 = vcombine.low %v368_v41, %v372_v42  ;;  %v4249_v59 = vcombine.high %v376_v49, %v380_v50 }
 0x194   :  { %v4251_v60 = vcombine.high %v377_v52, %v381_v55  ;;  %v4250_v3 = vcombine.low %v377_v52, %v381_v55  ;;  %v440_v55 = vld [vmem:[%s6199_s1 + $0xd10] sm:$0xff] }
 0x196   :  { %3615 = vmatpush1.bf16.msra.mxu0 %v4184_v62  ;;  %3787 = vmatpush1.bf16.msra.mxu1 %v4186_v63  ;;  %v388_v62 = vld [vmem:[%s6199_s1 + $0xb70] sm:$0xff]  ;;  %v385_v63 = vld [vmem:[%s6199_s1 + $0xb58] sm:$0xff] }
 0x197   :  { %3616 = vmatprep.subr.bf16.mxu0 %v4193_v0  ;;  %3788 = vmatprep.subr.bf16.mxu1 %v4195_v2  ;;  %v389_v0 = vld [vmem:[%s6199_s1 + $0xb78] sm:$0xff]  ;;  %v4248_v2 = vcombine.low %v376_v49, %v380_v50  ;;  %v4257_v4 = vcombine.high %v384_v61, %v388_v62 }
 0x198   :  { %v4259_v5 = vcombine.high %v385_v63, %v389_v0  ;;  %v4258_v9 = vcombine.low %v385_v63, %v389_v0  ;;  %v448_v0 = vld [vmem:[%s6199_s1 + $0xd50] sm:$0xff] }
 0x19a   :  { %3617 = vmatpush1.bf16.msra.mxu0 %v4192_v7  ;;  %3789 = vmatpush1.bf16.msra.mxu1 %v4194_v45  ;;  %v396_v7 = vld [vmem:[%s6199_s1 + $0xbb0] sm:$0xff]  ;;  %v393_v45 = vld [vmem:[%s6199_s1 + $0xb98] sm:$0xff] }
 0x19b   :  { %3618 = vmatprep.subr.bf16.mxu0 %v4201_v46  ;;  %3790 = vmatprep.subr.bf16.mxu1 %v4203_v8  ;;  %v397_v46 = vld [vmem:[%s6199_s1 + $0xbb8] sm:$0xff]  ;;  %v4256_v8 = vcombine.low %v384_v61, %v388_v62  ;;  %v4265_v10 = vcombine.high %v392_v6, %v396_v7 }
 0x19c   :  { %v4267_v11 = vcombine.high %v393_v45, %v397_v46  ;;  %v4266_v53 = vcombine.low %v393_v45, %v397_v46 }
 0x19e   :  { %3619 = vmatpush1.bf16.msra.mxu0 %v4200_v13  ;;  %3791 = vmatpush1.bf16.msra.mxu1 %v4202_v14  ;;  %v404_v13 = vld [vmem:[%s6199_s1 + $0xbf0] sm:$0xff]  ;;  %v401_v14 = vld [vmem:[%s6199_s1 + $0xbd8] sm:$0xff] }
 0x19f   :  { %3620 = vmatprep.subr.bf16.mxu0 %v4209_v16  ;;  %3792 = vmatprep.subr.bf16.mxu1 %v4211_v19  ;;  %v405_v16 = vld [vmem:[%s6199_s1 + $0xbf8] sm:$0xff]  ;;  %v4264_v19 = vcombine.low %v392_v6, %v396_v7  ;;  %v4273_v54 = vcombine.high %v400_v12, %v404_v13  ;;  %v6012_v7 = vld [vmem:[%s6201_s2] sm:$0xff] }
 0x1a0   :  { %v4275_v20 = vcombine.high %v401_v14, %v405_v16  ;;  %v4274_v26 = vcombine.low %v401_v14, %v405_v16  ;;  %v457_v16 = vld [vmem:[%s6199_s1 + $0xd98] sm:$0xff] }
 0x1a2   :  { %3621 = vmatpush1.bf16.msra.mxu0 %v4208_v22  ;;  %3793 = vmatpush1.bf16.msra.mxu1 %v4210_v24  ;;  %v412_v22 = vld [vmem:[%s6199_s1 + $0xc30] sm:$0xff]  ;;  %v409_v24 = vld [vmem:[%s6199_s1 + $0xc18] sm:$0xff] }
 0x1a3   :  { %3622 = vmatprep.subr.bf16.mxu0 %v4217_v25  ;;  %3794 = vmatprep.subr.bf16.mxu1 %v4219_v58  ;;  %v413_v25 = vld [vmem:[%s6199_s1 + $0xc38] sm:$0xff]  ;;  %v4272_v58 = vcombine.low %v400_v12, %v404_v13  ;;  %v4281_v28 = vcombine.high %v408_v21, %v412_v22  ;;  %v456_v12 = vld [vmem:[%s6199_s1 + $0xd90] sm:$0xff] }
 0x1a4   :  { %v4283_v31 = vcombine.high %v409_v24, %v413_v25  ;;  %v4282_v34 = vcombine.low %v409_v24, %v413_v25  ;;  %v460_v13 = vld [vmem:[%s6199_s1 + $0xdb0] sm:$0xff] }
 0x1a5   :  { %v4329_v24 = vcombine.high %v456_v12, %v460_v13 }
 0x1a6   :  { %3623 = vmatpush1.bf16.msra.mxu0 %v4216_v18  ;;  %3795 = vmatpush1.bf16.msra.mxu1 %v4218_v15  ;;  %v420_v18 = vld [vmem:[%s6199_s1 + $0xc70] sm:$0xff]  ;;  %v417_v15 = vld [vmem:[%s6199_s1 + $0xc58] sm:$0xff] }
 0x1a7   :  { %3624 = vmatprep.subr.bf16.mxu0 %v4225_v32  ;;  %3796 = vmatprep.subr.bf16.mxu1 %v4227_v33  ;;  %v421_v32 = vld [vmem:[%s6199_s1 + $0xc78] sm:$0xff]  ;;  %v4280_v33 = vcombine.low %v408_v21, %v412_v22  ;;  %v4289_v36 = vcombine.high %v416_v17, %v420_v18 }
 0x1a8   :  { %v4291_v37 = vcombine.high %v417_v15, %v421_v32  ;;  %v4290_v41 = vcombine.low %v417_v15, %v421_v32  ;;  %v465_v15 = vld [vmem:[%s6199_s1 + $0xdd8] sm:$0xff] }
 0x1a9   :  { %v469_v32 = vld [vmem:[%s6199_s1 + $0xdf8] sm:$0xff] }
 0x1aa   :  { %3625 = vmatpush1.bf16.msra.mxu0 %v4224_v39  ;;  %3797 = vmatpush1.bf16.msra.mxu1 %v4226_v23  ;;  %v428_v39 = vld [vmem:[%s6199_s1 + $0xcb0] sm:$0xff]  ;;  %v425_v23 = vld [vmem:[%s6199_s1 + $0xc98] sm:$0xff] }
 0x1ab   :  { %3626 = vmatprep.subr.bf16.mxu0 %v4233_v40  ;;  %3798 = vmatprep.subr.bf16.mxu1 %v4235_v27  ;;  %v429_v40 = vld [vmem:[%s6199_s1 + $0xcb8] sm:$0xff]  ;;  %v4288_v27 = vcombine.low %v416_v17, %v420_v18  ;;  %v4297_v42 = vcombine.high %v424_v38, %v428_v39 }
 0x1ac   :  { %v4299_v44 = vcombine.high %v425_v23, %v429_v40  ;;  %v4298_v49 = vcombine.low %v425_v23, %v429_v40 }
 0x1ae   :  { %3627 = vmatpush1.bf16.msra.mxu0 %v4232_v29  ;;  %3799 = vmatpush1.bf16.msra.mxu1 %v4234_v30  ;;  %v436_v29 = vld [vmem:[%s6199_s1 + $0xcf0] sm:$0xff]  ;;  %v437_v30 = vld [vmem:[%s6199_s1 + $0xcf8] sm:$0xff] }
 0x1af   :  { %3628 = vmatprep.subr.bf16.mxu0 %v4241_v48  ;;  %3800 = vmatprep.subr.bf16.mxu1 %v4243_v35  ;;  %v536_v48 = vlaneseq  ;;  %v4296_v35 = vcombine.low %v424_v38, %v428_v39  ;;  %v4305_v50 = vcombine.high %v432_v47, %v436_v29  ;;  %v4328_v38 = vcombine.low %v456_v12, %v460_v13  ;;  %v500_v12 = vld [vmem:[%s6199_s1 + $0xef0] sm:$0xff]  ;;  %v497_v13 = vld [vmem:[%s6199_s1 + $0xed8] sm:$0xff] }
 0x1b2   :  { %3629 = vmatpush1.bf16.msra.mxu0 %v4240_v56  ;;  %3801 = vmatpush1.bf16.msra.mxu1 %v4242_v57  ;;  %v444_v56 = vld [vmem:[%s6199_s1 + $0xd30] sm:$0xff]  ;;  %v445_v57 = vld [vmem:[%s6199_s1 + $0xd38] sm:$0xff] }
 0x1b3   :  { %3630 = vmatprep.subr.bf16.mxu0 %v4249_v59  ;;  %3802 = vmatprep.subr.bf16.mxu1 %v4251_v60  ;;  %v5994_v59 = vshrl.u32 %v536_v48, 7  ;;  %v4304_v60 = vcombine.low %v432_v47, %v436_v29  ;;  %v4313_v62 = vcombine.high %v440_v55, %v444_v56  ;;  %v4312_v6 = vcombine.low %v440_v55, %v444_v56  ;;  %v476_v48 = vld [vmem:[%s6199_s1 + $0xe30] sm:$0xff] }
 0x1b4   :  { %v4338_v55 = vcombine.low %v465_v15, %v469_v32 }
 0x1b5   :  { %v546_v45 = vsub.s32 2, %v5994_v59  ;;  %v542_v46 = vsub.s32 1, %v5994_v59 }
 0x1b6   :  { %3631 = vmatpush1.bf16.msra.mxu0 %v4248_v2  ;;  %3803 = vmatpush1.bf16.msra.mxu1 %v4250_v3  ;;  %v452_v2 = vld [vmem:[%s6199_s1 + $0xd70] sm:$0xff]  ;;  %v538_v3 = vsub.s32 0, %v5994_v59 }
 0x1b7   :  { %3632 = vmatprep.subr.bf16.mxu0 %v4257_v4  ;;  %3804 = vmatprep.subr.bf16.mxu1 %v4259_v5  ;;  %v449_v4 = vld [vmem:[%s6199_s1 + $0xd58] sm:$0xff] }
 0x1b8   :  { %v453_v5 = vld [vmem:[%s6199_s1 + $0xd78] sm:$0xff]  ;;  %v539_v14 = vrot.slane %v6012_v7, %v538_v3 }
 0x1b9   :  { %v4322_v22 = vcombine.low %v449_v4, %v453_v5 }
 0x1ba   :  { %3633 = vmatpush1.bf16.msra.mxu0 %v4256_v8  ;;  %3805 = vmatpush1.bf16.msra.mxu1 %v4258_v9  ;;  %v550_v9 = vsub.s32 3, %v5994_v59 }
 0x1bb   :  { %3634 = vmatprep.subr.bf16.mxu0 %v4265_v10  ;;  %3806 = vmatprep.subr.bf16.mxu1 %v4267_v11  ;;  %v4321_v10 = vcombine.high %v448_v0, %v452_v2  ;;  %v4323_v11 = vcombine.high %v449_v4, %v453_v5  ;;  %v488_v4 = vld [vmem:[%s6199_s1 + $0xe90] sm:$0xff] }
 0x1bc   :  { %v551_v21 = vrot.slane %v6012_v7, %v550_v9  ;;  %v492_v5 = vld [vmem:[%s6199_s1 + $0xeb0] sm:$0xff] }
 0x1bd   :  { %v4361_v9 = vcombine.high %v488_v4, %v492_v5 }
 0x1be   :  { %3635 = vmatpush1.bf16.msra.mxu0 %v4264_v19  ;;  %3807 = vmatpush1.bf16.msra.mxu1 %v4266_v53  ;;  %v461_v19 = vld [vmem:[%s6199_s1 + $0xdb8] sm:$0xff]  ;;  %v547_v53 = vrot.slane %v6012_v7, %v546_v45 }
 0x1bf   :  { %3636 = vmatprep.subr.bf16.mxu0 %v4273_v54  ;;  %3808 = vmatprep.subr.bf16.mxu1 %v4275_v20  ;;  %v543_v54 = vrot.slane %v6012_v7, %v542_v46  ;;  %v4320_v20 = vcombine.low %v448_v0, %v452_v2  ;;  %v4330_v39 = vcombine.low %v457_v16, %v461_v19  ;;  %v493_v45 = vld [vmem:[%s6199_s1 + $0xeb8] sm:$0xff] }
 0x1c2   :  { %3637 = vmatpush1.bf16.msra.mxu0 %v4272_v58  ;;  %3809 = vmatpush1.bf16.msra.mxu1 %v4274_v26  ;;  %v4331_v58 = vcombine.high %v457_v16, %v461_v19  ;;  %v464_v26 = vld [vmem:[%s6199_s1 + $0xdd0] sm:$0xff]  ;;  %v4360_v16 = vcombine.low %v488_v4, %v492_v5 }
 0x1c3   :  { %3649 = vmatprep.subr.bf16.mxu0 %v4281_v28  ;;  %3821 = vmatprep.subr.bf16.mxu1 %v4283_v31  ;;  %v468_v28 = vld [vmem:[%s6199_s1 + $0xdf0] sm:$0xff] }
 0x1c5   :  { %3639 = vmatmul.mubr.bf16.vlgmr.msra.gmra.mrb[4].mxu0 %v5147_v43  ;;  %3811 = vmatmul.mubr.bf16.vlgmr.msra.gmra.mrb[4].mxu1 %v5147_v43  ;;  %v433_v43 = vld [vmem:[%s6199_s1 + $0xcd8] sm:$0xff] }
 0x1c6   :  { %3650 = vmatpush1.bf16.msra.mxu0 %v4280_v33  ;;  %3822 = vmatpush1.bf16.msra.mxu1 %v4282_v34  ;;  %v4307_v52 = vcombine.high %v433_v43, %v437_v30  ;;  %v4306_v61 = vcombine.low %v433_v43, %v437_v30  ;;  %v4339_v43 = vcombine.high %v465_v15, %v469_v32  ;;  %v472_v30 = vld [vmem:[%s6199_s1 + $0xe10] sm:$0xff]  ;;  %v517_v15 = vld [vmem:[%s6199_s1 + $0xf78] sm:$0xff] }
 0x1c7   :  { %3651 = vmatprep.subr.bf16.mxu0 %v4289_v36  ;;  %3823 = vmatprep.subr.bf16.mxu1 %v4291_v37  ;;  %v4345_v56 = vcombine.high %v472_v30, %v476_v48 }
 0x1c8   :  { %3681 = vmatprep.mubr.bf16.mxu0 %v5170_v51  ;;  %3853 = vmatprep.mubr.bf16.mxu1 %v5170_v51  ;;  %v441_v51 = vld [vmem:[%s6199_s1 + $0xd18] sm:$0xff] }
 0x1c9   :  { %v4315_v63 = vcombine.high %v441_v51, %v445_v57  ;;  %v4314_v8 = vcombine.low %v441_v51, %v445_v57  ;;  %v480_v57 = vld [vmem:[%s6199_s1 + $0xe50] sm:$0xff] }
 0x1ca   :  { %3652 = vmatpush1.bf16.msra.mxu0 %v4288_v27  ;;  %3824 = vmatpush1.bf16.msra.mxu1 %v4290_v41 }
 0x1cb   :  { %3653 = vmatprep.subr.bf16.mxu0 %v4297_v42  ;;  %3825 = vmatprep.subr.bf16.mxu1 %v4299_v44  ;;  %v4337_v42 = vcombine.high %v464_v26, %v468_v28 }
 0x1ce   :  { %3654 = vmatpush1.bf16.msra.mxu0 %v4296_v35  ;;  %3826 = vmatpush1.bf16.msra.mxu1 %v4298_v49  ;;  %v473_v49 = vld [vmem:[%s6199_s1 + $0xe18] sm:$0xff] }
 0x1cf   :  { %3655 = vmatprep.subr.bf16.mxu0 %v4305_v50  ;;  %3827 = vmatprep.subr.bf16.mxu1 %v4307_v52  ;;  %v477_v50 = vld [vmem:[%s6199_s1 + $0xe38] sm:$0xff]  ;;  %v4336_v52 = vcombine.low %v464_v26, %v468_v28 }
 0x1d0   :  { %v4347_v51 = vcombine.high %v473_v49, %v477_v50  ;;  %v4346_v0 = vcombine.low %v473_v49, %v477_v50 }
 0x1d2   :  { %3656 = vmatpush1.bf16.msra.mxu0 %v4304_v60  ;;  %3828 = vmatpush1.bf16.msra.mxu1 %v4306_v61  ;;  %v484_v60 = vld [vmem:[%s6199_s1 + $0xe70] sm:$0xff]  ;;  %v481_v61 = vld [vmem:[%s6199_s1 + $0xe58] sm:$0xff] }
 0x1d3   :  { %3657 = vmatprep.subr.bf16.mxu0 %v4313_v62  ;;  %3829 = vmatprep.subr.bf16.mxu1 %v4315_v63  ;;  %v485_v62 = vld [vmem:[%s6199_s1 + $0xe78] sm:$0xff]  ;;  %v4344_v63 = vcombine.low %v472_v30, %v476_v48  ;;  %v4353_v2 = vcombine.high %v480_v57, %v484_v60  ;;  %v4352_v46 = vcombine.low %v480_v57, %v484_v60  ;;  %v566_v57 = vsub.s32 7, %v5994_v59 }
 0x1d4   :  { %v4355_v3 = vcombine.high %v481_v61, %v485_v62 }
 0x1d6   :  { %3658 = vmatpush1.bf16.msra.mxu0 %v4312_v6  ;;  %3830 = vmatpush1.bf16.msra.mxu1 %v4314_v8  ;;  %v489_v6 = vld [vmem:[%s6199_s1 + $0xe98] sm:$0xff]  ;;  %v4354_v8 = vcombine.low %v481_v61, %v485_v62 }
 0x1d7   :  { %3659 = vmatprep.subr.bf16.mxu0 %v4321_v10  ;;  %3831 = vmatprep.subr.bf16.mxu1 %v4323_v11  ;;  %v4363_v10 = vcombine.high %v489_v6, %v493_v45  ;;  %v496_v11 = vld [vmem:[%s6199_s1 + $0xed0] sm:$0xff]  ;;  %v4362_v19 = vcombine.low %v489_v6, %v493_v45 }
 0x1d8   :  { %v3339_v25 = vpop.f32.mrb[0].mxu0  ;;  %v3511_v17 = vpop.f32.mrb[0].mxu1 }
 0x1d9   :  { %v4404_v31 = vadd.f32 %v3339_v25, %v539_v14  ;;  %v3341_v18 = vpop.f32.mrb[1].mxu0  ;;  %v4408_v33 = vadd.f32 %v3511_v17, %v547_v53  ;;  %v3513_v36 = vpop.f32.mrb[1].mxu1  ;;  %v4368_v25 = vcombine.low %v496_v11, %v500_v12  ;;  %v516_v17 = vld [vmem:[%s6199_s1 + $0xf70] sm:$0xff] }
 0x1da   :  { %v4405_v34 = vadd.f32 %v3341_v18, %v543_v54  ;;  %v3343_v37 = vpop.f32.mrb[2].mxu0  ;;  %3660 = vmatpush1.bf16.msra.mxu0 %v4320_v20  ;;  %v4409_v23 = vadd.f32 %v3513_v36, %v551_v21  ;;  %v3515_v27 = vpop.f32.mrb[2].mxu1  ;;  %3832 = vmatpush1.bf16.msra.mxu1 %v4322_v22  ;;  %v504_v20 = vld [vmem:[%s6199_s1 + $0xf10] sm:$0xff]  ;;  %v505_v22 = vld [vmem:[%s6199_s1 + $0xf18] sm:$0xff] }
 0x1db   :  { %3864 = vst [vmem:[%s6202_s3] sm:$0xff] %v4404_v31  ;;  %v4406_v40 = vadd.f32 %v3343_v37, %v539_v14  ;;  %v3345_v41 = vpop.f32.mrb[3].mxu0  ;;  %3661 = vmatprep.subr.bf16.mxu0 %v4329_v24  ;;  %3866 = vst [vmem:[%s6202_s3 + $0x10] sm:$0xff] %v4408_v33  ;;  %v4410_v44 = vadd.f32 %v3515_v27, %v547_v53  ;;  %v3517_v29 = vpop.f32.mrb[3].mxu1  ;;  %3833 = vmatprep.subr.bf16.mxu1 %v4331_v58  ;;  %v501_v14 = vld [vmem:[%s6199_s1 + $0xef8] sm:$0xff]  ;;  %v512_v31 = vld [vmem:[%s6199_s1 + $0xf50] sm:$0xff] }
 0x1dc   :  { %3865 = vst [vmem:[%s6202_s3 + $0x8] sm:$0xff] %v4405_v34  ;;  %v4407_v47 = vadd.f32 %v3345_v41, %v543_v54  ;;  %3867 = vst [vmem:[%s6202_s3 + $0x18] sm:$0xff] %v4409_v23  ;;  %v4411_v35 = vadd.f32 %v3517_v29, %v551_v21  ;;  %v4369_v53 = vcombine.high %v496_v11, %v500_v12  ;;  %v508_v21 = vld [vmem:[%s6199_s1 + $0xf30] sm:$0xff]  ;;  %v509_v24 = vld [vmem:[%s6199_s1 + $0xf38] sm:$0xff] }
 0x1dd   :  { %3872 = vst [vmem:[%s6202_s3 + $0x40] sm:$0xff] %v4406_v40  ;;  %3874 = vst [vmem:[%s6202_s3 + $0x50] sm:$0xff] %v4410_v44  ;;  %v4371_v54 = vcombine.high %v497_v13, %v501_v14  ;;  %v4370_v58 = vcombine.low %v497_v13, %v501_v14  ;;  %v4377_v26 = vcombine.high %v504_v20, %v508_v21  ;;  %v513_v18 = vld [vmem:[%s6199_s1 + $0xf58] sm:$0xff]  ;;  %v520_v37 = vld [vmem:[%s6199_s1 + $0xf90] sm:$0xff] }
 0x1de   :  { %3873 = vst [vmem:[%s6202_s3 + $0x48] sm:$0xff] %v4407_v47  ;;  %3662 = vmatpush1.bf16.msra.mxu0 %v4328_v38  ;;  %3875 = vst [vmem:[%s6202_s3 + $0x58] sm:$0xff] %v4411_v35  ;;  %3834 = vmatpush1.bf16.msra.mxu1 %v4330_v39  ;;  %v4379_v28 = vcombine.high %v505_v22, %v509_v24  ;;  %v4376_v32 = vcombine.low %v504_v20, %v508_v21  ;;  %v524_v38 = vld [vmem:[%s6199_s1 + $0xfb0] sm:$0xff]  ;;  %v521_v39 = vld [vmem:[%s6199_s1 + $0xf98] sm:$0xff] }
 0x1df   :  { %3663 = vmatprep.subr.bf16.mxu0 %v4337_v42  ;;  %3835 = vmatprep.subr.bf16.mxu1 %v4339_v43  ;;  %v4378_v33 = vcombine.low %v505_v22, %v509_v24  ;;  %v4385_v34 = vcombine.high %v512_v31, %v516_v17  ;;  %v4387_v36 = vcombine.high %v513_v18, %v517_v15  ;;  %v525_v23 = vld [vmem:[%s6199_s1 + $0xfb8] sm:$0xff]  ;;  %v528_v44 = vld [vmem:[%s6199_s1 + $0xfd0] sm:$0xff] }
 0x1e0   :  { %v4384_v40 = vcombine.low %v512_v31, %v516_v17  ;;  %v4386_v27 = vcombine.low %v513_v18, %v517_v15  ;;  %v4393_v41 = vcombine.high %v520_v37, %v524_v38  ;;  %v4395_v42 = vcombine.high %v521_v39, %v525_v23  ;;  %v532_v47 = vld [vmem:[%s6199_s1 + $0xff0] sm:$0xff]  ;;  %v529_v29 = vld [vmem:[%s6199_s1 + $0xfd8] sm:$0xff] }
 0x1e1   :  { %v533_v43 = vld [vmem:[%s6199_s1 + $0xff8] sm:$0xff]  ;;  %v4392_v30 = vcombine.low %v520_v37, %v524_v38  ;;  %v4394_v48 = vcombine.low %v521_v39, %v525_v23  ;;  %v4401_v35 = vcombine.high %v528_v44, %v532_v47  ;;  %v4400_v50 = vcombine.low %v528_v44, %v532_v47 }
 0x1e2   :  { %3664 = vmatpush1.bf16.msra.mxu0 %v4336_v52  ;;  %3836 = vmatpush1.bf16.msra.mxu1 %v4338_v55  ;;  %v4403_v49 = vcombine.high %v529_v29, %v533_v43  ;;  %v4402_v52 = vcombine.low %v529_v29, %v533_v43  ;;  %v554_v55 = vsub.s32 4, %v5994_v59 }
 0x1e3   :  { %3665 = vmatprep.subr.bf16.mxu0 %v4345_v56  ;;  %3837 = vmatprep.subr.bf16.mxu1 %v4347_v51  ;;  %v562_v56 = vsub.s32 6, %v5994_v59  ;;  %v558_v51 = vsub.s32 5, %v5994_v59 }
 0x1e4   :  { %v555_v60 = vrot.slane %v6012_v7, %v554_v55 }
 0x1e5   :  { %v563_v61 = vrot.slane %v6012_v7, %v562_v56  ;;  %v559_v62 = vrot.slane %v6012_v7, %v558_v51 }
 0x1e6   :  { %3666 = vmatpush1.bf16.msra.mxu0 %v4344_v63  ;;  %3838 = vmatpush1.bf16.msra.mxu1 %v4346_v0  ;;  %v567_v63 = vrot.slane %v6012_v7, %v566_v57 }
 0x1e7   :  { %3667 = vmatprep.subr.bf16.mxu0 %v4353_v2  ;;  %3839 = vmatprep.subr.bf16.mxu1 %v4355_v3 }
 0x1ea   :  { %3668 = vmatpush1.bf16.msra.mxu0 %v4352_v46  ;;  %3840 = vmatpush1.bf16.msra.mxu1 %v4354_v8 }
 0x1eb   :  { %3669 = vmatprep.subr.bf16.mxu0 %v4361_v9  ;;  %3841 = vmatprep.subr.bf16.mxu1 %v4363_v10 }
 0x1ee   :  { %3670 = vmatpush1.bf16.msra.mxu0 %v4360_v16  ;;  %3842 = vmatpush1.bf16.msra.mxu1 %v4362_v19 }
 0x1ef   :  { %3671 = vmatprep.subr.bf16.mxu0 %v4369_v53  ;;  %3843 = vmatprep.subr.bf16.mxu1 %v4371_v54 }
 0x1f2   :  { %3672 = vmatpush1.bf16.msra.mxu0 %v4368_v25  ;;  %3844 = vmatpush1.bf16.msra.mxu1 %v4370_v58 }
 0x1f3   :  { %3673 = vmatprep.subr.bf16.mxu0 %v4377_v26  ;;  %3845 = vmatprep.subr.bf16.mxu1 %v4379_v28 }
 0x1f6   :  { %3674 = vmatpush1.bf16.msra.mxu0 %v4376_v32  ;;  %3846 = vmatpush1.bf16.msra.mxu1 %v4378_v33 }
 0x1f7   :  { %3675 = vmatprep.subr.bf16.mxu0 %v4385_v34  ;;  %3847 = vmatprep.subr.bf16.mxu1 %v4387_v36 }
 0x1fa   :  { %3676 = vmatpush1.bf16.msra.mxu0 %v4384_v40  ;;  %3848 = vmatpush1.bf16.msra.mxu1 %v4386_v27 }
 0x1fb   :  { %3677 = vmatprep.subr.bf16.mxu0 %v4393_v41  ;;  %3849 = vmatprep.subr.bf16.mxu1 %v4395_v42 }
 0x1fe   :  { %3678 = vmatpush1.bf16.msra.mxu0 %v4392_v30  ;;  %3850 = vmatpush1.bf16.msra.mxu1 %v4394_v48 }
 0x1ff   :  { %3679 = vmatprep.subr.bf16.mxu0 %v4401_v35  ;;  %3851 = vmatprep.subr.bf16.mxu1 %v4403_v49 }
 0x202   :  { %3680 = vmatpush1.bf16.msra.mxu0 %v4400_v50  ;;  %3852 = vmatpush1.bf16.msra.mxu1 %v4402_v52 }
 0x205   :  { %3682 = vmatmul.mubr.bf16.vlgmr.msra.gmra.mrb[4].mxu0 %v5358_v1  ;;  %3854 = vmatmul.mubr.bf16.vlgmr.msra.gmra.mrb[4].mxu1 %v5358_v1 }
 0x2d8   :  { %v3683_v0 = vpop.f32.mrb[4].mxu0  ;;  %v3855_v3 = vpop.f32.mrb[4].mxu1 }
 0x2d9   :  { %v4412_v2 = vadd.f32 %v3683_v0, %v555_v60  ;;  %v3685_v1 = vpop.f32.mrb[5].mxu0  ;;  %v4416_v4 = vadd.f32 %v3855_v3, %v563_v61  ;;  %v3857_v6 = vpop.f32.mrb[5].mxu1 }
 0x2da   :  { %v4413_v5 = vadd.f32 %v3685_v1, %v559_v62  ;;  %v3687_v45 = vpop.f32.mrb[6].mxu0  ;;  %v4417_v59 = vadd.f32 %v3857_v6, %v567_v63  ;;  %v3859_v8 = vpop.f32.mrb[6].mxu1 }
 0x2db   :  { %3868 = vst [vmem:[%s6202_s3 + $0x20] sm:$0xff] %v4412_v2  ;;  %v4414_v46 = vadd.f32 %v3687_v45, %v555_v60  ;;  %v3689_v9 = vpop.f32.mrb[7].mxu0  ;;  %3870 = vst [vmem:[%s6202_s3 + $0x30] sm:$0xff] %v4416_v4  ;;  %v4418_v7 = vadd.f32 %v3859_v8, %v563_v61  ;;  %v3861_v11 = vpop.f32.mrb[7].mxu1 }
 0x2dc   :  { %3869 = vst [vmem:[%s6202_s3 + $0x28] sm:$0xff] %v4413_v5  ;;  %v4415_v10 = vadd.f32 %v3689_v9, %v559_v62  ;;  %3871 = vst [vmem:[%s6202_s3 + $0x38] sm:$0xff] %v4417_v59  ;;  %v4419_v12 = vadd.f32 %v3861_v11, %v567_v63 }
 0x2dd   :  { %3876 = vst [vmem:[%s6202_s3 + $0x60] sm:$0xff] %v4414_v46  ;;  %3878 = vst [vmem:[%s6202_s3 + $0x70] sm:$0xff] %v4418_v7 }
 0x2de   :  { %3877 = vst [vmem:[%s6202_s3 + $0x68] sm:$0xff] %v4415_v10  ;;  %3879 = vst [vmem:[%s6202_s3 + $0x78] sm:$0xff] %v4419_v12 }

</bundles_post_ra>
